<compile_context>
chip_gen: v7x
topology: tpu7x:2x2x1
jax: 0.10.0
libtpu: 0.0.40
codegen_flags: <defaults>
</compile_context>

<pallas_src>
import functools

import numpy as np
import jax
import jax.numpy as jnp
from jax.experimental import pallas as pl
from jax.experimental.pallas import tpu as pltpu

NEG_SLOPE = 0.1
BN_EPS = 1e-5


# --------------------------------------------------------------------------- kernel
def _fused_kernel(p_ref, x_ref, br_ref, duph_ref, dupw_ref, o_ref, pad_ref, *,
                  layout, cin, c0, h, w, hq, wq):
    """One grid step == one batch element.

    p_ref    : (P,) f32 in SMEM     -- all folded conv weights / biases, flat
    x_ref    : (cin, h,  w )        -- low-res input  (batch dim squeezed)
    br_ref   : (cin, hq, wq)        -- high-res branch input
    duph_ref : (hq, h)  f32         -- 0/1 row-duplication matrix (nearest x2)
    dupw_ref : (w,  wq) f32         -- 0/1 col-duplication matrix (nearest x2)
    o_ref    : (c0, hq, wq)         -- output
    pad_ref  : (c0, hq+2, wq+2)     -- VMEM scratch: zero halo for the 3x3 convs
    """
    f32 = jnp.float32

    def pget(name, *idx):                       # static scalar read from SMEM
        off, shape = layout[name]
        flat = 0
        for i, s in zip(idx, shape):
            flat = flat * s + i
        return p_ref[off + flat]

    def leaky(v):
        return jnp.where(v > 0, v, NEG_SLOPE * v)

    def conv1x1(planes, name, cout, hh, ww):    # 1x1 conv + folded BN + leaky (VPU FMA)
        out = []
        for co in range(cout):
            acc = jnp.zeros((hh, ww), f32) + pget(name + "_b", co)
            for ci in range(len(planes)):
                acc = acc + pget(name, co, ci) * planes[ci]
            out.append(leaky(acc))
        return out

    def conv3x3(planes, name, cout):            # 3x3 conv (pad=1) + folded BN + leaky
        for ci in range(len(planes)):           # halo lives in the VMEM scratch
            pad_ref[ci, 1:hq + 1, 1:wq + 1] = planes[ci]
        acc = [jnp.zeros((hq, wq), f32) + pget(name + "_b", co) for co in range(cout)]
        for ci in range(len(planes)):
            for ky in range(3):
                for kx in range(3):
                    tap = pad_ref[ci, ky:ky + hq, kx:kx + wq]
                    for co in range(cout):
                        acc[co] = acc[co] + pget(name, co, ci, ky, kx) * tap
        return [leaky(a) for a in acc]

    duph = duph_ref[...]
    dupw = dupw_ref[...]

    def up2x(plane):
        # Exact nearest-neighbour 2x upsample as two 0/1 selector matmuls (the MXU is
        # otherwise idle here).  The 3-way bf16 split (8+8+8 mantissa bits) keeps the
        # result bit-exact even if each f32 dot is executed as a single bf16 MXU pass.
        hi = plane.astype(jnp.bfloat16).astype(f32)
        rem = plane - hi
        mid = rem.astype(jnp.bfloat16).astype(f32)
        lo = rem - mid
        out = jnp.zeros((hq, wq), f32)
        for part in (hi, mid, lo):
            r = jnp.dot(duph, part, preferred_element_type=f32)          # (hq, w)
            out = out + jnp.dot(r, dupw, preferred_element_type=f32)     # (hq, wq)
        return out

    # zero the halo scratch each step (cheap, and megacore-safe); interiors are
    # overwritten by the conv3x3 calls below before they are read.
    pad_ref[...] = jnp.zeros((c0, hq + 2, wq + 2), f32)

    # ---- low-res path: neck_in (1x1) and the x-half of out0 (1x1), fused at low res
    xs = [x_ref[ci].astype(f32) for ci in range(cin)]
    t = conv1x1(xs, "neck_in", c0, h, w)
    zup = []
    for co in range(c0):
        acc = jnp.zeros((h, w), f32)
        for ci in range(c0):
            acc = acc + pget("out0_hi", co, ci) * t[ci]
        zup.append(up2x(acc))                   # UpSampleExpand(2), no HBM round trip

    # ---- high-res path: neck_branch (1x1)
    brs = [br_ref[ci].astype(f32) for ci in range(cin)]
    u = conv1x1(brs, "neck_branch", c0, hq, wq)

    # ---- out0: 1x1 over cat([branch_feat, upsampled_x_feat]); the concat is folded away
    a = []
    for co in range(c0):
        acc = zup[co] + pget("out0_b", co)
        for ci in range(c0):
            acc = acc + pget("out0_lo", co, ci) * u[ci]
        a.append(leaky(acc))

    # ---- neck_out chain: every intermediate stays in VMEM / vregs
    a = conv3x3(a, "out1", cin)
    a = conv1x1(a, "out2", c0, hq, wq)
    a = conv3x3(a, "out3", cin)
    a = conv1x1(a, "out4", c0, hq, wq)

    for co in range(c0):
        o_ref[co] = a[co].astype(o_ref.dtype)


# --------------------------------------------------------------------------- wrapper
def subneck_forward(x, branch, packed, dup_h, dup_w, *, layout):
    B, cin, h, w = x.shape
    c0 = cin // 2
    hq, wq = branch.shape[2], branch.shape[3]
    assert (hq, wq) == (2 * h, 2 * w) and branch.shape[1] == cin

    kernel = functools.partial(_fused_kernel, layout=layout, cin=cin, c0=c0,
                               h=h, w=w, hq=hq, wq=wq)
    # TODO(synk): for large feature maps add a row-tile grid axis with a 2-row halo
    #             (v7x has only 64 MiB VMEM), and an MXU/NHWC tiled path for C >= 128.
    return pl.pallas_call(
        kernel,
        out_shape=jax.ShapeDtypeStruct((B, c0, hq, wq), x.dtype),
        grid_spec=pltpu.PrefetchScalarGridSpec(
            num_scalar_prefetch=0,
            grid=(B,),
            in_specs=[
                pl.BlockSpec(memory_space=pltpu.MemorySpace.SMEM),           # params
                pl.BlockSpec((None, cin, h, w), lambda b: (b, 0, 0, 0)),     # x
                pl.BlockSpec((None, cin, hq, wq), lambda b: (b, 0, 0, 0)),   # branch
                pl.BlockSpec((hq, h), lambda b: (0, 0)),                     # dup_h
                pl.BlockSpec((w, wq), lambda b: (0, 0)),                     # dup_w
            ],
            out_specs=pl.BlockSpec((None, c0, hq, wq), lambda b: (b, 0, 0, 0)),
            scratch_shapes=[pltpu.VMEM((c0, hq + 2, wq + 2), jnp.float32)],
        ),
        compiler_params=pltpu.CompilerParams(dimension_semantics=("parallel",)),
    )(packed, x, branch, dup_h, dup_w)


# ------------------------------------------------------------- params (BN folded) ---
def init_conv_bn(key, cin, cout, k):
    kw, kg, kb, km, kv = jax.random.split(key, 5)
    w = jax.random.normal(kw, (cout, cin, k, k), jnp.float32) / np.sqrt(cin * k * k)
    gamma = 1.0 + 0.1 * jax.random.normal(kg, (cout,), jnp.float32)
    beta = 0.1 * jax.random.normal(kb, (cout,), jnp.float32)
    mean = 0.1 * jax.random.normal(km, (cout,), jnp.float32)
    var = jax.random.uniform(kv, (cout,), jnp.float32, minval=0.5, maxval=1.5)
    scale = gamma / jnp.sqrt(var + BN_EPS)
    bias = beta - mean * scale
    return (w, scale, bias)


def fold_and_pack(raw, c):
    """Fold BN scale into the conv weights and pack everything into one flat f32 vector."""
    c0 = c // 2

    def folded(name):
        w, scale, bias = raw[name]
        w = np.asarray(w, np.float32) * np.asarray(scale, np.float32)[:, None, None, None]
        return w, np.asarray(bias, np.float32)

    entries = []
    def add(name, arr):
        entries.append((name, np.asarray(arr, np.float32)))

    w, b = folded("neck_in");     add("neck_in", w[:, :, 0, 0]);     add("neck_in_b", b)
    w, b = folded("neck_branch"); add("neck_branch", w[:, :, 0, 0]); add("neck_branch_b", b)
    w, b = folded("out0")
    add("out0_lo", w[:, :c0, 0, 0]); add("out0_hi", w[:, c0:, 0, 0]); add("out0_b", b)
    w, b = folded("out1");        add("out1", w);                    add("out1_b", b)
    w, b = folded("out2");        add("out2", w[:, :, 0, 0]);        add("out2_b", b)
    w, b = folded("out3");        add("out3", w);                    add("out3_b", b)
    w, b = folded("out4");        add("out4", w[:, :, 0, 0]);        add("out4_b", b)

    layout, flat, pos = {}, [], 0
    for name, arr in entries:
        layout[name] = (pos, arr.shape)
        flat.append(arr.reshape(-1))
        pos += arr.size
    return jnp.asarray(np.concatenate(flat)), layout


def make_dup_matrices(h, w):
    hq, wq = 2 * h, 2 * w
    dup_h = np.zeros((hq, h), np.float32)
    dup_h[np.arange(hq), np.arange(hq) // 2] = 1.0
    dup_w = np.zeros((w, wq), np.float32)
    dup_w[np.arange(wq) // 2, np.arange(wq)] = 1.0
    return jnp.asarray(dup_h), jnp.asarray(dup_w)


# ------------------------------------------------------------ pure-JAX reference ----
def reference_forward(x, branch, raw):
    def cbl(v, name, k):
        w, scale, bias = raw[name]
        pad = (k - 1) // 2
        y = jax.lax.conv_general_dilated(
            v, w, window_strides=(1, 1), padding=[(pad, pad), (pad, pad)],
            dimension_numbers=("NCHW", "OIHW", "NCHW"),
            precision=jax.lax.Precision.HIGHEST)
        y = y * scale[None, :, None, None] + bias[None, :, None, None]
        return jnp.where(y > 0, y, NEG_SLOPE * y)

    t = cbl(x, "neck_in", 1)
    B, c0, h, w = t.shape
    t = jnp.broadcast_to(t[:, :, :, None, :, None],
                         (B, c0, h, 2, w, 2)).reshape(B, c0, 2 * h, 2 * w)
    u = cbl(branch, "neck_branch", 1)
    y = jnp.concatenate([u, t], axis=1)
    for name, k in (("out0", 1), ("out1", 3), ("out2", 1), ("out3", 3), ("out4", 1)):
        y = cbl(y, name, k)
    return y


# --------------------------------------------------------------------------- main ---
if __name__ == "__main__":
    key = jax.random.PRNGKey(0)
    B, C, H, W = 2, 4, 16, 16          # x is (B, C, H, W); branch is (B, C, 2H, 2W)
    keys = jax.random.split(key, 9)

    raw = {
        "neck_in":     init_conv_bn(keys[0], C, C // 2, 1),
        "neck_branch": init_conv_bn(keys[1], C, C // 2, 1),
        "out0":        init_conv_bn(keys[2], C, C // 2, 1),
        "out1":        init_conv_bn(keys[3], C // 2, C, 3),
        "out2":        init_conv_bn(keys[4], C, C // 2, 1),
        "out3":        init_conv_bn(keys[5], C // 2, C, 3),
        "out4":        init_conv_bn(keys[6], C, C // 2, 1),
    }

    x = jax.random.normal(keys[7], (B, C, H, W), jnp.float32)
    branch = jax.random.normal(keys[8], (B, C, 2 * H, 2 * W), jnp.float32)

    packed, layout = fold_and_pack(raw, C)
    dup_h, dup_w = make_dup_matrices(H, W)

    fwd = jax.jit(functools.partial(subneck_forward, layout=layout))
    out = fwd(x, branch, packed, dup_h, dup_w)
    out = jax.block_until_ready(out)

    ref = reference_forward(x, branch, raw)
    assert out.shape == (B, C // 2, 2 * H, 2 * W), out.shape
    np.testing.assert_allclose(np.asarray(out), np.asarray(ref), atol=1e-4, rtol=1e-4)
    print("KERNEL_OK")
</pallas_src>

<mosaic_0001>
module attributes {stable_mosaic.version = 11 : i64} {
  func.func @_fused_kernel(%arg0: i32, %arg1: memref<202xf32, #tpu.memory_space<smem>>, %arg2: memref<1x4x16x16xf32, #tpu.memory_space<vmem>>, %arg3: memref<1x4x32x32xf32, #tpu.memory_space<vmem>>, %arg4: memref<32x16xf32, #tpu.memory_space<vmem>>, %arg5: memref<16x32xf32, #tpu.memory_space<vmem>>, %arg6: memref<1x2x32x32xf32, #tpu.memory_space<vmem>>, %arg7: memref<2x34x34xf32, #tpu.memory_space<vmem>>) attributes {dimension_semantics = [#tpu.dimension_semantics<parallel>], iteration_bounds = array<i64: 2>, scalar_prefetch = 0 : i64, scratch_operands = 1 : i64, tpu.core_type = #tpu.core_type<tc>, window_params = [{transform_indices = @transform_0, window_bounds = array<i64: 202>}, {transform_indices = @transform_1, window_bounds = array<i64: 1, 4, 16, 16>}, {transform_indices = @transform_2, window_bounds = array<i64: 1, 4, 32, 32>}, {pipeline_mode = #tpu.pipeline_mode<synchronous>, transform_indices = @transform_3, window_bounds = array<i64: 32, 16>}, {pipeline_mode = #tpu.pipeline_mode<synchronous>, transform_indices = @transform_4, window_bounds = array<i64: 16, 32>}, {transform_indices = @transform_5, window_bounds = array<i64: 1, 2, 32, 32>}]} {
    %c0 = arith.constant 0 : index
    %c0_0 = arith.constant 0 : index
    %0 = vector.load %arg4[%c0, %c0_0] : memref<32x16xf32, #tpu.memory_space<vmem>>, vector<32x16xf32>
    %c0_1 = arith.constant 0 : index
    %c0_2 = arith.constant 0 : index
    %1 = vector.load %arg5[%c0_1, %c0_2] : memref<16x32xf32, #tpu.memory_space<vmem>>, vector<16x32xf32>
    %cst = arith.constant 0.000000e+00 : f32
    %2 = vector.broadcast %cst : f32 to vector<2x34x34xf32>
    %c0_3 = arith.constant 0 : index
    %c0_4 = arith.constant 0 : index
    %c0_5 = arith.constant 0 : index
    %3 = vector.load %arg7[%c0_3, %c0_4, %c0_5] : memref<2x34x34xf32, #tpu.memory_space<vmem>>, vector<2x34x34xf32>
    tpu.vector_store %arg7[%c0_3, %c0_4, %c0_5], %2 {strides = array<i32>} : memref<2x34x34xf32, #tpu.memory_space<vmem>>, vector<2x34x34xf32>,
    %c0_6 = arith.constant 0 : index
    %c0_7 = arith.constant 0 : index
    %c0_8 = arith.constant 0 : index
    %c0_9 = arith.constant 0 : index
    %4 = vector.load %arg2[%c0_6, %c0_7, %c0_8, %c0_9] : memref<1x4x16x16xf32, #tpu.memory_space<vmem>>, vector<1x1x16x16xf32>
    %5 = vector.shape_cast %4 : vector<1x1x16x16xf32> to vector<16x16xf32>
    %c0_10 = arith.constant 0 : index
    %c1 = arith.constant 1 : index
    %c0_11 = arith.constant 0 : index
    %c0_12 = arith.constant 0 : index
    %6 = vector.load %arg2[%c0_10, %c1, %c0_11, %c0_12] : memref<1x4x16x16xf32, #tpu.memory_space<vmem>>, vector<1x1x16x16xf32>
    %7 = vector.shape_cast %6 : vector<1x1x16x16xf32> to vector<16x16xf32>
    %c0_13 = arith.constant 0 : index
    %c2 = arith.constant 2 : index
    %c0_14 = arith.constant 0 : index
    %c0_15 = arith.constant 0 : index
    %8 = vector.load %arg2[%c0_13, %c2, %c0_14, %c0_15] : memref<1x4x16x16xf32, #tpu.memory_space<vmem>>, vector<1x1x16x16xf32>
    %9 = vector.shape_cast %8 : vector<1x1x16x16xf32> to vector<16x16xf32>
    %c0_16 = arith.constant 0 : index
    %c3 = arith.constant 3 : index
    %c0_17 = arith.constant 0 : index
    %c0_18 = arith.constant 0 : index
    %10 = vector.load %arg2[%c0_16, %c3, %c0_17, %c0_18] : memref<1x4x16x16xf32, #tpu.memory_space<vmem>>, vector<1x1x16x16xf32>
    %11 = vector.shape_cast %10 : vector<1x1x16x16xf32> to vector<16x16xf32>
    %cst_19 = arith.constant 0.000000e+00 : f32
    %12 = vector.broadcast %cst_19 : f32 to vector<16x16xf32>
    %c8 = arith.constant 8 : index
    %13 = memref.load %arg1[%c8] : memref<202xf32, #tpu.memory_space<smem>>
    %14 = vector.broadcast %13 : f32 to vector<16x16xf32>
    %15 = arith.addf %12, %14 : vector<16x16xf32>
    %c0_20 = arith.constant 0 : index
    %16 = memref.load %arg1[%c0_20] : memref<202xf32, #tpu.memory_space<smem>>
    %17 = vector.broadcast %16 : f32 to vector<16x16xf32>
    %18 = arith.mulf %17, %5 : vector<16x16xf32>
    %19 = arith.addf %15, %18 : vector<16x16xf32>
    %c1_21 = arith.constant 1 : index
    %20 = memref.load %arg1[%c1_21] : memref<202xf32, #tpu.memory_space<smem>>
    %21 = vector.broadcast %20 : f32 to vector<16x16xf32>
    %22 = arith.mulf %21, %7 : vector<16x16xf32>
    %23 = arith.addf %19, %22 : vector<16x16xf32>
    %c2_22 = arith.constant 2 : index
    %24 = memref.load %arg1[%c2_22] : memref<202xf32, #tpu.memory_space<smem>>
    %25 = vector.broadcast %24 : f32 to vector<16x16xf32>
    %26 = arith.mulf %25, %9 : vector<16x16xf32>
    %27 = arith.addf %23, %26 : vector<16x16xf32>
    %c3_23 = arith.constant 3 : index
    %28 = memref.load %arg1[%c3_23] : memref<202xf32, #tpu.memory_space<smem>>
    %29 = vector.broadcast %28 : f32 to vector<16x16xf32>
    %30 = arith.mulf %29, %11 : vector<16x16xf32>
    %31 = arith.addf %27, %30 : vector<16x16xf32>
    %cst_24 = arith.constant 0.000000e+00 : f32
    %32 = vector.broadcast %cst_24 : f32 to vector<16x16xf32>
    %33 = arith.cmpf ogt, %31, %32 : vector<16x16xf32>
    %cst_25 = arith.constant 1.000000e-01 : f32
    %34 = vector.broadcast %cst_25 : f32 to vector<16x16xf32>
    %35 = arith.mulf %34, %31 : vector<16x16xf32>
    %36 = arith.select %33, %31, %35 : vector<16x16xi1>, vector<16x16xf32>
    %cst_26 = arith.constant 0.000000e+00 : f32
    %37 = vector.broadcast %cst_26 : f32 to vector<16x16xf32>
    %c9 = arith.constant 9 : index
    %38 = memref.load %arg1[%c9] : memref<202xf32, #tpu.memory_space<smem>>
    %39 = vector.broadcast %38 : f32 to vector<16x16xf32>
    %40 = arith.addf %37, %39 : vector<16x16xf32>
    %c4 = arith.constant 4 : index
    %41 = memref.load %arg1[%c4] : memref<202xf32, #tpu.memory_space<smem>>
    %42 = vector.broadcast %41 : f32 to vector<16x16xf32>
    %43 = arith.mulf %42, %5 : vector<16x16xf32>
    %44 = arith.addf %40, %43 : vector<16x16xf32>
    %c5 = arith.constant 5 : index
    %45 = memref.load %arg1[%c5] : memref<202xf32, #tpu.memory_space<smem>>
    %46 = vector.broadcast %45 : f32 to vector<16x16xf32>
    %47 = arith.mulf %46, %7 : vector<16x16xf32>
    %48 = arith.addf %44, %47 : vector<16x16xf32>
    %c6 = arith.constant 6 : index
    %49 = memref.load %arg1[%c6] : memref<202xf32, #tpu.memory_space<smem>>
    %50 = vector.broadcast %49 : f32 to vector<16x16xf32>
    %51 = arith.mulf %50, %9 : vector<16x16xf32>
    %52 = arith.addf %48, %51 : vector<16x16xf32>
    %c7 = arith.constant 7 : index
    %53 = memref.load %arg1[%c7] : memref<202xf32, #tpu.memory_space<smem>>
    %54 = vector.broadcast %53 : f32 to vector<16x16xf32>
    %55 = arith.mulf %54, %11 : vector<16x16xf32>
    %56 = arith.addf %52, %55 : vector<16x16xf32>
    %cst_27 = arith.constant 0.000000e+00 : f32
    %57 = vector.broadcast %cst_27 : f32 to vector<16x16xf32>
    %58 = arith.cmpf ogt, %56, %57 : vector<16x16xf32>
    %cst_28 = arith.constant 1.000000e-01 : f32
    %59 = vector.broadcast %cst_28 : f32 to vector<16x16xf32>
    %60 = arith.mulf %59, %56 : vector<16x16xf32>
    %61 = arith.select %58, %56, %60 : vector<16x16xi1>, vector<16x16xf32>
    %cst_29 = arith.constant 0.000000e+00 : f32
    %62 = vector.broadcast %cst_29 : f32 to vector<16x16xf32>
    %c24 = arith.constant 24 : index
    %63 = memref.load %arg1[%c24] : memref<202xf32, #tpu.memory_space<smem>>
    %64 = vector.broadcast %63 : f32 to vector<16x16xf32>
    %65 = arith.mulf %64, %36 : vector<16x16xf32>
    %66 = arith.addf %62, %65 : vector<16x16xf32>
    %c25 = arith.constant 25 : index
    %67 = memref.load %arg1[%c25] : memref<202xf32, #tpu.memory_space<smem>>
    %68 = vector.broadcast %67 : f32 to vector<16x16xf32>
    %69 = arith.mulf %68, %61 : vector<16x16xf32>
    %70 = arith.addf %66, %69 : vector<16x16xf32>
    %71 = arith.truncf %70 : vector<16x16xf32> to vector<16x16xbf16>
    %72 = arith.extf %71 : vector<16x16xbf16> to vector<16x16xf32>
    %73 = arith.subf %70, %72 : vector<16x16xf32>
    %74 = arith.truncf %73 : vector<16x16xf32> to vector<16x16xbf16>
    %75 = arith.extf %74 : vector<16x16xbf16> to vector<16x16xf32>
    %76 = arith.subf %73, %75 : vector<16x16xf32>
    %cst_30 = arith.constant 0.000000e+00 : f32
    %77 = vector.broadcast %cst_30 : f32 to vector<32x32xf32>
    %cst_31 = arith.constant dense<0.000000e+00> : vector<32x16xf32>
    %78 = tpu.matmul %0, %72, %cst_31 {dimension_numbers = #tpu.dot_dimension_numbers<[1], [0], [0], [1], [0, 0, 1, 1], [], []>} : vector<32x16xf32>, vector<16x16xf32>, vector<32x16xf32> -> vector<32x16xf32>
    %cst_32 = arith.constant dense<0.000000e+00> : vector<32x32xf32>
    %79 = tpu.matmul %78, %1, %cst_32 {dimension_numbers = #tpu.dot_dimension_numbers<[1], [0], [0], [1], [0, 0, 1, 1], [], []>} : vector<32x16xf32>, vector<16x32xf32>, vector<32x32xf32> -> vector<32x32xf32>
    %80 = arith.addf %77, %79 : vector<32x32xf32>
    %cst_33 = arith.constant dense<0.000000e+00> : vector<32x16xf32>
    %81 = tpu.matmul %0, %75, %cst_33 {dimension_numbers = #tpu.dot_dimension_numbers<[1], [0], [0], [1], [0, 0, 1, 1], [], []>} : vector<32x16xf32>, vector<16x16xf32>, vector<32x16xf32> -> vector<32x16xf32>
    %cst_34 = arith.constant dense<0.000000e+00> : vector<32x32xf32>
    %82 = tpu.matmul %81, %1, %cst_34 {dimension_numbers = #tpu.dot_dimension_numbers<[1], [0], [0], [1], [0, 0, 1, 1], [], []>} : vector<32x16xf32>, vector<16x32xf32>, vector<32x32xf32> -> vector<32x32xf32>
    %83 = arith.addf %80, %82 : vector<32x32xf32>
    %cst_35 = arith.constant dense<0.000000e+00> : vector<32x16xf32>
    %84 = tpu.matmul %0, %76, %cst_35 {dimension_numbers = #tpu.dot_dimension_numbers<[1], [0], [0], [1], [0, 0, 1, 1], [], []>} : vector<32x16xf32>, vector<16x16xf32>, vector<32x16xf32> -> vector<32x16xf32>
    %cst_36 = arith.constant dense<0.000000e+00> : vector<32x32xf32>
    %85 = tpu.matmul %84, %1, %cst_36 {dimension_numbers = #tpu.dot_dimension_numbers<[1], [0], [0], [1], [0, 0, 1, 1], [], []>} : vector<32x16xf32>, vector<16x32xf32>, vector<32x32xf32> -> vector<32x32xf32>
    %86 = arith.addf %83, %85 : vector<32x32xf32>
    %cst_37 = arith.constant 0.000000e+00 : f32
    %87 = vector.broadcast %cst_37 : f32 to vector<16x16xf32>
    %c26 = arith.constant 26 : index
    %88 = memref.load %arg1[%c26] : memref<202xf32, #tpu.memory_space<smem>>
    %89 = vector.broadcast %88 : f32 to vector<16x16xf32>
    %90 = arith.mulf %89, %36 : vector<16x16xf32>
    %91 = arith.addf %87, %90 : vector<16x16xf32>
    %c27 = arith.constant 27 : index
    %92 = memref.load %arg1[%c27] : memref<202xf32, #tpu.memory_space<smem>>
    %93 = vector.broadcast %92 : f32 to vector<16x16xf32>
    %94 = arith.mulf %93, %61 : vector<16x16xf32>
    %95 = arith.addf %91, %94 : vector<16x16xf32>
    %96 = arith.truncf %95 : vector<16x16xf32> to vector<16x16xbf16>
    %97 = arith.extf %96 : vector<16x16xbf16> to vector<16x16xf32>
    %98 = arith.subf %95, %97 : vector<16x16xf32>
    %99 = arith.truncf %98 : vector<16x16xf32> to vector<16x16xbf16>
    %100 = arith.extf %99 : vector<16x16xbf16> to vector<16x16xf32>
    %101 = arith.subf %98, %100 : vector<16x16xf32>
    %cst_38 = arith.constant 0.000000e+00 : f32
    %102 = vector.broadcast %cst_38 : f32 to vector<32x32xf32>
    %cst_39 = arith.constant dense<0.000000e+00> : vector<32x16xf32>
    %103 = tpu.matmul %0, %97, %cst_39 {dimension_numbers = #tpu.dot_dimension_numbers<[1], [0], [0], [1], [0, 0, 1, 1], [], []>} : vector<32x16xf32>, vector<16x16xf32>, vector<32x16xf32> -> vector<32x16xf32>
    %cst_40 = arith.constant dense<0.000000e+00> : vector<32x32xf32>
    %104 = tpu.matmul %103, %1, %cst_40 {dimension_numbers = #tpu.dot_dimension_numbers<[1], [0], [0], [1], [0, 0, 1, 1], [], []>} : vector<32x16xf32>, vector<16x32xf32>, vector<32x32xf32> -> vector<32x32xf32>
    %105 = arith.addf %102, %104 : vector<32x32xf32>
    %cst_41 = arith.constant dense<0.000000e+00> : vector<32x16xf32>
    %106 = tpu.matmul %0, %100, %cst_41 {dimension_numbers = #tpu.dot_dimension_numbers<[1], [0], [0], [1], [0, 0, 1, 1], [], []>} : vector<32x16xf32>, vector<16x16xf32>, vector<32x16xf32> -> vector<32x16xf32>
    %cst_42 = arith.constant dense<0.000000e+00> : vector<32x32xf32>
    %107 = tpu.matmul %106, %1, %cst_42 {dimension_numbers = #tpu.dot_dimension_numbers<[1], [0], [0], [1], [0, 0, 1, 1], [], []>} : vector<32x16xf32>, vector<16x32xf32>, vector<32x32xf32> -> vector<32x32xf32>
    %108 = arith.addf %105, %107 : vector<32x32xf32>
    %cst_43 = arith.constant dense<0.000000e+00> : vector<32x16xf32>
    %109 = tpu.matmul %0, %101, %cst_43 {dimension_numbers = #tpu.dot_dimension_numbers<[1], [0], [0], [1], [0, 0, 1, 1], [], []>} : vector<32x16xf32>, vector<16x16xf32>, vector<32x16xf32> -> vector<32x16xf32>
    %cst_44 = arith.constant dense<0.000000e+00> : vector<32x32xf32>
    %110 = tpu.matmul %109, %1, %cst_44 {dimension_numbers = #tpu.dot_dimension_numbers<[1], [0], [0], [1], [0, 0, 1, 1], [], []>} : vector<32x16xf32>, vector<16x32xf32>, vector<32x32xf32> -> vector<32x32xf32>
    %111 = arith.addf %108, %110 : vector<32x32xf32>
    %c0_45 = arith.constant 0 : index
    %c0_46 = arith.constant 0 : index
    %c0_47 = arith.constant 0 : index
    %c0_48 = arith.constant 0 : index
    %112 = vector.load %arg3[%c0_45, %c0_46, %c0_47, %c0_48] : memref<1x4x32x32xf32, #tpu.memory_space<vmem>>, vector<1x1x32x32xf32>
    %113 = vector.shape_cast %112 : vector<1x1x32x32xf32> to vector<32x32xf32>
    %c0_49 = arith.constant 0 : index
    %c1_50 = arith.constant 1 : index
    %c0_51 = arith.constant 0 : index
    %c0_52 = arith.constant 0 : index
    %114 = vector.load %arg3[%c0_49, %c1_50, %c0_51, %c0_52] : memref<1x4x32x32xf32, #tpu.memory_space<vmem>>, vector<1x1x32x32xf32>
    %115 = vector.shape_cast %114 : vector<1x1x32x32xf32> to vector<32x32xf32>
    %c0_53 = arith.constant 0 : index
    %c2_54 = arith.constant 2 : index
    %c0_55 = arith.constant 0 : index
    %c0_56 = arith.constant 0 : index
    %116 = vector.load %arg3[%c0_53, %c2_54, %c0_55, %c0_56] : memref<1x4x32x32xf32, #tpu.memory_space<vmem>>, vector<1x1x32x32xf32>
    %117 = vector.shape_cast %116 : vector<1x1x32x32xf32> to vector<32x32xf32>
    %c0_57 = arith.constant 0 : index
    %c3_58 = arith.constant 3 : index
    %c0_59 = arith.constant 0 : index
    %c0_60 = arith.constant 0 : index
    %118 = vector.load %arg3[%c0_57, %c3_58, %c0_59, %c0_60] : memref<1x4x32x32xf32, #tpu.memory_space<vmem>>, vector<1x1x32x32xf32>
    %119 = vector.shape_cast %118 : vector<1x1x32x32xf32> to vector<32x32xf32>
    %cst_61 = arith.constant 0.000000e+00 : f32
    %120 = vector.broadcast %cst_61 : f32 to vector<32x32xf32>
    %c18 = arith.constant 18 : index
    %121 = memref.load %arg1[%c18] : memref<202xf32, #tpu.memory_space<smem>>
    %122 = vector.broadcast %121 : f32 to vector<32x32xf32>
    %123 = arith.addf %120, %122 : vector<32x32xf32>
    %c10 = arith.constant 10 : index
    %124 = memref.load %arg1[%c10] : memref<202xf32, #tpu.memory_space<smem>>
    %125 = vector.broadcast %124 : f32 to vector<32x32xf32>
    %126 = arith.mulf %125, %113 : vector<32x32xf32>
    %127 = arith.addf %123, %126 : vector<32x32xf32>
    %c11 = arith.constant 11 : index
    %128 = memref.load %arg1[%c11] : memref<202xf32, #tpu.memory_space<smem>>
    %129 = vector.broadcast %128 : f32 to vector<32x32xf32>
    %130 = arith.mulf %129, %115 : vector<32x32xf32>
    %131 = arith.addf %127, %130 : vector<32x32xf32>
    %c12 = arith.constant 12 : index
    %132 = memref.load %arg1[%c12] : memref<202xf32, #tpu.memory_space<smem>>
    %133 = vector.broadcast %132 : f32 to vector<32x32xf32>
    %134 = arith.mulf %133, %117 : vector<32x32xf32>
    %135 = arith.addf %131, %134 : vector<32x32xf32>
    %c13 = arith.constant 13 : index
    %136 = memref.load %arg1[%c13] : memref<202xf32, #tpu.memory_space<smem>>
    %137 = vector.broadcast %136 : f32 to vector<32x32xf32>
    %138 = arith.mulf %137, %119 : vector<32x32xf32>
    %139 = arith.addf %135, %138 : vector<32x32xf32>
    %cst_62 = arith.constant 0.000000e+00 : f32
    %140 = vector.broadcast %cst_62 : f32 to vector<32x32xf32>
    %141 = arith.cmpf ogt, %139, %140 : vector<32x32xf32>
    %cst_63 = arith.constant 1.000000e-01 : f32
    %142 = vector.broadcast %cst_63 : f32 to vector<32x32xf32>
    %143 = arith.mulf %142, %139 : vector<32x32xf32>
    %144 = arith.select %141, %139, %143 : vector<32x32xi1>, vector<32x32xf32>
    %cst_64 = arith.constant 0.000000e+00 : f32
    %145 = vector.broadcast %cst_64 : f32 to vector<32x32xf32>
    %c19 = arith.constant 19 : index
    %146 = memref.load %arg1[%c19] : memref<202xf32, #tpu.memory_space<smem>>
    %147 = vector.broadcast %146 : f32 to vector<32x32xf32>
    %148 = arith.addf %145, %147 : vector<32x32xf32>
    %c14 = arith.constant 14 : index
    %149 = memref.load %arg1[%c14] : memref<202xf32, #tpu.memory_space<smem>>
    %150 = vector.broadcast %149 : f32 to vector<32x32xf32>
    %151 = arith.mulf %150, %113 : vector<32x32xf32>
    %152 = arith.addf %148, %151 : vector<32x32xf32>
    %c15 = arith.constant 15 : index
    %153 = memref.load %arg1[%c15] : memref<202xf32, #tpu.memory_space<smem>>
    %154 = vector.broadcast %153 : f32 to vector<32x32xf32>
    %155 = arith.mulf %154, %115 : vector<32x32xf32>
    %156 = arith.addf %152, %155 : vector<32x32xf32>
    %c16 = arith.constant 16 : index
    %157 = memref.load %arg1[%c16] : memref<202xf32, #tpu.memory_space<smem>>
    %158 = vector.broadcast %157 : f32 to vector<32x32xf32>
    %159 = arith.mulf %158, %117 : vector<32x32xf32>
    %160 = arith.addf %156, %159 : vector<32x32xf32>
    %c17 = arith.constant 17 : index
    %161 = memref.load %arg1[%c17] : memref<202xf32, #tpu.memory_space<smem>>
    %162 = vector.broadcast %161 : f32 to vector<32x32xf32>
    %163 = arith.mulf %162, %119 : vector<32x32xf32>
    %164 = arith.addf %160, %163 : vector<32x32xf32>
    %cst_65 = arith.constant 0.000000e+00 : f32
    %165 = vector.broadcast %cst_65 : f32 to vector<32x32xf32>
    %166 = arith.cmpf ogt, %164, %165 : vector<32x32xf32>
    %cst_66 = arith.constant 1.000000e-01 : f32
    %167 = vector.broadcast %cst_66 : f32 to vector<32x32xf32>
    %168 = arith.mulf %167, %164 : vector<32x32xf32>
    %169 = arith.select %166, %164, %168 : vector<32x32xi1>, vector<32x32xf32>
    %c28 = arith.constant 28 : index
    %170 = memref.load %arg1[%c28] : memref<202xf32, #tpu.memory_space<smem>>
    %171 = vector.broadcast %170 : f32 to vector<32x32xf32>
    %172 = arith.addf %86, %171 : vector<32x32xf32>
    %c20 = arith.constant 20 : index
    %173 = memref.load %arg1[%c20] : memref<202xf32, #tpu.memory_space<smem>>
    %174 = vector.broadcast %173 : f32 to vector<32x32xf32>
    %175 = arith.mulf %174, %144 : vector<32x32xf32>
    %176 = arith.addf %172, %175 : vector<32x32xf32>
    %c21 = arith.constant 21 : index
    %177 = memref.load %arg1[%c21] : memref<202xf32, #tpu.memory_space<smem>>
    %178 = vector.broadcast %177 : f32 to vector<32x32xf32>
    %179 = arith.mulf %178, %169 : vector<32x32xf32>
    %180 = arith.addf %176, %179 : vector<32x32xf32>
    %cst_67 = arith.constant 0.000000e+00 : f32
    %181 = vector.broadcast %cst_67 : f32 to vector<32x32xf32>
    %182 = arith.cmpf ogt, %180, %181 : vector<32x32xf32>
    %cst_68 = arith.constant 1.000000e-01 : f32
    %183 = vector.broadcast %cst_68 : f32 to vector<32x32xf32>
    %184 = arith.mulf %183, %180 : vector<32x32xf32>
    %185 = arith.select %182, %180, %184 : vector<32x32xi1>, vector<32x32xf32>
    %c29 = arith.constant 29 : index
    %186 = memref.load %arg1[%c29] : memref<202xf32, #tpu.memory_space<smem>>
    %187 = vector.broadcast %186 : f32 to vector<32x32xf32>
    %188 = arith.addf %111, %187 : vector<32x32xf32>
    %c22 = arith.constant 22 : index
    %189 = memref.load %arg1[%c22] : memref<202xf32, #tpu.memory_space<smem>>
    %190 = vector.broadcast %189 : f32 to vector<32x32xf32>
    %191 = arith.mulf %190, %144 : vector<32x32xf32>
    %192 = arith.addf %188, %191 : vector<32x32xf32>
    %c23 = arith.constant 23 : index
    %193 = memref.load %arg1[%c23] : memref<202xf32, #tpu.memory_space<smem>>
    %194 = vector.broadcast %193 : f32 to vector<32x32xf32>
    %195 = arith.mulf %194, %169 : vector<32x32xf32>
    %196 = arith.addf %192, %195 : vector<32x32xf32>
    %cst_69 = arith.constant 0.000000e+00 : f32
    %197 = vector.broadcast %cst_69 : f32 to vector<32x32xf32>
    %198 = arith.cmpf ogt, %196, %197 : vector<32x32xf32>
    %cst_70 = arith.constant 1.000000e-01 : f32
    %199 = vector.broadcast %cst_70 : f32 to vector<32x32xf32>
    %200 = arith.mulf %199, %196 : vector<32x32xf32>
    %201 = arith.select %198, %196, %200 : vector<32x32xi1>, vector<32x32xf32>
    %c0_71 = arith.constant 0 : index
    %c1_72 = arith.constant 1 : index
    %c1_73 = arith.constant 1 : index
    %202 = vector.load %arg7[%c0_71, %c1_72, %c1_73] : memref<2x34x34xf32, #tpu.memory_space<vmem>>, vector<1x32x32xf32>
    %203 = vector.shape_cast %202 : vector<1x32x32xf32> to vector<32x32xf32>
    %204 = vector.shape_cast %185 : vector<32x32xf32> to vector<1x32x32xf32>
    tpu.vector_store %arg7[%c0_71, %c1_72, %c1_73], %204 {strides = array<i32>} : memref<2x34x34xf32, #tpu.memory_space<vmem>>, vector<1x32x32xf32>,
    %c1_74 = arith.constant 1 : index
    %c1_75 = arith.constant 1 : index
    %c1_76 = arith.constant 1 : index
    %205 = vector.load %arg7[%c1_74, %c1_75, %c1_76] : memref<2x34x34xf32, #tpu.memory_space<vmem>>, vector<1x32x32xf32>
    %206 = vector.shape_cast %205 : vector<1x32x32xf32> to vector<32x32xf32>
    %207 = vector.shape_cast %201 : vector<32x32xf32> to vector<1x32x32xf32>
    tpu.vector_store %arg7[%c1_74, %c1_75, %c1_76], %207 {strides = array<i32>} : memref<2x34x34xf32, #tpu.memory_space<vmem>>, vector<1x32x32xf32>,
    %cst_77 = arith.constant 0.000000e+00 : f32
    %208 = vector.broadcast %cst_77 : f32 to vector<32x32xf32>
    %c102 = arith.constant 102 : index
    %209 = memref.load %arg1[%c102] : memref<202xf32, #tpu.memory_space<smem>>
    %210 = vector.broadcast %209 : f32 to vector<32x32xf32>
    %211 = arith.addf %208, %210 : vector<32x32xf32>
    %cst_78 = arith.constant 0.000000e+00 : f32
    %212 = vector.broadcast %cst_78 : f32 to vector<32x32xf32>
    %c103 = arith.constant 103 : index
    %213 = memref.load %arg1[%c103] : memref<202xf32, #tpu.memory_space<smem>>
    %214 = vector.broadcast %213 : f32 to vector<32x32xf32>
    %215 = arith.addf %212, %214 : vector<32x32xf32>
    %cst_79 = arith.constant 0.000000e+00 : f32
    %216 = vector.broadcast %cst_79 : f32 to vector<32x32xf32>
    %c104 = arith.constant 104 : index
    %217 = memref.load %arg1[%c104] : memref<202xf32, #tpu.memory_space<smem>>
    %218 = vector.broadcast %217 : f32 to vector<32x32xf32>
    %219 = arith.addf %216, %218 : vector<32x32xf32>
    %cst_80 = arith.constant 0.000000e+00 : f32
    %220 = vector.broadcast %cst_80 : f32 to vector<32x32xf32>
    %c105 = arith.constant 105 : index
    %221 = memref.load %arg1[%c105] : memref<202xf32, #tpu.memory_space<smem>>
    %222 = vector.broadcast %221 : f32 to vector<32x32xf32>
    %223 = arith.addf %220, %222 : vector<32x32xf32>
    %c0_81 = arith.constant 0 : index
    %c0_82 = arith.constant 0 : index
    %c0_83 = arith.constant 0 : index
    %224 = vector.load %arg7[%c0_81, %c0_82, %c0_83] : memref<2x34x34xf32, #tpu.memory_space<vmem>>, vector<1x32x32xf32>
    %225 = vector.shape_cast %224 : vector<1x32x32xf32> to vector<32x32xf32>
    %c30 = arith.constant 30 : index
    %226 = memref.load %arg1[%c30] : memref<202xf32, #tpu.memory_space<smem>>
    %227 = vector.broadcast %226 : f32 to vector<32x32xf32>
    %228 = arith.mulf %227, %225 : vector<32x32xf32>
    %229 = arith.addf %211, %228 : vector<32x32xf32>
    %c48 = arith.constant 48 : index
    %230 = memref.load %arg1[%c48] : memref<202xf32, #tpu.memory_space<smem>>
    %231 = vector.broadcast %230 : f32 to vector<32x32xf32>
    %232 = arith.mulf %231, %225 : vector<32x32xf32>
    %233 = arith.addf %215, %232 : vector<32x32xf32>
    %c66 = arith.constant 66 : index
    %234 = memref.load %arg1[%c66] : memref<202xf32, #tpu.memory_space<smem>>
    %235 = vector.broadcast %234 : f32 to vector<32x32xf32>
    %236 = arith.mulf %235, %225 : vector<32x32xf32>
    %237 = arith.addf %219, %236 : vector<32x32xf32>
    %c84 = arith.constant 84 : index
    %238 = memref.load %arg1[%c84] : memref<202xf32, #tpu.memory_space<smem>>
    %239 = vector.broadcast %238 : f32 to vector<32x32xf32>
    %240 = arith.mulf %239, %225 : vector<32x32xf32>
    %241 = arith.addf %223, %240 : vector<32x32xf32>
    %c0_84 = arith.constant 0 : index
    %c0_85 = arith.constant 0 : index
    %c1_86 = arith.constant 1 : index
    %242 = vector.load %arg7[%c0_84, %c0_85, %c1_86] : memref<2x34x34xf32, #tpu.memory_space<vmem>>, vector<1x32x32xf32>
    %243 = vector.shape_cast %242 : vector<1x32x32xf32> to vector<32x32xf32>
    %c31 = arith.constant 31 : index
    %244 = memref.load %arg1[%c31] : memref<202xf32, #tpu.memory_space<smem>>
    %245 = vector.broadcast %244 : f32 to vector<32x32xf32>
    %246 = arith.mulf %245, %243 : vector<32x32xf32>
    %247 = arith.addf %229, %246 : vector<32x32xf32>
    %c49 = arith.constant 49 : index
    %248 = memref.load %arg1[%c49] : memref<202xf32, #tpu.memory_space<smem>>
    %249 = vector.broadcast %248 : f32 to vector<32x32xf32>
    %250 = arith.mulf %249, %243 : vector<32x32xf32>
    %251 = arith.addf %233, %250 : vector<32x32xf32>
    %c67 = arith.constant 67 : index
    %252 = memref.load %arg1[%c67] : memref<202xf32, #tpu.memory_space<smem>>
    %253 = vector.broadcast %252 : f32 to vector<32x32xf32>
    %254 = arith.mulf %253, %243 : vector<32x32xf32>
    %255 = arith.addf %237, %254 : vector<32x32xf32>
    %c85 = arith.constant 85 : index
    %256 = memref.load %arg1[%c85] : memref<202xf32, #tpu.memory_space<smem>>
    %257 = vector.broadcast %256 : f32 to vector<32x32xf32>
    %258 = arith.mulf %257, %243 : vector<32x32xf32>
    %259 = arith.addf %241, %258 : vector<32x32xf32>
    %c0_87 = arith.constant 0 : index
    %c0_88 = arith.constant 0 : index
    %c2_89 = arith.constant 2 : index
    %260 = vector.load %arg7[%c0_87, %c0_88, %c2_89] : memref<2x34x34xf32, #tpu.memory_space<vmem>>, vector<1x32x32xf32>
    %261 = vector.shape_cast %260 : vector<1x32x32xf32> to vector<32x32xf32>
    %c32 = arith.constant 32 : index
    %262 = memref.load %arg1[%c32] : memref<202xf32, #tpu.memory_space<smem>>
    %263 = vector.broadcast %262 : f32 to vector<32x32xf32>
    %264 = arith.mulf %263, %261 : vector<32x32xf32>
    %265 = arith.addf %247, %264 : vector<32x32xf32>
    %c50 = arith.constant 50 : index
    %266 = memref.load %arg1[%c50] : memref<202xf32, #tpu.memory_space<smem>>
    %267 = vector.broadcast %266 : f32 to vector<32x32xf32>
    %268 = arith.mulf %267, %261 : vector<32x32xf32>
    %269 = arith.addf %251, %268 : vector<32x32xf32>
    %c68 = arith.constant 68 : index
    %270 = memref.load %arg1[%c68] : memref<202xf32, #tpu.memory_space<smem>>
    %271 = vector.broadcast %270 : f32 to vector<32x32xf32>
    %272 = arith.mulf %271, %261 : vector<32x32xf32>
    %273 = arith.addf %255, %272 : vector<32x32xf32>
    %c86 = arith.constant 86 : index
    %274 = memref.load %arg1[%c86] : memref<202xf32, #tpu.memory_space<smem>>
    %275 = vector.broadcast %274 : f32 to vector<32x32xf32>
    %276 = arith.mulf %275, %261 : vector<32x32xf32>
    %277 = arith.addf %259, %276 : vector<32x32xf32>
    %c0_90 = arith.constant 0 : index
    %c1_91 = arith.constant 1 : index
    %c0_92 = arith.constant 0 : index
    %278 = vector.load %arg7[%c0_90, %c1_91, %c0_92] : memref<2x34x34xf32, #tpu.memory_space<vmem>>, vector<1x32x32xf32>
    %279 = vector.shape_cast %278 : vector<1x32x32xf32> to vector<32x32xf32>
    %c33 = arith.constant 33 : index
    %280 = memref.load %arg1[%c33] : memref<202xf32, #tpu.memory_space<smem>>
    %281 = vector.broadcast %280 : f32 to vector<32x32xf32>
    %282 = arith.mulf %281, %279 : vector<32x32xf32>
    %283 = arith.addf %265, %282 : vector<32x32xf32>
    %c51 = arith.constant 51 : index
    %284 = memref.load %arg1[%c51] : memref<202xf32, #tpu.memory_space<smem>>
    %285 = vector.broadcast %284 : f32 to vector<32x32xf32>
    %286 = arith.mulf %285, %279 : vector<32x32xf32>
    %287 = arith.addf %269, %286 : vector<32x32xf32>
    %c69 = arith.constant 69 : index
    %288 = memref.load %arg1[%c69] : memref<202xf32, #tpu.memory_space<smem>>
    %289 = vector.broadcast %288 : f32 to vector<32x32xf32>
    %290 = arith.mulf %289, %279 : vector<32x32xf32>
    %291 = arith.addf %273, %290 : vector<32x32xf32>
    %c87 = arith.constant 87 : index
    %292 = memref.load %arg1[%c87] : memref<202xf32, #tpu.memory_space<smem>>
    %293 = vector.broadcast %292 : f32 to vector<32x32xf32>
    %294 = arith.mulf %293, %279 : vector<32x32xf32>
    %295 = arith.addf %277, %294 : vector<32x32xf32>
    %c0_93 = arith.constant 0 : index
    %c1_94 = arith.constant 1 : index
    %c1_95 = arith.constant 1 : index
    %296 = vector.load %arg7[%c0_93, %c1_94, %c1_95] : memref<2x34x34xf32, #tpu.memory_space<vmem>>, vector<1x32x32xf32>
    %297 = vector.shape_cast %296 : vector<1x32x32xf32> to vector<32x32xf32>
    %c34 = arith.constant 34 : index
    %298 = memref.load %arg1[%c34] : memref<202xf32, #tpu.memory_space<smem>>
    %299 = vector.broadcast %298 : f32 to vector<32x32xf32>
    %300 = arith.mulf %299, %297 : vector<32x32xf32>
    %301 = arith.addf %283, %300 : vector<32x32xf32>
    %c52 = arith.constant 52 : index
    %302 = memref.load %arg1[%c52] : memref<202xf32, #tpu.memory_space<smem>>
    %303 = vector.broadcast %302 : f32 to vector<32x32xf32>
    %304 = arith.mulf %303, %297 : vector<32x32xf32>
    %305 = arith.addf %287, %304 : vector<32x32xf32>
    %c70 = arith.constant 70 : index
    %306 = memref.load %arg1[%c70] : memref<202xf32, #tpu.memory_space<smem>>
    %307 = vector.broadcast %306 : f32 to vector<32x32xf32>
    %308 = arith.mulf %307, %297 : vector<32x32xf32>
    %309 = arith.addf %291, %308 : vector<32x32xf32>
    %c88 = arith.constant 88 : index
    %310 = memref.load %arg1[%c88] : memref<202xf32, #tpu.memory_space<smem>>
    %311 = vector.broadcast %310 : f32 to vector<32x32xf32>
    %312 = arith.mulf %311, %297 : vector<32x32xf32>
    %313 = arith.addf %295, %312 : vector<32x32xf32>
    %c0_96 = arith.constant 0 : index
    %c1_97 = arith.constant 1 : index
    %c2_98 = arith.constant 2 : index
    %314 = vector.load %arg7[%c0_96, %c1_97, %c2_98] : memref<2x34x34xf32, #tpu.memory_space<vmem>>, vector<1x32x32xf32>
    %315 = vector.shape_cast %314 : vector<1x32x32xf32> to vector<32x32xf32>
    %c35 = arith.constant 35 : index
    %316 = memref.load %arg1[%c35] : memref<202xf32, #tpu.memory_space<smem>>
    %317 = vector.broadcast %316 : f32 to vector<32x32xf32>
    %318 = arith.mulf %317, %315 : vector<32x32xf32>
    %319 = arith.addf %301, %318 : vector<32x32xf32>
    %c53 = arith.constant 53 : index
    %320 = memref.load %arg1[%c53] : memref<202xf32, #tpu.memory_space<smem>>
    %321 = vector.broadcast %320 : f32 to vector<32x32xf32>
    %322 = arith.mulf %321, %315 : vector<32x32xf32>
    %323 = arith.addf %305, %322 : vector<32x32xf32>
    %c71 = arith.constant 71 : index
    %324 = memref.load %arg1[%c71] : memref<202xf32, #tpu.memory_space<smem>>
    %325 = vector.broadcast %324 : f32 to vector<32x32xf32>
    %326 = arith.mulf %325, %315 : vector<32x32xf32>
    %327 = arith.addf %309, %326 : vector<32x32xf32>
    %c89 = arith.constant 89 : index
    %328 = memref.load %arg1[%c89] : memref<202xf32, #tpu.memory_space<smem>>
    %329 = vector.broadcast %328 : f32 to vector<32x32xf32>
    %330 = arith.mulf %329, %315 : vector<32x32xf32>
    %331 = arith.addf %313, %330 : vector<32x32xf32>
    %c0_99 = arith.constant 0 : index
    %c2_100 = arith.constant 2 : index
    %c0_101 = arith.constant 0 : index
    %332 = vector.load %arg7[%c0_99, %c2_100, %c0_101] : memref<2x34x34xf32, #tpu.memory_space<vmem>>, vector<1x32x32xf32>
    %333 = vector.shape_cast %332 : vector<1x32x32xf32> to vector<32x32xf32>
    %c36 = arith.constant 36 : index
    %334 = memref.load %arg1[%c36] : memref<202xf32, #tpu.memory_space<smem>>
    %335 = vector.broadcast %334 : f32 to vector<32x32xf32>
    %336 = arith.mulf %335, %333 : vector<32x32xf32>
    %337 = arith.addf %319, %336 : vector<32x32xf32>
    %c54 = arith.constant 54 : index
    %338 = memref.load %arg1[%c54] : memref<202xf32, #tpu.memory_space<smem>>
    %339 = vector.broadcast %338 : f32 to vector<32x32xf32>
    %340 = arith.mulf %339, %333 : vector<32x32xf32>
    %341 = arith.addf %323, %340 : vector<32x32xf32>
    %c72 = arith.constant 72 : index
    %342 = memref.load %arg1[%c72] : memref<202xf32, #tpu.memory_space<smem>>
    %343 = vector.broadcast %342 : f32 to vector<32x32xf32>
    %344 = arith.mulf %343, %333 : vector<32x32xf32>
    %345 = arith.addf %327, %344 : vector<32x32xf32>
    %c90 = arith.constant 90 : index
    %346 = memref.load %arg1[%c90] : memref<202xf32, #tpu.memory_space<smem>>
    %347 = vector.broadcast %346 : f32 to vector<32x32xf32>
    %348 = arith.mulf %347, %333 : vector<32x32xf32>
    %349 = arith.addf %331, %348 : vector<32x32xf32>
    %c0_102 = arith.constant 0 : index
    %c2_103 = arith.constant 2 : index
    %c1_104 = arith.constant 1 : index
    %350 = vector.load %arg7[%c0_102, %c2_103, %c1_104] : memref<2x34x34xf32, #tpu.memory_space<vmem>>, vector<1x32x32xf32>
    %351 = vector.shape_cast %350 : vector<1x32x32xf32> to vector<32x32xf32>
    %c37 = arith.constant 37 : index
    %352 = memref.load %arg1[%c37] : memref<202xf32, #tpu.memory_space<smem>>
    %353 = vector.broadcast %352 : f32 to vector<32x32xf32>
    %354 = arith.mulf %353, %351 : vector<32x32xf32>
    %355 = arith.addf %337, %354 : vector<32x32xf32>
    %c55 = arith.constant 55 : index
    %356 = memref.load %arg1[%c55] : memref<202xf32, #tpu.memory_space<smem>>
    %357 = vector.broadcast %356 : f32 to vector<32x32xf32>
    %358 = arith.mulf %357, %351 : vector<32x32xf32>
    %359 = arith.addf %341, %358 : vector<32x32xf32>
    %c73 = arith.constant 73 : index
    %360 = memref.load %arg1[%c73] : memref<202xf32, #tpu.memory_space<smem>>
    %361 = vector.broadcast %360 : f32 to vector<32x32xf32>
    %362 = arith.mulf %361, %351 : vector<32x32xf32>
    %363 = arith.addf %345, %362 : vector<32x32xf32>
    %c91 = arith.constant 91 : index
    %364 = memref.load %arg1[%c91] : memref<202xf32, #tpu.memory_space<smem>>
    %365 = vector.broadcast %364 : f32 to vector<32x32xf32>
    %366 = arith.mulf %365, %351 : vector<32x32xf32>
    %367 = arith.addf %349, %366 : vector<32x32xf32>
    %c0_105 = arith.constant 0 : index
    %c2_106 = arith.constant 2 : index
    %c2_107 = arith.constant 2 : index
    %368 = vector.load %arg7[%c0_105, %c2_106, %c2_107] : memref<2x34x34xf32, #tpu.memory_space<vmem>>, vector<1x32x32xf32>
    %369 = vector.shape_cast %368 : vector<1x32x32xf32> to vector<32x32xf32>
    %c38 = arith.constant 38 : index
    %370 = memref.load %arg1[%c38] : memref<202xf32, #tpu.memory_space<smem>>
    %371 = vector.broadcast %370 : f32 to vector<32x32xf32>
    %372 = arith.mulf %371, %369 : vector<32x32xf32>
    %373 = arith.addf %355, %372 : vector<32x32xf32>
    %c56 = arith.constant 56 : index
    %374 = memref.load %arg1[%c56] : memref<202xf32, #tpu.memory_space<smem>>
    %375 = vector.broadcast %374 : f32 to vector<32x32xf32>
    %376 = arith.mulf %375, %369 : vector<32x32xf32>
    %377 = arith.addf %359, %376 : vector<32x32xf32>
    %c74 = arith.constant 74 : index
    %378 = memref.load %arg1[%c74] : memref<202xf32, #tpu.memory_space<smem>>
    %379 = vector.broadcast %378 : f32 to vector<32x32xf32>
    %380 = arith.mulf %379, %369 : vector<32x32xf32>
    %381 = arith.addf %363, %380 : vector<32x32xf32>
    %c92 = arith.constant 92 : index
    %382 = memref.load %arg1[%c92] : memref<202xf32, #tpu.memory_space<smem>>
    %383 = vector.broadcast %382 : f32 to vector<32x32xf32>
    %384 = arith.mulf %383, %369 : vector<32x32xf32>
    %385 = arith.addf %367, %384 : vector<32x32xf32>
    %c1_108 = arith.constant 1 : index
    %c0_109 = arith.constant 0 : index
    %c0_110 = arith.constant 0 : index
    %386 = vector.load %arg7[%c1_108, %c0_109, %c0_110] : memref<2x34x34xf32, #tpu.memory_space<vmem>>, vector<1x32x32xf32>
    %387 = vector.shape_cast %386 : vector<1x32x32xf32> to vector<32x32xf32>
    %c39 = arith.constant 39 : index
    %388 = memref.load %arg1[%c39] : memref<202xf32, #tpu.memory_space<smem>>
    %389 = vector.broadcast %388 : f32 to vector<32x32xf32>
    %390 = arith.mulf %389, %387 : vector<32x32xf32>
    %391 = arith.addf %373, %390 : vector<32x32xf32>
    %c57 = arith.constant 57 : index
    %392 = memref.load %arg1[%c57] : memref<202xf32, #tpu.memory_space<smem>>
    %393 = vector.broadcast %392 : f32 to vector<32x32xf32>
    %394 = arith.mulf %393, %387 : vector<32x32xf32>
    %395 = arith.addf %377, %394 : vector<32x32xf32>
    %c75 = arith.constant 75 : index
    %396 = memref.load %arg1[%c75] : memref<202xf32, #tpu.memory_space<smem>>
    %397 = vector.broadcast %396 : f32 to vector<32x32xf32>
    %398 = arith.mulf %397, %387 : vector<32x32xf32>
    %399 = arith.addf %381, %398 : vector<32x32xf32>
    %c93 = arith.constant 93 : index
    %400 = memref.load %arg1[%c93] : memref<202xf32, #tpu.memory_space<smem>>
    %401 = vector.broadcast %400 : f32 to vector<32x32xf32>
    %402 = arith.mulf %401, %387 : vector<32x32xf32>
    %403 = arith.addf %385, %402 : vector<32x32xf32>
    %c1_111 = arith.constant 1 : index
    %c0_112 = arith.constant 0 : index
    %c1_113 = arith.constant 1 : index
    %404 = vector.load %arg7[%c1_111, %c0_112, %c1_113] : memref<2x34x34xf32, #tpu.memory_space<vmem>>, vector<1x32x32xf32>
    %405 = vector.shape_cast %404 : vector<1x32x32xf32> to vector<32x32xf32>
    %c40 = arith.constant 40 : index
    %406 = memref.load %arg1[%c40] : memref<202xf32, #tpu.memory_space<smem>>
    %407 = vector.broadcast %406 : f32 to vector<32x32xf32>
    %408 = arith.mulf %407, %405 : vector<32x32xf32>
    %409 = arith.addf %391, %408 : vector<32x32xf32>
    %c58 = arith.constant 58 : index
    %410 = memref.load %arg1[%c58] : memref<202xf32, #tpu.memory_space<smem>>
    %411 = vector.broadcast %410 : f32 to vector<32x32xf32>
    %412 = arith.mulf %411, %405 : vector<32x32xf32>
    %413 = arith.addf %395, %412 : vector<32x32xf32>
    %c76 = arith.constant 76 : index
    %414 = memref.load %arg1[%c76] : memref<202xf32, #tpu.memory_space<smem>>
    %415 = vector.broadcast %414 : f32 to vector<32x32xf32>
    %416 = arith.mulf %415, %405 : vector<32x32xf32>
    %417 = arith.addf %399, %416 : vector<32x32xf32>
    %c94 = arith.constant 94 : index
    %418 = memref.load %arg1[%c94] : memref<202xf32, #tpu.memory_space<smem>>
    %419 = vector.broadcast %418 : f32 to vector<32x32xf32>
    %420 = arith.mulf %419, %405 : vector<32x32xf32>
    %421 = arith.addf %403, %420 : vector<32x32xf32>
    %c1_114 = arith.constant 1 : index
    %c0_115 = arith.constant 0 : index
    %c2_116 = arith.constant 2 : index
    %422 = vector.load %arg7[%c1_114, %c0_115, %c2_116] : memref<2x34x34xf32, #tpu.memory_space<vmem>>, vector<1x32x32xf32>
    %423 = vector.shape_cast %422 : vector<1x32x32xf32> to vector<32x32xf32>
    %c41 = arith.constant 41 : index
    %424 = memref.load %arg1[%c41] : memref<202xf32, #tpu.memory_space<smem>>
    %425 = vector.broadcast %424 : f32 to vector<32x32xf32>
    %426 = arith.mulf %425, %423 : vector<32x32xf32>
    %427 = arith.addf %409, %426 : vector<32x32xf32>
    %c59 = arith.constant 59 : index
    %428 = memref.load %arg1[%c59] : memref<202xf32, #tpu.memory_space<smem>>
    %429 = vector.broadcast %428 : f32 to vector<32x32xf32>
    %430 = arith.mulf %429, %423 : vector<32x32xf32>
    %431 = arith.addf %413, %430 : vector<32x32xf32>
    %c77 = arith.constant 77 : index
    %432 = memref.load %arg1[%c77] : memref<202xf32, #tpu.memory_space<smem>>
    %433 = vector.broadcast %432 : f32 to vector<32x32xf32>
    %434 = arith.mulf %433, %423 : vector<32x32xf32>
    %435 = arith.addf %417, %434 : vector<32x32xf32>
    %c95 = arith.constant 95 : index
    %436 = memref.load %arg1[%c95] : memref<202xf32, #tpu.memory_space<smem>>
    %437 = vector.broadcast %436 : f32 to vector<32x32xf32>
    %438 = arith.mulf %437, %423 : vector<32x32xf32>
    %439 = arith.addf %421, %438 : vector<32x32xf32>
    %c1_117 = arith.constant 1 : index
    %c1_118 = arith.constant 1 : index
    %c0_119 = arith.constant 0 : index
    %440 = vector.load %arg7[%c1_117, %c1_118, %c0_119] : memref<2x34x34xf32, #tpu.memory_space<vmem>>, vector<1x32x32xf32>
    %441 = vector.shape_cast %440 : vector<1x32x32xf32> to vector<32x32xf32>
    %c42 = arith.constant 42 : index
    %442 = memref.load %arg1[%c42] : memref<202xf32, #tpu.memory_space<smem>>
    %443 = vector.broadcast %442 : f32 to vector<32x32xf32>
    %444 = arith.mulf %443, %441 : vector<32x32xf32>
    %445 = arith.addf %427, %444 : vector<32x32xf32>
    %c60 = arith.constant 60 : index
    %446 = memref.load %arg1[%c60] : memref<202xf32, #tpu.memory_space<smem>>
    %447 = vector.broadcast %446 : f32 to vector<32x32xf32>
    %448 = arith.mulf %447, %441 : vector<32x32xf32>
    %449 = arith.addf %431, %448 : vector<32x32xf32>
    %c78 = arith.constant 78 : index
    %450 = memref.load %arg1[%c78] : memref<202xf32, #tpu.memory_space<smem>>
    %451 = vector.broadcast %450 : f32 to vector<32x32xf32>
    %452 = arith.mulf %451, %441 : vector<32x32xf32>
    %453 = arith.addf %435, %452 : vector<32x32xf32>
    %c96 = arith.constant 96 : index
    %454 = memref.load %arg1[%c96] : memref<202xf32, #tpu.memory_space<smem>>
    %455 = vector.broadcast %454 : f32 to vector<32x32xf32>
    %456 = arith.mulf %455, %441 : vector<32x32xf32>
    %457 = arith.addf %439, %456 : vector<32x32xf32>
    %c1_120 = arith.constant 1 : index
    %c1_121 = arith.constant 1 : index
    %c1_122 = arith.constant 1 : index
    %458 = vector.load %arg7[%c1_120, %c1_121, %c1_122] : memref<2x34x34xf32, #tpu.memory_space<vmem>>, vector<1x32x32xf32>
    %459 = vector.shape_cast %458 : vector<1x32x32xf32> to vector<32x32xf32>
    %c43 = arith.constant 43 : index
    %460 = memref.load %arg1[%c43] : memref<202xf32, #tpu.memory_space<smem>>
    %461 = vector.broadcast %460 : f32 to vector<32x32xf32>
    %462 = arith.mulf %461, %459 : vector<32x32xf32>
    %463 = arith.addf %445, %462 : vector<32x32xf32>
    %c61 = arith.constant 61 : index
    %464 = memref.load %arg1[%c61] : memref<202xf32, #tpu.memory_space<smem>>
    %465 = vector.broadcast %464 : f32 to vector<32x32xf32>
    %466 = arith.mulf %465, %459 : vector<32x32xf32>
    %467 = arith.addf %449, %466 : vector<32x32xf32>
    %c79 = arith.constant 79 : index
    %468 = memref.load %arg1[%c79] : memref<202xf32, #tpu.memory_space<smem>>
    %469 = vector.broadcast %468 : f32 to vector<32x32xf32>
    %470 = arith.mulf %469, %459 : vector<32x32xf32>
    %471 = arith.addf %453, %470 : vector<32x32xf32>
    %c97 = arith.constant 97 : index
    %472 = memref.load %arg1[%c97] : memref<202xf32, #tpu.memory_space<smem>>
    %473 = vector.broadcast %472 : f32 to vector<32x32xf32>
    %474 = arith.mulf %473, %459 : vector<32x32xf32>
    %475 = arith.addf %457, %474 : vector<32x32xf32>
    %c1_123 = arith.constant 1 : index
    %c1_124 = arith.constant 1 : index
    %c2_125 = arith.constant 2 : index
    %476 = vector.load %arg7[%c1_123, %c1_124, %c2_125] : memref<2x34x34xf32, #tpu.memory_space<vmem>>, vector<1x32x32xf32>
    %477 = vector.shape_cast %476 : vector<1x32x32xf32> to vector<32x32xf32>
    %c44 = arith.constant 44 : index
    %478 = memref.load %arg1[%c44] : memref<202xf32, #tpu.memory_space<smem>>
    %479 = vector.broadcast %478 : f32 to vector<32x32xf32>
    %480 = arith.mulf %479, %477 : vector<32x32xf32>
    %481 = arith.addf %463, %480 : vector<32x32xf32>
    %c62 = arith.constant 62 : index
    %482 = memref.load %arg1[%c62] : memref<202xf32, #tpu.memory_space<smem>>
    %483 = vector.broadcast %482 : f32 to vector<32x32xf32>
    %484 = arith.mulf %483, %477 : vector<32x32xf32>
    %485 = arith.addf %467, %484 : vector<32x32xf32>
    %c80 = arith.constant 80 : index
    %486 = memref.load %arg1[%c80] : memref<202xf32, #tpu.memory_space<smem>>
    %487 = vector.broadcast %486 : f32 to vector<32x32xf32>
    %488 = arith.mulf %487, %477 : vector<32x32xf32>
    %489 = arith.addf %471, %488 : vector<32x32xf32>
    %c98 = arith.constant 98 : index
    %490 = memref.load %arg1[%c98] : memref<202xf32, #tpu.memory_space<smem>>
    %491 = vector.broadcast %490 : f32 to vector<32x32xf32>
    %492 = arith.mulf %491, %477 : vector<32x32xf32>
    %493 = arith.addf %475, %492 : vector<32x32xf32>
    %c1_126 = arith.constant 1 : index
    %c2_127 = arith.constant 2 : index
    %c0_128 = arith.constant 0 : index
    %494 = vector.load %arg7[%c1_126, %c2_127, %c0_128] : memref<2x34x34xf32, #tpu.memory_space<vmem>>, vector<1x32x32xf32>
    %495 = vector.shape_cast %494 : vector<1x32x32xf32> to vector<32x32xf32>
    %c45 = arith.constant 45 : index
    %496 = memref.load %arg1[%c45] : memref<202xf32, #tpu.memory_space<smem>>
    %497 = vector.broadcast %496 : f32 to vector<32x32xf32>
    %498 = arith.mulf %497, %495 : vector<32x32xf32>
    %499 = arith.addf %481, %498 : vector<32x32xf32>
    %c63 = arith.constant 63 : index
    %500 = memref.load %arg1[%c63] : memref<202xf32, #tpu.memory_space<smem>>
    %501 = vector.broadcast %500 : f32 to vector<32x32xf32>
    %502 = arith.mulf %501, %495 : vector<32x32xf32>
    %503 = arith.addf %485, %502 : vector<32x32xf32>
    %c81 = arith.constant 81 : index
    %504 = memref.load %arg1[%c81] : memref<202xf32, #tpu.memory_space<smem>>
    %505 = vector.broadcast %504 : f32 to vector<32x32xf32>
    %506 = arith.mulf %505, %495 : vector<32x32xf32>
    %507 = arith.addf %489, %506 : vector<32x32xf32>
    %c99 = arith.constant 99 : index
    %508 = memref.load %arg1[%c99] : memref<202xf32, #tpu.memory_space<smem>>
    %509 = vector.broadcast %508 : f32 to vector<32x32xf32>
    %510 = arith.mulf %509, %495 : vector<32x32xf32>
    %511 = arith.addf %493, %510 : vector<32x32xf32>
    %c1_129 = arith.constant 1 : index
    %c2_130 = arith.constant 2 : index
    %c1_131 = arith.constant 1 : index
    %512 = vector.load %arg7[%c1_129, %c2_130, %c1_131] : memref<2x34x34xf32, #tpu.memory_space<vmem>>, vector<1x32x32xf32>
    %513 = vector.shape_cast %512 : vector<1x32x32xf32> to vector<32x32xf32>
    %c46 = arith.constant 46 : index
    %514 = memref.load %arg1[%c46] : memref<202xf32, #tpu.memory_space<smem>>
    %515 = vector.broadcast %514 : f32 to vector<32x32xf32>
    %516 = arith.mulf %515, %513 : vector<32x32xf32>
    %517 = arith.addf %499, %516 : vector<32x32xf32>
    %c64 = arith.constant 64 : index
    %518 = memref.load %arg1[%c64] : memref<202xf32, #tpu.memory_space<smem>>
    %519 = vector.broadcast %518 : f32 to vector<32x32xf32>
    %520 = arith.mulf %519, %513 : vector<32x32xf32>
    %521 = arith.addf %503, %520 : vector<32x32xf32>
    %c82 = arith.constant 82 : index
    %522 = memref.load %arg1[%c82] : memref<202xf32, #tpu.memory_space<smem>>
    %523 = vector.broadcast %522 : f32 to vector<32x32xf32>
    %524 = arith.mulf %523, %513 : vector<32x32xf32>
    %525 = arith.addf %507, %524 : vector<32x32xf32>
    %c100 = arith.constant 100 : index
    %526 = memref.load %arg1[%c100] : memref<202xf32, #tpu.memory_space<smem>>
    %527 = vector.broadcast %526 : f32 to vector<32x32xf32>
    %528 = arith.mulf %527, %513 : vector<32x32xf32>
    %529 = arith.addf %511, %528 : vector<32x32xf32>
    %c1_132 = arith.constant 1 : index
    %c2_133 = arith.constant 2 : index
    %c2_134 = arith.constant 2 : index
    %530 = vector.load %arg7[%c1_132, %c2_133, %c2_134] : memref<2x34x34xf32, #tpu.memory_space<vmem>>, vector<1x32x32xf32>
    %531 = vector.shape_cast %530 : vector<1x32x32xf32> to vector<32x32xf32>
    %c47 = arith.constant 47 : index
    %532 = memref.load %arg1[%c47] : memref<202xf32, #tpu.memory_space<smem>>
    %533 = vector.broadcast %532 : f32 to vector<32x32xf32>
    %534 = arith.mulf %533, %531 : vector<32x32xf32>
    %535 = arith.addf %517, %534 : vector<32x32xf32>
    %c65 = arith.constant 65 : index
    %536 = memref.load %arg1[%c65] : memref<202xf32, #tpu.memory_space<smem>>
    %537 = vector.broadcast %536 : f32 to vector<32x32xf32>
    %538 = arith.mulf %537, %531 : vector<32x32xf32>
    %539 = arith.addf %521, %538 : vector<32x32xf32>
    %c83 = arith.constant 83 : index
    %540 = memref.load %arg1[%c83] : memref<202xf32, #tpu.memory_space<smem>>
    %541 = vector.broadcast %540 : f32 to vector<32x32xf32>
    %542 = arith.mulf %541, %531 : vector<32x32xf32>
    %543 = arith.addf %525, %542 : vector<32x32xf32>
    %c101 = arith.constant 101 : index
    %544 = memref.load %arg1[%c101] : memref<202xf32, #tpu.memory_space<smem>>
    %545 = vector.broadcast %544 : f32 to vector<32x32xf32>
    %546 = arith.mulf %545, %531 : vector<32x32xf32>
    %547 = arith.addf %529, %546 : vector<32x32xf32>
    %cst_135 = arith.constant 0.000000e+00 : f32
    %548 = vector.broadcast %cst_135 : f32 to vector<32x32xf32>
    %549 = arith.cmpf ogt, %535, %548 : vector<32x32xf32>
    %cst_136 = arith.constant 1.000000e-01 : f32
    %550 = vector.broadcast %cst_136 : f32 to vector<32x32xf32>
    %551 = arith.mulf %550, %535 : vector<32x32xf32>
    %552 = arith.select %549, %535, %551 : vector<32x32xi1>, vector<32x32xf32>
    %cst_137 = arith.constant 0.000000e+00 : f32
    %553 = vector.broadcast %cst_137 : f32 to vector<32x32xf32>
    %554 = arith.cmpf ogt, %539, %553 : vector<32x32xf32>
    %cst_138 = arith.constant 1.000000e-01 : f32
    %555 = vector.broadcast %cst_138 : f32 to vector<32x32xf32>
    %556 = arith.mulf %555, %539 : vector<32x32xf32>
    %557 = arith.select %554, %539, %556 : vector<32x32xi1>, vector<32x32xf32>
    %cst_139 = arith.constant 0.000000e+00 : f32
    %558 = vector.broadcast %cst_139 : f32 to vector<32x32xf32>
    %559 = arith.cmpf ogt, %543, %558 : vector<32x32xf32>
    %cst_140 = arith.constant 1.000000e-01 : f32
    %560 = vector.broadcast %cst_140 : f32 to vector<32x32xf32>
    %561 = arith.mulf %560, %543 : vector<32x32xf32>
    %562 = arith.select %559, %543, %561 : vector<32x32xi1>, vector<32x32xf32>
    %cst_141 = arith.constant 0.000000e+00 : f32
    %563 = vector.broadcast %cst_141 : f32 to vector<32x32xf32>
    %564 = arith.cmpf ogt, %547, %563 : vector<32x32xf32>
    %cst_142 = arith.constant 1.000000e-01 : f32
    %565 = vector.broadcast %cst_142 : f32 to vector<32x32xf32>
    %566 = arith.mulf %565, %547 : vector<32x32xf32>
    %567 = arith.select %564, %547, %566 : vector<32x32xi1>, vector<32x32xf32>
    %cst_143 = arith.constant 0.000000e+00 : f32
    %568 = vector.broadcast %cst_143 : f32 to vector<32x32xf32>
    %c114 = arith.constant 114 : index
    %569 = memref.load %arg1[%c114] : memref<202xf32, #tpu.memory_space<smem>>
    %570 = vector.broadcast %569 : f32 to vector<32x32xf32>
    %571 = arith.addf %568, %570 : vector<32x32xf32>
    %c106 = arith.constant 106 : index
    %572 = memref.load %arg1[%c106] : memref<202xf32, #tpu.memory_space<smem>>
    %573 = vector.broadcast %572 : f32 to vector<32x32xf32>
    %574 = arith.mulf %573, %552 : vector<32x32xf32>
    %575 = arith.addf %571, %574 : vector<32x32xf32>
    %c107 = arith.constant 107 : index
    %576 = memref.load %arg1[%c107] : memref<202xf32, #tpu.memory_space<smem>>
    %577 = vector.broadcast %576 : f32 to vector<32x32xf32>
    %578 = arith.mulf %577, %557 : vector<32x32xf32>
    %579 = arith.addf %575, %578 : vector<32x32xf32>
    %c108 = arith.constant 108 : index
    %580 = memref.load %arg1[%c108] : memref<202xf32, #tpu.memory_space<smem>>
    %581 = vector.broadcast %580 : f32 to vector<32x32xf32>
    %582 = arith.mulf %581, %562 : vector<32x32xf32>
    %583 = arith.addf %579, %582 : vector<32x32xf32>
    %c109 = arith.constant 109 : index
    %584 = memref.load %arg1[%c109] : memref<202xf32, #tpu.memory_space<smem>>
    %585 = vector.broadcast %584 : f32 to vector<32x32xf32>
    %586 = arith.mulf %585, %567 : vector<32x32xf32>
    %587 = arith.addf %583, %586 : vector<32x32xf32>
    %cst_144 = arith.constant 0.000000e+00 : f32
    %588 = vector.broadcast %cst_144 : f32 to vector<32x32xf32>
    %589 = arith.cmpf ogt, %587, %588 : vector<32x32xf32>
    %cst_145 = arith.constant 1.000000e-01 : f32
    %590 = vector.broadcast %cst_145 : f32 to vector<32x32xf32>
    %591 = arith.mulf %590, %587 : vector<32x32xf32>
    %592 = arith.select %589, %587, %591 : vector<32x32xi1>, vector<32x32xf32>
    %cst_146 = arith.constant 0.000000e+00 : f32
    %593 = vector.broadcast %cst_146 : f32 to vector<32x32xf32>
    %c115 = arith.constant 115 : index
    %594 = memref.load %arg1[%c115] : memref<202xf32, #tpu.memory_space<smem>>
    %595 = vector.broadcast %594 : f32 to vector<32x32xf32>
    %596 = arith.addf %593, %595 : vector<32x32xf32>
    %c110 = arith.constant 110 : index
    %597 = memref.load %arg1[%c110] : memref<202xf32, #tpu.memory_space<smem>>
    %598 = vector.broadcast %597 : f32 to vector<32x32xf32>
    %599 = arith.mulf %598, %552 : vector<32x32xf32>
    %600 = arith.addf %596, %599 : vector<32x32xf32>
    %c111 = arith.constant 111 : index
    %601 = memref.load %arg1[%c111] : memref<202xf32, #tpu.memory_space<smem>>
    %602 = vector.broadcast %601 : f32 to vector<32x32xf32>
    %603 = arith.mulf %602, %557 : vector<32x32xf32>
    %604 = arith.addf %600, %603 : vector<32x32xf32>
    %c112 = arith.constant 112 : index
    %605 = memref.load %arg1[%c112] : memref<202xf32, #tpu.memory_space<smem>>
    %606 = vector.broadcast %605 : f32 to vector<32x32xf32>
    %607 = arith.mulf %606, %562 : vector<32x32xf32>
    %608 = arith.addf %604, %607 : vector<32x32xf32>
    %c113 = arith.constant 113 : index
    %609 = memref.load %arg1[%c113] : memref<202xf32, #tpu.memory_space<smem>>
    %610 = vector.broadcast %609 : f32 to vector<32x32xf32>
    %611 = arith.mulf %610, %567 : vector<32x32xf32>
    %612 = arith.addf %608, %611 : vector<32x32xf32>
    %cst_147 = arith.constant 0.000000e+00 : f32
    %613 = vector.broadcast %cst_147 : f32 to vector<32x32xf32>
    %614 = arith.cmpf ogt, %612, %613 : vector<32x32xf32>
    %cst_148 = arith.constant 1.000000e-01 : f32
    %615 = vector.broadcast %cst_148 : f32 to vector<32x32xf32>
    %616 = arith.mulf %615, %612 : vector<32x32xf32>
    %617 = arith.select %614, %612, %616 : vector<32x32xi1>, vector<32x32xf32>
    %c0_149 = arith.constant 0 : index
    %c1_150 = arith.constant 1 : index
    %c1_151 = arith.constant 1 : index
    %618 = vector.load %arg7[%c0_149, %c1_150, %c1_151] : memref<2x34x34xf32, #tpu.memory_space<vmem>>, vector<1x32x32xf32>
    %619 = vector.shape_cast %618 : vector<1x32x32xf32> to vector<32x32xf32>
    %620 = vector.shape_cast %592 : vector<32x32xf32> to vector<1x32x32xf32>
    tpu.vector_store %arg7[%c0_149, %c1_150, %c1_151], %620 {strides = array<i32>} : memref<2x34x34xf32, #tpu.memory_space<vmem>>, vector<1x32x32xf32>,
    %c1_152 = arith.constant 1 : index
    %c1_153 = arith.constant 1 : index
    %c1_154 = arith.constant 1 : index
    %621 = vector.load %arg7[%c1_152, %c1_153, %c1_154] : memref<2x34x34xf32, #tpu.memory_space<vmem>>, vector<1x32x32xf32>
    %622 = vector.shape_cast %621 : vector<1x32x32xf32> to vector<32x32xf32>
    %623 = vector.shape_cast %617 : vector<32x32xf32> to vector<1x32x32xf32>
    tpu.vector_store %arg7[%c1_152, %c1_153, %c1_154], %623 {strides = array<i32>} : memref<2x34x34xf32, #tpu.memory_space<vmem>>, vector<1x32x32xf32>,
    %cst_155 = arith.constant 0.000000e+00 : f32
    %624 = vector.broadcast %cst_155 : f32 to vector<32x32xf32>
    %c188 = arith.constant 188 : index
    %625 = memref.load %arg1[%c188] : memref<202xf32, #tpu.memory_space<smem>>
    %626 = vector.broadcast %625 : f32 to vector<32x32xf32>
    %627 = arith.addf %624, %626 : vector<32x32xf32>
    %cst_156 = arith.constant 0.000000e+00 : f32
    %628 = vector.broadcast %cst_156 : f32 to vector<32x32xf32>
    %c189 = arith.constant 189 : index
    %629 = memref.load %arg1[%c189] : memref<202xf32, #tpu.memory_space<smem>>
    %630 = vector.broadcast %629 : f32 to vector<32x32xf32>
    %631 = arith.addf %628, %630 : vector<32x32xf32>
    %cst_157 = arith.constant 0.000000e+00 : f32
    %632 = vector.broadcast %cst_157 : f32 to vector<32x32xf32>
    %c190 = arith.constant 190 : index
    %633 = memref.load %arg1[%c190] : memref<202xf32, #tpu.memory_space<smem>>
    %634 = vector.broadcast %633 : f32 to vector<32x32xf32>
    %635 = arith.addf %632, %634 : vector<32x32xf32>
    %cst_158 = arith.constant 0.000000e+00 : f32
    %636 = vector.broadcast %cst_158 : f32 to vector<32x32xf32>
    %c191 = arith.constant 191 : index
    %637 = memref.load %arg1[%c191] : memref<202xf32, #tpu.memory_space<smem>>
    %638 = vector.broadcast %637 : f32 to vector<32x32xf32>
    %639 = arith.addf %636, %638 : vector<32x32xf32>
    %c0_159 = arith.constant 0 : index
    %c0_160 = arith.constant 0 : index
    %c0_161 = arith.constant 0 : index
    %640 = vector.load %arg7[%c0_159, %c0_160, %c0_161] : memref<2x34x34xf32, #tpu.memory_space<vmem>>, vector<1x32x32xf32>
    %641 = vector.shape_cast %640 : vector<1x32x32xf32> to vector<32x32xf32>
    %c116 = arith.constant 116 : index
    %642 = memref.load %arg1[%c116] : memref<202xf32, #tpu.memory_space<smem>>
    %643 = vector.broadcast %642 : f32 to vector<32x32xf32>
    %644 = arith.mulf %643, %641 : vector<32x32xf32>
    %645 = arith.addf %627, %644 : vector<32x32xf32>
    %c134 = arith.constant 134 : index
    %646 = memref.load %arg1[%c134] : memref<202xf32, #tpu.memory_space<smem>>
    %647 = vector.broadcast %646 : f32 to vector<32x32xf32>
    %648 = arith.mulf %647, %641 : vector<32x32xf32>
    %649 = arith.addf %631, %648 : vector<32x32xf32>
    %c152 = arith.constant 152 : index
    %650 = memref.load %arg1[%c152] : memref<202xf32, #tpu.memory_space<smem>>
    %651 = vector.broadcast %650 : f32 to vector<32x32xf32>
    %652 = arith.mulf %651, %641 : vector<32x32xf32>
    %653 = arith.addf %635, %652 : vector<32x32xf32>
    %c170 = arith.constant 170 : index
    %654 = memref.load %arg1[%c170] : memref<202xf32, #tpu.memory_space<smem>>
    %655 = vector.broadcast %654 : f32 to vector<32x32xf32>
    %656 = arith.mulf %655, %641 : vector<32x32xf32>
    %657 = arith.addf %639, %656 : vector<32x32xf32>
    %c0_162 = arith.constant 0 : index
    %c0_163 = arith.constant 0 : index
    %c1_164 = arith.constant 1 : index
    %658 = vector.load %arg7[%c0_162, %c0_163, %c1_164] : memref<2x34x34xf32, #tpu.memory_space<vmem>>, vector<1x32x32xf32>
    %659 = vector.shape_cast %658 : vector<1x32x32xf32> to vector<32x32xf32>
    %c117 = arith.constant 117 : index
    %660 = memref.load %arg1[%c117] : memref<202xf32, #tpu.memory_space<smem>>
    %661 = vector.broadcast %660 : f32 to vector<32x32xf32>
    %662 = arith.mulf %661, %659 : vector<32x32xf32>
    %663 = arith.addf %645, %662 : vector<32x32xf32>
    %c135 = arith.constant 135 : index
    %664 = memref.load %arg1[%c135] : memref<202xf32, #tpu.memory_space<smem>>
    %665 = vector.broadcast %664 : f32 to vector<32x32xf32>
    %666 = arith.mulf %665, %659 : vector<32x32xf32>
    %667 = arith.addf %649, %666 : vector<32x32xf32>
    %c153 = arith.constant 153 : index
    %668 = memref.load %arg1[%c153] : memref<202xf32, #tpu.memory_space<smem>>
    %669 = vector.broadcast %668 : f32 to vector<32x32xf32>
    %670 = arith.mulf %669, %659 : vector<32x32xf32>
    %671 = arith.addf %653, %670 : vector<32x32xf32>
    %c171 = arith.constant 171 : index
    %672 = memref.load %arg1[%c171] : memref<202xf32, #tpu.memory_space<smem>>
    %673 = vector.broadcast %672 : f32 to vector<32x32xf32>
    %674 = arith.mulf %673, %659 : vector<32x32xf32>
    %675 = arith.addf %657, %674 : vector<32x32xf32>
    %c0_165 = arith.constant 0 : index
    %c0_166 = arith.constant 0 : index
    %c2_167 = arith.constant 2 : index
    %676 = vector.load %arg7[%c0_165, %c0_166, %c2_167] : memref<2x34x34xf32, #tpu.memory_space<vmem>>, vector<1x32x32xf32>
    %677 = vector.shape_cast %676 : vector<1x32x32xf32> to vector<32x32xf32>
    %c118 = arith.constant 118 : index
    %678 = memref.load %arg1[%c118] : memref<202xf32, #tpu.memory_space<smem>>
    %679 = vector.broadcast %678 : f32 to vector<32x32xf32>
    %680 = arith.mulf %679, %677 : vector<32x32xf32>
    %681 = arith.addf %663, %680 : vector<32x32xf32>
    %c136 = arith.constant 136 : index
    %682 = memref.load %arg1[%c136] : memref<202xf32, #tpu.memory_space<smem>>
    %683 = vector.broadcast %682 : f32 to vector<32x32xf32>
    %684 = arith.mulf %683, %677 : vector<32x32xf32>
    %685 = arith.addf %667, %684 : vector<32x32xf32>
    %c154 = arith.constant 154 : index
    %686 = memref.load %arg1[%c154] : memref<202xf32, #tpu.memory_space<smem>>
    %687 = vector.broadcast %686 : f32 to vector<32x32xf32>
    %688 = arith.mulf %687, %677 : vector<32x32xf32>
    %689 = arith.addf %671, %688 : vector<32x32xf32>
    %c172 = arith.constant 172 : index
    %690 = memref.load %arg1[%c172] : memref<202xf32, #tpu.memory_space<smem>>
    %691 = vector.broadcast %690 : f32 to vector<32x32xf32>
    %692 = arith.mulf %691, %677 : vector<32x32xf32>
    %693 = arith.addf %675, %692 : vector<32x32xf32>
    %c0_168 = arith.constant 0 : index
    %c1_169 = arith.constant 1 : index
    %c0_170 = arith.constant 0 : index
    %694 = vector.load %arg7[%c0_168, %c1_169, %c0_170] : memref<2x34x34xf32, #tpu.memory_space<vmem>>, vector<1x32x32xf32>
    %695 = vector.shape_cast %694 : vector<1x32x32xf32> to vector<32x32xf32>
    %c119 = arith.constant 119 : index
    %696 = memref.load %arg1[%c119] : memref<202xf32, #tpu.memory_space<smem>>
    %697 = vector.broadcast %696 : f32 to vector<32x32xf32>
    %698 = arith.mulf %697, %695 : vector<32x32xf32>
    %699 = arith.addf %681, %698 : vector<32x32xf32>
    %c137 = arith.constant 137 : index
    %700 = memref.load %arg1[%c137] : memref<202xf32, #tpu.memory_space<smem>>
    %701 = vector.broadcast %700 : f32 to vector<32x32xf32>
    %702 = arith.mulf %701, %695 : vector<32x32xf32>
    %703 = arith.addf %685, %702 : vector<32x32xf32>
    %c155 = arith.constant 155 : index
    %704 = memref.load %arg1[%c155] : memref<202xf32, #tpu.memory_space<smem>>
    %705 = vector.broadcast %704 : f32 to vector<32x32xf32>
    %706 = arith.mulf %705, %695 : vector<32x32xf32>
    %707 = arith.addf %689, %706 : vector<32x32xf32>
    %c173 = arith.constant 173 : index
    %708 = memref.load %arg1[%c173] : memref<202xf32, #tpu.memory_space<smem>>
    %709 = vector.broadcast %708 : f32 to vector<32x32xf32>
    %710 = arith.mulf %709, %695 : vector<32x32xf32>
    %711 = arith.addf %693, %710 : vector<32x32xf32>
    %c0_171 = arith.constant 0 : index
    %c1_172 = arith.constant 1 : index
    %c1_173 = arith.constant 1 : index
    %712 = vector.load %arg7[%c0_171, %c1_172, %c1_173] : memref<2x34x34xf32, #tpu.memory_space<vmem>>, vector<1x32x32xf32>
    %713 = vector.shape_cast %712 : vector<1x32x32xf32> to vector<32x32xf32>
    %c120 = arith.constant 120 : index
    %714 = memref.load %arg1[%c120] : memref<202xf32, #tpu.memory_space<smem>>
    %715 = vector.broadcast %714 : f32 to vector<32x32xf32>
    %716 = arith.mulf %715, %713 : vector<32x32xf32>
    %717 = arith.addf %699, %716 : vector<32x32xf32>
    %c138 = arith.constant 138 : index
    %718 = memref.load %arg1[%c138] : memref<202xf32, #tpu.memory_space<smem>>
    %719 = vector.broadcast %718 : f32 to vector<32x32xf32>
    %720 = arith.mulf %719, %713 : vector<32x32xf32>
    %721 = arith.addf %703, %720 : vector<32x32xf32>
    %c156 = arith.constant 156 : index
    %722 = memref.load %arg1[%c156] : memref<202xf32, #tpu.memory_space<smem>>
    %723 = vector.broadcast %722 : f32 to vector<32x32xf32>
    %724 = arith.mulf %723, %713 : vector<32x32xf32>
    %725 = arith.addf %707, %724 : vector<32x32xf32>
    %c174 = arith.constant 174 : index
    %726 = memref.load %arg1[%c174] : memref<202xf32, #tpu.memory_space<smem>>
    %727 = vector.broadcast %726 : f32 to vector<32x32xf32>
    %728 = arith.mulf %727, %713 : vector<32x32xf32>
    %729 = arith.addf %711, %728 : vector<32x32xf32>
    %c0_174 = arith.constant 0 : index
    %c1_175 = arith.constant 1 : index
    %c2_176 = arith.constant 2 : index
    %730 = vector.load %arg7[%c0_174, %c1_175, %c2_176] : memref<2x34x34xf32, #tpu.memory_space<vmem>>, vector<1x32x32xf32>
    %731 = vector.shape_cast %730 : vector<1x32x32xf32> to vector<32x32xf32>
    %c121 = arith.constant 121 : index
    %732 = memref.load %arg1[%c121] : memref<202xf32, #tpu.memory_space<smem>>
    %733 = vector.broadcast %732 : f32 to vector<32x32xf32>
    %734 = arith.mulf %733, %731 : vector<32x32xf32>
    %735 = arith.addf %717, %734 : vector<32x32xf32>
    %c139 = arith.constant 139 : index
    %736 = memref.load %arg1[%c139] : memref<202xf32, #tpu.memory_space<smem>>
    %737 = vector.broadcast %736 : f32 to vector<32x32xf32>
    %738 = arith.mulf %737, %731 : vector<32x32xf32>
    %739 = arith.addf %721, %738 : vector<32x32xf32>
    %c157 = arith.constant 157 : index
    %740 = memref.load %arg1[%c157] : memref<202xf32, #tpu.memory_space<smem>>
    %741 = vector.broadcast %740 : f32 to vector<32x32xf32>
    %742 = arith.mulf %741, %731 : vector<32x32xf32>
    %743 = arith.addf %725, %742 : vector<32x32xf32>
    %c175 = arith.constant 175 : index
    %744 = memref.load %arg1[%c175] : memref<202xf32, #tpu.memory_space<smem>>
    %745 = vector.broadcast %744 : f32 to vector<32x32xf32>
    %746 = arith.mulf %745, %731 : vector<32x32xf32>
    %747 = arith.addf %729, %746 : vector<32x32xf32>
    %c0_177 = arith.constant 0 : index
    %c2_178 = arith.constant 2 : index
    %c0_179 = arith.constant 0 : index
    %748 = vector.load %arg7[%c0_177, %c2_178, %c0_179] : memref<2x34x34xf32, #tpu.memory_space<vmem>>, vector<1x32x32xf32>
    %749 = vector.shape_cast %748 : vector<1x32x32xf32> to vector<32x32xf32>
    %c122 = arith.constant 122 : index
    %750 = memref.load %arg1[%c122] : memref<202xf32, #tpu.memory_space<smem>>
    %751 = vector.broadcast %750 : f32 to vector<32x32xf32>
    %752 = arith.mulf %751, %749 : vector<32x32xf32>
    %753 = arith.addf %735, %752 : vector<32x32xf32>
    %c140 = arith.constant 140 : index
    %754 = memref.load %arg1[%c140] : memref<202xf32, #tpu.memory_space<smem>>
    %755 = vector.broadcast %754 : f32 to vector<32x32xf32>
    %756 = arith.mulf %755, %749 : vector<32x32xf32>
    %757 = arith.addf %739, %756 : vector<32x32xf32>
    %c158 = arith.constant 158 : index
    %758 = memref.load %arg1[%c158] : memref<202xf32, #tpu.memory_space<smem>>
    %759 = vector.broadcast %758 : f32 to vector<32x32xf32>
    %760 = arith.mulf %759, %749 : vector<32x32xf32>
    %761 = arith.addf %743, %760 : vector<32x32xf32>
    %c176 = arith.constant 176 : index
    %762 = memref.load %arg1[%c176] : memref<202xf32, #tpu.memory_space<smem>>
    %763 = vector.broadcast %762 : f32 to vector<32x32xf32>
    %764 = arith.mulf %763, %749 : vector<32x32xf32>
    %765 = arith.addf %747, %764 : vector<32x32xf32>
    %c0_180 = arith.constant 0 : index
    %c2_181 = arith.constant 2 : index
    %c1_182 = arith.constant 1 : index
    %766 = vector.load %arg7[%c0_180, %c2_181, %c1_182] : memref<2x34x34xf32, #tpu.memory_space<vmem>>, vector<1x32x32xf32>
    %767 = vector.shape_cast %766 : vector<1x32x32xf32> to vector<32x32xf32>
    %c123 = arith.constant 123 : index
    %768 = memref.load %arg1[%c123] : memref<202xf32, #tpu.memory_space<smem>>
    %769 = vector.broadcast %768 : f32 to vector<32x32xf32>
    %770 = arith.mulf %769, %767 : vector<32x32xf32>
    %771 = arith.addf %753, %770 : vector<32x32xf32>
    %c141 = arith.constant 141 : index
    %772 = memref.load %arg1[%c141] : memref<202xf32, #tpu.memory_space<smem>>
    %773 = vector.broadcast %772 : f32 to vector<32x32xf32>
    %774 = arith.mulf %773, %767 : vector<32x32xf32>
    %775 = arith.addf %757, %774 : vector<32x32xf32>
    %c159 = arith.constant 159 : index
    %776 = memref.load %arg1[%c159] : memref<202xf32, #tpu.memory_space<smem>>
    %777 = vector.broadcast %776 : f32 to vector<32x32xf32>
    %778 = arith.mulf %777, %767 : vector<32x32xf32>
    %779 = arith.addf %761, %778 : vector<32x32xf32>
    %c177 = arith.constant 177 : index
    %780 = memref.load %arg1[%c177] : memref<202xf32, #tpu.memory_space<smem>>
    %781 = vector.broadcast %780 : f32 to vector<32x32xf32>
    %782 = arith.mulf %781, %767 : vector<32x32xf32>
    %783 = arith.addf %765, %782 : vector<32x32xf32>
    %c0_183 = arith.constant 0 : index
    %c2_184 = arith.constant 2 : index
    %c2_185 = arith.constant 2 : index
    %784 = vector.load %arg7[%c0_183, %c2_184, %c2_185] : memref<2x34x34xf32, #tpu.memory_space<vmem>>, vector<1x32x32xf32>
    %785 = vector.shape_cast %784 : vector<1x32x32xf32> to vector<32x32xf32>
    %c124 = arith.constant 124 : index
    %786 = memref.load %arg1[%c124] : memref<202xf32, #tpu.memory_space<smem>>
    %787 = vector.broadcast %786 : f32 to vector<32x32xf32>
    %788 = arith.mulf %787, %785 : vector<32x32xf32>
    %789 = arith.addf %771, %788 : vector<32x32xf32>
    %c142 = arith.constant 142 : index
    %790 = memref.load %arg1[%c142] : memref<202xf32, #tpu.memory_space<smem>>
    %791 = vector.broadcast %790 : f32 to vector<32x32xf32>
    %792 = arith.mulf %791, %785 : vector<32x32xf32>
    %793 = arith.addf %775, %792 : vector<32x32xf32>
    %c160 = arith.constant 160 : index
    %794 = memref.load %arg1[%c160] : memref<202xf32, #tpu.memory_space<smem>>
    %795 = vector.broadcast %794 : f32 to vector<32x32xf32>
    %796 = arith.mulf %795, %785 : vector<32x32xf32>
    %797 = arith.addf %779, %796 : vector<32x32xf32>
    %c178 = arith.constant 178 : index
    %798 = memref.load %arg1[%c178] : memref<202xf32, #tpu.memory_space<smem>>
    %799 = vector.broadcast %798 : f32 to vector<32x32xf32>
    %800 = arith.mulf %799, %785 : vector<32x32xf32>
    %801 = arith.addf %783, %800 : vector<32x32xf32>
    %c1_186 = arith.constant 1 : index
    %c0_187 = arith.constant 0 : index
    %c0_188 = arith.constant 0 : index
    %802 = vector.load %arg7[%c1_186, %c0_187, %c0_188] : memref<2x34x34xf32, #tpu.memory_space<vmem>>, vector<1x32x32xf32>
    %803 = vector.shape_cast %802 : vector<1x32x32xf32> to vector<32x32xf32>
    %c125 = arith.constant 125 : index
    %804 = memref.load %arg1[%c125] : memref<202xf32, #tpu.memory_space<smem>>
    %805 = vector.broadcast %804 : f32 to vector<32x32xf32>
    %806 = arith.mulf %805, %803 : vector<32x32xf32>
    %807 = arith.addf %789, %806 : vector<32x32xf32>
    %c143 = arith.constant 143 : index
    %808 = memref.load %arg1[%c143] : memref<202xf32, #tpu.memory_space<smem>>
    %809 = vector.broadcast %808 : f32 to vector<32x32xf32>
    %810 = arith.mulf %809, %803 : vector<32x32xf32>
    %811 = arith.addf %793, %810 : vector<32x32xf32>
    %c161 = arith.constant 161 : index
    %812 = memref.load %arg1[%c161] : memref<202xf32, #tpu.memory_space<smem>>
    %813 = vector.broadcast %812 : f32 to vector<32x32xf32>
    %814 = arith.mulf %813, %803 : vector<32x32xf32>
    %815 = arith.addf %797, %814 : vector<32x32xf32>
    %c179 = arith.constant 179 : index
    %816 = memref.load %arg1[%c179] : memref<202xf32, #tpu.memory_space<smem>>
    %817 = vector.broadcast %816 : f32 to vector<32x32xf32>
    %818 = arith.mulf %817, %803 : vector<32x32xf32>
    %819 = arith.addf %801, %818 : vector<32x32xf32>
    %c1_189 = arith.constant 1 : index
    %c0_190 = arith.constant 0 : index
    %c1_191 = arith.constant 1 : index
    %820 = vector.load %arg7[%c1_189, %c0_190, %c1_191] : memref<2x34x34xf32, #tpu.memory_space<vmem>>, vector<1x32x32xf32>
    %821 = vector.shape_cast %820 : vector<1x32x32xf32> to vector<32x32xf32>
    %c126 = arith.constant 126 : index
    %822 = memref.load %arg1[%c126] : memref<202xf32, #tpu.memory_space<smem>>
    %823 = vector.broadcast %822 : f32 to vector<32x32xf32>
    %824 = arith.mulf %823, %821 : vector<32x32xf32>
    %825 = arith.addf %807, %824 : vector<32x32xf32>
    %c144 = arith.constant 144 : index
    %826 = memref.load %arg1[%c144] : memref<202xf32, #tpu.memory_space<smem>>
    %827 = vector.broadcast %826 : f32 to vector<32x32xf32>
    %828 = arith.mulf %827, %821 : vector<32x32xf32>
    %829 = arith.addf %811, %828 : vector<32x32xf32>
    %c162 = arith.constant 162 : index
    %830 = memref.load %arg1[%c162] : memref<202xf32, #tpu.memory_space<smem>>
    %831 = vector.broadcast %830 : f32 to vector<32x32xf32>
    %832 = arith.mulf %831, %821 : vector<32x32xf32>
    %833 = arith.addf %815, %832 : vector<32x32xf32>
    %c180 = arith.constant 180 : index
    %834 = memref.load %arg1[%c180] : memref<202xf32, #tpu.memory_space<smem>>
    %835 = vector.broadcast %834 : f32 to vector<32x32xf32>
    %836 = arith.mulf %835, %821 : vector<32x32xf32>
    %837 = arith.addf %819, %836 : vector<32x32xf32>
    %c1_192 = arith.constant 1 : index
    %c0_193 = arith.constant 0 : index
    %c2_194 = arith.constant 2 : index
    %838 = vector.load %arg7[%c1_192, %c0_193, %c2_194] : memref<2x34x34xf32, #tpu.memory_space<vmem>>, vector<1x32x32xf32>
    %839 = vector.shape_cast %838 : vector<1x32x32xf32> to vector<32x32xf32>
    %c127 = arith.constant 127 : index
    %840 = memref.load %arg1[%c127] : memref<202xf32, #tpu.memory_space<smem>>
    %841 = vector.broadcast %840 : f32 to vector<32x32xf32>
    %842 = arith.mulf %841, %839 : vector<32x32xf32>
    %843 = arith.addf %825, %842 : vector<32x32xf32>
    %c145 = arith.constant 145 : index
    %844 = memref.load %arg1[%c145] : memref<202xf32, #tpu.memory_space<smem>>
    %845 = vector.broadcast %844 : f32 to vector<32x32xf32>
    %846 = arith.mulf %845, %839 : vector<32x32xf32>
    %847 = arith.addf %829, %846 : vector<32x32xf32>
    %c163 = arith.constant 163 : index
    %848 = memref.load %arg1[%c163] : memref<202xf32, #tpu.memory_space<smem>>
    %849 = vector.broadcast %848 : f32 to vector<32x32xf32>
    %850 = arith.mulf %849, %839 : vector<32x32xf32>
    %851 = arith.addf %833, %850 : vector<32x32xf32>
    %c181 = arith.constant 181 : index
    %852 = memref.load %arg1[%c181] : memref<202xf32, #tpu.memory_space<smem>>
    %853 = vector.broadcast %852 : f32 to vector<32x32xf32>
    %854 = arith.mulf %853, %839 : vector<32x32xf32>
    %855 = arith.addf %837, %854 : vector<32x32xf32>
    %c1_195 = arith.constant 1 : index
    %c1_196 = arith.constant 1 : index
    %c0_197 = arith.constant 0 : index
    %856 = vector.load %arg7[%c1_195, %c1_196, %c0_197] : memref<2x34x34xf32, #tpu.memory_space<vmem>>, vector<1x32x32xf32>
    %857 = vector.shape_cast %856 : vector<1x32x32xf32> to vector<32x32xf32>
    %c128 = arith.constant 128 : index
    %858 = memref.load %arg1[%c128] : memref<202xf32, #tpu.memory_space<smem>>
    %859 = vector.broadcast %858 : f32 to vector<32x32xf32>
    %860 = arith.mulf %859, %857 : vector<32x32xf32>
    %861 = arith.addf %843, %860 : vector<32x32xf32>
    %c146 = arith.constant 146 : index
    %862 = memref.load %arg1[%c146] : memref<202xf32, #tpu.memory_space<smem>>
    %863 = vector.broadcast %862 : f32 to vector<32x32xf32>
    %864 = arith.mulf %863, %857 : vector<32x32xf32>
    %865 = arith.addf %847, %864 : vector<32x32xf32>
    %c164 = arith.constant 164 : index
    %866 = memref.load %arg1[%c164] : memref<202xf32, #tpu.memory_space<smem>>
    %867 = vector.broadcast %866 : f32 to vector<32x32xf32>
    %868 = arith.mulf %867, %857 : vector<32x32xf32>
    %869 = arith.addf %851, %868 : vector<32x32xf32>
    %c182 = arith.constant 182 : index
    %870 = memref.load %arg1[%c182] : memref<202xf32, #tpu.memory_space<smem>>
    %871 = vector.broadcast %870 : f32 to vector<32x32xf32>
    %872 = arith.mulf %871, %857 : vector<32x32xf32>
    %873 = arith.addf %855, %872 : vector<32x32xf32>
    %c1_198 = arith.constant 1 : index
    %c1_199 = arith.constant 1 : index
    %c1_200 = arith.constant 1 : index
    %874 = vector.load %arg7[%c1_198, %c1_199, %c1_200] : memref<2x34x34xf32, #tpu.memory_space<vmem>>, vector<1x32x32xf32>
    %875 = vector.shape_cast %874 : vector<1x32x32xf32> to vector<32x32xf32>
    %c129 = arith.constant 129 : index
    %876 = memref.load %arg1[%c129] : memref<202xf32, #tpu.memory_space<smem>>
    %877 = vector.broadcast %876 : f32 to vector<32x32xf32>
    %878 = arith.mulf %877, %875 : vector<32x32xf32>
    %879 = arith.addf %861, %878 : vector<32x32xf32>
    %c147 = arith.constant 147 : index
    %880 = memref.load %arg1[%c147] : memref<202xf32, #tpu.memory_space<smem>>
    %881 = vector.broadcast %880 : f32 to vector<32x32xf32>
    %882 = arith.mulf %881, %875 : vector<32x32xf32>
    %883 = arith.addf %865, %882 : vector<32x32xf32>
    %c165 = arith.constant 165 : index
    %884 = memref.load %arg1[%c165] : memref<202xf32, #tpu.memory_space<smem>>
    %885 = vector.broadcast %884 : f32 to vector<32x32xf32>
    %886 = arith.mulf %885, %875 : vector<32x32xf32>
    %887 = arith.addf %869, %886 : vector<32x32xf32>
    %c183 = arith.constant 183 : index
    %888 = memref.load %arg1[%c183] : memref<202xf32, #tpu.memory_space<smem>>
    %889 = vector.broadcast %888 : f32 to vector<32x32xf32>
    %890 = arith.mulf %889, %875 : vector<32x32xf32>
    %891 = arith.addf %873, %890 : vector<32x32xf32>
    %c1_201 = arith.constant 1 : index
    %c1_202 = arith.constant 1 : index
    %c2_203 = arith.constant 2 : index
    %892 = vector.load %arg7[%c1_201, %c1_202, %c2_203] : memref<2x34x34xf32, #tpu.memory_space<vmem>>, vector<1x32x32xf32>
    %893 = vector.shape_cast %892 : vector<1x32x32xf32> to vector<32x32xf32>
    %c130 = arith.constant 130 : index
    %894 = memref.load %arg1[%c130] : memref<202xf32, #tpu.memory_space<smem>>
    %895 = vector.broadcast %894 : f32 to vector<32x32xf32>
    %896 = arith.mulf %895, %893 : vector<32x32xf32>
    %897 = arith.addf %879, %896 : vector<32x32xf32>
    %c148 = arith.constant 148 : index
    %898 = memref.load %arg1[%c148] : memref<202xf32, #tpu.memory_space<smem>>
    %899 = vector.broadcast %898 : f32 to vector<32x32xf32>
    %900 = arith.mulf %899, %893 : vector<32x32xf32>
    %901 = arith.addf %883, %900 : vector<32x32xf32>
    %c166 = arith.constant 166 : index
    %902 = memref.load %arg1[%c166] : memref<202xf32, #tpu.memory_space<smem>>
    %903 = vector.broadcast %902 : f32 to vector<32x32xf32>
    %904 = arith.mulf %903, %893 : vector<32x32xf32>
    %905 = arith.addf %887, %904 : vector<32x32xf32>
    %c184 = arith.constant 184 : index
    %906 = memref.load %arg1[%c184] : memref<202xf32, #tpu.memory_space<smem>>
    %907 = vector.broadcast %906 : f32 to vector<32x32xf32>
    %908 = arith.mulf %907, %893 : vector<32x32xf32>
    %909 = arith.addf %891, %908 : vector<32x32xf32>
    %c1_204 = arith.constant 1 : index
    %c2_205 = arith.constant 2 : index
    %c0_206 = arith.constant 0 : index
    %910 = vector.load %arg7[%c1_204, %c2_205, %c0_206] : memref<2x34x34xf32, #tpu.memory_space<vmem>>, vector<1x32x32xf32>
    %911 = vector.shape_cast %910 : vector<1x32x32xf32> to vector<32x32xf32>
    %c131 = arith.constant 131 : index
    %912 = memref.load %arg1[%c131] : memref<202xf32, #tpu.memory_space<smem>>
    %913 = vector.broadcast %912 : f32 to vector<32x32xf32>
    %914 = arith.mulf %913, %911 : vector<32x32xf32>
    %915 = arith.addf %897, %914 : vector<32x32xf32>
    %c149 = arith.constant 149 : index
    %916 = memref.load %arg1[%c149] : memref<202xf32, #tpu.memory_space<smem>>
    %917 = vector.broadcast %916 : f32 to vector<32x32xf32>
    %918 = arith.mulf %917, %911 : vector<32x32xf32>
    %919 = arith.addf %901, %918 : vector<32x32xf32>
    %c167 = arith.constant 167 : index
    %920 = memref.load %arg1[%c167] : memref<202xf32, #tpu.memory_space<smem>>
    %921 = vector.broadcast %920 : f32 to vector<32x32xf32>
    %922 = arith.mulf %921, %911 : vector<32x32xf32>
    %923 = arith.addf %905, %922 : vector<32x32xf32>
    %c185 = arith.constant 185 : index
    %924 = memref.load %arg1[%c185] : memref<202xf32, #tpu.memory_space<smem>>
    %925 = vector.broadcast %924 : f32 to vector<32x32xf32>
    %926 = arith.mulf %925, %911 : vector<32x32xf32>
    %927 = arith.addf %909, %926 : vector<32x32xf32>
    %c1_207 = arith.constant 1 : index
    %c2_208 = arith.constant 2 : index
    %c1_209 = arith.constant 1 : index
    %928 = vector.load %arg7[%c1_207, %c2_208, %c1_209] : memref<2x34x34xf32, #tpu.memory_space<vmem>>, vector<1x32x32xf32>
    %929 = vector.shape_cast %928 : vector<1x32x32xf32> to vector<32x32xf32>
    %c132 = arith.constant 132 : index
    %930 = memref.load %arg1[%c132] : memref<202xf32, #tpu.memory_space<smem>>
    %931 = vector.broadcast %930 : f32 to vector<32x32xf32>
    %932 = arith.mulf %931, %929 : vector<32x32xf32>
    %933 = arith.addf %915, %932 : vector<32x32xf32>
    %c150 = arith.constant 150 : index
    %934 = memref.load %arg1[%c150] : memref<202xf32, #tpu.memory_space<smem>>
    %935 = vector.broadcast %934 : f32 to vector<32x32xf32>
    %936 = arith.mulf %935, %929 : vector<32x32xf32>
    %937 = arith.addf %919, %936 : vector<32x32xf32>
    %c168 = arith.constant 168 : index
    %938 = memref.load %arg1[%c168] : memref<202xf32, #tpu.memory_space<smem>>
    %939 = vector.broadcast %938 : f32 to vector<32x32xf32>
    %940 = arith.mulf %939, %929 : vector<32x32xf32>
    %941 = arith.addf %923, %940 : vector<32x32xf32>
    %c186 = arith.constant 186 : index
    %942 = memref.load %arg1[%c186] : memref<202xf32, #tpu.memory_space<smem>>
    %943 = vector.broadcast %942 : f32 to vector<32x32xf32>
    %944 = arith.mulf %943, %929 : vector<32x32xf32>
    %945 = arith.addf %927, %944 : vector<32x32xf32>
    %c1_210 = arith.constant 1 : index
    %c2_211 = arith.constant 2 : index
    %c2_212 = arith.constant 2 : index
    %946 = vector.load %arg7[%c1_210, %c2_211, %c2_212] : memref<2x34x34xf32, #tpu.memory_space<vmem>>, vector<1x32x32xf32>
    %947 = vector.shape_cast %946 : vector<1x32x32xf32> to vector<32x32xf32>
    %c133 = arith.constant 133 : index
    %948 = memref.load %arg1[%c133] : memref<202xf32, #tpu.memory_space<smem>>
    %949 = vector.broadcast %948 : f32 to vector<32x32xf32>
    %950 = arith.mulf %949, %947 : vector<32x32xf32>
    %951 = arith.addf %933, %950 : vector<32x32xf32>
    %c151 = arith.constant 151 : index
    %952 = memref.load %arg1[%c151] : memref<202xf32, #tpu.memory_space<smem>>
    %953 = vector.broadcast %952 : f32 to vector<32x32xf32>
    %954 = arith.mulf %953, %947 : vector<32x32xf32>
    %955 = arith.addf %937, %954 : vector<32x32xf32>
    %c169 = arith.constant 169 : index
    %956 = memref.load %arg1[%c169] : memref<202xf32, #tpu.memory_space<smem>>
    %957 = vector.broadcast %956 : f32 to vector<32x32xf32>
    %958 = arith.mulf %957, %947 : vector<32x32xf32>
    %959 = arith.addf %941, %958 : vector<32x32xf32>
    %c187 = arith.constant 187 : index
    %960 = memref.load %arg1[%c187] : memref<202xf32, #tpu.memory_space<smem>>
    %961 = vector.broadcast %960 : f32 to vector<32x32xf32>
    %962 = arith.mulf %961, %947 : vector<32x32xf32>
    %963 = arith.addf %945, %962 : vector<32x32xf32>
    %cst_213 = arith.constant 0.000000e+00 : f32
    %964 = vector.broadcast %cst_213 : f32 to vector<32x32xf32>
    %965 = arith.cmpf ogt, %951, %964 : vector<32x32xf32>
    %cst_214 = arith.constant 1.000000e-01 : f32
    %966 = vector.broadcast %cst_214 : f32 to vector<32x32xf32>
    %967 = arith.mulf %966, %951 : vector<32x32xf32>
    %968 = arith.select %965, %951, %967 : vector<32x32xi1>, vector<32x32xf32>
    %cst_215 = arith.constant 0.000000e+00 : f32
    %969 = vector.broadcast %cst_215 : f32 to vector<32x32xf32>
    %970 = arith.cmpf ogt, %955, %969 : vector<32x32xf32>
    %cst_216 = arith.constant 1.000000e-01 : f32
    %971 = vector.broadcast %cst_216 : f32 to vector<32x32xf32>
    %972 = arith.mulf %971, %955 : vector<32x32xf32>
    %973 = arith.select %970, %955, %972 : vector<32x32xi1>, vector<32x32xf32>
    %cst_217 = arith.constant 0.000000e+00 : f32
    %974 = vector.broadcast %cst_217 : f32 to vector<32x32xf32>
    %975 = arith.cmpf ogt, %959, %974 : vector<32x32xf32>
    %cst_218 = arith.constant 1.000000e-01 : f32
    %976 = vector.broadcast %cst_218 : f32 to vector<32x32xf32>
    %977 = arith.mulf %976, %959 : vector<32x32xf32>
    %978 = arith.select %975, %959, %977 : vector<32x32xi1>, vector<32x32xf32>
    %cst_219 = arith.constant 0.000000e+00 : f32
    %979 = vector.broadcast %cst_219 : f32 to vector<32x32xf32>
    %980 = arith.cmpf ogt, %963, %979 : vector<32x32xf32>
    %cst_220 = arith.constant 1.000000e-01 : f32
    %981 = vector.broadcast %cst_220 : f32 to vector<32x32xf32>
    %982 = arith.mulf %981, %963 : vector<32x32xf32>
    %983 = arith.select %980, %963, %982 : vector<32x32xi1>, vector<32x32xf32>
    %cst_221 = arith.constant 0.000000e+00 : f32
    %984 = vector.broadcast %cst_221 : f32 to vector<32x32xf32>
    %c200 = arith.constant 200 : index
    %985 = memref.load %arg1[%c200] : memref<202xf32, #tpu.memory_space<smem>>
    %986 = vector.broadcast %985 : f32 to vector<32x32xf32>
    %987 = arith.addf %984, %986 : vector<32x32xf32>
    %c192 = arith.constant 192 : index
    %988 = memref.load %arg1[%c192] : memref<202xf32, #tpu.memory_space<smem>>
    %989 = vector.broadcast %988 : f32 to vector<32x32xf32>
    %990 = arith.mulf %989, %968 : vector<32x32xf32>
    %991 = arith.addf %987, %990 : vector<32x32xf32>
    %c193 = arith.constant 193 : index
    %992 = memref.load %arg1[%c193] : memref<202xf32, #tpu.memory_space<smem>>
    %993 = vector.broadcast %992 : f32 to vector<32x32xf32>
    %994 = arith.mulf %993, %973 : vector<32x32xf32>
    %995 = arith.addf %991, %994 : vector<32x32xf32>
    %c194 = arith.constant 194 : index
    %996 = memref.load %arg1[%c194] : memref<202xf32, #tpu.memory_space<smem>>
    %997 = vector.broadcast %996 : f32 to vector<32x32xf32>
    %998 = arith.mulf %997, %978 : vector<32x32xf32>
    %999 = arith.addf %995, %998 : vector<32x32xf32>
    %c195 = arith.constant 195 : index
    %1000 = memref.load %arg1[%c195] : memref<202xf32, #tpu.memory_space<smem>>
    %1001 = vector.broadcast %1000 : f32 to vector<32x32xf32>
    %1002 = arith.mulf %1001, %983 : vector<32x32xf32>
    %1003 = arith.addf %999, %1002 : vector<32x32xf32>
    %cst_222 = arith.constant 0.000000e+00 : f32
    %1004 = vector.broadcast %cst_222 : f32 to vector<32x32xf32>
    %1005 = arith.cmpf ogt, %1003, %1004 : vector<32x32xf32>
    %cst_223 = arith.constant 1.000000e-01 : f32
    %1006 = vector.broadcast %cst_223 : f32 to vector<32x32xf32>
    %1007 = arith.mulf %1006, %1003 : vector<32x32xf32>
    %1008 = arith.select %1005, %1003, %1007 : vector<32x32xi1>, vector<32x32xf32>
    %cst_224 = arith.constant 0.000000e+00 : f32
    %1009 = vector.broadcast %cst_224 : f32 to vector<32x32xf32>
    %c201 = arith.constant 201 : index
    %1010 = memref.load %arg1[%c201] : memref<202xf32, #tpu.memory_space<smem>>
    %1011 = vector.broadcast %1010 : f32 to vector<32x32xf32>
    %1012 = arith.addf %1009, %1011 : vector<32x32xf32>
    %c196 = arith.constant 196 : index
    %1013 = memref.load %arg1[%c196] : memref<202xf32, #tpu.memory_space<smem>>
    %1014 = vector.broadcast %1013 : f32 to vector<32x32xf32>
    %1015 = arith.mulf %1014, %968 : vector<32x32xf32>
    %1016 = arith.addf %1012, %1015 : vector<32x32xf32>
    %c197 = arith.constant 197 : index
    %1017 = memref.load %arg1[%c197] : memref<202xf32, #tpu.memory_space<smem>>
    %1018 = vector.broadcast %1017 : f32 to vector<32x32xf32>
    %1019 = arith.mulf %1018, %973 : vector<32x32xf32>
    %1020 = arith.addf %1016, %1019 : vector<32x32xf32>
    %c198 = arith.constant 198 : index
    %1021 = memref.load %arg1[%c198] : memref<202xf32, #tpu.memory_space<smem>>
    %1022 = vector.broadcast %1021 : f32 to vector<32x32xf32>
    %1023 = arith.mulf %1022, %978 : vector<32x32xf32>
    %1024 = arith.addf %1020, %1023 : vector<32x32xf32>
    %c199 = arith.constant 199 : index
    %1025 = memref.load %arg1[%c199] : memref<202xf32, #tpu.memory_space<smem>>
    %1026 = vector.broadcast %1025 : f32 to vector<32x32xf32>
    %1027 = arith.mulf %1026, %983 : vector<32x32xf32>
    %1028 = arith.addf %1024, %1027 : vector<32x32xf32>
    %cst_225 = arith.constant 0.000000e+00 : f32
    %1029 = vector.broadcast %cst_225 : f32 to vector<32x32xf32>
    %1030 = arith.cmpf ogt, %1028, %1029 : vector<32x32xf32>
    %cst_226 = arith.constant 1.000000e-01 : f32
    %1031 = vector.broadcast %cst_226 : f32 to vector<32x32xf32>
    %1032 = arith.mulf %1031, %1028 : vector<32x32xf32>
    %1033 = arith.select %1030, %1028, %1032 : vector<32x32xi1>, vector<32x32xf32>
    %c0_227 = arith.constant 0 : index
    %c0_228 = arith.constant 0 : index
    %c0_229 = arith.constant 0 : index
    %c0_230 = arith.constant 0 : index
    %1034 = vector.load %arg6[%c0_227, %c0_228, %c0_229, %c0_230] : memref<1x2x32x32xf32, #tpu.memory_space<vmem>>, vector<1x1x32x32xf32>
    %1035 = vector.shape_cast %1034 : vector<1x1x32x32xf32> to vector<32x32xf32>
    %1036 = vector.shape_cast %1008 : vector<32x32xf32> to vector<1x1x32x32xf32>
    tpu.vector_store %arg6[%c0_227, %c0_228, %c0_229, %c0_230], %1036 {strides = array<i32>} : memref<1x2x32x32xf32, #tpu.memory_space<vmem>>, vector<1x1x32x32xf32>,
    %c0_231 = arith.constant 0 : index
    %c1_232 = arith.constant 1 : index
    %c0_233 = arith.constant 0 : index
    %c0_234 = arith.constant 0 : index
    %1037 = vector.load %arg6[%c0_231, %c1_232, %c0_233, %c0_234] : memref<1x2x32x32xf32, #tpu.memory_space<vmem>>, vector<1x1x32x32xf32>
    %1038 = vector.shape_cast %1037 : vector<1x1x32x32xf32> to vector<32x32xf32>
    %1039 = vector.shape_cast %1033 : vector<32x32xf32> to vector<1x1x32x32xf32>
    tpu.vector_store %arg6[%c0_231, %c1_232, %c0_233, %c0_234], %1039 {strides = array<i32>} : memref<1x2x32x32xf32, #tpu.memory_space<vmem>>, vector<1x1x32x32xf32>,
    return
  }
  func.func @transform_0(%arg0: i32) -> i32 {
    %c0_i32 = arith.constant 0 : i32
    %c0_i32_0 = arith.constant 0 : i32
    return %c0_i32 : i32
  }
  func.func @transform_1(%arg0: i32) -> (i32, i32, i32, i32) {
    %c0_i32 = arith.constant 0 : i32
    %c0_i32_0 = arith.constant 0 : i32
    %c0_i32_1 = arith.constant 0 : i32
    %c0_i32_2 = arith.constant 0 : i32
    return %arg0, %c0_i32, %c0_i32_0, %c0_i32_1 : i32, i32, i32, i32
  }
  func.func @transform_2(%arg0: i32) -> (i32, i32, i32, i32) {
    %c0_i32 = arith.constant 0 : i32
    %c0_i32_0 = arith.constant 0 : i32
    %c0_i32_1 = arith.constant 0 : i32
    %c0_i32_2 = arith.constant 0 : i32
    return %arg0, %c0_i32, %c0_i32_0, %c0_i32_1 : i32, i32, i32, i32
  }
  func.func @transform_3(%arg0: i32) -> (i32, i32) {
    %c0_i32 = arith.constant 0 : i32
    %c0_i32_0 = arith.constant 0 : i32
    %c0_i32_1 = arith.constant 0 : i32
    return %c0_i32, %c0_i32_0 : i32, i32
  }
  func.func @transform_4(%arg0: i32) -> (i32, i32) {
    %c0_i32 = arith.constant 0 : i32
    %c0_i32_0 = arith.constant 0 : i32
    %c0_i32_1 = arith.constant 0 : i32
    return %c0_i32, %c0_i32_0 : i32, i32
  }
  func.func @transform_5(%arg0: i32) -> (i32, i32, i32, i32) {
    %c0_i32 = arith.constant 0 : i32
    %c0_i32_0 = arith.constant 0 : i32
    %c0_i32_1 = arith.constant 0 : i32
    %c0_i32_2 = arith.constant 0 : i32
    return %arg0, %c0_i32, %c0_i32_0, %c0_i32_1 : i32, i32, i32, i32
  }
}

</mosaic_0001>

<bundles_post_ra>
// kernel: subneck_forward.1
= control target key start
LH: loop header
LB: loop body
LE: loop exit
PB: predicated region body
PF: predicated region fallthrough
CT: control target
= control target key end

     0   :  { %s9452_s0 = inlined_call_operand.vmem [shape: f32[202], index: 0, kind: input, shape index: {}]   ;;  %s9453_s1 = inlined_call_operand.hbm [shape: f32[2,4,16,16], index: 1, kind: input, shape index: {}]   ;;  %s9454_s2 = inlined_call_operand.hbm [shape: f32[2,4,32,32], index: 2, kind: input, shape index: {}]   ;;  %s9455_s3 = inlined_call_operand.vmem [shape: f32[32,16], index: 3, kind: input, shape index: {}]   ;;  %s9456_s4 = inlined_call_operand.vmem [shape: f32[16,32], index: 4, kind: input, shape index: {}]   ;;  %s9457_s5 = inlined_call_operand.hbm [shape: f32[2,2,32,32], index: 5, kind: output, shape index: {}]  }
   0x1   :  { %9608 = sst [smem:[#allocation77_spill]] %s9452_s0 }
   0x2   :  { %9609 = sst [smem:[#allocation78_spill]] %s9453_s1 }
   0x3   :  { %10 = vsyncpa [#allocation6], 0 }
   0x4   :  { %11 = vsyncpa [#allocation4], 0 }
   0x5   :  { %13 = vsyncpa [#allocation4 + $0x1], 0 }
   0x6   :  { %14 = vsyncpa [#allocation9], 0 }
   0x7   :  { %16 = vsyncpa [#allocation9 + $0x1], 0 }
   0x8   :  { %17 = vsyncpa [#allocation5], 0 }
   0x9   :  { %19 = vsyncpa [#allocation5 + $0x1], 0  ;;  %s6158_s18 = smov 0   ;;  %s6160_s19 = smov 0  }
   0xa   :  { %s6162_s20 = smov 0   ;;  %s6164_s21 = smov 0  }
   0xb LB: > { %s6179_s22 = sadd.s32 4294967295, %s6114_s21   ;;  %s5332_s23 = sadd.s32 4294967294, %s6114_s21   ;;  %s6114_s21 = sphi %s6164_s21, %s9943_s21   ;;  %s6110_s20 = sphi %s6162_s20, %s9942_s20   ;;  %s6106_s19 = sphi %s6160_s19, %s9941_s19   ;;  %s6102_s18 = sphi %s6158_s18, %s9940_s18  }
   0xc   : > { %s6183_s24 = sadd.s32 1, %s6114_s21   ;;  %s53_s25 = sadd.s32 1, %s6110_s20 }
   0xd   : > { %s50_s26 = ssub.s32 %s6114_s21, %s6183_s24  ;;  %p60_p0 = scmp.ne.s32.totalorder %s6110_s20, %s6106_s19 }
   0xe   : > { %p51_p1 = scmp.eq.s32.totalorder %s50_s26, 0  ;;  %p61_p2 = scmp.eq.s32.totalorder %s6114_s21, 0 }
   0xf   : > { %p66_p3 = scmp.ne.s32.totalorder %s6106_s19, %s6102_s18  ;;  %p9458_p4 = scmp.eq.s32.totalorder %s6179_s22, 0 }
  0x10   : > { %s6195_s27 = scalar_select %p51_p1, %s6110_s20, %s53_s25  }
  0x11   : > { %p6197_p5 = por %p61_p2, %p60_p0  ;;  %p6203_p6 = por %p9458_p4, %p66_p3 }
  0x12   : > { %p158_p7 = scmp.eq.s32.totalorder %s6179_s22, 1  ;;  %p164_p8 = scmp.eq.s32.totalorder %s5332_s23, 1 }
  0x13   : > { %s9611_s29 = scalar_select %p6203_p6, 1, 0 }
  0x14   : > { %p5333_p9 = scmp.ge.s32.totalorder %s6114_s21, 1  ;;  %p171_p10 = scmp.lt.s32.totalorder %s6114_s21, 3 }
  0x15   : > { %p6210_p11 = por %p158_p7, %p60_p0  ;;  %p6214_p12 = por %p164_p8, %p66_p3 }
  0x16   : > { %p6218_p13 = pnand %p5333_p9, %p171_p10  ;;  %s9615_s0 = sld [smem:[#allocation77_spill]] }
  0x17   : > { %s9612_s30 = scalar_select %p6210_p11, 1, 0 }
  0x18   : > { %s9613_s6 = scalar_select %p6214_p12, 1, 0 }
  0x19   : > { %p5892_p1 = pneg %p6218_p13  ;;  %p5908_p2 = scmp.lt.s32.totalorder %s6114_s21, 2 }
  0x1a   : > { %s6236_s12 = sand.u32 1, %s6110_s20  }
  0x1b   : > { %p6231_p7 = pnand %p5892_p1, %p9458_p4  ;;  %p6240_p3 = pnand %p5908_p2, %p6197_p5 }
  0x1c   : > { %s184_s10 = sshll.u32 %s9615_s0, 4  ;;  %s5336_s14 = sshll.u32 %s6236_s12, 6  ;;  %s185_s10 = int_to_ptr.vmem [resolvable:$true] %s184_s10 }
  0x1d   : > { %s5965_s15 = scalar_lea.vmem %s185_s10, 32  ;;  %p5967_p9 = pneg %p6231_p7 }
  0x1e   : > { %p5966_p8 = scmp.ne.s32.totalorder %s185_s10, %s5965_s15  ;;  %p5973_p1 = scmp.lt.s32.totalorder %s185_s10, %s185_s10 }
  0x1f   : > { %p5974_p4 = scmp.lt.s32.totalorder %s5965_s15, %s5965_s15 }
  0x20   : > { %p5968_p10 = pnand %p5967_p9, %p5966_p8 }
  0x21   : > { %p5975_p12 = por %p5974_p4, %p5973_p1 }
  0x22   : > { %p5969_p0 = pneg %p5968_p10 }
  0x24   : > { %p5976_p11 = pnand %p5975_p12, %p5969_p0 }
  0x26   : > { %5979 = shalt.err (!%p5976_p11)
}
  0x27   : > { %s6116_s16 = smov [#allocation3]   ;;  %s5623_s17 = sshll.u32 %s6114_s21, 10 }
  0x28   : > { %5895 = dma.vmem_to_smem (!%p6231_p7), %s185_s10, 32, %s6116_s16, [#allocation6]  }
  0x29   : > { %s205_s23 = scalar_lea.vmem [#allocation7], %s5336_s14  ;;  %s9618_s1 = sld [smem:[#allocation78_spill]] }
  0x2a   : > { %s212_s25 = sshll.u32 %s205_s23, 4  ;;  %s202_s9 = scalar_lea.sflag [#allocation4], %s6236_s12  ;;  %s6255_s25 = int_to_ptr.vmem [resolvable:$true] %s212_s25 }
  0x2b   : > { %p5982_p5 = pneg %p6240_p3 }
  0x2f   : > { %s6253_s8 = scalar_lea.hbm %s9618_s1, %s5623_s17  ;;  %s5985_s15 = scalar_lea.hbm %s9618_s1, 2048 }
  0x30   : > { %s5980_s11 = scalar_lea.hbm %s6253_s8, 1024  ;;  %p5986_p0 = scmp.lt.u32.totalorder %s6253_s8, %s9618_s1 }
  0x31   : > { %p5981_p4 = scmp.ne.s32.totalorder %s6253_s8, %s5980_s11  ;;  %p5987_p2 = scmp.lt.u32.totalorder %s5985_s15, %s5980_s11 }
  0x32   : > { %p5989_p8 = scmp.lt.u32.totalorder %s5980_s11, %s6253_s8 }
  0x33   : > { %p5983_p11 = pnand %p5982_p5, %p5981_p4  ;;  %p5988_p7 = por %p5987_p2, %p5986_p0 }
  0x35   : > { %p5984_p12 = pneg %p5983_p11  ;;  %p5990_p9 = por %p5989_p8, %p5988_p7 }
  0x37   : > { %p5991_p10 = pnand %p5990_p9, %p5984_p12 }
  0x39   : > { %5994 = shalt.err (!%p5991_p10)
}
  0x3a   : > { %s5995_s23 = scalar_lea.vmem %s6255_s25, 1024  ;;  %s6117_s26 = smov [#allocation7]  }
  0x3b   : > { %p5996_p1 = scmp.ne.s32.totalorder %s6255_s25, %s5995_s23  ;;  %s6000_s28 = sshll.u32 %s6117_s26, 4  ;;  %s6001_s28 = int_to_ptr.vmem [resolvable:$false] %s6000_s28 }
  0x3c   : > { %s6002_s10 = scalar_lea.vmem %s6001_s28, 2048  ;;  %p6003_p6 = scmp.lt.s32.totalorder %s6255_s25, %s6001_s28 }
  0x3d   : > { %p5998_p4 = pnand %p5996_p1, %p5982_p5  ;;  %p6004_p0 = scmp.lt.s32.totalorder %s6002_s10, %s5995_s23 }
  0x3f   : > { %p5999_p11 = pneg %p5998_p4  ;;  %p6005_p2 = por %p6004_p0, %p6003_p6 }
  0x41   : > { %p6006_p7 = pnand %p6005_p2, %p5999_p11 }
  0x43   : > { %6009 = shalt.err (!%p6006_p7)
}
  0x44   : > { %s6118_s11 = smov 128   ;;  %s6119_s14 = smov 8  }
  0x45   : > { %5899 = dma.hbm_to_vmem [thread:$0]  (!%p6240_p3), %s6253_s8, 1024, %s6255_s25, %s202_s9, %s6118_s11, %s6118_s11, %s6119_s14  }
  0x46   : > { %s5339_s15 = sshll.u32 %s6236_s12, 7  ;;  %s5624_s16 = sshll.u32 %s6114_s21, 11 }
  0x47   : > { %s6293_s26 = scalar_lea.hbm %s9454_s2, %s5624_s16  ;;  %s226_s28 = scalar_lea.vmem [#allocation8], %s5339_s15 }
  0x48   : > { %s233_s10 = sshll.u32 %s226_s28, 4  ;;  %s223_s0 = scalar_lea.sflag [#allocation9], %s6236_s12  ;;  %s6295_s10 = int_to_ptr.vmem [resolvable:$true] %s233_s10 }
  0x49   : > { %s6010_s1 = scalar_lea.hbm %s6293_s26, 2048  ;;  %s6015_s9 = scalar_lea.hbm %s9454_s2, 4096 }
  0x4a   : > { %p6011_p6 = scmp.ne.s32.totalorder %s6293_s26, %s6010_s1  ;;  %p6016_p9 = scmp.lt.u32.totalorder %s6293_s26, %s9454_s2 }
  0x4b   : > { %p6017_p10 = scmp.lt.u32.totalorder %s6015_s9, %s6010_s1  ;;  %p6019_p4 = scmp.lt.u32.totalorder %s6010_s1, %s6293_s26 }
  0x4c   : > { %p6013_p12 = pnand %p6011_p6, %p5982_p5 }
  0x4d   : > { %p6018_p1 = por %p6017_p10, %p6016_p9 }
  0x4e   : > { %p6014_p8 = pneg %p6013_p12 }
  0x4f   : > { %p6020_p11 = por %p6019_p4, %p6018_p1 }
  0x51   : > { %p6021_p0 = pnand %p6020_p11, %p6014_p8 }
  0x53   : > { %6024 = shalt.err (!%p6021_p0)
}
  0x54   : > { %s6025_s15 = scalar_lea.vmem %s6295_s10, 2048  ;;  %s6120_s23 = smov [#allocation8]  }
  0x55   : > { %p6026_p2 = scmp.ne.s32.totalorder %s6295_s10, %s6025_s15  ;;  %s6030_s28 = sshll.u32 %s6120_s23, 4  ;;  %s6031_s28 = int_to_ptr.vmem [resolvable:$false] %s6030_s28 }
  0x56   : > { %s6032_s25 = scalar_lea.vmem %s6031_s28, 4096  ;;  %p6033_p12 = scmp.lt.s32.totalorder %s6295_s10, %s6031_s28 }
  0x57   : > { %p6028_p7 = pnand %p6026_p2, %p5982_p5  ;;  %p6034_p9 = scmp.lt.s32.totalorder %s6032_s25, %s6025_s15 }
  0x59   : > { %p6029_p6 = pneg %p6028_p7  ;;  %p6035_p10 = por %p6034_p9, %p6033_p12 }
  0x5b   : > { %p6036_p1 = pnand %p6035_p10, %p6029_p6 }
  0x5d   : > { %6039 = shalt.err (!%p6036_p1)
}
  0x5e   : > { %5902 = dma.hbm_to_vmem [thread:$0]  (!%p6240_p3), %s6293_s26, 2048, %s6295_s10, %s223_s0, %s6118_s11, %s6118_s11, %s6119_s14  }
  0x5f   : > { %245 = sbr.rel (%p6218_p13) target bundleno = 1887 (0x75f), region = 40 }
  0x66   : > { %p9619_p5 = scmp.eq.s32.totalorder %s6179_s22, 0 }
  0x68   : > { %6085 = dma.done.wait (%p9619_p5), [#allocation6], 32   ;;  %p9620_p8 = pmov %p9619_p5 }
  0x69   : > { %s6333_s1 = sand.u32 1, %s6106_s19   ;;  %p9621_p3 = scmp.ne.s32.totalorder %s9611_s29, 0 }
  0x6a   : > { %6087 = vsyncadd (%p9620_p8), [#allocation6], 4294967264  ;;  %s9461_s12 = sshll.u32 %s6333_s1, 6  ;;  %s252_s13 = scalar_lea.sflag [#allocation4], %s6333_s1 }
  0x6b   : > { %s6339_s0 = scalar_lea.vmem [#allocation7], %s9461_s12 }
  0x6c   : > { %6089 = dma.done.wait (%p9621_p3), %s252_s13, 1024  }
  0x6d   : > { %6091 = vsyncadd (%p9621_p3), %s252_s13, 4294966272  ;;  %s5345_s7 = sshll.u32 %s6333_s1, 7  ;;  %s261_s11 = scalar_lea.sflag [#allocation9], %s6333_s1 }
  0x6e   : > { %s6347_s14 = scalar_lea.vmem [#allocation8], %s5345_s7 }
  0x6f   : > { %6093 = dma.done.wait (%p9621_p3), %s261_s11, 2048  }
  0x70   : > { %6095 = vsyncadd (%p9621_p3), %s261_s11, 4294965248 }
  0x71   : > { %269 = sfence }
  0x72   : > { %s6353_s26 = sld [smem:[#allocation3 + $0x8]]  ;;  %vm414_vm0 = vcmask 130048   ;;  %s5354_s8 = sld [smem:[#allocation3 + $0x1]]  ;;  %v6362_v0 = vld [vmem:[%s9455_s3] sm:$0xff]  ;;  %v315_v1 = vld [vmem:[%s6339_s0] sm:$0xff]  ;;  %v316_v2 = vld [vmem:[%s6339_s0 + $0x8] sm:$0xff] }
  0x73   : > { %s329_s10 = sld [smem:[#allocation3]]  ;;  %s5355_s9 = sld [smem:[#allocation3 + $0x2]]  ;;  %5702 = vmatprep.mubr.msk.f32.mxu1 %vm414_vm0, %v6362_v0  ;;  %v5347_v3 = vld [vmem:[%s6339_s0 + $0x10] sm:$0xff]  ;;  %v5348_v4 = vld [vmem:[%s6339_s0 + $0x18] sm:$0xff]  ;;  %v5349_v5 = vld [vmem:[%s6339_s0 + $0x20] sm:$0xff]  ;;  %vm303_vm5 = vcmask 277504  }
  0x74   : > { %s6355_s16 = sld [smem:[#allocation3 + $0x3]]  ;;  %s6357_s17 = sld [smem:[#allocation3 + $0x9]]  ;;  %v5350_v6 = vld [vmem:[%s6339_s0 + $0x28] sm:$0xff]  ;;  %v5351_v9 = vld [vmem:[%s6339_s0 + $0x30] sm:$0xff]  ;;  %v5352_v10 = vld [vmem:[%s6339_s0 + $0x38] sm:$0xff]  ;;  %vm308_vm14 = vcmask 271360  }
  0x75   : > { %s6365_s23 = sld [smem:[#allocation3 + $0x4]]  ;;  %s6367_s28 = sld [smem:[#allocation3 + $0x5]] }
  0x76   : > { %s6373_s25 = sld [smem:[#allocation3 + $0x6]]  ;;  %s6375_s13 = sld [smem:[#allocation3 + $0x7]] }
  0x77   : > { %s6387_s0 = sld [smem:[#allocation3 + $0x18]]  ;;  %s6391_s7 = sld [smem:[#allocation3 + $0x19]] }
  0x78   : > { %v327_v7 = vstv %s6353_s26  ;;  %v336_v13 = vstv %s5354_s8  ;;  %s5388_s11 = sld [smem:[#allocation3 + $0x1a]]  ;;  %s5389_s26 = sld [smem:[#allocation3 + $0x1b]] }
  0x79   : > { %v330_v8 = vstv %s329_s10  ;;  %v342_v14 = vstv %s5355_s9  ;;  %v337_v15 = vmul.f32 %v5347_v3, %v336_v13  ;;  %v338_v16 = vmul.f32 %v5348_v4, %v336_v13  ;;  %v298_v13 = vld [vmem:[%s9455_s3 + $0x8] sm:$0xff]  ;;  %s5433_s10 = sld [smem:[#allocation3 + $0xf]]  ;;  %s5429_s8 = sld [smem:[#allocation3 + $0xc]] }
  0x7a   : > { %v331_v11 = vmul.f32 %v330_v8, %v315_v1  ;;  %v332_v12 = vmul.f32 %v330_v8, %v316_v2  ;;  %v343_v17 = vmul.f32 %v5349_v5, %v342_v14  ;;  %v344_v18 = vmul.f32 %v5350_v6, %v342_v14  ;;  %s5434_s9 = sld [smem:[#allocation3 + $0x10]]  ;;  %s5437_s29 = sld [smem:[#allocation3 + $0x14]] }
  0x7b   : > { %v348_v21 = vstv %s6355_s16  ;;  %v360_v22 = vstv %s6357_s17  ;;  %v363_v25 = vstv %s6365_s23  ;;  %v369_v26 = vstv %s6367_s28  ;;  %s5430_s16 = sld [smem:[#allocation3 + $0xd]]  ;;  %s6474_s17 = sld [smem:[#allocation3 + $0x11]] }
  0x7c   : > { %v333_v19 = vadd.f32 %v331_v11, %v327_v7  ;;  %v334_v20 = vadd.f32 %v332_v12, %v327_v7  ;;  %v349_v23 = vmul.f32 %v5351_v9, %v348_v21  ;;  %v350_v24 = vmul.f32 %v5352_v10, %v348_v21  ;;  %s5436_s15 = sld [smem:[#allocation3 + $0x1c]]  ;;  %s5438_s23 = sld [smem:[#allocation3 + $0x15]] }
  0x7d   : > { %v364_v29 = vmul.f32 %v363_v25, %v315_v1  ;;  %v365_v30 = vmul.f32 %v363_v25, %v316_v2  ;;  %v370_v31 = vmul.f32 %v5347_v3, %v369_v26  ;;  %v371_v32 = vmul.f32 %v5348_v4, %v369_v26  ;;  %s5440_s28 = sld [smem:[#allocation3 + $0x16]]  ;;  %s6592_s12 = sld [smem:[#allocation3 + $0x69]] }
  0x7e   : > { %v339_v27 = vadd.f32 %v337_v15, %v333_v19  ;;  %v340_v28 = vadd.f32 %v338_v16, %v334_v20  ;;  %v375_v33 = vstv %s6373_s25  ;;  %v381_v34 = vstv %s6375_s13  ;;  %v299_v16 = vld [vmem:[%s9455_s3 + $0x10] sm:$0xff]  ;;  %v300_v20 = vld [vmem:[%s9455_s3 + $0x18] sm:$0xff]  ;;  %s5427_s13 = sld [smem:[#allocation3 + $0xa]]  ;;  %s5439_s25 = sld [smem:[#allocation3 + $0x1d]] }
  0x7f   : > { %v366_v37 = vadd.f32 %v364_v29, %v360_v22  ;;  %v367_v38 = vadd.f32 %v365_v30, %v360_v22  ;;  %v376_v39 = vmul.f32 %v5349_v5, %v375_v33  ;;  %v377_v40 = vmul.f32 %v5350_v6, %v375_v33  ;;  %p9937_p4 = scmp.ne.s32.totalorder %s9612_s30, 0 }
  0x80   : > { %v345_v35 = vadd.f32 %v343_v17, %v339_v27  ;;  %v346_v36 = vadd.f32 %v344_v18, %v340_v28  ;;  %v382_v45 = vmul.f32 %v5351_v9, %v381_v34  ;;  %v383_v46 = vmul.f32 %v5352_v10, %v381_v34 }
  0x81   : > { %v372_v43 = vadd.f32 %v370_v31, %v366_v37  ;;  %v373_v44 = vadd.f32 %v371_v32, %v367_v38  ;;  %v393_v51 = vstv %s6387_s0  ;;  %v399_v56 = vstv %s6391_s7  ;;  %v301_v37 = vld [vmem:[%s9456_s4] sm:$0xff]  ;;  %v302_v38 = vld [vmem:[%s9456_s4 + $0x8] sm:$0xff]  ;;  %s5426_s0 = sld [smem:[#allocation3 + $0x12]]  ;;  %s5428_s7 = sld [smem:[#allocation3 + $0xb]] }
  0x82   : > { %v351_v41 = vadd.f32 %v349_v23, %v345_v35  ;;  %v352_v42 = vadd.f32 %v350_v24, %v346_v36  ;;  %v978_v2 = vstv %s5388_s11  ;;  %v984_v3 = vstv %s5389_s26  ;;  %s5432_s11 = sld [smem:[#allocation3 + $0xe]]  ;;  %s5431_s26 = sld [smem:[#allocation3 + $0x13]] }
  0x83   : > { %v378_v49 = vadd.f32 %v376_v39, %v372_v43  ;;  %v379_v50 = vadd.f32 %v377_v40, %v373_v44  ;;  %v5826_v39 = vpack.c.bf16 %v302_v38, %v301_v37  ;;  %v1602_v37 = vstv %s5430_s16  ;;  %s6123_s16 = smov 127  }
  0x84   : > { %vm353_vm1 = vcmp.gt.f32.partialorder %v351_v41, 0.0  ;;  %vm354_vm2 = vcmp.gt.f32.partialorder %v352_v42, 0.0  ;;  %v355_v47 = vmul.f32 0.1, %v351_v41  ;;  %v356_v48 = vmul.f32 0.1, %v352_v42 }
  0x85   : > { %v384_v54 = vadd.f32 %v382_v45, %v378_v49  ;;  %v385_v55 = vadd.f32 %v383_v46, %v379_v50  ;;  %5827 = vmatprep.subr.bf16.mxu0 %v5826_v39 }
  0x86   : > { %v357_v52 = vsel %vm353_vm1, %v351_v41, %v355_v47  ;;  %v358_v53 = vsel %vm354_vm2, %v352_v42, %v356_v48  ;;  %5829 = vmatpush3.bf16.msra.mxu0 %v5826_v39 }
  0x87   : > { %vm386_vm3 = vcmp.gt.f32.partialorder %v384_v54, 0.0  ;;  %vm387_vm4 = vcmp.gt.f32.partialorder %v385_v55, 0.0  ;;  %v388_v57 = vmul.f32 0.1, %v384_v54  ;;  %v389_v58 = vmul.f32 0.1, %v385_v55  ;;  %5831 = vmatprep.subr.bf16.mxu0 %v5826_v39 }
  0x88   : > { %v394_v59 = vmul.f32 %v393_v51, %v357_v52  ;;  %v395_v60 = vmul.f32 %v393_v51, %v358_v53  ;;  %v979_v6 = vmul.f32 %v978_v2, %v357_v52  ;;  %v980_v8 = vmul.f32 %v978_v2, %v358_v53 }
  0x89   : > { %v390_v61 = vsel %vm386_vm3, %v384_v54, %v388_v57  ;;  %v391_v62 = vsel %vm387_vm4, %v385_v55, %v389_v58  ;;  %v1572_v2 = vstv %s5427_s13  ;;  %s5441_s13 = sld [smem:[#allocation3 + $0x17]] }
  0x8a   : > { %v400_v63 = vmul.f32 %v399_v56, %v390_v61  ;;  %v401_v1 = vmul.f32 %v399_v56, %v391_v62  ;;  %v985_v9 = vmul.f32 %v984_v3, %v390_v61  ;;  %v986_v10 = vmul.f32 %v984_v3, %v391_v62 }
  0x8c   : > { %v402_v4 = vadd.f32 %v400_v63, %v394_v59  ;;  %v403_v5 = vadd.f32 %v401_v1, %v395_v60  ;;  %v987_v17 = vadd.f32 %v985_v9, %v979_v6  ;;  %v988_v18 = vadd.f32 %v986_v10, %v980_v8  ;;  %v1550_v1 = vld [vmem:[%s6347_s14 + $0x8] sm:$0xff]  ;;  %v1552_v10 = vld [vmem:[%s6347_s14 + $0x18] sm:$0xff] }
  0x8d   : > { %v6121_v63 = vmov 0.0   ;;  %v1574_v3 = vmul.f32 %v1572_v2, %v1550_v1  ;;  %v1569_v6 = vstv %s5426_s0  ;;  %v1627_v8 = vstv %s5432_s11  ;;  %s5462_s0 = sld [smem:[#allocation3 + $0x22]]  ;;  %s5450_s11 = sld [smem:[#allocation3 + $0x1f]] }
  0x8e   : > { %v404_v7 = vpack.c.bf16 %v403_v5, %v402_v4  ;;  %v989_v23 = vpack.c.bf16 %v988_v18, %v987_v17  ;;  %305 = vst.msk [vmem:[#allocation2 + $0x8] sm:$0xff] %vm303_vm5, %v6121_v63  ;;  %306 = vst.msk [vmem:[#allocation2 + $0x10] sm:$0xff] %vm303_vm5, %v6121_v63 }
  0x8f   : > { %304 = vst.msk [vmem:[#allocation2] sm:$0xff] %vm303_vm5, %v6121_v63  ;;  %307 = vst.msk [vmem:[#allocation2 + $0x18] sm:$0xff] %vm303_vm5, %v6121_v63 }
  0x90   : > { %5819 = vmatprep.subr.bf16.mxu1 %v404_v7  ;;  %v405_v11 = vunpack.c.l.bf16 %v404_v7  ;;  %v406_v12 = vunpack.c.h.bf16 %v404_v7  ;;  %v990_v26 = vunpack.c.l.bf16 %v989_v23  ;;  %v991_v27 = vunpack.c.h.bf16 %v989_v23  ;;  %310 = vst.msk [vmem:[#allocation2 + $0x28] sm:$0xff] %vm303_vm5, %v6121_v63  ;;  %311 = vst.msk [vmem:[#allocation2 + $0x30] sm:$0xff] %vm303_vm5, %v6121_v63 }
  0x91   : > { %5821 = vmatpush3.bf16.msra.mxu1 %v404_v7  ;;  %312 = vst.msk [vmem:[#allocation2 + $0x38] sm:$0xff] %vm303_vm5, %v6121_v63  ;;  %313 = vst.msk [vmem:[#allocation2 + $0x40] sm:$0xff] %vm303_vm5, %v6121_v63  ;;  %v1582_v7 = vstv %s5428_s7  ;;  %s5463_s7 = sld [smem:[#allocation3 + $0x34]] }
  0x92   : > { %v407_v14 = vsub.f32 %v402_v4, %v405_v11  ;;  %v408_v15 = vsub.f32 %v403_v5, %v406_v12  ;;  %v992_v29 = vsub.f32 %v987_v17, %v990_v26  ;;  %v993_v30 = vsub.f32 %v988_v18, %v991_v27  ;;  %v1549_v4 = vld [vmem:[%s6347_s14] sm:$0xff]  ;;  %v5415_v5 = vld [vmem:[%s6347_s14 + $0x28] sm:$0xff]  ;;  %309 = vst.msk [vmem:[#allocation2 + $0x20] sm:$0x3] %vm308_vm14, %v6121_v63 }
  0x93   : > { %v1573_v9 = vmul.f32 %v1572_v2, %v1549_v4  ;;  %v1578_v11 = vadd.f32 %v1574_v3, %v1569_v6  ;;  %v1584_v12 = vmul.f32 %v5415_v5, %v1582_v7  ;;  %v1637_v17 = vstv %s5433_s10  ;;  %314 = vst.msk [vmem:[#allocation2 + $0x48] sm:$0x3] %vm308_vm14, %v6121_v63  ;;  %s5451_s10 = sld [smem:[#allocation3 + $0x31]] }
  0x94   : > { %5703 = vmatmul.mubr.msk.f32.vlgmr.msra.gmra.mrb[0].mxu1 %vm414_vm0, %v298_v13  ;;  %v409_v19 = vpack.c.bf16 %v408_v15, %v407_v14  ;;  %v994_v31 = vpack.c.bf16 %v993_v30, %v992_v29  ;;  %v1628_v18 = vmul.f32 %v1627_v8, %v1549_v4 }
  0x95   : > { %5705 = vmatprep.mubr.msk.f32.mxu1 %vm414_vm0, %v299_v16  ;;  %v1588_v27 = vadd.f32 %v1584_v12, %v1578_v11 }
  0x96   : > { %5823 = vmatprep.subr.bf16.mxu1 %v409_v19  ;;  %v410_v21 = vunpack.c.l.bf16 %v409_v19  ;;  %v411_v22 = vunpack.c.h.bf16 %v409_v19  ;;  %v995_v32 = vunpack.c.l.bf16 %v994_v31  ;;  %v996_v33 = vunpack.c.h.bf16 %v994_v31 }
  0x97   : > { %5825 = vmatpush3.bf16.msra.mxu1 %v409_v19  ;;  %v5419_v19 = vld [vmem:[%s6347_s14 + $0x48] sm:$0xff] }
  0x98   : > { %5706 = vmatmul.mubr.msk.f32.gmra.mrb[2].mxu1 %vm414_vm0, %v300_v20  ;;  %v412_v24 = vsub.f32 %v407_v14, %v410_v21  ;;  %v413_v25 = vsub.f32 %v408_v15, %v411_v22  ;;  %v997_v34 = vsub.f32 %v992_v29, %v995_v32  ;;  %v998_v35 = vsub.f32 %v993_v30, %v996_v33  ;;  %v5414_v14 = vld [vmem:[%s6347_s14 + $0x20] sm:$0xff]  ;;  %v1551_v15 = vld [vmem:[%s6347_s14 + $0x10] sm:$0xff] }
  0x99   : > { %5712 = vmatprep.mubr.msk.f32.mxu1 %vm414_vm0, %v6362_v0  ;;  %v1576_v21 = vmul.f32 %v1572_v2, %v1552_v10  ;;  %v1647_v22 = vstv %s5434_s9  ;;  %v1575_v26 = vmul.f32 %v1572_v2, %v1551_v15  ;;  %v1639_v29 = vmul.f32 %v5415_v5, %v1637_v17  ;;  %v5418_v30 = vld [vmem:[%s6347_s14 + $0x40] sm:$0xff]  ;;  %v5416_v32 = vld [vmem:[%s6347_s14 + $0x30] sm:$0xff]  ;;  %s5452_s9 = sld [smem:[#allocation3 + $0x43]] }
  0x9a   : > { %v5834_v28 = vpack.c.bf16 %v413_v25, %v412_v24  ;;  %v5858_v36 = vpack.c.bf16 %v998_v35, %v997_v34  ;;  %v1583_v24 = vmul.f32 %v5414_v14, %v1582_v7  ;;  %v5417_v25 = vld [vmem:[%s6347_s14 + $0x38] sm:$0xff]  ;;  %v1638_v35 = vmul.f32 %v5414_v14, %v1637_v17 }
  0x9b   : > { %v1649_v38 = vmul.f32 %v5419_v19, %v1647_v22 }
  0x9c   : > { %5713 = vmatmul.mubr.msk.f32.vlgmr.msra.gmra.mrb[4].mxu1 %vm414_vm0, %v298_v13  ;;  %5835 = vmatprep.subr.bf16.mxu1 %v5834_v28 }
  0x9d   : > { %5715 = vmatprep.mubr.msk.f32.mxu1 %vm414_vm0, %v299_v16  ;;  %5837 = vmatpush3.bf16.msra.mxu1 %v5834_v28 }
  0x9e   : > { %5843 = vmatprep.subr.bf16.mxu1 %v989_v23 }
  0xa0   : > { %5716 = vmatmul.mubr.msk.f32.gmra.mrb[6].mxu1 %vm414_vm0, %v300_v20 }
  0xa1   : > { %5742 = vmatprep.mubr.msk.f32.mxu1 %vm414_vm0, %v6362_v0 }
  0xa4   : > { %5743 = vmatmul.mubr.msk.f32.vlgmr.msra.gmra.mrb[8].mxu1 %vm414_vm0, %v298_v13 }
  0xa5   : > { %5745 = vmatprep.mubr.msk.f32.mxu1 %vm414_vm0, %v299_v16  ;;  %5845 = vmatpush3.bf16.msra.mxu1 %v989_v23  ;;  %v1577_v23 = vadd.f32 %v1573_v9, %v1569_v6 }
  0xa6   : > { %5847 = vmatprep.subr.bf16.mxu1 %v994_v31 }
  0xa8   : > { %5746 = vmatmul.mubr.msk.f32.gmra.mrb[10].mxu1 %vm414_vm0, %v300_v20 }
  0xa9   : > { %5762 = vmatprep.mubr.msk.f32.mxu1 %vm414_vm0, %v6362_v0 }
  0xac   : > { %5763 = vmatmul.mubr.msk.f32.vlgmr.msra.gmra.mrb[12].mxu1 %vm414_vm0, %v298_v13 }
  0xad   : > { %5765 = vmatprep.mubr.msk.f32.mxu1 %vm414_vm0, %v299_v16  ;;  %5849 = vmatpush3.bf16.msra.mxu1 %v994_v31  ;;  %v1631_v31 = vmul.f32 %v1627_v8, %v1552_v10 }
  0xae   : > { %5859 = vmatprep.subr.bf16.mxu1 %v5858_v36 }
  0xb0   : > { %5766 = vmatmul.mubr.msk.f32.gmra.mrb[14].mxu1 %vm414_vm0, %v300_v20 }
  0xb1   : > { %5772 = vmatprep.mubr.msk.f32.mxu1 %vm414_vm0, %v6362_v0 }
  0xb4   : > { %5773 = vmatmul.mubr.msk.f32.vlgmr.msra.gmra.mrb[16].mxu1 %vm414_vm0, %v298_v13 }
  0xb5   : > { %5775 = vmatprep.mubr.msk.f32.mxu1 %vm414_vm0, %v299_v16  ;;  %5861 = vmatpush3.bf16.msra.mxu1 %v5858_v36  ;;  %v1630_v36 = vmul.f32 %v1627_v8, %v1551_v15 }
  0xb8   : > { %5776 = vmatmul.mubr.msk.f32.gmra.mrb[18].mxu1 %vm414_vm0, %v300_v20 }
  0xb9   : > { %5802 = vmatprep.mubr.msk.f32.mxu1 %vm414_vm0, %v6362_v0 }
  0xbc   : > { %5803 = vmatmul.mubr.msk.f32.vlgmr.msra.gmra.mrb[20].mxu1 %vm414_vm0, %v298_v13  ;;  %v1629_v13 = vmul.f32 %v1627_v8, %v1550_v1 }
  0xbd   : > { %5805 = vmatprep.mubr.msk.f32.mxu1 %vm414_vm0, %v299_v16  ;;  %v1624_v16 = vstv %s5431_s26  ;;  %s5464_s26 = sld [smem:[#allocation3 + $0x46]] }
  0xbe   : > { %v1633_v28 = vadd.f32 %v1629_v13, %v1624_v16  ;;  %v1632_v34 = vadd.f32 %v1628_v18, %v1624_v16 }
  0xc0   : > { %5806 = vmatmul.mubr.msk.f32.gmra.mrb[22].mxu1 %vm414_vm0, %v300_v20  ;;  %v1592_v20 = vstv %s5429_s8  ;;  %s5465_s8 = sld [smem:[#allocation3 + $0x58]] }
  0xc1   : > { %v1594_v33 = vmul.f32 %v5419_v19, %v1592_v20 }
 0x167   : > { %v5704_v40 = vpop.f32.mrb[0].mxu1 }
 0x168   : > { %v493_v0 = vpop.f32.mrb[1].mxu1 }
 0x16b   : > { %v5707_v41 = vpop.f32.mrb[2].mxu1 }
 0x16c   : > { %v503_v42 = vpop.f32.mrb[3].mxu1 }
 0x16f   : > { %v5714_v43 = vpop.f32.mrb[4].mxu1 }
 0x170   : > { %v578_v44 = vpop.f32.mrb[5].mxu1 }
 0x171   : > { %5722 = vmatprep.mubr.msk.f32.mxu0 %vm414_vm0, %v578_v44  ;;  %v1579_v44 = vadd.f32 %v1575_v26, %v1569_v6 }
 0x172   : > { %5723 = vmatmul.mubr.msk.f32.vlgmr.msra.gmra.mrb[0].mxu0 %vm414_vm0, %v5714_v43  ;;  %v5421_v43 = vld [vmem:[%s6347_s14 + $0x58] sm:$0xff] }
 0x173   : > { %v5717_v45 = vpop.f32.mrb[6].mxu1  ;;  %5833 = vmatpush3.bf16.msra.mxu0 %v5826_v39 }
 0x174   : > { %v588_v46 = vpop.f32.mrb[7].mxu1  ;;  %5839 = vmatprep.subr.bf16.mxu0 %v5826_v39 }
 0x175   : > { %5725 = vmatprep.mubr.msk.f32.mxu0 %vm414_vm0, %v588_v46  ;;  %v1643_v46 = vadd.f32 %v1639_v29, %v1633_v28 }
 0x176   : > { %5726 = vmatmul.mubr.msk.f32.gmra.mrb[2].mxu0 %vm414_vm0, %v5717_v45  ;;  %v1585_v45 = vmul.f32 %v5416_v32, %v1582_v7 }
 0x177   : > { %5732 = vmatprep.mubr.msk.f32.mxu0 %vm414_vm0, %v493_v0  ;;  %v5744_v47 = vpop.f32.mrb[8].mxu1  ;;  %v5423_v0 = vld [vmem:[%s6347_s14 + $0x68] sm:$0xff]  ;;  %v1653_v3 = vadd.f32 %v1649_v38, %v1643_v46 }
 0x178   : > { %v857_v48 = vpop.f32.mrb[9].mxu1  ;;  %v1589_v1 = vadd.f32 %v1585_v45, %v1579_v44 }
 0x17a   : > { %5733 = vmatmul.mubr.msk.f32.vlgmr.msra.gmra.mrb[0].mxu0 %vm414_vm0, %v5704_v40  ;;  %v1586_v40 = vmul.f32 %v5417_v25, %v1582_v7  ;;  %v5424_v7 = vld [vmem:[%s6347_s14 + $0x70] sm:$0xff] }
 0x17b   : > { %5735 = vmatprep.mubr.msk.f32.mxu0 %vm414_vm0, %v503_v42  ;;  %5841 = vmatpush3.bf16.msra.mxu0 %v5826_v39  ;;  %v5747_v49 = vpop.f32.mrb[10].mxu1  ;;  %v1593_v42 = vmul.f32 %v5418_v30, %v1592_v20 }
 0x17c   : > { %v867_v50 = vpop.f32.mrb[11].mxu1  ;;  %5851 = vmatprep.subr.bf16.mxu0 %v5826_v39 }
 0x17e   : > { %5736 = vmatmul.mubr.msk.f32.gmra.mrb[2].mxu0 %vm414_vm0, %v5707_v41  ;;  %v1587_v41 = vadd.f32 %v1583_v24, %v1577_v23 }
 0x17f   : > { %5752 = vmatprep.mubr.msk.f32.mxu0 %vm414_vm0, %v857_v48  ;;  %v5764_v51 = vpop.f32.mrb[12].mxu1  ;;  %v5422_v48 = vld [vmem:[%s6347_s14 + $0x60] sm:$0xff] }
 0x180   : > { %v1065_v52 = vpop.f32.mrb[13].mxu1 }
 0x182   : > { %5753 = vmatmul.mubr.msk.f32.vlgmr.msra.gmra.mrb[0].mxu0 %vm414_vm0, %v5744_v47  ;;  %v1657_v47 = vstv %s6474_s17  ;;  %s5466_s17 = sld [smem:[#allocation3 + $0x23]] }
 0x183   : > { %5755 = vmatprep.mubr.msk.f32.mxu0 %vm414_vm0, %v867_v50  ;;  %v5767_v53 = vpop.f32.mrb[14].mxu1  ;;  %5853 = vmatpush3.bf16.msra.mxu0 %v5826_v39  ;;  %v1641_v50 = vmul.f32 %v5417_v25, %v1637_v17  ;;  %v1659_v4 = vmul.f32 %v5423_v0, %v1657_v47  ;;  %v1658_v9 = vmul.f32 %v5422_v48, %v1657_v47 }
 0x184   : > { %v1075_v54 = vpop.f32.mrb[15].mxu1  ;;  %5855 = vmatprep.subr.bf16.mxu0 %v5826_v39  ;;  %v1660_v24 = vmul.f32 %v5424_v7, %v1657_v47 }
 0x185   : > { %v1663_v18 = vadd.f32 %v1659_v4, %v1653_v3 }
 0x186   : > { %5756 = vmatmul.mubr.msk.f32.gmra.mrb[2].mxu0 %vm414_vm0, %v5747_v49  ;;  %v1635_v49 = vadd.f32 %v1631_v31, %v1624_v16 }
 0x187   : > { %v5774_v55 = vpop.f32.mrb[16].mxu1  ;;  %v1671_v28 = vmul.f32 0.1, %v1663_v18  ;;  %vm1667_vm8 = vcmp.gt.f32.partialorder %v1663_v18, 0.0 }
 0x188   : > { %v1150_v56 = vpop.f32.mrb[17].mxu1  ;;  %v1645_v5 = vadd.f32 %v1641_v50, %v1635_v49 }
 0x189   : > { %5782 = vmatprep.mubr.msk.f32.mxu0 %vm414_vm0, %v1150_v56  ;;  %v1598_v56 = vadd.f32 %v1594_v33, %v1588_v27  ;;  %v1685_v33 = vstv %s5437_s29  ;;  %v6493_v38 = vsel %vm1667_vm8, %v1663_v18, %v1671_v28  ;;  %v1733_v18 = vstv %s5441_s13  ;;  %s5453_s29 = sld [smem:[#allocation3 + $0x55]]  ;;  %s6560_s13 = sld [smem:[#allocation3 + $0x1e]] }
 0x18a   : > { %5783 = vmatmul.mubr.msk.f32.vlgmr.msra.gmra.mrb[4].mxu0 %vm414_vm0, %v5774_v55  ;;  %v1640_v55 = vmul.f32 %v5416_v32, %v1637_v17  ;;  %v1605_v17 = vmul.f32 %v5424_v7, %v1602_v37 }
 0x18b   : > { %v5777_v57 = vpop.f32.mrb[18].mxu1  ;;  %5857 = vmatpush3.bf16.msra.mxu0 %v5826_v39 }
 0x18c   : > { %v1160_v58 = vpop.f32.mrb[19].mxu1  ;;  %5863 = vmatprep.subr.bf16.mxu0 %v5826_v39 }
 0x18d   : > { %5785 = vmatprep.mubr.msk.f32.mxu0 %vm414_vm0, %v1160_v58 }
 0x18e   : > { %5786 = vmatmul.mubr.msk.f32.gmra.mrb[6].mxu0 %vm414_vm0, %v5777_v57  ;;  %v1604_v57 = vmul.f32 %v5423_v0, %v1602_v37 }
 0x18f   : > { %5792 = vmatprep.mubr.msk.f32.mxu0 %vm414_vm0, %v1065_v52  ;;  %v5804_v59 = vpop.f32.mrb[20].mxu1  ;;  %v1642_v52 = vadd.f32 %v1638_v35, %v1632_v34  ;;  %v1679_v35 = vstv %s5436_s15  ;;  %s5467_s15 = sld [smem:[#allocation3 + $0x35]] }
 0x190   : > { %v1429_v60 = vpop.f32.mrb[21].mxu1  ;;  %v1608_v12 = vadd.f32 %v1604_v57, %v1598_v56 }
 0x192   : > { %5793 = vmatmul.mubr.msk.f32.vlgmr.msra.gmra.mrb[4].mxu0 %vm414_vm0, %v5764_v51  ;;  %v5420_v51 = vld [vmem:[%s6347_s14 + $0x50] sm:$0xff]  ;;  %v1616_v25 = vmul.f32 0.1, %v1608_v12  ;;  %vm1612_vm6 = vcmp.gt.f32.partialorder %v1608_v12, 0.0 }
 0x193   : > { %5795 = vmatprep.mubr.msk.f32.mxu0 %vm414_vm0, %v1075_v54  ;;  %5865 = vmatpush3.bf16.msra.mxu0 %v5826_v39  ;;  %v5807_v61 = vpop.f32.mrb[22].mxu1  ;;  %v1580_v39 = vadd.f32 %v1576_v21, %v1569_v6  ;;  %v1634_v54 = vadd.f32 %v1630_v36, %v1624_v16  ;;  %v1595_v2 = vmul.f32 %v5420_v51, %v1592_v20 }
 0x194   : > { %v1439_v62 = vpop.f32.mrb[23].mxu1  ;;  %v1651_v6 = vmul.f32 %v5421_v43, %v1647_v22  ;;  %v1650_v11 = vmul.f32 %v5420_v51, %v1647_v22  ;;  %v6489_v32 = vsel %vm1612_vm6, %v1608_v12, %v1616_v25 }
 0x195   : > { %v1590_v58 = vadd.f32 %v1586_v40, %v1580_v39  ;;  %v1644_v10 = vadd.f32 %v1640_v55, %v1634_v54  ;;  %v1599_v16 = vadd.f32 %v1595_v2, %v1589_v1  ;;  %v1695_v39 = vstv %s5438_s23  ;;  %s5454_s23 = sld [smem:[#allocation3 + $0x20]] }
 0x196   : > { %5796 = vmatmul.mubr.msk.f32.gmra.mrb[6].mxu0 %vm414_vm0, %v5767_v53  ;;  %v1648_v53 = vmul.f32 %v5418_v30, %v1647_v22  ;;  %v1655_v19 = vadd.f32 %v1651_v6, %v1645_v5  ;;  %v1687_v0 = vmul.f32 %v1685_v33, %v6489_v32 }
 0x197   : > { %5812 = vmatprep.mubr.msk.f32.mxu0 %vm414_vm0, %v1429_v60  ;;  %v1597_v60 = vadd.f32 %v1593_v42, %v1587_v41  ;;  %v1654_v23 = vadd.f32 %v1650_v11, %v1644_v10  ;;  %v1609_v22 = vadd.f32 %v1605_v17, %v1599_v16  ;;  %v1717_v16 = vstv %s5439_s25  ;;  %s6558_s25 = sld [smem:[#allocation3 + $0x32]] }
 0x198   : > { %v1652_v8 = vadd.f32 %v1648_v53, %v1642_v52 }
 0x199   : > { %v1664_v31 = vadd.f32 %v1660_v24, %v1654_v23  ;;  %vm1613_vm11 = vcmp.gt.f32.partialorder %v1609_v22, 0.0  ;;  %v1735_v23 = vmul.f32 %v1733_v18, %v6493_v38 }
 0x19a   : > { %5813 = vmatmul.mubr.msk.f32.vlgmr.msra.gmra.mrb[4].mxu0 %vm414_vm0, %v5804_v59  ;;  %v1596_v59 = vmul.f32 %v5421_v43, %v1592_v20  ;;  %v1662_v21 = vadd.f32 %v1658_v9, %v1652_v8 }
 0x19b   : > { %5815 = vmatprep.mubr.msk.f32.mxu0 %vm414_vm0, %v1439_v62  ;;  %v5425_v62 = vld [vmem:[%s6347_s14 + $0x78] sm:$0xff]  ;;  %v1672_v42 = vmul.f32 0.1, %v1664_v31  ;;  %vm1668_vm13 = vcmp.gt.f32.partialorder %v1664_v31, 0.0  ;;  %s6122_s14 = smov 1  }
 0x19c   : > { %v1600_v13 = vadd.f32 %v1596_v59, %v1590_v58  ;;  %v1606_v14 = vmul.f32 %v5425_v62, %v1602_v37  ;;  %v1661_v20 = vmul.f32 %v5425_v62, %v1657_v47  ;;  %v1670_v30 = vmul.f32 0.1, %v1662_v21 }
 0x19d   : > { %vm1666_vm9 = vcmp.gt.f32.partialorder %v1662_v21, 0.0  ;;  %v1697_v47 = vmul.f32 %v1695_v39, %v6493_v38  ;;  %v1676_v55 = vsel %vm1668_vm13, %v1664_v31, %v1672_v42 }
 0x19e   : > { %5816 = vmatmul.mubr.msk.f32.gmra.mrb[6].mxu0 %vm414_vm0, %v5807_v61  ;;  %v1603_v61 = vmul.f32 %v5422_v48, %v1602_v37  ;;  %v1610_v26 = vadd.f32 %v1606_v14, %v1600_v13  ;;  %v1665_v29 = vadd.f32 %v1661_v20, %v1655_v19  ;;  %v1617_v37 = vmul.f32 0.1, %v1609_v22 }
 0x19f   : > { %v6496_v41 = vsel %vm1666_vm9, %v1662_v21, %v1670_v30  ;;  %v1698_v3 = vmul.f32 %v1695_v39, %v1676_v55 }
 0x1a0   : > { %v1607_v15 = vadd.f32 %v1603_v61, %v1597_v60  ;;  %v1618_v34 = vmul.f32 0.1, %v1610_v26  ;;  %vm1614_vm10 = vcmp.gt.f32.partialorder %v1610_v26, 0.0  ;;  %v1673_v40 = vmul.f32 0.1, %v1665_v29 }
 0x1a1   : > { %vm1669_vm12 = vcmp.gt.f32.partialorder %v1665_v29, 0.0  ;;  %v1621_v49 = vsel %vm1613_vm11, %v1609_v22, %v1617_v37  ;;  %v1696_v51 = vmul.f32 %v1695_v39, %v6496_v41 }
 0x1a2   : > { %v1615_v27 = vmul.f32 0.1, %v1607_v15  ;;  %vm1611_vm7 = vcmp.gt.f32.partialorder %v1607_v15, 0.0  ;;  %v1622_v45 = vsel %vm1614_vm10, %v1610_v26, %v1618_v34  ;;  %v1677_v52 = vsel %vm1669_vm12, %v1665_v29, %v1673_v40 }
 0x1a3   : > { %v1689_v54 = vmul.f32 %v1685_v33, %v1622_v45  ;;  %v1688_v58 = vmul.f32 %v1685_v33, %v1621_v49  ;;  %v1699_v61 = vmul.f32 %v1695_v39, %v1677_v52  ;;  %v1734_v26 = vmul.f32 %v1733_v18, %v6496_v41 }
 0x1a4   : > { %v6491_v36 = vsel %vm1611_vm7, %v1607_v15, %v1615_v27  ;;  %v1723_v15 = vstv %s5440_s28  ;;  %v1737_v34 = vmul.f32 %v1733_v18, %v1677_v52  ;;  %v1736_v39 = vmul.f32 %v1733_v18, %v1676_v55  ;;  %s6552_s28 = sld [smem:[#allocation3 + $0x47]] }
 0x1a5   : > { %v1686_v44 = vmul.f32 %v1685_v33, %v6491_v36  ;;  %v1725_v17 = vmul.f32 %v1723_v15, %v6489_v32  ;;  %v1724_v20 = vmul.f32 %v1723_v15, %v6491_v36  ;;  %v1727_v22 = vmul.f32 %v1723_v15, %v1622_v45 }
 0x1a6   : > { %v1726_v30 = vmul.f32 %v1723_v15, %v1621_v49  ;;  %vm1770_vm7 = vcmask 269320   ;;  %v6518_v52 = vstv %s5462_s0  ;;  %s6566_s0 = sld [smem:[#allocation3 + $0x30]] }
 0x255   : > { %v5754_v43 = vpop.f32.mrb[0].mxu0 }
 0x256   : > { %v1681_v46 = vadd.f32 %v5754_v43, %v1679_v35  ;;  %v954_v48 = vpop.f32.mrb[1].mxu0 }
 0x257   : > { %v1680_v50 = vadd.f32 %v1679_v35, %v954_v48 }
 0x258   : > { %v1691_v53 = vadd.f32 %v1687_v0, %v1681_v46 }
 0x259   : > { %v1690_v56 = vadd.f32 %v1686_v44, %v1680_v50  ;;  %v5757_v57 = vpop.f32.mrb[2].mxu0 }
 0x25a   : > { %v1701_v59 = vadd.f32 %v1697_v47, %v1691_v53  ;;  %v1683_v60 = vadd.f32 %v5757_v57, %v1679_v35  ;;  %v964_v62 = vpop.f32.mrb[3].mxu0  ;;  %v6527_v57 = vstv %s5450_s11  ;;  %s6572_s11 = sld [smem:[#allocation3 + $0x66]] }
 0x25b   : > { %v1700_v1 = vadd.f32 %v1696_v51, %v1690_v56  ;;  %v1682_v2 = vadd.f32 %v1679_v35, %v964_v62  ;;  %v6525_v56 = vstv %s5463_s7  ;;  %v6538_v62 = vstv %s5451_s10  ;;  %s6568_s7 = sld [smem:[#allocation3 + $0x42]]  ;;  %s6576_s10 = sld [smem:[#allocation3 + $0x68]] }
 0x25c   : > { %v1693_v4 = vadd.f32 %v1689_v54, %v1683_v60  ;;  %vm1705_vm15 = vcmp.gt.f32.partialorder %v1701_v59, 0.0  ;;  %v1709_v63 = vmul.f32 0.1, %v1701_v59 }
 0x25d   : > { %v1692_v5 = vadd.f32 %v1688_v58, %v1682_v2  ;;  %v1708_v8 = vmul.f32 0.1, %v1700_v1  ;;  %vm1704_vm0 = vcmp.gt.f32.partialorder %v1700_v1, 0.0 }
 0x25e   : > { %v1703_v6 = vadd.f32 %v1699_v61, %v1693_v4  ;;  %v1713_v7 = vsel %vm1705_vm15, %v1701_v59, %v1709_v63  ;;  %v6536_v61 = vstv %s5464_s26  ;;  %v6548_v4 = vstv %s5452_s9  ;;  %s6574_s26 = sld [smem:[#allocation3 + $0x67]]  ;;  %s5469_s9 = sld [smem:[#allocation3 + $0x59]] }
 0x25f   : > { %v1702_v9 = vadd.f32 %v1698_v3, %v1692_v5  ;;  %1760 = vrot.lane.b32.xlu0 %v1713_v7, %s6122_s14  ;;  %v1712_v11 = vsel %vm1704_vm0, %v1700_v1, %v1708_v8  ;;  %v6546_v3 = vstv %s5465_s8  ;;  %v6564_v7 = vstv %s5453_s29  ;;  %s6583_s8 = sld [smem:[#allocation3 + $0x54]]  ;;  %s6124_s29 = smov 126  }
 0x260   : > { %vm1707_vm1 = vcmp.gt.f32.partialorder %v1703_v6, 0.0  ;;  %v1711_v10 = vmul.f32 0.1, %v1703_v6 }
 0x261   : > { %v1710_v13 = vmul.f32 0.1, %v1702_v9  ;;  %vm1706_vm2 = vcmp.gt.f32.partialorder %v1702_v9, 0.0 }
 0x262   : > { %v1715_v12 = vsel %vm1707_vm1, %v1703_v6, %v1711_v10  ;;  %v6562_v6 = vstv %s5466_s17  ;;  %s5456_s17 = sld [smem:[#allocation3 + $0x44]] }
 0x263   : > { %1758 = vrot.lane.b32.xlu0 %v1712_v11, %s6122_s14  ;;  %1764 = vrot.lane.b32.xlu1 %v1715_v12, %s6122_s14  ;;  %v1714_v14 = vsel %vm1706_vm2, %v1702_v9, %v1710_v13  ;;  %v6585_v12 = vstv %s5467_s15  ;;  %v6587_v13 = vstv %s5454_s23  ;;  %s5457_s15 = sld [smem:[#allocation3 + $0x56]]  ;;  %s5475_s23 = sld [smem:[#allocation3 + $0x37]] }
 0x267   : > { %1762 = vrot.lane.b32.xlu1 %v1714_v14, %s6122_s14 }
 0x26d   : > { %v5814_v19 = vpop.f32.mrb[4].mxu0 }
 0x26e   : > { %v1719_v21 = vadd.f32 %v5814_v19, %v1717_v16  ;;  %v1526_v24 = vpop.f32.mrb[5].mxu0  ;;  %v6602_v19 = vstv %s6560_s13  ;;  %s5478_s13 = sld [smem:[#allocation3 + $0x26]] }
 0x26f   : > { %v1718_v25 = vadd.f32 %v1717_v16, %v1526_v24  ;;  %9622 = vst [vmem:[#allocation15_spill] sm:$0xff] %v6602_v19  ;;  %v6617_v24 = vstv %s6572_s11  ;;  %s5481_s11 = sld [smem:[#allocation3 + $0x5c]] }
 0x270   : > { %v1729_v27 = vadd.f32 %v1725_v17, %v1719_v21  ;;  %v6608_v21 = vstv %s6558_s25  ;;  %9624 = vst [vmem:[#allocation17_spill] sm:$0xff] %v6617_v24  ;;  %s5477_s25 = sld [smem:[#allocation3 + $0x5b]] }
 0x271   : > { %v1728_v28 = vadd.f32 %v1724_v20, %v1718_v25  ;;  %v5817_v29 = vpop.f32.mrb[6].mxu0  ;;  %v6605_v20 = vstv %s6552_s28  ;;  %v6620_v25 = vstv %s6568_s7  ;;  %s5476_s28 = sld [smem:[#allocation3 + $0x49]]  ;;  %s5480_s7 = sld [smem:[#allocation3 + $0x4a]] }
 0x272   : > { %v1739_v31 = vadd.f32 %v1735_v23, %v1729_v27  ;;  %v1721_v33 = vadd.f32 %v5817_v29, %v1717_v16  ;;  %v1536_v32 = vpop.f32.mrb[7].mxu0  ;;  %v6612_v23 = vstv %s6566_s0  ;;  %9625 = vst [vmem:[#allocation18_spill] sm:$0xff] %v6620_v25  ;;  %v6626_v27 = vstv %s6576_s10  ;;  %s5479_s0 = sld [smem:[#allocation3 + $0x38]]  ;;  %s5459_s10 = sld [smem:[#allocation3 + $0x33]] }
 0x273   : > { %v1738_v35 = vadd.f32 %v1734_v26, %v1728_v28  ;;  %v1720_v37 = vadd.f32 %v1717_v16, %v1536_v32  ;;  %9623 = vst [vmem:[#allocation16_spill] sm:$0xff] %v6612_v23  ;;  %v6623_v26 = vstv %s6574_s26  ;;  %9627 = vst [vmem:[#allocation20_spill] sm:$0xff] %v6626_v27  ;;  %s5458_s26 = sld [smem:[#allocation3 + $0x21]] }
 0x274   : > { %v1731_v36 = vadd.f32 %v1727_v22, %v1721_v33  ;;  %vm1743_vm3 = vcmp.gt.f32.partialorder %v1739_v31, 0.0  ;;  %v1747_v40 = vmul.f32 0.1, %v1739_v31  ;;  %9626 = vst [vmem:[#allocation19_spill] sm:$0xff] %v6623_v26  ;;  %v6639_v33 = vstv %s5469_s9  ;;  %s5470_s9 = sld [smem:[#allocation3 + $0x24]] }
 0x275   : > { %v1730_v38 = vadd.f32 %v1726_v30, %v1720_v37  ;;  %vm1742_vm4 = vcmp.gt.f32.partialorder %v1738_v35, 0.0  ;;  %v1746_v0 = vmul.f32 0.1, %v1738_v35  ;;  %v6635_v30 = vstv %s6583_s8  ;;  %s5460_s8 = sld [smem:[#allocation3 + $0x45]] }
 0x276   : > { %v1741_v42 = vadd.f32 %v1737_v34, %v1731_v36  ;;  %v1751_v41 = vsel %vm1743_vm3, %v1739_v31, %v1747_v40  ;;  %9628 = vst [vmem:[#allocation21_spill] sm:$0xff] %v6635_v30  ;;  %v6641_v34 = vstv %s5456_s17  ;;  %v6651_v37 = vstv %s6592_s12  ;;  %s5474_s12 = sld [smem:[#allocation3 + $0x25]]  ;;  %s5461_s17 = sld [smem:[#allocation3 + $0x57]] }
 0x277   : > { %v1740_v43 = vadd.f32 %v1736_v39, %v1730_v38  ;;  %v1750_v44 = vsel %vm1742_vm4, %v1738_v35, %v1746_v0  ;;  %1781 = vrot.lane.b32.xlu1 %v1751_v41, %s6122_s14  ;;  %9629 = vst [vmem:[#allocation22_spill] sm:$0xff] %v6651_v37 }
 0x278   : > { %1779 = vrot.lane.b32.xlu0 %v1750_v44, %s6122_s14  ;;  %vm1745_vm5 = vcmp.gt.f32.partialorder %v1741_v42, 0.0  ;;  %v1749_v45 = vmul.f32 0.1, %v1741_v42 }
 0x279   : > { %vm1744_vm6 = vcmp.gt.f32.partialorder %v1740_v43, 0.0  ;;  %v1748_v46 = vmul.f32 0.1, %v1740_v43 }
 0x27a   : > { %v1753_v47 = vsel %vm1745_vm5, %v1741_v42, %v1749_v45  ;;  %v6665_v42 = vstv %s5457_s15  ;;  %s6977_s15 = sld [smem:[#allocation3 + $0x36]] }
 0x27b   : > { %v1752_v48 = vsel %vm1744_vm6, %v1740_v43, %v1748_v46  ;;  %1785 = vrot.lane.b32.xlu1 %v1753_v47, %s6122_s14 }
 0x27c   : > { %1783 = vrot.lane.b32.xlu0 %v1752_v48, %s6122_s14 }
 0x2d1   : > { %v1761_v49 = vpop.permute.xlu0 %1760 }
 0x2d2   : > { %1772 = vst.msk [vmem:[#allocation2 + $0x9] sm:$0xff] %vm1770_vm7, %v1761_v49 }
 0x2d5   : > { %v1759_v50 = vpop.permute.xlu0 %1758  ;;  %v1765_v51 = vpop.permute.xlu1 %1764 }
 0x2d6   : > { %1771 = vst.msk [vmem:[#allocation2 + $0x1] sm:$0xff] %vm1770_vm7, %v1759_v50  ;;  %1774 = vst.msk [vmem:[#allocation2 + $0x19] sm:$0xff] %vm1770_vm7, %v1765_v51 }
 0x2d9   : > { %v6520_v53 = vld [vmem:[#allocation2 + $0x9] sm:$0xff]  ;;  %v1763_v54 = vpop.permute.xlu1 %1762 }
 0x2da   : > { %1773 = vst.msk [vmem:[#allocation2 + $0x11] sm:$0xff] %vm1770_vm7, %v1763_v54  ;;  %v2107_v55 = vmul.f32 %v6518_v52, %v6520_v53  ;;  %v2133_v59 = vmul.f32 %v6525_v56, %v6520_v53  ;;  %v2159_v1 = vmul.f32 %v6536_v61, %v6520_v53  ;;  %v2185_v63 = vmul.f32 %v6546_v3, %v6520_v53 }
 0x2db   : > { %v2211_v9 = vmul.f32 %v6562_v6, %v6520_v53  ;;  %v2237_v16 = vmul.f32 %v6585_v12, %v6520_v53  ;;  %v2263_v28 = vmul.f32 %v6605_v20, %v6520_v53  ;;  %v2289_v38 = vmul.f32 %v6639_v33, %v6520_v53 }
 0x2dc   : > { %2116 = vrot.lane.b32.xlu1 %v2107_v55, %s6123_s16 }
 0x2dd   : > { %v6530_v58 = vld [vmem:[#allocation2] sm:$0xff]  ;;  %v6594_v15 = vld [vmem:[#allocation2 + $0x8] sm:$0xff] }
 0x2de   : > { %v1854_v60 = vmul.f32 %v6527_v57, %v6530_v58  ;;  %v1880_v2 = vmul.f32 %v6538_v62, %v6530_v58  ;;  %v1906_v5 = vmul.f32 %v6548_v4, %v6530_v58  ;;  %v1932_v10 = vmul.f32 %v6564_v7, %v6530_v58  ;;  %v2060_v45 = vld [vmem:[#allocation2 + $0x1] sm:$0xff] }
 0x2df   : > { %v1958_v17 = vmul.f32 %v6587_v13, %v6530_v58  ;;  %v1815_v22 = vmul.f32 %v6602_v19, %v6594_v15  ;;  %v1984_v29 = vmul.f32 %v6608_v21, %v6530_v58  ;;  %v1825_v31 = vmul.f32 %v6612_v23, %v6594_v15 }
 0x2e0   : > { %2142 = vrot.lane.b32.xlu1 %v2133_v59, %s6123_s16  ;;  %1862 = vrot.lane.b32.xlu0 %v1854_v60, %s6123_s16  ;;  %v1835_v35 = vmul.f32 %v6620_v25, %v6594_v15  ;;  %v1845_v40 = vmul.f32 %v6635_v30, %v6594_v15  ;;  %v2010_v0 = vmul.f32 %v6641_v34, %v6530_v58 }
 0x2e1   : > { %v6644_v32 = vadd.f32 %v1815_v22, %v6617_v24  ;;  %v6654_v39 = vadd.f32 %v1825_v31, %v6623_v26  ;;  %v1855_v43 = vmul.f32 %v6527_v57, %v6594_v15  ;;  %v2036_v44 = vmul.f32 %v6665_v42, %v6530_v58  ;;  %v6676_v46 = vld [vmem:[#allocation2 + $0x10] sm:$0xff]  ;;  %v6694_v55 = vld [vmem:[#allocation2 + $0x18] sm:$0xff] }
 0x2e2   : > { %v6657_v36 = vadd.f32 %v1835_v35, %v6626_v27  ;;  %v6668_v41 = vadd.f32 %v1845_v40, %v6651_v37  ;;  %v1881_v47 = vmul.f32 %v6538_v62, %v6594_v15  ;;  %v2106_v48 = vmul.f32 %v6518_v52, %v2060_v45 }
 0x2e3   : > { %v1816_v49 = vmul.f32 %v6602_v19, %v6676_v46  ;;  %v1826_v50 = vmul.f32 %v6612_v23, %v6676_v46  ;;  %v1836_v54 = vmul.f32 %v6620_v25, %v6676_v46  ;;  %v1846_v59 = vmul.f32 %v6635_v30, %v6676_v46 }
 0x2e4   : > { %2168 = vrot.lane.b32.xlu1 %v2159_v1, %s6123_s16  ;;  %1888 = vrot.lane.b32.xlu0 %v1880_v2, %s6123_s16  ;;  %v1907_v60 = vmul.f32 %v6548_v4, %v6594_v15  ;;  %v2132_v1 = vmul.f32 %v6525_v56, %v2060_v45  ;;  %v1959_v22 = vmul.f32 %v6587_v13, %v6594_v15 }
 0x2e5   : > { %v6690_v51 = vadd.f32 %v1816_v49, %v6617_v24  ;;  %v6697_v58 = vadd.f32 %v1826_v50, %v6623_v26  ;;  %v6705_v2 = vadd.f32 %v1836_v54, %v6626_v27  ;;  %v1985_v31 = vmul.f32 %v6608_v21, %v6594_v15  ;;  %v2312_v49 = vld [vmem:[#allocation2 + $0x2] sm:$0xff] }
 0x2e6   : > { %v2210_v35 = vmul.f32 %v6562_v6, %v2060_v45  ;;  %v2011_v40 = vmul.f32 %v6641_v34, %v6594_v15  ;;  %v6762_v50 = vstv %s5474_s12  ;;  %s6995_s12 = sld [smem:[#allocation3 + $0x48]] }
 0x2e7   : > { %v2358_v54 = vmul.f32 %v6762_v50, %v2312_v49 }
 0x2e8   : > { %2194 = vrot.lane.b32.xlu1 %v2185_v63, %s6123_s16  ;;  %1914 = vrot.lane.b32.xlu0 %v1906_v5, %s6123_s16  ;;  %v6708_v63 = vadd.f32 %v1846_v59, %v6651_v37  ;;  %v1817_v5 = vmul.f32 %v6602_v19, %v6694_v55  ;;  %v6769_v59 = vstv %s5475_s23  ;;  %s5473_s23 = sld [smem:[#allocation3 + $0x5a]] }
 0x2e9   : > { %v1782_v8 = vpop.permute.xlu1 %1781 }
 0x2ea   : > { %v1780_v11 = vpop.permute.xlu0 %1779  ;;  %1793 = vst.msk [vmem:[#allocation2 + $0x31] sm:$0xff] %vm1770_vm7, %v1782_v8  ;;  %v1827_v8 = vmul.f32 %v6612_v23, %v6694_v55 }
 0x2eb   : > { %1792 = vst.msk [vmem:[#allocation2 + $0x29] sm:$0xff] %vm1770_vm7, %v1780_v11  ;;  %v6720_v11 = vadd.f32 %v1817_v5, %v6617_v24 }
 0x2ec   : > { %2220 = vrot.lane.b32.xlu1 %v2211_v9, %s6124_s29  ;;  %1940 = vrot.lane.b32.xlu0 %v1932_v10, %s6123_s16  ;;  %v1933_v9 = vmul.f32 %v6564_v7, %v6594_v15  ;;  %v2158_v10 = vmul.f32 %v6536_v61, %v2060_v45 }
 0x2ed   : > { %v1786_v14 = vpop.permute.xlu1 %1785 }
 0x2ee   : > { %v1784_v18 = vpop.permute.xlu0 %1783  ;;  %1795 = vst.msk [vmem:[#allocation2 + $0x41] sm:$0xff] %vm1770_vm7, %v1786_v14  ;;  %v1837_v14 = vmul.f32 %v6620_v25, %v6694_v55 }
 0x2ef   : > { %1794 = vst.msk [vmem:[#allocation2 + $0x39] sm:$0xff] %vm1770_vm7, %v1784_v18  ;;  %v1847_v18 = vmul.f32 %v6635_v30, %v6694_v55 }
 0x2f0   : > { %2246 = vrot.lane.b32.xlu1 %v2237_v16, %s6124_s29  ;;  %1966 = vrot.lane.b32.xlu0 %v1958_v17, %s6124_s29  ;;  %v6725_v16 = vadd.f32 %v1827_v8, %v6623_v26  ;;  %v6730_v17 = vadd.f32 %v1837_v14, %v6626_v27 }
 0x2f2   : > { %v7202_v25 = vld [vmem:[#allocation2 + $0x29] sm:$0xff] }
 0x2f3   : > { %9672 = vst [vmem:[#allocation65_spill] sm:$0xff] %v7202_v25 }
 0x2f4   : > { %2272 = vrot.lane.b32.xlu1 %v2263_v28, %s6124_s29  ;;  %1992 = vrot.lane.b32.xlu0 %v1984_v29, %s6124_s29  ;;  %v2184_v28 = vmul.f32 %v6546_v3, %v2060_v45  ;;  %v6738_v29 = vadd.f32 %v1847_v18, %v6651_v37  ;;  %v6790_v18 = vstv %s5478_s13  ;;  %s5486_s13 = sld [smem:[#allocation3 + $0x28]] }
 0x2f8   : > { %2298 = vrot.lane.b32.xlu1 %v2289_v38, %s6124_s29  ;;  %2018 = vrot.lane.b32.xlu0 %v2010_v0, %s6124_s29  ;;  %v2236_v38 = vmul.f32 %v6585_v12, %v2060_v45  ;;  %v2037_v0 = vmul.f32 %v6665_v42, %v6594_v15 }
 0x2fc   : > { %1864 = vrot.lane.b32.xlu1 %v1855_v43, %s6123_s16  ;;  %2044 = vrot.lane.b32.xlu0 %v2036_v44, %s6124_s29  ;;  %v2262_v43 = vmul.f32 %v6605_v20, %v2060_v45  ;;  %v6755_v44 = vld [vmem:[#allocation2 + $0x19] sm:$0xff] }
 0x2fd   : > { %v2135_v15 = vmul.f32 %v6525_v56, %v6755_v44  ;;  %v2187_v5 = vmul.f32 %v6546_v3, %v6755_v44 }
 0x300   : > { %1890 = vrot.lane.b32.xlu1 %v1881_v47, %s6123_s16  ;;  %2114 = vrot.lane.b32.xlu0 %v2106_v48, %s6123_s16  ;;  %v2109_v47 = vmul.f32 %v6518_v52, %v6755_v44  ;;  %v2288_v48 = vmul.f32 %v6639_v33, %v2060_v45  ;;  %v2161_v45 = vmul.f32 %v6536_v61, %v6755_v44 }
 0x304   : > { %1916 = vrot.lane.b32.xlu1 %v1907_v60, %s6123_s16  ;;  %2140 = vrot.lane.b32.xlu0 %v2132_v1, %s6123_s16  ;;  %v2384_v60 = vmul.f32 %v6769_v59, %v2312_v49  ;;  %v6776_v1 = vstv %s5476_s28  ;;  %s5498_s28 = sld [smem:[#allocation3 + $0x2b]] }
 0x305   : > { %v2410_v8 = vmul.f32 %v6776_v1, %v2312_v49 }
 0x308   : > { %1942 = vrot.lane.b32.xlu1 %v1933_v9, %s6123_s16  ;;  %2166 = vrot.lane.b32.xlu0 %v2158_v10, %s6123_s16  ;;  %v6783_v9 = vstv %s5477_s25  ;;  %v2213_v10 = vmul.f32 %v6562_v6, %v6755_v44  ;;  %s5499_s25 = sld [smem:[#allocation3 + $0x3d]] }
 0x309   : > { %v2436_v14 = vmul.f32 %v6783_v9, %v2312_v49 }
 0x30c   : > { %1968 = vrot.lane.b32.xlu1 %v1959_v22, %s6124_s29  ;;  %2192 = vrot.lane.b32.xlu0 %v2184_v28, %s6123_s16  ;;  %v2239_v22 = vmul.f32 %v6585_v12, %v6755_v44  ;;  %v2462_v28 = vmul.f32 %v6790_v18, %v2312_v49 }
 0x310   : > { %1994 = vrot.lane.b32.xlu1 %v1985_v31, %s6124_s29  ;;  %2218 = vrot.lane.b32.xlu0 %v2210_v35, %s6124_s29  ;;  %v6797_v31 = vstv %s5479_s0  ;;  %v2265_v35 = vmul.f32 %v6605_v20, %v6755_v44  ;;  %s5500_s0 = sld [smem:[#allocation3 + $0x4f]] }
 0x314   : > { %2020 = vrot.lane.b32.xlu1 %v2011_v40, %s6124_s29  ;;  %2244 = vrot.lane.b32.xlu0 %v2236_v38, %s6124_s29  ;;  %v2488_v40 = vmul.f32 %v6797_v31, %v2312_v49  ;;  %v6804_v38 = vstv %s5480_s7  ;;  %s5487_s7 = sld [smem:[#allocation3 + $0x3a]] }
 0x318   : > { %2046 = vrot.lane.b32.xlu1 %v2037_v0, %s6124_s29  ;;  %2270 = vrot.lane.b32.xlu0 %v2262_v43, %s6124_s29  ;;  %v2291_v0 = vmul.f32 %v6639_v33, %v6755_v44  ;;  %v2514_v43 = vmul.f32 %v6804_v38, %v2312_v49 }
 0x31c   : > { %2120 = vrot.lane.b32.xlu1 %v2109_v47, %s6123_s16  ;;  %2296 = vrot.lane.b32.xlu0 %v2288_v48, %s6124_s29  ;;  %v6811_v47 = vld [vmem:[#allocation2 + $0x1a] sm:$0xff]  ;;  %v6813_v48 = vstv %s5481_s11  ;;  %s5501_s11 = sld [smem:[#allocation3 + $0x61]] }
 0x320   : > { %2146 = vrot.lane.b32.xlu1 %v2135_v15, %s6123_s16  ;;  %2366 = vrot.lane.b32.xlu0 %v2358_v54, %s6123_s16  ;;  %v2361_v15 = vmul.f32 %v6762_v50, %v6811_v47  ;;  %v2540_v54 = vmul.f32 %v6813_v48, %v2312_v49  ;;  %v1882_v49 = vmul.f32 %v6538_v62, %v6676_v46 }
 0x324   : > { %2172 = vrot.lane.b32.xlu1 %v2161_v45, %s6123_s16  ;;  %2392 = vrot.lane.b32.xlu0 %v2384_v60, %s6123_s16  ;;  %v2387_v45 = vmul.f32 %v6769_v59, %v6811_v47  ;;  %v1856_v60 = vmul.f32 %v6527_v57, %v6676_v46 }
 0x328   : > { %2198 = vrot.lane.b32.xlu1 %v2187_v5, %s6123_s16  ;;  %2418 = vrot.lane.b32.xlu0 %v2410_v8, %s6123_s16  ;;  %v2413_v5 = vmul.f32 %v6776_v1, %v6811_v47  ;;  %v2439_v8 = vmul.f32 %v6783_v9, %v6811_v47 }
 0x32c   : > { %2224 = vrot.lane.b32.xlu1 %v2213_v10, %s6124_s29  ;;  %2444 = vrot.lane.b32.xlu0 %v2436_v14, %s6123_s16  ;;  %v1908_v10 = vmul.f32 %v6548_v4, %v6676_v46  ;;  %v2465_v14 = vmul.f32 %v6790_v18, %v6811_v47 }
 0x330   : > { %2250 = vrot.lane.b32.xlu1 %v2239_v22, %s6124_s29  ;;  %2470 = vrot.lane.b32.xlu0 %v2462_v28, %s6124_s29  ;;  %v1934_v22 = vmul.f32 %v6564_v7, %v6676_v46 }
 0x334   : > { %2276 = vrot.lane.b32.xlu1 %v2265_v35, %s6124_s29  ;;  %2496 = vrot.lane.b32.xlu0 %v2488_v40, %s6124_s29  ;;  %v2491_v35 = vmul.f32 %v6797_v31, %v6811_v47  ;;  %v1960_v40 = vmul.f32 %v6587_v13, %v6676_v46 }
 0x338   : > { %2302 = vrot.lane.b32.xlu1 %v2291_v0, %s6124_s29  ;;  %2522 = vrot.lane.b32.xlu0 %v2514_v43, %s6124_s29 }
 0x33c   : > { %2372 = vrot.lane.b32.xlu1 %v2361_v15, %s6123_s16  ;;  %2548 = vrot.lane.b32.xlu0 %v2540_v54, %s6124_s29  ;;  %v2517_v15 = vmul.f32 %v6804_v38, %v6811_v47  ;;  %v1986_v54 = vmul.f32 %v6608_v21, %v6676_v46 }
 0x340   : > { %2398 = vrot.lane.b32.xlu1 %v2387_v45, %s6123_s16  ;;  %1866 = vrot.lane.b32.xlu0 %v1856_v60, %s6123_s16 }
 0x344   : > { %2424 = vrot.lane.b32.xlu1 %v2413_v5, %s6123_s16  ;;  %1892 = vrot.lane.b32.xlu0 %v1882_v49, %s6123_s16  ;;  %v2543_v5 = vmul.f32 %v6813_v48, %v6811_v47  ;;  %v2012_v49 = vmul.f32 %v6641_v34, %v6676_v46 }
 0x348   : > { %2450 = vrot.lane.b32.xlu1 %v2439_v8, %s6123_s16  ;;  %1918 = vrot.lane.b32.xlu0 %v1908_v10, %s6123_s16 }
 0x34c   : > { %2476 = vrot.lane.b32.xlu1 %v2465_v14, %s6124_s29  ;;  %1944 = vrot.lane.b32.xlu0 %v1934_v22, %s6123_s16  ;;  %v1857_v14 = vmul.f32 %v6527_v57, %v6694_v55  ;;  %v2038_v22 = vmul.f32 %v6665_v42, %v6676_v46 }
 0x34e   : > { %v6846_v28 = vpop.permute.xlu1 %2116 }
 0x350   : > { %2502 = vrot.lane.b32.xlu1 %v2491_v35, %s6124_s29  ;;  %1970 = vrot.lane.b32.xlu0 %v1960_v40, %s6124_s29  ;;  %v6882_v35 = vld [vmem:[#allocation2 + $0x11] sm:$0xff] }
 0x352   : > { %v6854_v0 = vpop.permute.xlu1 %2142  ;;  %v6856_v43 = vpop.permute.xlu0 %1862 }
 0x353   : > { %9630 = vst [vmem:[#allocation23_spill] sm:$0xff] %v6856_v43  ;;  %v7190_v43 = vld [vmem:[#allocation2 + $0x30] sm:$0xff] }
 0x354   : > { %2528 = vrot.lane.b32.xlu1 %v2517_v15, %s6124_s29  ;;  %1996 = vrot.lane.b32.xlu0 %v1986_v54, %s6124_s29  ;;  %v1883_v54 = vmul.f32 %v6538_v62, %v6694_v55  ;;  %9670 = vst [vmem:[#allocation63_spill] sm:$0xff] %v7190_v43 }
 0x356   : > { %v6864_v45 = vpop.permute.xlu1 %2168  ;;  %v6866_v60 = vpop.permute.xlu0 %1888 }
 0x357   : > { %9631 = vst [vmem:[#allocation24_spill] sm:$0xff] %v6866_v60 }
 0x358   : > { %2554 = vrot.lane.b32.xlu1 %v2543_v5, %s6124_s29  ;;  %2022 = vrot.lane.b32.xlu0 %v2012_v49, %s6124_s29  ;;  %v2108_v5 = vmul.f32 %v6518_v52, %v6882_v35  ;;  %v1909_v49 = vmul.f32 %v6548_v4, %v6694_v55 }
 0x35a   : > { %v6874_v8 = vpop.permute.xlu1 %2194  ;;  %v6876_v10 = vpop.permute.xlu0 %1914 }
 0x35b   : > { %9632 = vst [vmem:[#allocation25_spill] sm:$0xff] %v6876_v10 }
 0x35c   : > { %1868 = vrot.lane.b32.xlu1 %v1857_v14, %s6123_s16  ;;  %2048 = vrot.lane.b32.xlu0 %v2038_v22, %s6124_s29  ;;  %v2134_v14 = vmul.f32 %v6525_v56, %v6882_v35  ;;  %v1935_v22 = vmul.f32 %v6564_v7, %v6694_v55 }
 0x35e   : > { %v6886_v40 = vpop.permute.xlu1 %2220  ;;  %v6888_v15 = vpop.permute.xlu0 %1940 }
 0x35f   : > { %9633 = vst [vmem:[#allocation26_spill] sm:$0xff] %v6888_v15  ;;  %v6973_v15 = vstv %s5459_s10  ;;  %s5502_s10 = sld [smem:[#allocation3 + $0x2c]] }
 0x360   : > { %1894 = vrot.lane.b32.xlu1 %v1883_v54, %s6123_s16  ;;  %2118 = vrot.lane.b32.xlu0 %v2108_v5, %s6123_s16  ;;  %v2160_v54 = vmul.f32 %v6536_v61, %v6882_v35  ;;  %v1961_v5 = vmul.f32 %v6587_v13, %v6694_v55  ;;  %9643 = vst [vmem:[#allocation36_spill] sm:$0xff] %v6973_v15 }
 0x362   : > { %v6896_v57 = vpop.permute.xlu1 %2246  ;;  %v6898_v46 = vpop.permute.xlu0 %1966 }
 0x363   : > { %9634 = vst [vmem:[#allocation27_spill] sm:$0xff] %v6898_v46 }
 0x364   : > { %1920 = vrot.lane.b32.xlu1 %v1909_v49, %s6123_s16  ;;  %2144 = vrot.lane.b32.xlu0 %v2134_v14, %s6123_s16  ;;  %v2186_v49 = vmul.f32 %v6546_v3, %v6882_v35  ;;  %v1987_v14 = vmul.f32 %v6608_v21, %v6694_v55  ;;  %v2013_v3 = vmul.f32 %v6641_v34, %v6694_v55 }
 0x366   : > { %v6906_v62 = vpop.permute.xlu1 %2272  ;;  %v6908_v52 = vpop.permute.xlu0 %1992 }
 0x367   : > { %9635 = vst [vmem:[#allocation28_spill] sm:$0xff] %v6908_v52 }
 0x368   : > { %1946 = vrot.lane.b32.xlu1 %v1935_v22, %s6123_s16  ;;  %2170 = vrot.lane.b32.xlu0 %v2160_v54, %s6123_s16  ;;  %v2212_v22 = vmul.f32 %v6562_v6, %v6882_v35 }
 0x36a   : > { %v6916_v4 = vpop.permute.xlu1 %2298  ;;  %v6918_v56 = vpop.permute.xlu0 %2018 }
 0x36b   : > { %9636 = vst [vmem:[#allocation29_spill] sm:$0xff] %v6918_v56 }
 0x36c   : > { %1972 = vrot.lane.b32.xlu1 %v1961_v5, %s6124_s29  ;;  %2196 = vrot.lane.b32.xlu0 %v2186_v49, %s6123_s16  ;;  %v2238_v5 = vmul.f32 %v6585_v12, %v6882_v35  ;;  %v2039_v49 = vmul.f32 %v6665_v42, %v6694_v55  ;;  %v6958_v42 = vld [vmem:[#allocation2 + $0x12] sm:$0xff]  ;;  %v6960_v55 = vstv %s5458_s26  ;;  %s5488_s26 = sld [smem:[#allocation3 + $0x4c]] }
 0x36d   : > { %9641 = vst [vmem:[#allocation34_spill] sm:$0xff] %v6960_v55 }
 0x36e   : > { %v1865_v7 = vpop.permute.xlu1 %1864  ;;  %v6926_v61 = vpop.permute.xlu0 %2044 }
 0x36f   : > { %9637 = vst [vmem:[#allocation30_spill] sm:$0xff] %v6926_v61  ;;  %v2067_v61 = vmul.f32 %v6960_v55, %v6520_v53 }
 0x370   : > { %1998 = vrot.lane.b32.xlu1 %v1987_v14, %s6124_s29  ;;  %2222 = vrot.lane.b32.xlu0 %v2212_v22, %s6124_s29  ;;  %v2264_v14 = vmul.f32 %v6605_v20, %v6882_v35  ;;  %v6948_v22 = vld [vmem:[#allocation2 + $0xa] sm:$0xff]  ;;  %v1875_v20 = vadd.f32 %v1865_v7, %v6644_v32 }
 0x372   : > { %v1891_v13 = vpop.permute.xlu1 %1890  ;;  %v6934_v54 = vpop.permute.xlu0 %2114 }
 0x373   : > { %9638 = vst [vmem:[#allocation31_spill] sm:$0xff] %v6934_v54  ;;  %v1901_v32 = vadd.f32 %v1891_v13, %v6654_v39  ;;  %v6993_v39 = vstv %s5470_s9  ;;  %s5503_s9 = sld [smem:[#allocation3 + $0x3e]] }
 0x374   : > { %2024 = vrot.lane.b32.xlu1 %v2013_v3, %s6124_s29  ;;  %2248 = vrot.lane.b32.xlu0 %v2238_v5, %s6124_s29  ;;  %v2359_v3 = vmul.f32 %v6762_v50, %v6948_v22  ;;  %v2290_v5 = vmul.f32 %v6639_v33, %v6882_v35  ;;  %v2360_v33 = vmul.f32 %v6762_v50, %v6958_v42 }
 0x375   : > { %v2411_v50 = vmul.f32 %v6776_v1, %v6948_v22  ;;  %9645 = vst [vmem:[#allocation38_spill] sm:$0xff] %v6993_v39  ;;  %v2319_v13 = vmul.f32 %v6993_v39, %v6948_v22 }
 0x376   : > { %v1917_v21 = vpop.permute.xlu1 %1916  ;;  %v6942_v6 = vpop.permute.xlu0 %2140 }
 0x377   : > { %9639 = vst [vmem:[#allocation32_spill] sm:$0xff] %v6942_v6 }
 0x378   : > { %2050 = vrot.lane.b32.xlu1 %v2039_v49, %s6124_s29  ;;  %2274 = vrot.lane.b32.xlu0 %v2264_v14, %s6124_s29 }
 0x37a   : > { %v1943_v12 = vpop.permute.xlu1 %1942  ;;  %v6952_v34 = vpop.permute.xlu0 %2166 }
 0x37b   : > { %9640 = vst [vmem:[#allocation33_spill] sm:$0xff] %v6952_v34  ;;  %v2385_v34 = vmul.f32 %v6769_v59, %v6948_v22 }
 0x37c   : > { %2368 = vrot.lane.b32.xlu1 %v2359_v3, %s6123_s16  ;;  %2300 = vrot.lane.b32.xlu0 %v2290_v5, %s6124_s29 }
 0x37e   : > { %v1969_v49 = vpop.permute.xlu1 %1968  ;;  %v6965_v14 = vpop.permute.xlu0 %2192 }
 0x37f   : > { %9642 = vst [vmem:[#allocation35_spill] sm:$0xff] %v6965_v14  ;;  %v1979_v6 = vadd.f32 %v1969_v49, %v1875_v20  ;;  %v2386_v20 = vmul.f32 %v6769_v59, %v6958_v42  ;;  %v6989_v14 = vstv %s5460_s8  ;;  %s5489_s8 = sld [smem:[#allocation3 + $0x5e]] }
 0x380   : > { %2394 = vrot.lane.b32.xlu1 %v2385_v34, %s6123_s16  ;;  %2370 = vrot.lane.b32.xlu0 %v2360_v33, %s6123_s16  ;;  %v2077_v34 = vmul.f32 %v6973_v15, %v6520_v53 }
 0x381   : > { %v2071_v7 = vadd.f32 %v2067_v61, %v1979_v6  ;;  %v1927_v61 = vadd.f32 %v1917_v21, %v6657_v36  ;;  %v2087_v36 = vmul.f32 %v6989_v14, %v6520_v53 }
 0x382   : > { %v1995_v3 = vpop.permute.xlu1 %1994  ;;  %v6980_v5 = vpop.permute.xlu0 %2218 }
 0x383   : > { %9644 = vst [vmem:[#allocation37_spill] sm:$0xff] %v6980_v5  ;;  %v2127_v49 = vadd.f32 %v6846_v28, %v2071_v7  ;;  %v2005_v33 = vadd.f32 %v1995_v3, %v1901_v32  ;;  %v2437_v7 = vmul.f32 %v6783_v9, %v6948_v22  ;;  %v2412_v3 = vmul.f32 %v6776_v1, %v6958_v42 }
 0x384   : > { %2420 = vrot.lane.b32.xlu1 %v2411_v50, %s6123_s16  ;;  %2396 = vrot.lane.b32.xlu0 %v2386_v20, %s6123_s16  ;;  %v1953_v1 = vadd.f32 %v1943_v12, %v6668_v41  ;;  %v7152_v5 = vstv %s5503_s9  ;;  %s7332_s9 = sld [smem:[#allocation3 + $0x39]] }
 0x385   : > { %v2081_v59 = vadd.f32 %v2077_v34, %v2005_v33  ;;  %v2231_v28 = vadd.f32 %v6886_v40, %v2127_v49  ;;  %v7012_v40 = vstv %s5461_s17  ;;  %v7017_v49 = vstv %s6977_s15  ;;  %s5490_s17 = sld [smem:[#allocation3 + $0x29]]  ;;  %s5504_s15 = sld [smem:[#allocation3 + $0x50]] }
 0x386   : > { %v2021_v6 = vpop.permute.xlu1 %2020  ;;  %v7001_v32 = vpop.permute.xlu0 %2244  ;;  %v2329_v33 = vmul.f32 %v7017_v49, %v6948_v22  ;;  %v2097_v41 = vmul.f32 %v7012_v40, %v6520_v53  ;;  %v2489_v53 = vmul.f32 %v6797_v31, %v6948_v22 }
 0x387   : > { %9646 = vst [vmem:[#allocation39_spill] sm:$0xff] %v7001_v32  ;;  %v2153_v50 = vadd.f32 %v6854_v0, %v2081_v59  ;;  %v2031_v21 = vadd.f32 %v2021_v6, %v1927_v61  ;;  %v7010_v20 = vadd.f32 %v2319_v13, %v2231_v28  ;;  %v2463_v28 = vmul.f32 %v6790_v18, %v6948_v22 }
 0x388   : > { %2446 = vrot.lane.b32.xlu1 %v2437_v7, %s6123_s16  ;;  %2422 = vrot.lane.b32.xlu0 %v2412_v3, %s6123_s16  ;;  %v2438_v13 = vmul.f32 %v6783_v9, %v6958_v42 }
 0x389   : > { %v2091_v34 = vadd.f32 %v2087_v36, %v2031_v21  ;;  %v2257_v0 = vadd.f32 %v6896_v57, %v2153_v50  ;;  %v7037_v57 = vstv %s6995_s12  ;;  %v2464_v21 = vmul.f32 %v6790_v18, %v6958_v42  ;;  %s5491_s12 = sld [smem:[#allocation3 + $0x3b]] }
 0x38a   : > { %v2047_v61 = vpop.permute.xlu1 %2046  ;;  %v7023_v59 = vpop.permute.xlu0 %2270  ;;  %v2339_v9 = vmul.f32 %v7037_v57, %v6948_v22  ;;  %v2515_v18 = vmul.f32 %v6804_v38, %v6948_v22 }
 0x38b   : > { %9647 = vst [vmem:[#allocation40_spill] sm:$0xff] %v7023_v59  ;;  %v2179_v6 = vadd.f32 %v6864_v45, %v2091_v34  ;;  %v2057_v12 = vadd.f32 %v2047_v61, %v1953_v1  ;;  %v7032_v7 = vadd.f32 %v2329_v33, %v2257_v0  ;;  %v7138_v59 = vstv %s5502_s10  ;;  %s7290_s10 = sld [smem:[#allocation3 + $0x41]] }
 0x38c   : > { %2472 = vrot.lane.b32.xlu1 %v2463_v28, %s6124_s29  ;;  %2448 = vrot.lane.b32.xlu0 %v2438_v13, %s6123_s16  ;;  %v7154_v56 = vstv %s5490_s17  ;;  %v7166_v10 = vstv %s5504_s15  ;;  %s7374_s17 = sld [smem:[#allocation3 + $0x53]] }
 0x38d   : > { %9648 = vst [vmem:[#allocation41_spill] sm:$0xff] %v7032_v7  ;;  %v2101_v3 = vadd.f32 %v2097_v41, %v2057_v12  ;;  %v2283_v50 = vadd.f32 %v6906_v62, %v2179_v6  ;;  %v7055_v62 = vstv %s5473_s23  ;;  %v2541_v41 = vmul.f32 %v6813_v48, %v6948_v22  ;;  %9666 = vst [vmem:[#allocation59_spill] sm:$0xff] %v7154_v56  ;;  %s5505_s23 = sld [smem:[#allocation3 + $0x62]]  ;;  %s7376_s15 = sld [smem:[#allocation3 + $0x4b]] }
 0x38e   : > { %v7042_v36 = vpop.permute.xlu1 %2120  ;;  %v7044_v45 = vpop.permute.xlu0 %2296  ;;  %v2349_v33 = vmul.f32 %v7055_v62, %v6948_v22  ;;  %v2516_v12 = vmul.f32 %v6804_v38, %v6958_v42  ;;  %v2542_v38 = vmul.f32 %v6813_v48, %v6958_v42 }
 0x38f   : > { %9649 = vst [vmem:[#allocation42_spill] sm:$0xff] %v7044_v45  ;;  %v2205_v1 = vadd.f32 %v6874_v8, %v2101_v3  ;;  %v7051_v34 = vadd.f32 %v2339_v9, %v2283_v50  ;;  %v2490_v8 = vmul.f32 %v6797_v31, %v6958_v42  ;;  %v7080_v3 = vld [vmem:[#allocation2 + $0x31] sm:$0xff]  ;;  %v7082_v31 = vstv %s5498_s28  ;;  %s5492_s28 = sld [smem:[#allocation3 + $0x4d]] }
 0x390   : > { %2498 = vrot.lane.b32.xlu1 %v2489_v53, %s6124_s29  ;;  %2474 = vrot.lane.b32.xlu0 %v2464_v21, %s6124_s29  ;;  %9654 = vst [vmem:[#allocation47_spill] sm:$0xff] %v7080_v3  ;;  %9655 = vst [vmem:[#allocation48_spill] sm:$0xff] %v7082_v31  ;;  %v2863_v22 = vmul.f32 %v7082_v31, %v7080_v3  ;;  %v7094_v53 = vld [vmem:[#allocation2 + $0x28] sm:$0xff]  ;;  %v7096_v21 = vstv %s5499_s25  ;;  %v7126_v45 = vstv %s5488_s26  ;;  %s5493_s25 = sld [smem:[#allocation3 + $0x5f]] }
 0x391   : > { %9650 = vst [vmem:[#allocation43_spill] sm:$0xff] %v7051_v34  ;;  %v2309_v0 = vadd.f32 %v6916_v4, %v2205_v1  ;;  %9657 = vst [vmem:[#allocation50_spill] sm:$0xff] %v7096_v21  ;;  %v7098_v1 = vstv %s5486_s13  ;;  %v2714_v54 = vmul.f32 %v7154_v56, %v7094_v53  ;;  %v7168_v52 = vstv %s5491_s12  ;;  %s5510_s13 = sld [smem:[#allocation3 + $0x2e]]  ;;  %s5514_s26 = sld [smem:[#allocation3 + $0x2f]] }
 0x392   : > { %v7060_v61 = vpop.permute.xlu1 %2146  ;;  %v7062_v28 = vpop.permute.xlu0 %2366  ;;  %9658 = vst [vmem:[#allocation51_spill] sm:$0xff] %v7098_v1  ;;  %v2610_v48 = vmul.f32 %v7098_v1, %v7094_v53  ;;  %9662 = vst [vmem:[#allocation55_spill] sm:$0xff] %v7126_v45  ;;  %v2740_v60 = vmul.f32 %v7168_v52, %v7094_v53  ;;  %v2611_v30 = vmul.f32 %v7098_v1, %v7190_v43  ;;  %s7396_s12 = sld [smem:[#allocation3 + $0x5d]] }
 0x393   : > { %9651 = vst [vmem:[#allocation44_spill] sm:$0xff] %v7062_v28  ;;  %v7068_v13 = vadd.f32 %v2349_v33, %v2309_v0  ;;  %v7140_v28 = vstv %s5489_s8  ;;  %9668 = vst [vmem:[#allocation61_spill] sm:$0xff] %v7168_v52  ;;  %v7178_v46 = vstv %s5505_s23  ;;  %v2862_v19 = vmul.f32 %v7082_v31, %v7202_v25  ;;  %s7307_s8 = sld [smem:[#allocation3 + $0x27]]  ;;  %s5517_s23 = sld [smem:[#allocation3 + $0x65]] }
 0x394   : > { %2524 = vrot.lane.b32.xlu1 %v2515_v18, %s6124_s29  ;;  %2500 = vrot.lane.b32.xlu0 %v2490_v8, %s6124_s29  ;;  %v2889_v18 = vmul.f32 %v7096_v21, %v7080_v3  ;;  %v7110_v8 = vstv %s5500_s0  ;;  %9664 = vst [vmem:[#allocation57_spill] sm:$0xff] %v7140_v28  ;;  %v2688_v32 = vmul.f32 %v7140_v28, %v7094_v53  ;;  %s5511_s0 = sld [smem:[#allocation3 + $0x40]] }
 0x395   : > { %9652 = vst [vmem:[#allocation45_spill] sm:$0xff] %v7068_v13  ;;  %v7180_v37 = vstv %s5492_s28  ;;  %v3045_v27 = vmul.f32 %v7178_v46, %v7080_v3  ;;  %v2888_v34 = vmul.f32 %v7096_v21, %v7202_v25  ;;  %v2078_v1 = vmul.f32 %v6973_v15, %v6882_v35  ;;  %s7621_s28 = sld [smem:[#allocation3 + $0x2a]] }
 0x396   : > { %v7072_v4 = vpop.permute.xlu1 %2172  ;;  %v7074_v6 = vpop.permute.xlu0 %2392  ;;  %9669 = vst [vmem:[#allocation62_spill] sm:$0xff] %v7180_v37  ;;  %v2766_v26 = vmul.f32 %v7180_v37, %v7094_v53  ;;  %v7192_v24 = vstv %s5493_s25  ;;  %s7626_s25 = sld [smem:[#allocation3 + $0x3c]] }
 0x397   : > { %9653 = vst [vmem:[#allocation46_spill] sm:$0xff] %v7074_v6  ;;  %9671 = vst [vmem:[#allocation64_spill] sm:$0xff] %v7192_v24 }
 0x398   : > { %2550 = vrot.lane.b32.xlu1 %v2541_v41, %s6124_s29  ;;  %2526 = vrot.lane.b32.xlu0 %v2516_v12, %s6124_s29  ;;  %v7112_v41 = vstv %s5487_s7  ;;  %s5512_s7 = sld [smem:[#allocation3 + $0x52]] }
 0x399   : > { %9660 = vst [vmem:[#allocation53_spill] sm:$0xff] %v7112_v41 }
 0x39a   : > { %v7086_v50 = vpop.permute.xlu1 %2198  ;;  %v7088_v9 = vpop.permute.xlu0 %2418 }
 0x39b   : > { %9656 = vst [vmem:[#allocation49_spill] sm:$0xff] %v7088_v9  ;;  %v7124_v9 = vstv %s5501_s11  ;;  %s5513_s11 = sld [smem:[#allocation3 + $0x64]] }
 0x39c   : > { %2872 = vrot.lane.b32.xlu1 %v2863_v22, %s6123_s16  ;;  %2552 = vrot.lane.b32.xlu0 %v2542_v38, %s6124_s29  ;;  %v2915_v38 = vmul.f32 %v7110_v8, %v7080_v3  ;;  %v2941_v6 = vmul.f32 %v7124_v9, %v7080_v3 }
 0x39e   : > { %v7102_v0 = vpop.permute.xlu1 %2224  ;;  %v7104_v33 = vpop.permute.xlu0 %2444 }
 0x39f   : > { %9659 = vst [vmem:[#allocation52_spill] sm:$0xff] %v7104_v33  ;;  %v2636_v33 = vmul.f32 %v7112_v41, %v7094_v53 }
 0x3a0   : > { %2898 = vrot.lane.b32.xlu1 %v2889_v18, %s6123_s16  ;;  %2618 = vrot.lane.b32.xlu0 %v2610_v48, %s6123_s16 }
 0x3a2   : > { %v7116_v12 = vpop.permute.xlu1 %2250  ;;  %v7118_v22 = vpop.permute.xlu0 %2470 }
 0x3a3   : > { %9661 = vst [vmem:[#allocation54_spill] sm:$0xff] %v7118_v22  ;;  %v2662_v22 = vmul.f32 %v7126_v45, %v7094_v53 }
 0x3a4   : > { %2924 = vrot.lane.b32.xlu1 %v2915_v38, %s6123_s16  ;;  %2644 = vrot.lane.b32.xlu0 %v2636_v33, %s6123_s16 }
 0x3a6   : > { %v7130_v18 = vpop.permute.xlu1 %2276  ;;  %v7132_v48 = vpop.permute.xlu0 %2496 }
 0x3a7   : > { %9663 = vst [vmem:[#allocation56_spill] sm:$0xff] %v7132_v48  ;;  %v2967_v48 = vmul.f32 %v7138_v59, %v7080_v3 }
 0x3a8   : > { %2950 = vrot.lane.b32.xlu1 %v2941_v6, %s6123_s16  ;;  %2670 = vrot.lane.b32.xlu0 %v2662_v22, %s6123_s16 }
 0x3aa   : > { %v7144_v33 = vpop.permute.xlu1 %2302  ;;  %v7146_v38 = vpop.permute.xlu0 %2522 }
 0x3ab   : > { %9665 = vst [vmem:[#allocation58_spill] sm:$0xff] %v7146_v38  ;;  %v2993_v38 = vmul.f32 %v7152_v5, %v7080_v3 }
 0x3ac   : > { %2976 = vrot.lane.b32.xlu1 %v2967_v48, %s6124_s29  ;;  %2696 = vrot.lane.b32.xlu0 %v2688_v32, %s6123_s16 }
 0x3ae   : > { %v7158_v6 = vpop.permute.xlu1 %2372  ;;  %v7160_v22 = vpop.permute.xlu0 %2548 }
 0x3af   : > { %9667 = vst [vmem:[#allocation60_spill] sm:$0xff] %v7160_v22  ;;  %v3019_v22 = vmul.f32 %v7166_v10, %v7080_v3  ;;  %v2792_v3 = vmul.f32 %v7192_v24, %v7094_v53 }
 0x3b0   : > { %3002 = vrot.lane.b32.xlu1 %v2993_v38, %s6124_s29  ;;  %2722 = vrot.lane.b32.xlu0 %v2714_v54, %s6124_s29 }
 0x3b2   : > { %v7172_v32 = vpop.permute.xlu1 %2398  ;;  %v1867_v48 = vpop.permute.xlu0 %1866 }
 0x3b3   : > { %v1876_v53 = vadd.f32 %v1867_v48, %v6690_v51 }
 0x3b4   : > { %3028 = vrot.lane.b32.xlu1 %v3019_v22, %s6124_s29  ;;  %2748 = vrot.lane.b32.xlu0 %v2740_v60, %s6124_s29 }
 0x3b6   : > { %v7184_v38 = vpop.permute.xlu1 %2424  ;;  %v1893_v54 = vpop.permute.xlu0 %1892 }
 0x3b8   : > { %3054 = vrot.lane.b32.xlu1 %v3045_v27, %s6124_s29  ;;  %2774 = vrot.lane.b32.xlu0 %v2766_v26, %s6124_s29  ;;  %v2637_v26 = vmul.f32 %v7112_v41, %v7190_v43  ;;  %v2068_v41 = vmul.f32 %v6960_v55, %v6882_v35 }
 0x3ba   : > { %v7196_v22 = vpop.permute.xlu1 %2450  ;;  %v1919_v60 = vpop.permute.xlu0 %1918 }
 0x3bc   : > { %2620 = vrot.lane.b32.xlu1 %v2611_v30, %s6123_s16  ;;  %2800 = vrot.lane.b32.xlu0 %v2792_v3, %s6124_s29  ;;  %v2663_v3 = vmul.f32 %v7126_v45, %v7190_v43  ;;  %v2689_v45 = vmul.f32 %v7140_v28, %v7190_v43  ;;  %v7311_v28 = vstv %s5513_s11  ;;  %s7680_s11 = sld [smem:[#allocation3 + $0x3f]] }
 0x3be   : > { %v7206_v23 = vpop.permute.xlu1 %2476  ;;  %v1945_v27 = vpop.permute.xlu0 %1944 }
 0x3c0   : > { %2646 = vrot.lane.b32.xlu1 %v2637_v26, %s6123_s16  ;;  %2870 = vrot.lane.b32.xlu0 %v2862_v19, %s6123_s16  ;;  %v1902_v19 = vadd.f32 %v1893_v54, %v6697_v58  ;;  %v1928_v58 = vadd.f32 %v1919_v60, %v6705_v2  ;;  %v2715_v54 = vmul.f32 %v7154_v56, %v7190_v43 }
 0x3c1   : > { %v1954_v2 = vadd.f32 %v1945_v27, %v6708_v63 }
 0x3c2   : > { %v7215_v13 = vpop.permute.xlu1 %2502  ;;  %v1971_v30 = vpop.permute.xlu0 %1970 }
 0x3c3   : > { %v1980_v7 = vadd.f32 %v1971_v30, %v1876_v53  ;;  %v2914_v53 = vmul.f32 %v7110_v8, %v7202_v25 }
 0x3c4   : > { %2672 = vrot.lane.b32.xlu1 %v2663_v3, %s6123_s16  ;;  %2896 = vrot.lane.b32.xlu0 %v2888_v34, %s6123_s16  ;;  %v2940_v3 = vmul.f32 %v7124_v9, %v7202_v25 }
 0x3c5   : > { %v7226_v51 = vadd.f32 %v2068_v41, %v1980_v7 }
 0x3c6   : > { %v7228_v48 = vpop.permute.xlu1 %2528  ;;  %v1997_v26 = vpop.permute.xlu0 %1996 }
 0x3c7   : > { %v2006_v30 = vadd.f32 %v1997_v26, %v1902_v19  ;;  %v2088_v26 = vmul.f32 %v6989_v14, %v6882_v35 }
 0x3c8   : > { %2698 = vrot.lane.b32.xlu1 %v2689_v45, %s6123_s16  ;;  %2922 = vrot.lane.b32.xlu0 %v2914_v53, %s6123_s16  ;;  %v2741_v53 = vmul.f32 %v7168_v52, %v7190_v43  ;;  %v2069_v52 = vmul.f32 %v6960_v55, %v6755_v44 }
 0x3c9   : > { %v7239_v7 = vadd.f32 %v2078_v1, %v2006_v30  ;;  %v2966_v30 = vmul.f32 %v7138_v59, %v7202_v25 }
 0x3ca   : > { %v7241_v34 = vpop.permute.xlu1 %2554  ;;  %v2023_v41 = vpop.permute.xlu0 %2022 }
 0x3cb   : > { %v2032_v19 = vadd.f32 %v2023_v41, %v1928_v58  ;;  %v2098_v41 = vmul.f32 %v7012_v40, %v6882_v35 }
 0x3cc   : > { %2724 = vrot.lane.b32.xlu1 %v2715_v54, %s6124_s29  ;;  %2948 = vrot.lane.b32.xlu0 %v2940_v3, %s6123_s16  ;;  %v2767_v3 = vmul.f32 %v7180_v37, %v7190_v43 }
 0x3cd   : > { %v7252_v45 = vadd.f32 %v2088_v26, %v2032_v19  ;;  %v2992_v19 = vmul.f32 %v7152_v5, %v7202_v25 }
 0x3ce   : > { %v1869_v1 = vpop.permute.xlu1 %1868  ;;  %v2049_v60 = vpop.permute.xlu0 %2048 }
 0x3cf   : > { %v2058_v58 = vadd.f32 %v2049_v60, %v1954_v2  ;;  %v2793_v2 = vmul.f32 %v7192_v24, %v7190_v43  ;;  %v3018_v60 = vmul.f32 %v7166_v10, %v7202_v25  ;;  %v7286_v24 = vstv %s5510_s13  ;;  %s7638_s13 = sld [smem:[#allocation3 + $0x4e]] }
 0x3d0   : > { %2750 = vrot.lane.b32.xlu1 %v2741_v53, %s6124_s29  ;;  %2974 = vrot.lane.b32.xlu0 %v2966_v30, %s6124_s29  ;;  %v7274_v53 = vld [vmem:[#allocation2 + $0x41] sm:$0xff]  ;;  %v7319_v43 = vstv %s5514_s26  ;;  %s7731_s26 = sld [smem:[#allocation3 + $0x51]] }
 0x3d1   : > { %v7262_v54 = vadd.f32 %v2098_v41, %v2058_v58  ;;  %v2865_v41 = vmul.f32 %v7082_v31, %v7274_v53  ;;  %v2891_v31 = vmul.f32 %v7096_v21, %v7274_v53 }
 0x3d2   : > { %v1895_v63 = vpop.permute.xlu1 %1894  ;;  %v2119_v27 = vpop.permute.xlu0 %2118 }
 0x3d4   : > { %2776 = vrot.lane.b32.xlu1 %v2767_v3, %s6124_s29  ;;  %3000 = vrot.lane.b32.xlu0 %v2992_v19, %s6124_s29  ;;  %v3044_v3 = vmul.f32 %v7178_v46, %v7202_v25  ;;  %v7284_v19 = vld [vmem:[#allocation2 + $0x2a] sm:$0xff] }
 0x3d5   : > { %9673 = vst [vmem:[#allocation66_spill] sm:$0xff] %v7284_v19  ;;  %v3114_v25 = vmul.f32 %v7286_v24, %v7284_v19 }
 0x3d6   : > { %v1921_v35 = vpop.permute.xlu1 %1920  ;;  %v2145_v26 = vpop.permute.xlu0 %2144 }
 0x3d8   : > { %2802 = vrot.lane.b32.xlu1 %v2793_v2, %s6124_s29  ;;  %3026 = vrot.lane.b32.xlu0 %v3018_v60, %s6124_s29  ;;  %v1877_v2 = vadd.f32 %v1869_v1, %v6720_v11  ;;  %v7305_v11 = vstv %s5512_s7  ;;  %v1903_v1 = vadd.f32 %v1895_v63, %v6725_v16  ;;  %v1929_v63 = vadd.f32 %v1921_v35, %v6730_v17  ;;  %s7647_s7 = sld [smem:[#allocation3 + $0x2d]] }
 0x3da   : > { %v1947_v30 = vpop.permute.xlu1 %1946  ;;  %v7278_v58 = vpop.permute.xlu0 %2170 }
 0x3dc   : > { %2876 = vrot.lane.b32.xlu1 %v2865_v41, %s6123_s16  ;;  %3052 = vrot.lane.b32.xlu0 %v3044_v3, %s6124_s29  ;;  %v7301_v41 = vstv %s5511_s0  ;;  %v2128_v3 = vadd.f32 %v2119_v27, %v7226_v51  ;;  %v2089_v27 = vmul.f32 %v6989_v14, %v6755_v44  ;;  %s7643_s0 = sld [smem:[#allocation3 + $0x60]] }
 0x3de   : > { %v1973_v60 = vpop.permute.xlu1 %1972  ;;  %v7293_v37 = vpop.permute.xlu0 %2196 }
 0x3df   : > { %v1981_v56 = vadd.f32 %v1973_v60, %v1877_v2  ;;  %v2079_v2 = vmul.f32 %v6973_v15, %v6755_v44  ;;  %v7330_v15 = vstv %s7290_s10  ;;  %s7757_s10 = sld [smem:[#allocation3 + $0x63]] }
 0x3e0   : > { %2902 = vrot.lane.b32.xlu1 %v2891_v31, %s6123_s16  ;;  %3122 = vrot.lane.b32.xlu0 %v3114_v25, %s6123_s16  ;;  %v2917_v25 = vmul.f32 %v7110_v8, %v7274_v53  ;;  %v3140_v31 = vmul.f32 %v7301_v41, %v7284_v19 }
 0x3e1   : > { %v2073_v21 = vadd.f32 %v2069_v52, %v1981_v56  ;;  %v2320_v56 = vmul.f32 %v6993_v39, %v6958_v42 }
 0x3e2   : > { %v1999_v60 = vpop.permute.xlu1 %1998  ;;  %v2223_v55 = vpop.permute.xlu0 %2222 }
 0x3e3   : > { %v2129_v16 = vadd.f32 %v7042_v36, %v2073_v21  ;;  %v2007_v51 = vadd.f32 %v1999_v60, %v1903_v1  ;;  %v2232_v52 = vadd.f32 %v2223_v55, %v2128_v3  ;;  %v2321_v36 = vmul.f32 %v6993_v39, %v6811_v47  ;;  %v7359_v39 = vld [vmem:[#allocation2 + $0x40] sm:$0xff] }
 0x3e4   : > { %2928 = vrot.lane.b32.xlu1 %v2917_v25, %s6123_s16  ;;  %3148 = vrot.lane.b32.xlu0 %v3140_v31, %s6123_s16  ;;  %v2154_v55 = vadd.f32 %v2145_v26, %v7239_v7  ;;  %v2943_v60 = vmul.f32 %v7124_v9, %v7274_v53  ;;  %v3166_v25 = vmul.f32 %v7305_v11, %v7284_v19 }
 0x3e5   : > { %v2233_v21 = vadd.f32 %v7102_v0, %v2129_v16  ;;  %v2083_v1 = vadd.f32 %v2079_v2, %v2007_v51  ;;  %v7338_v17 = vadd.f32 %v2320_v56, %v2232_v52  ;;  %v2099_v31 = vmul.f32 %v7012_v40, %v6755_v44 }
 0x3e6   : > { %v2025_v35 = vpop.permute.xlu1 %2024  ;;  %v2249_v3 = vpop.permute.xlu0 %2248  ;;  %v2330_v7 = vmul.f32 %v7017_v49, %v6958_v42  ;;  %v1955_v51 = vadd.f32 %v1947_v30, %v6738_v29  ;;  %v2969_v52 = vmul.f32 %v7138_v59, %v7274_v53  ;;  %v7355_v56 = vstv %s7307_s8  ;;  %s5519_s8 = sld [smem:[#allocation3 + $0x6a]] }
 0x3e7   : > { %v2155_v0 = vadd.f32 %v7060_v61, %v2083_v1  ;;  %v2033_v26 = vadd.f32 %v2025_v35, %v1929_v63  ;;  %v2258_v2 = vadd.f32 %v2249_v3, %v2154_v55  ;;  %v2325_v16 = vadd.f32 %v2321_v36, %v2233_v21 }
 0x3e8   : > { %2954 = vrot.lane.b32.xlu1 %v2943_v60, %s6123_s16  ;;  %3174 = vrot.lane.b32.xlu0 %v3166_v25, %s6123_s16  ;;  %v2331_v44 = vmul.f32 %v7017_v49, %v6811_v47  ;;  %v2180_v61 = vadd.f32 %v7278_v58, %v7252_v45  ;;  %v3192_v21 = vmul.f32 %v7311_v28, %v7284_v19  ;;  %v7383_v25 = vstv %s7332_s9  ;;  %s5524_s9 = sld [smem:[#allocation3 + $0x6e]] }
 0x3e9   : > { %v2259_v63 = vadd.f32 %v7116_v12, %v2155_v0  ;;  %v2093_v29 = vadd.f32 %v2089_v27, %v2033_v26  ;;  %v7364_v30 = vadd.f32 %v2330_v7, %v2258_v2  ;;  %v2995_v1 = vmul.f32 %v7152_v5, %v7274_v53 }
 0x3ea   : > { %v2051_v36 = vpop.permute.xlu1 %2050  ;;  %v2275_v55 = vpop.permute.xlu0 %2274  ;;  %v2340_v35 = vmul.f32 %v7037_v57, %v6958_v42  ;;  %v2381_v3 = vadd.f32 %v7158_v6, %v2325_v16  ;;  %v2206_v60 = vadd.f32 %v7293_v37, %v7262_v54  ;;  %v3218_v54 = vmul.f32 %v7319_v43, %v7284_v19 }
 0x3eb   : > { %v2181_v45 = vadd.f32 %v7072_v4, %v2093_v29  ;;  %v2059_v12 = vadd.f32 %v2051_v36, %v1955_v51  ;;  %v2284_v58 = vadd.f32 %v2275_v55, %v2180_v61  ;;  %v2335_v27 = vadd.f32 %v2331_v44, %v2259_v63 }
 0x3ec   : > { %2980 = vrot.lane.b32.xlu1 %v2969_v52, %s6124_s29  ;;  %3200 = vrot.lane.b32.xlu0 %v3192_v21, %s6123_s16  ;;  %v2485_v6 = vadd.f32 %v7206_v23, %v2381_v3  ;;  %v2573_v4 = vmul.f32 %v7355_v56, %v7359_v39  ;;  %v2350_v51 = vmul.f32 %v7055_v62, %v6958_v42 }
 0x3ed   : > { %v2285_v7 = vadd.f32 %v7130_v18, %v2181_v45  ;;  %v2103_v0 = vadd.f32 %v2099_v31, %v2059_v12  ;;  %v7389_v26 = vadd.f32 %v2340_v35, %v2284_v58  ;;  %v2407_v2 = vadd.f32 %v7172_v32, %v2335_v27 }
 0x3ee   : > { %v2369_v16 = vpop.permute.xlu1 %2368  ;;  %v2301_v37 = vpop.permute.xlu0 %2300  ;;  %v7398_v23 = vadd.f32 %v2573_v4, %v2485_v6  ;;  %v2341_v18 = vmul.f32 %v7037_v57, %v6811_v47  ;;  %v2583_v44 = vmul.f32 %v7383_v25, %v7359_v39  ;;  %v3244_v21 = vmul.f32 %v7330_v15, %v7284_v19 }
 0x3ef   : > { %v2207_v31 = vadd.f32 %v7086_v50, %v2103_v0  ;;  %v2310_v52 = vadd.f32 %v2301_v37, %v2206_v60  ;;  %v2511_v32 = vadd.f32 %v7215_v13, %v2407_v2  ;;  %v2351_v50 = vmul.f32 %v7055_v62, %v6811_v47 }
 0x3f0   : > { %9674 = vst [vmem:[#allocation67_spill] sm:$0xff] %v7398_v23  ;;  %3006 = vrot.lane.b32.xlu1 %v2995_v1, %s6124_s29  ;;  %3226 = vrot.lane.b32.xlu0 %v3218_v54, %s6124_s29  ;;  %v2345_v42 = vadd.f32 %v2341_v18, %v2285_v7  ;;  %v3021_v13 = vmul.f32 %v7166_v10, %v7274_v53  ;;  %v7421_v35 = vstv %s7374_s17  ;;  %v7437_v6 = vstv %s7396_s12  ;;  %v7441_v7 = vld [vmem:[#allocation2 + $0x42] sm:$0xff]  ;;  %v7456_v18 = vld [vmem:[#allocation2 + $0x38] sm:$0xff]  ;;  %s5518_s17 = sld [smem:[#allocation3 + $0x72]]  ;;  %s5525_s12 = sld [smem:[#allocation3 + $0x6f]] }
 0x3f1   : > { %v2311_v61 = vadd.f32 %v7144_v33, %v2207_v31  ;;  %v7409_v63 = vadd.f32 %v2350_v51, %v2310_v52  ;;  %v7411_v29 = vadd.f32 %v2583_v44, %v2511_v32  ;;  %v7424_v33 = vstv %s7376_s15  ;;  %9677 = vst [vmem:[#allocation70_spill] sm:$0xff] %v7441_v7  ;;  %v9679_v44 = vld [vmem:[#allocation51_spill] sm:$0xff]  ;;  %s5520_s15 = sld [smem:[#allocation3 + $0x6b]] }
 0x3f2   : > { %v2395_v36 = vpop.permute.xlu1 %2394  ;;  %v2371_v55 = vpop.permute.xlu0 %2370  ;;  %v2433_v1 = vadd.f32 %v7184_v38, %v2345_v42  ;;  %v2593_v45 = vmul.f32 %v7424_v33, %v7359_v39  ;;  %v3047_v38 = vmul.f32 %v7178_v46, %v7274_v53  ;;  %v3270_v60 = vmul.f32 %v7421_v35, %v7284_v19 }
 0x3f3   : > { %9675 = vst [vmem:[#allocation68_spill] sm:$0xff] %v7411_v29  ;;  %v2355_v3 = vadd.f32 %v2351_v50, %v2311_v61  ;;  %v3117_v54 = vmul.f32 %v7286_v24, %v7441_v7  ;;  %v3143_v32 = vmul.f32 %v7301_v41, %v7441_v7  ;;  %v2612_v42 = vmul.f32 %v9679_v44, %v7456_v18  ;;  %v9680_v50 = vld [vmem:[#allocation63_spill] sm:$0xff] }
 0x3f4   : > { %3032 = vrot.lane.b32.xlu1 %v3021_v13, %s6124_s29  ;;  %3252 = vrot.lane.b32.xlu0 %v3244_v21, %s6124_s29  ;;  %v2537_v47 = vadd.f32 %v7228_v48, %v2433_v1  ;;  %v7443_v48 = vstv %s5517_s23  ;;  %v2571_v13 = vmul.f32 %v7355_v56, %v9680_v50  ;;  %v9681_v21 = vld [vmem:[#allocation41_spill] sm:$0xff]  ;;  %s5523_s23 = sld [smem:[#allocation3 + $0x73]] }
 0x3f5   : > { %v2459_v12 = vadd.f32 %v7196_v22, %v2355_v3  ;;  %v2603_v22 = vmul.f32 %v7437_v6, %v7359_v39  ;;  %v3296_v51 = vmul.f32 %v7443_v48, %v7284_v19  ;;  %v2405_v1 = vadd.f32 %v2395_v36, %v9681_v21  ;;  %v7671_v19 = vld [vmem:[#allocation2 + $0x2] sm:$0xff] }
 0x3f6   : > { %v2421_v58 = vpop.permute.xlu1 %2420  ;;  %v2397_v27 = vpop.permute.xlu0 %2396  ;;  %v7439_v4 = vadd.f32 %v2593_v45, %v2537_v47  ;;  %v3169_v45 = vmul.f32 %v7305_v11, %v7441_v7  ;;  %v2572_v36 = vmul.f32 %v7355_v56, %v7456_v18 }
 0x3f7   : > { %v2563_v0 = vadd.f32 %v7241_v34, %v2459_v12  ;;  %v2379_v34 = vadd.f32 %v2369_v16, %v7010_v20  ;;  %v2380_v20 = vadd.f32 %v2371_v55, %v7338_v17  ;;  %v9682_v12 = vld [vmem:[#allocation53_spill] sm:$0xff]  ;;  %v9683_v17 = vld [vmem:[#allocation43_spill] sm:$0xff] }
 0x3f8   : > { %9676 = vst [vmem:[#allocation69_spill] sm:$0xff] %v7439_v4  ;;  %3058 = vrot.lane.b32.xlu1 %v3047_v38, %s6124_s29  ;;  %3278 = vrot.lane.b32.xlu0 %v3270_v60, %s6124_s29  ;;  %v2638_v38 = vmul.f32 %v9682_v12, %v7456_v18  ;;  %v2431_v55 = vadd.f32 %v2421_v58, %v9683_v17  ;;  %v9686_v58 = vld [vmem:[#allocation45_spill] sm:$0xff] }
 0x3f9   : > { %v7450_v53 = vadd.f32 %v2603_v22, %v2563_v0  ;;  %v2581_v22 = vmul.f32 %v7383_v25, %v9680_v50  ;;  %v9705_v4 = vld [vmem:[#allocation21_spill] sm:$0xff] }
 0x3fa   : > { %v2447_v2 = vpop.permute.xlu1 %2446  ;;  %v2423_v37 = vpop.permute.xlu0 %2422 }
 0x3fb   : > { %9678 = vst [vmem:[#allocation71_spill] sm:$0xff] %v7450_v53  ;;  %v9702_v53 = vld [vmem:[#allocation15_spill] sm:$0xff] }
 0x3fc   : > { %3128 = vrot.lane.b32.xlu1 %v3117_v54, %s6123_s16  ;;  %3304 = vrot.lane.b32.xlu0 %v3296_v51, %s6124_s29  ;;  %v2406_v54 = vadd.f32 %v2397_v27, %v7364_v30  ;;  %v2582_v30 = vmul.f32 %v7383_v25, %v7456_v18  ;;  %v2457_v27 = vadd.f32 %v2447_v2, %v9686_v58 }
 0x3fd   : > { %v3273_v58 = vmul.f32 %v7421_v35, %v7441_v7 }
 0x3fe   : > { %v2473_v31 = vpop.permute.xlu1 %2472  ;;  %v2449_v52 = vpop.permute.xlu0 %2448 }
 0x3ff   : > { %v2483_v61 = vadd.f32 %v2473_v31, %v2379_v34  ;;  %v2458_v2 = vadd.f32 %v2449_v52, %v7409_v63 }
 0x400   : > { %3154 = vrot.lane.b32.xlu1 %v3143_v32, %s6123_s16  ;;  %2622 = vrot.lane.b32.xlu0 %v2612_v42, %s6123_s16  ;;  %v3195_v42 = vmul.f32 %v7311_v28, %v7441_v7 }
 0x401   : > { %v7471_v16 = vadd.f32 %v2571_v13, %v2483_v61  ;;  %v9685_v61 = vld [vmem:[#allocation55_spill] sm:$0xff] }
 0x402   : > { %v2499_v3 = vpop.permute.xlu1 %2498  ;;  %v2475_v47 = vpop.permute.xlu0 %2474  ;;  %v2664_v13 = vmul.f32 %v9685_v61, %v7456_v18 }
 0x403   : > { %v2509_v60 = vadd.f32 %v2499_v3, %v2405_v1  ;;  %v2484_v0 = vadd.f32 %v2475_v47, %v2380_v20  ;;  %v2591_v20 = vmul.f32 %v7424_v33, %v9680_v50  ;;  %v2432_v3 = vadd.f32 %v2423_v37, %v7389_v26 }
 0x404   : > { %3180 = vrot.lane.b32.xlu1 %v3169_v45, %s6123_s16  ;;  %2648 = vrot.lane.b32.xlu0 %v2638_v38, %s6123_s16  ;;  %v2592_v26 = vmul.f32 %v7424_v33, %v7456_v18 }
 0x405   : > { %v7485_v51 = vadd.f32 %v2581_v22, %v2509_v60  ;;  %v7487_v34 = vadd.f32 %v2572_v36, %v2484_v0  ;;  %v3221_v0 = vmul.f32 %v7319_v43, %v7441_v7  ;;  %v9688_v22 = vld [vmem:[#allocation57_spill] sm:$0xff] }
 0x406   : > { %v2525_v31 = vpop.permute.xlu1 %2524  ;;  %v2501_v32 = vpop.permute.xlu0 %2500  ;;  %v2690_v36 = vmul.f32 %v9688_v22, %v7456_v18 }
 0x407   : > { %9684 = vst [vmem:[#allocation51_spill] sm:$0xff] %v7487_v34  ;;  %v2535_v21 = vadd.f32 %v2525_v31, %v2431_v55  ;;  %v2510_v1 = vadd.f32 %v2501_v32, %v2406_v54  ;;  %v2601_v54 = vmul.f32 %v7437_v6, %v9680_v50  ;;  %v9690_v50 = vld [vmem:[#allocation59_spill] sm:$0xff]  ;;  %v9716_v34 = vld [vmem:[#allocation24_spill] sm:$0xff] }
 0x408   : > { %3206 = vrot.lane.b32.xlu1 %v3195_v42, %s6123_s16  ;;  %2674 = vrot.lane.b32.xlu0 %v2664_v13, %s6123_s16  ;;  %v3247_v13 = vmul.f32 %v7330_v15, %v7441_v7 }
 0x409   : > { %v7501_v47 = vadd.f32 %v2591_v20, %v2535_v21  ;;  %v7503_v45 = vadd.f32 %v2582_v30, %v2510_v1  ;;  %v2716_v21 = vmul.f32 %v9690_v50, %v7456_v18  ;;  %v2602_v20 = vmul.f32 %v7437_v6, %v7456_v18 }
 0x40a   : > { %v2551_v38 = vpop.permute.xlu1 %2550  ;;  %v2527_v60 = vpop.permute.xlu0 %2526 }
 0x40b   : > { %9687 = vst [vmem:[#allocation63_spill] sm:$0xff] %v7503_v45  ;;  %v2561_v17 = vadd.f32 %v2551_v38, %v2457_v27  ;;  %v2536_v55 = vadd.f32 %v2527_v60, %v2432_v3  ;;  %v9692_v27 = vld [vmem:[#allocation61_spill] sm:$0xff] }
 0x40c   : > { %3232 = vrot.lane.b32.xlu1 %v3221_v0, %s6124_s29  ;;  %2700 = vrot.lane.b32.xlu0 %v2690_v36, %s6123_s16  ;;  %v2742_v3 = vmul.f32 %v9692_v27, %v7456_v18  ;;  %v3299_v0 = vmul.f32 %v7443_v48, %v7441_v7  ;;  %v9693_v36 = vld [vmem:[#allocation62_spill] sm:$0xff] }
 0x40d   : > { %v7516_v37 = vadd.f32 %v2601_v54, %v2561_v17  ;;  %v7518_v31 = vadd.f32 %v2592_v26, %v2536_v55  ;;  %v2768_v17 = vmul.f32 %v9693_v36, %v7456_v18  ;;  %v2613_v26 = vmul.f32 %v9679_v44, %v7359_v39 }
 0x40e   : > { %v7520_v32 = vpop.permute.xlu1 %2872  ;;  %v2553_v42 = vpop.permute.xlu0 %2552 }
 0x40f   : > { %9689 = vst [vmem:[#allocation41_spill] sm:$0xff] %v7518_v31  ;;  %v2562_v1 = vadd.f32 %v2553_v42, %v2458_v2  ;;  %v9694_v2 = vld [vmem:[#allocation64_spill] sm:$0xff] }
 0x410   : > { %3258 = vrot.lane.b32.xlu1 %v3247_v13, %s6124_s29  ;;  %2726 = vrot.lane.b32.xlu0 %v2716_v21, %s6124_s29  ;;  %v2794_v42 = vmul.f32 %v9694_v2, %v7456_v18  ;;  %v7560_v13 = vld [vmem:[#allocation2 + $0x39] sm:$0xff] }
 0x411   : > { %v7530_v63 = vadd.f32 %v2602_v20, %v2562_v1  ;;  %9695 = vst [vmem:[#allocation43_spill] sm:$0xff] %v7560_v13  ;;  %v2639_v20 = vmul.f32 %v9682_v12, %v7359_v39 }
 0x412   : > { %v7532_v52 = vpop.permute.xlu1 %2898  ;;  %v7534_v30 = vpop.permute.xlu0 %2618 }
 0x413   : > { %9691 = vst [vmem:[#allocation53_spill] sm:$0xff] %v7530_v63  ;;  %v9711_v63 = vld [vmem:[#allocation22_spill] sm:$0xff] }
 0x414   : > { %3284 = vrot.lane.b32.xlu1 %v3273_v58, %s6124_s29  ;;  %2752 = vrot.lane.b32.xlu0 %v2742_v3, %s6124_s29  ;;  %v9697_v58 = vld [vmem:[#allocation48_spill] sm:$0xff] }
 0x415   : > { %v2864_v3 = vmul.f32 %v9697_v58, %v7560_v13  ;;  %v2916_v58 = vmul.f32 %v7110_v8, %v7560_v13 }
 0x416   : > { %v7542_v38 = vpop.permute.xlu1 %2924  ;;  %v7544_v60 = vpop.permute.xlu0 %2644 }
 0x418   : > { %3310 = vrot.lane.b32.xlu1 %v3299_v0, %s6124_s29  ;;  %2778 = vrot.lane.b32.xlu0 %v2768_v17, %s6124_s29  ;;  %v2665_v0 = vmul.f32 %v9685_v61, %v7359_v39  ;;  %v9698_v17 = vld [vmem:[#allocation50_spill] sm:$0xff] }
 0x41a   : > { %v7552_v55 = vpop.permute.xlu1 %2950  ;;  %v7554_v54 = vpop.permute.xlu0 %2670 }
 0x41c   : > { %2624 = vrot.lane.b32.xlu1 %v2613_v26, %s6123_s16  ;;  %2804 = vrot.lane.b32.xlu0 %v2794_v42, %s6124_s29  ;;  %v2890_v26 = vmul.f32 %v9698_v17, %v7560_v13  ;;  %v2942_v17 = vmul.f32 %v7124_v9, %v7560_v13 }
 0x41e   : > { %v7564_v21 = vpop.permute.xlu1 %2976  ;;  %v7566_v1 = vpop.permute.xlu0 %2696 }
 0x41f   : > { %9696 = vst [vmem:[#allocation55_spill] sm:$0xff] %v7566_v1  ;;  %v9723_v1 = vld [vmem:[#allocation25_spill] sm:$0xff] }
 0x420   : > { %2650 = vrot.lane.b32.xlu1 %v2639_v20, %s6123_s16  ;;  %2874 = vrot.lane.b32.xlu0 %v2864_v3, %s6123_s16  ;;  %v2691_v20 = vmul.f32 %v9688_v22, %v7359_v39 }
 0x422   : > { %v7574_v18 = vpop.permute.xlu1 %3002  ;;  %v7576_v44 = vpop.permute.xlu0 %2722 }
 0x424   : > { %2676 = vrot.lane.b32.xlu1 %v2665_v0, %s6123_s16  ;;  %2900 = vrot.lane.b32.xlu0 %v2890_v26, %s6123_s16  ;;  %v2717_v0 = vmul.f32 %v9690_v50, %v7359_v39  ;;  %v2743_v26 = vmul.f32 %v9692_v27, %v7359_v39 }
 0x426   : > { %v7584_v12 = vpop.permute.xlu1 %3028  ;;  %v7586_v42 = vpop.permute.xlu0 %2748 }
 0x428   : > { %2702 = vrot.lane.b32.xlu1 %v2691_v20, %s6123_s16  ;;  %2926 = vrot.lane.b32.xlu0 %v2916_v58, %s6123_s16  ;;  %v2968_v20 = vmul.f32 %v7138_v59, %v7560_v13  ;;  %v2769_v58 = vmul.f32 %v9693_v36, %v7359_v39  ;;  %v9703_v59 = vld [vmem:[#allocation16_spill] sm:$0xff] }
 0x42a   : > { %v7594_v61 = vpop.permute.xlu1 %3054  ;;  %v7596_v3 = vpop.permute.xlu0 %2774 }
 0x42b   : > { %9699 = vst [vmem:[#allocation45_spill] sm:$0xff] %v7596_v3 }
 0x42c   : > { %2728 = vrot.lane.b32.xlu1 %v2717_v0, %s6124_s29  ;;  %2952 = vrot.lane.b32.xlu0 %v2942_v17, %s6123_s16  ;;  %v2994_v0 = vmul.f32 %v7152_v5, %v7560_v13  ;;  %v5952_v17 = vld [vmem:[#allocation2] sm:$0xff] }
 0x42d   : > { %v1814_v27 = vmul.f32 %v5952_v17, %v9702_v53  ;;  %v1844_v36 = vmul.f32 %v5952_v17, %v9705_v4  ;;  %v2795_v53 = vmul.f32 %v9694_v2, %v7359_v39  ;;  %v9708_v4 = vld [vmem:[#allocation23_spill] sm:$0xff] }
 0x42e   : > { %v2621_v22 = vpop.permute.xlu1 %2620  ;;  %v7604_v8 = vpop.permute.xlu0 %2800  ;;  %v9709_v39 = vld [vmem:[#allocation19_spill] sm:$0xff] }
 0x42f   : > { %9700 = vst [vmem:[#allocation57_spill] sm:$0xff] %v7604_v8  ;;  %v1848_v31 = vadd.f32 %v1844_v36, %v9711_v63 }
 0x430   : > { %2754 = vrot.lane.b32.xlu1 %v2743_v26, %s6124_s29  ;;  %2978 = vrot.lane.b32.xlu0 %v2968_v20, %s6124_s29  ;;  %v1824_v26 = vmul.f32 %v5952_v17, %v9703_v59  ;;  %v9704_v20 = vld [vmem:[#allocation18_spill] sm:$0xff]  ;;  %v9707_v59 = vld [vmem:[#allocation17_spill] sm:$0xff] }
 0x431   : > { %v1834_v7 = vmul.f32 %v5952_v17, %v9704_v20  ;;  %v1818_v23 = vadd.f32 %v1814_v27, %v9707_v59  ;;  %v9710_v20 = vld [vmem:[#allocation20_spill] sm:$0xff] }
 0x432   : > { %v7612_v50 = vpop.permute.xlu1 %2646  ;;  %v7614_v9 = vpop.permute.xlu0 %2870  ;;  %v1828_v2 = vadd.f32 %v1824_v26, %v9709_v39  ;;  %v7661_v59 = vld [vmem:[#allocation2 + $0x3a] sm:$0xff] }
 0x433   : > { %9701 = vst [vmem:[#allocation59_spill] sm:$0xff] %v7614_v9  ;;  %v1874_v17 = vadd.f32 %v9708_v4, %v1818_v23  ;;  %v9713_v23 = vld [vmem:[#allocation27_spill] sm:$0xff]  ;;  %v5953_v26 = vld [vmem:[#allocation2 + $0x1] sm:$0xff] }
 0x434   : > { %2780 = vrot.lane.b32.xlu1 %v2769_v58, %s6124_s29  ;;  %3004 = vrot.lane.b32.xlu0 %v2994_v0, %s6124_s29  ;;  %v3020_v58 = vmul.f32 %v7166_v10, %v7560_v13  ;;  %v7640_v0 = vld [vmem:[#allocation2 + $0x32] sm:$0xff]  ;;  %v1838_v10 = vadd.f32 %v1834_v7, %v9710_v20  ;;  %v9714_v7 = vld [vmem:[#allocation34_spill] sm:$0xff]  ;;  %v2086_v36 = vmul.f32 %v5953_v26, %v6989_v14 }
 0x435   : > { %v1978_v4 = vadd.f32 %v9713_v23, %v1874_v17  ;;  %v2066_v39 = vmul.f32 %v5953_v26, %v9714_v7  ;;  %v9715_v20 = vld [vmem:[#allocation36_spill] sm:$0xff]  ;;  %v7669_v8 = vmul.f32 %v5953_v26, %v7012_v40  ;;  %v7676_v17 = vstv %s7621_s28  ;;  %s7876_s28 = sld [smem:[#allocation3 + $0x6c]] }
 0x436   : > { %v7630_v29 = vpop.permute.xlu1 %2672  ;;  %v7632_v5 = vpop.permute.xlu0 %2896  ;;  %v2076_v63 = vmul.f32 %v5953_v26, %v9715_v20  ;;  %v7684_v14 = vmul.f32 %v7671_v19, %v7017_v49  ;;  %v7688_v40 = vmul.f32 %v7671_v19, %v7037_v57  ;;  %v9719_v23 = vld [vmem:[#allocation28_spill] sm:$0xff]  ;;  %v7696_v26 = vstv %s7638_s13  ;;  %s7890_s13 = sld [smem:[#allocation3 + $0x6d]] }
 0x437   : > { %9706 = vst [vmem:[#allocation61_spill] sm:$0xff] %v7632_v5  ;;  %9720 = vst [vmem:[#allocation48_spill] sm:$0xff] %v7696_v26  ;;  %v3141_v49 = vmul.f32 %v7301_v41, %v7640_v0  ;;  %v3116_v20 = vmul.f32 %v7286_v24, %v7661_v59  ;;  %v2070_v57 = vadd.f32 %v2066_v39, %v1978_v4  ;;  %v7707_v5 = vstv %s7643_s0  ;;  %v9724_v4 = vld [vmem:[#allocation31_spill] sm:$0xff]  ;;  %s5527_s0 = sld [smem:[#allocation3 + $0x71]] }
 0x438   : > { %2806 = vrot.lane.b32.xlu1 %v2795_v53, %s6124_s29  ;;  %3030 = vrot.lane.b32.xlu0 %v3020_v58, %s6124_s29  ;;  %v3115_v53 = vmul.f32 %v7286_v24, %v7640_v0  ;;  %v3046_v58 = vmul.f32 %v7178_v46, %v7560_v13  ;;  %v9717_v46 = vld [vmem:[#allocation38_spill] sm:$0xff]  ;;  %v7717_v24 = vstv %s7647_s7  ;;  %s5536_s7 = sld [smem:[#allocation3 + $0x75]] }
 0x439   : > { %v2318_v13 = vmul.f32 %v7671_v19, %v9717_v46  ;;  %v9722_v46 = vld [vmem:[#allocation47_spill] sm:$0xff]  ;;  %v2126_v39 = vadd.f32 %v9724_v4, %v2070_v57  ;;  %v3193_v57 = vmul.f32 %v7311_v28, %v7640_v0 }
 0x43a   : > { %v7653_v45 = vpop.permute.xlu1 %2698  ;;  %v7655_v27 = vpop.permute.xlu0 %2922  ;;  %v2843_v9 = vmul.f32 %v7696_v26, %v9722_v46  ;;  %v7744_v26 = vstv %s7680_s11  ;;  %s5537_s11 = sld [smem:[#allocation3 + $0x87]] }
 0x43b   : > { %9712 = vst [vmem:[#allocation62_spill] sm:$0xff] %v7655_v27  ;;  %v1900_v27 = vadd.f32 %v9716_v34, %v1828_v2  ;;  %v2631_v34 = vadd.f32 %v2621_v22, %v7471_v16  ;;  %v7692_v2 = vstv %s7626_s25  ;;  %v2823_v16 = vmul.f32 %v7676_v17, %v9722_v46  ;;  %s5526_s25 = sld [smem:[#allocation3 + $0x70]] }
 0x43c   : > { %3124 = vrot.lane.b32.xlu1 %v3115_v53, %s6123_s16  ;;  %3056 = vrot.lane.b32.xlu0 %v3046_v58, %s6124_s29  ;;  %9718 = vst [vmem:[#allocation64_spill] sm:$0xff] %v7692_v2 }
 0x43d   : > { %v2004_v53 = vadd.f32 %v9719_v23, %v1900_v27  ;;  %v1926_v27 = vadd.f32 %v9723_v1, %v1838_v10  ;;  %v2833_v23 = vmul.f32 %v7692_v2, %v9722_v46  ;;  %v3142_v1 = vmul.f32 %v7301_v41, %v7661_v59  ;;  %v9725_v10 = vld [vmem:[#allocation29_spill] sm:$0xff] }
 0x43e   : > { %v2725_v58 = vpop.permute.xlu1 %2724  ;;  %v7698_v7 = vpop.permute.xlu0 %2948 }
 0x43f   : > { %9721 = vst [vmem:[#allocation50_spill] sm:$0xff] %v7698_v7  ;;  %v2735_v22 = vadd.f32 %v2725_v58, %v2631_v34  ;;  %v3167_v7 = vmul.f32 %v7305_v11, %v7640_v0  ;;  %v2657_v34 = vadd.f32 %v7612_v50, %v7485_v51  ;;  %v9726_v51 = vld [vmem:[#allocation37_spill] sm:$0xff] }
 0x440   : > { %3150 = vrot.lane.b32.xlu1 %v3141_v49, %s6123_s16  ;;  %3126 = vrot.lane.b32.xlu0 %v3116_v20, %s6123_s16  ;;  %v2030_v49 = vadd.f32 %v9725_v10, %v1926_v27  ;;  %v2080_v20 = vadd.f32 %v2076_v63, %v2004_v53  ;;  %v2230_v50 = vadd.f32 %v9726_v51, %v2126_v39  ;;  %v9727_v63 = vld [vmem:[#allocation26_spill] sm:$0xff]  ;;  %v9728_v27 = vld [vmem:[#allocation32_spill] sm:$0xff] }
 0x441   : > { %v2827_v58 = vadd.f32 %v2823_v16, %v2735_v22  ;;  %v3168_v22 = vmul.f32 %v7305_v11, %v7661_v59  ;;  %v1952_v53 = vadd.f32 %v9727_v63, %v1848_v31  ;;  %v2853_v10 = vmul.f32 %v7707_v5, %v9722_v46  ;;  %v9729_v31 = vld [vmem:[#allocation30_spill] sm:$0xff]  ;;  %v9732_v63 = vld [vmem:[#allocation44_spill] sm:$0xff] }
 0x442   : > { %v2751_v3 = vpop.permute.xlu1 %2750  ;;  %v7725_v2 = vpop.permute.xlu0 %2974  ;;  %v2152_v4 = vadd.f32 %v9728_v27, %v2080_v20  ;;  %v3075_v11 = vmul.f32 %v7717_v24, %v7640_v0  ;;  %v3219_v46 = vmul.f32 %v7319_v43, %v7640_v0 }
 0x443   : > { %v2883_v16 = vadd.f32 %v7520_v32, %v2827_v58  ;;  %v2761_v41 = vadd.f32 %v2751_v3, %v2657_v34  ;;  %v2683_v32 = vadd.f32 %v7630_v29, %v7501_v47  ;;  %v2056_v34 = vadd.f32 %v9729_v31, %v1952_v53 }
 0x444   : > { %3176 = vrot.lane.b32.xlu1 %v3167_v7, %s6123_s16  ;;  %3152 = vrot.lane.b32.xlu0 %v3142_v1, %s6123_s16  ;;  %v2090_v58 = vadd.f32 %v2086_v36, %v2030_v49  ;;  %v9730_v7 = vld [vmem:[#allocation39_spill] sm:$0xff]  ;;  %v2322_v29 = vadd.f32 %v2318_v13, %v2230_v50  ;;  %v3194_v36 = vmul.f32 %v7311_v28, %v7661_v59  ;;  %v7779_v28 = vstv %s7731_s26  ;;  %s5538_s26 = sld [smem:[#allocation3 + $0x99]] }
 0x445   : > { %v2837_v3 = vadd.f32 %v2833_v23, %v2761_v41  ;;  %v2987_v39 = vadd.f32 %v7564_v21, %v2883_v16  ;;  %v2256_v20 = vadd.f32 %v9730_v7, %v2152_v4  ;;  %v9731_v16 = vld [vmem:[#allocation33_spill] sm:$0xff]  ;;  %v3085_v49 = vmul.f32 %v7744_v26, %v7640_v0  ;;  %v9733_v4 = vld [vmem:[#allocation40_spill] sm:$0xff] }
 0x446   : > { %v2777_v1 = vpop.permute.xlu1 %2776  ;;  %v7753_v51 = vpop.permute.xlu0 %3000  ;;  %v2178_v41 = vadd.f32 %v9731_v16, %v2090_v58  ;;  %v2378_v13 = vadd.f32 %v9732_v63, %v2322_v29  ;;  %v2100_v27 = vadd.f32 %v7669_v8, %v2056_v34  ;;  %v5955_v8 = vld [vmem:[#allocation2 + $0x28] sm:$0xff]  ;;  %v3220_v16 = vmul.f32 %v7319_v43, %v7661_v59 }
 0x447   : > { %v2909_v47 = vadd.f32 %v7532_v52, %v2837_v3  ;;  %v2787_v21 = vadd.f32 %v2777_v1, %v2683_v32  ;;  %v7760_v23 = vadd.f32 %v3075_v11, %v2987_v39  ;;  %v2709_v52 = vadd.f32 %v7653_v45, %v7516_v37  ;;  %v9734_v39 = vld [vmem:[#allocation54_spill] sm:$0xff]  ;;  %v9736_v37 = vld [vmem:[#allocation35_spill] sm:$0xff] }
 0x448   : > { %3202 = vrot.lane.b32.xlu1 %v3193_v57, %s6123_s16  ;;  %3178 = vrot.lane.b32.xlu0 %v3168_v22, %s6123_s16  ;;  %v2282_v57 = vadd.f32 %v9733_v4, %v2178_v41  ;;  %v2332_v22 = vadd.f32 %v7684_v14, %v2256_v20  ;;  %v2482_v11 = vadd.f32 %v9734_v39, %v2378_v13  ;;  %v9737_v34 = vld [vmem:[#allocation46_spill] sm:$0xff]  ;;  %v7804_v41 = vstv %s7757_s10  ;;  %s5539_s10 = sld [smem:[#allocation3 + $0xab]] }
 0x449   : > { %v2847_v50 = vadd.f32 %v2843_v9, %v2787_v21  ;;  %v3013_v53 = vadd.f32 %v7574_v18, %v2909_v47  ;;  %v2204_v18 = vadd.f32 %v9736_v37, %v2100_v27  ;;  %v2570_v9 = vmul.f32 %v5955_v8, %v7355_v56  ;;  %v9738_v29 = vld [vmem:[#allocation42_spill] sm:$0xff]  ;;  %v9745_v37 = vld [vmem:[#allocation65_spill] sm:$0xff] }
 0x44a   : > { %v2803_v32 = vpop.permute.xlu1 %2802  ;;  %v7776_v3 = vpop.permute.xlu0 %3026  ;;  %v3245_v14 = vmul.f32 %v7330_v15, %v7640_v0  ;;  %v2404_v7 = vadd.f32 %v9737_v34, %v2332_v22  ;;  %v3095_v1 = vmul.f32 %v7779_v28, %v7640_v0  ;;  %v2342_v21 = vadd.f32 %v7688_v40, %v2282_v57  ;;  %v9746_v34 = vld [vmem:[#allocation60_spill] sm:$0xff] }
 0x44b   : > { %v2935_v31 = vadd.f32 %v7542_v38, %v2847_v50  ;;  %v2813_v58 = vadd.f32 %v2803_v32, %v2709_v52  ;;  %v7783_v45 = vadd.f32 %v3085_v49, %v3013_v53  ;;  %v2308_v47 = vadd.f32 %v9738_v29, %v2204_v18  ;;  %v9741_v52 = vld [vmem:[#allocation49_spill] sm:$0xff]  ;;  %v9747_v29 = vld [vmem:[#allocation59_spill] sm:$0xff] }
 0x44c   : > { %3228 = vrot.lane.b32.xlu1 %v3219_v46, %s6124_s29  ;;  %3204 = vrot.lane.b32.xlu0 %v3194_v36, %s6123_s16  ;;  %v9739_v36 = vld [vmem:[#allocation56_spill] sm:$0xff]  ;;  %v2574_v49 = vadd.f32 %v2570_v9, %v2482_v11  ;;  %v2348_v13 = vmul.f32 %v7671_v19, %v7055_v62  ;;  %v2580_v40 = vmul.f32 %v5955_v8, %v7383_v25  ;;  %v9742_v25 = vld [vmem:[#allocation58_spill] sm:$0xff] }
 0x44d   : > { %9735 = vst [vmem:[#allocation15_spill] sm:$0xff] %v7783_v45  ;;  %v2857_v20 = vadd.f32 %v2853_v10, %v2813_v58  ;;  %v3039_v38 = vadd.f32 %v7584_v12, %v2935_v31  ;;  %v2508_v10 = vadd.f32 %v9739_v36, %v2404_v7  ;;  %v2430_v43 = vadd.f32 %v9741_v52, %v2342_v21  ;;  %v9752_v52 = vld [vmem:[#allocation48_spill] sm:$0xff] }
 0x44e   : > { %v7797_v56 = vpop.permute.xlu1 %2876  ;;  %v7799_v46 = vpop.permute.xlu0 %3052  ;;  %v2630_v50 = vadd.f32 %v7534_v30, %v2574_v49  ;;  %v2352_v27 = vadd.f32 %v2348_v13, %v2308_v47  ;;  %v3271_v62 = vmul.f32 %v7421_v35, %v7640_v0  ;;  %v3246_v19 = vmul.f32 %v7330_v15, %v7661_v59 }
 0x44f   : > { %v2961_v12 = vadd.f32 %v7552_v55, %v2857_v20  ;;  %v7808_v63 = vadd.f32 %v3095_v1, %v3039_v38  ;;  %v3105_v55 = vmul.f32 %v7804_v41, %v7640_v0  ;;  %v2534_v22 = vadd.f32 %v9742_v25, %v2430_v43 }
 0x450   : > { %3254 = vrot.lane.b32.xlu1 %v3245_v14, %s6124_s29  ;;  %3230 = vrot.lane.b32.xlu0 %v3220_v16, %s6124_s29  ;;  %v2584_v32 = vadd.f32 %v2580_v40, %v2508_v10  ;;  %v2734_v30 = vadd.f32 %v7576_v44, %v2630_v50  ;;  %v2590_v58 = vmul.f32 %v5955_v8, %v7424_v33  ;;  %v9749_v10 = vld [vmem:[#allocation45_spill] sm:$0xff]  ;;  %v9753_v50 = vld [vmem:[#allocation66_spill] sm:$0xff] }
 0x451   : > { %9740 = vst [vmem:[#allocation16_spill] sm:$0xff] %v7808_v63  ;;  %v3065_v53 = vadd.f32 %v7594_v61, %v2961_v12  ;;  %v9744_v61 = vld [vmem:[#allocation52_spill] sm:$0xff]  ;;  %v2822_v15 = vmul.f32 %v7676_v17, %v9745_v37  ;;  %v3297_v44 = vmul.f32 %v7443_v48, %v7640_v0  ;;  %v3272_v14 = vmul.f32 %v7421_v35, %v7661_v59 }
 0x452   : > { %v7820_v4 = vpop.permute.xlu1 %2902  ;;  %v3123_v57 = vpop.permute.xlu0 %3122  ;;  %v2456_v11 = vadd.f32 %v9744_v61, %v2352_v27  ;;  %v2656_v31 = vadd.f32 %v7544_v60, %v2584_v32  ;;  %v2594_v20 = vadd.f32 %v2590_v58, %v2534_v22  ;;  %v2600_v1 = vmul.f32 %v5955_v8, %v7437_v6  ;;  %v9748_v0 = vld [vmem:[#allocation64_spill] sm:$0xff]  ;;  %v9750_v6 = vld [vmem:[#allocation55_spill] sm:$0xff]  ;;  %v9751_v8 = vld [vmem:[#allocation61_spill] sm:$0xff] }
 0x453   : > { %v7828_v39 = vadd.f32 %v3105_v55, %v3065_v53  ;;  %v2826_v60 = vadd.f32 %v2822_v15, %v2734_v30  ;;  %v2832_v21 = vmul.f32 %v9748_v0, %v9745_v37  ;;  %v2842_v43 = vmul.f32 %v9752_v52, %v9745_v37  ;;  %v9754_v27 = vld [vmem:[#allocation57_spill] sm:$0xff]  ;;  %v9755_v22 = vld [vmem:[#allocation62_spill] sm:$0xff] }
 0x454   : > { %3280 = vrot.lane.b32.xlu1 %v3271_v62, %s6124_s29  ;;  %3256 = vrot.lane.b32.xlu0 %v3246_v19, %s6124_s29  ;;  %v2560_v7 = vadd.f32 %v9746_v34, %v2456_v11  ;;  %v2760_v38 = vadd.f32 %v7586_v42, %v2656_v31  ;;  %v2682_v33 = vadd.f32 %v7554_v54, %v2594_v20  ;;  %v5956_v30 = vld [vmem:[#allocation2 + $0x29] sm:$0xff] }
 0x455   : > { %9743 = vst [vmem:[#allocation18_spill] sm:$0xff] %v7828_v39  ;;  %v2882_v47 = vadd.f32 %v9747_v29, %v2826_v60  ;;  %v3298_v42 = vmul.f32 %v7443_v48, %v7661_v59  ;;  %v3074_v53 = vmul.f32 %v7717_v24, %v9753_v50  ;;  %v2852_v61 = vmul.f32 %v5956_v30, %v7707_v5  ;;  %v9756_v34 = vld [vmem:[#allocation50_spill] sm:$0xff] }
 0x456   : > { %v7837_v18 = vpop.permute.xlu1 %2928  ;;  %v3149_v9 = vpop.permute.xlu0 %3148  ;;  %v2604_v36 = vadd.f32 %v2600_v1, %v2560_v7  ;;  %v2786_v49 = vadd.f32 %v9749_v10, %v2682_v33  ;;  %v2836_v12 = vadd.f32 %v2832_v21, %v2760_v38  ;;  %v3084_v31 = vmul.f32 %v7744_v26, %v9753_v50 }
 0x457   : > { %v2986_v13 = vadd.f32 %v7725_v2, %v2882_v47  ;;  %v3094_v20 = vmul.f32 %v7779_v28, %v9753_v50  ;;  %v3104_v47 = vmul.f32 %v7804_v41, %v9753_v50  ;;  %v7886_v21 = vstv %s5519_s8  ;;  %s5541_s8 = sld [smem:[#allocation3 + $0x88]] }
 0x458   : > { %3306 = vrot.lane.b32.xlu1 %v3297_v44, %s6124_s29  ;;  %3282 = vrot.lane.b32.xlu0 %v3272_v14, %s6124_s29  ;;  %v2708_v54 = vadd.f32 %v9750_v6, %v2604_v36  ;;  %v2908_v40 = vadd.f32 %v9751_v8, %v2836_v12  ;;  %v2846_v19 = vadd.f32 %v2842_v43, %v2786_v49  ;;  %v7892_v49 = vstv %s5518_s17  ;;  %s5543_s17 = sld [smem:[#allocation3 + $0xac]] }
 0x459   : > { %v3078_v25 = vadd.f32 %v3074_v53, %v2986_v13  ;;  %v7900_v43 = vstv %s5523_s23  ;;  %v7905_v53 = vstv %s7876_s28  ;;  %s5550_s23 = sld [smem:[#allocation3 + $0x9c]]  ;;  %s5551_s28 = sld [smem:[#allocation3 + $0xae]] }
 0x45a   : > { %v7852_v35 = vpop.permute.xlu1 %2954  ;;  %v3175_v16 = vpop.permute.xlu0 %3174  ;;  %v2812_v62 = vadd.f32 %v9754_v27, %v2708_v54  ;;  %v3012_v2 = vadd.f32 %v7753_v51, %v2908_v40  ;;  %v2934_v32 = vadd.f32 %v9755_v22, %v2846_v19  ;;  %v7898_v54 = vstv %s5525_s12  ;;  %s5549_s12 = sld [smem:[#allocation3 + $0x8a]] }
 0x45b   : > { %v3134_v11 = vadd.f32 %v3123_v57, %v3078_v25 }
 0x45c   : > { %3308 = vrot.lane.b32.xlu0 %v3298_v42, %s6124_s29  ;;  %v2856_v15 = vadd.f32 %v2852_v61, %v2812_v62  ;;  %v3038_v51 = vadd.f32 %v7776_v3, %v2934_v32  ;;  %v3088_v44 = vadd.f32 %v3084_v31, %v3012_v2  ;;  %v7888_v42 = vstv %s5524_s9  ;;  %s5542_s9 = sld [smem:[#allocation3 + $0x9a]] }
 0x45d   : > { %v7907_v62 = vstv %s5526_s25  ;;  %s5552_s25 = sld [smem:[#allocation3 + $0x79]] }
 0x45e   : > { %v7865_v55 = vpop.permute.xlu1 %2980  ;;  %v3201_v48 = vpop.permute.xlu0 %3200  ;;  %v2960_v7 = vadd.f32 %v9756_v34, %v2856_v15  ;;  %v3160_v57 = vadd.f32 %v3149_v9, %v3088_v44  ;;  %v3098_v1 = vadd.f32 %v3094_v20, %v3038_v51  ;;  %v7918_v15 = vstv %s7890_s13  ;;  %s5553_s13 = sld [smem:[#allocation3 + $0x8b]] }
 0x45f   : > { %9757 = vst [vmem:[#allocation21_spill] sm:$0xff] %v7918_v15  ;;  %v7920_v51 = vstv %s5527_s0  ;;  %s5554_s0 = sld [smem:[#allocation3 + $0x9d]] }
 0x460   : > { %v3064_v3 = vadd.f32 %v7799_v46, %v2960_v7  ;;  %v3186_v9 = vadd.f32 %v3175_v16, %v3098_v1  ;;  %v7894_v46 = vstv %s5520_s15  ;;  %9758 = vst [vmem:[#allocation17_spill] sm:$0xff] %v7920_v51  ;;  %s5548_s15 = sld [smem:[#allocation3 + $0x78]] }
 0x462   : > { %v7873_v58 = vpop.permute.xlu1 %3006  ;;  %v3227_v37 = vpop.permute.xlu0 %3226  ;;  %v3108_v6 = vadd.f32 %v3104_v47, %v3064_v3 }
 0x463   : > { %v3238_v14 = vadd.f32 %v3227_v37, %v3134_v11 }
 0x464   : > { %v3212_v27 = vadd.f32 %v3201_v48, %v3108_v6 }
 0x465   : > { %v3324_v38 = vmul.f32 0.1, %v3238_v14  ;;  %vm3320_vm8 = vcmp.gt.f32.partialorder %v3238_v14, 0.0 }
 0x466   : > { %v7881_v60 = vpop.permute.xlu1 %3032  ;;  %v3253_v33 = vpop.permute.xlu0 %3252 }
 0x467   : > { %v3264_v29 = vadd.f32 %v3253_v33, %v3160_v57  ;;  %v3328_v36 = vsel %vm3320_vm8, %v3238_v14, %v3324_v38 }
 0x468   : > { %v3373_v16 = vmul.f32 %v7886_v21, %v3328_v36  ;;  %v3428_v50 = vmul.f32 %v7888_v42, %v3328_v36 }
 0x469   : > { %vm3332_vm9 = vcmp.gt.f32.partialorder %v3264_v29, 0.0  ;;  %v3336_v10 = vmul.f32 0.1, %v3264_v29 }
 0x46a   : > { %v7896_v12 = vpop.permute.xlu1 %3058  ;;  %v3279_v13 = vpop.permute.xlu0 %3278  ;;  %v3377_v11 = vadd.f32 %v3373_v16, %v7892_v49  ;;  %v3432_v31 = vadd.f32 %v3428_v50, %v7900_v43 }
 0x46b   : > { %v3340_v8 = vsel %vm3332_vm9, %v3264_v29, %v3336_v10  ;;  %v3290_v40 = vadd.f32 %v3279_v13, %v3186_v9 }
 0x46c   : > { %v3383_v2 = vmul.f32 %v7894_v46, %v3340_v8  ;;  %v3438_v25 = vmul.f32 %v7898_v54, %v3340_v8 }
 0x46d   : > { %vm3344_vm10 = vcmp.gt.f32.partialorder %v3290_v40, 0.0  ;;  %v3348_v19 = vmul.f32 0.1, %v3290_v40 }
 0x46e   : > { %v7911_v22 = vpop.permute.xlu1 %3128  ;;  %v3305_v32 = vpop.permute.xlu0 %3304  ;;  %v3387_v14 = vadd.f32 %v3383_v2, %v3377_v11  ;;  %v3442_v34 = vadd.f32 %v3438_v25, %v3432_v31  ;;  %v9761_v31 = vld [vmem:[#allocation63_spill] sm:$0xff] }
 0x46f   : > { %v3352_v30 = vsel %vm3344_vm10, %v3290_v40, %v3348_v19  ;;  %v3316_v61 = vadd.f32 %v3305_v32, %v3212_v27  ;;  %v9759_v19 = vld [vmem:[#allocation51_spill] sm:$0xff] }
 0x470   : > { %v3393_v37 = vmul.f32 %v7905_v53, %v3352_v30  ;;  %v3448_v48 = vmul.f32 %v7907_v62, %v3352_v30 }
 0x471   : > { %vm3356_vm11 = vcmp.gt.f32.partialorder %v3316_v61, 0.0  ;;  %v3360_v44 = vmul.f32 0.1, %v3316_v61 }
 0x472   : > { %v7922_v7 = vpop.permute.xlu1 %3154  ;;  %v2623_v57 = vpop.permute.xlu0 %2622  ;;  %v3397_v38 = vadd.f32 %v3393_v37, %v3387_v14  ;;  %v3452_v33 = vadd.f32 %v3448_v48, %v3442_v34 }
 0x473   : > { %v3364_v20 = vsel %vm3356_vm11, %v3316_v61, %v3360_v44  ;;  %v2632_v2 = vadd.f32 %v2623_v57, %v9759_v19  ;;  %v9760_v61 = vld [vmem:[#allocation43_spill] sm:$0xff] }
 0x474   : > { %v3403_v3 = vmul.f32 %v7918_v15, %v3364_v20  ;;  %v3458_v1 = vmul.f32 %v7920_v51, %v3364_v20  ;;  %v2824_v11 = vmul.f32 %v7676_v17, %v9760_v61  ;;  %v2834_v20 = vmul.f32 %v9748_v0, %v9760_v61  ;;  %v9767_v15 = vld [vmem:[#allocation70_spill] sm:$0xff] }
 0x476   : > { %v7926_v29 = vpop.permute.xlu1 %3180  ;;  %v2649_v47 = vpop.permute.xlu0 %2648  ;;  %v3407_v9 = vadd.f32 %v3403_v3, %v3397_v38  ;;  %v3462_v36 = vadd.f32 %v3458_v1, %v3452_v33  ;;  %v9762_v38 = vld [vmem:[#allocation41_spill] sm:$0xff] }
 0x477   : > { %v2658_v37 = vadd.f32 %v2649_v47, %v9761_v31 }
 0x478   : > { %vm3411_vm12 = vcmp.gt.f32.partialorder %v3407_v9, 0.0  ;;  %v3415_v10 = vmul.f32 0.1, %v3407_v9  ;;  %v3470_v40 = vmul.f32 0.1, %v3462_v36  ;;  %vm3466_vm13 = vcmp.gt.f32.partialorder %v3462_v36, 0.0 }
 0x47a   : > { %v7928_v13 = vpop.permute.xlu1 %3206  ;;  %v2675_v6 = vpop.permute.xlu0 %2674  ;;  %v3419_v8 = vsel %vm3411_vm12, %v3407_v9, %v3415_v10  ;;  %v3474_v27 = vsel %vm3466_vm13, %v3462_v36, %v3470_v40  ;;  %v2844_v36 = vmul.f32 %v9752_v52, %v9760_v61  ;;  %v9763_v10 = vld [vmem:[#allocation53_spill] sm:$0xff] }
 0x47b   : > { %3482 = vrot.lane.b32.xlu0 %v3419_v8, %s6122_s14  ;;  %v2684_v33 = vadd.f32 %v2675_v6, %v9762_v38 }
 0x47e   : > { %v7931_v16 = vpop.permute.xlu1 %3232  ;;  %v2701_v50 = vpop.permute.xlu0 %2700 }
 0x47f   : > { %3502 = vrot.lane.b32.xlu0 %v3474_v27, %s6122_s14  ;;  %v2710_v47 = vadd.f32 %v2701_v50, %v9763_v10 }
 0x482   : > { %v7935_v25 = vpop.permute.xlu1 %3258  ;;  %v2727_v32 = vpop.permute.xlu0 %2726 }
 0x483   : > { %v2736_v30 = vadd.f32 %v2727_v32, %v2632_v2  ;;  %v2854_v2 = vmul.f32 %v7707_v5, %v9760_v61 }
 0x485   : > { %v2828_v48 = vadd.f32 %v2824_v11, %v2736_v30 }
 0x486   : > { %v7940_v44 = vpop.permute.xlu1 %3284  ;;  %v2753_v14 = vpop.permute.xlu0 %2752 }
 0x487   : > { %v2762_v34 = vadd.f32 %v2753_v14, %v2658_v37 }
 0x489   : > { %v2838_v57 = vadd.f32 %v2834_v20, %v2762_v34  ;;  %v9764_v34 = vld [vmem:[#allocation67_spill] sm:$0xff] }
 0x48a   : > { %v7945_v3 = vpop.permute.xlu1 %3310  ;;  %v2779_v1 = vpop.permute.xlu0 %2778 }
 0x48b   : > { %v2788_v9 = vadd.f32 %v2779_v1, %v2684_v33  ;;  %v5957_v1 = vld [vmem:[#allocation2 + $0x41] sm:$0xff] }
 0x48c   : > { %v2825_v50 = vmul.f32 %v5957_v1, %v7676_v17  ;;  %v2835_v61 = vmul.f32 %v5957_v1, %v9748_v0  ;;  %v3077_v17 = vmul.f32 %v7717_v24, %v9767_v15  ;;  %v2845_v0 = vmul.f32 %v5957_v1, %v9752_v52 }
 0x48d   : > { %v2848_v8 = vadd.f32 %v2844_v36, %v2788_v9  ;;  %v9765_v36 = vld [vmem:[#allocation68_spill] sm:$0xff] }
 0x48e   : > { %v2625_v40 = vpop.permute.xlu1 %2624  ;;  %v2805_v27 = vpop.permute.xlu0 %2804 }
 0x48f   : > { %v2814_v19 = vadd.f32 %v2805_v27, %v2710_v47  ;;  %v2633_v20 = vadd.f32 %v2625_v40, %v9764_v34  ;;  %v3076_v40 = vmul.f32 %v7717_v24, %v7661_v59  ;;  %v9766_v34 = vld [vmem:[#allocation69_spill] sm:$0xff] }
 0x491   : > { %v2858_v32 = vadd.f32 %v2854_v2, %v2814_v19 }
 0x492   : > { %v2651_v30 = vpop.permute.xlu1 %2650  ;;  %v2875_v6 = vpop.permute.xlu0 %2874 }
 0x493   : > { %v2659_v10 = vadd.f32 %v2651_v30, %v9765_v36  ;;  %v2884_v47 = vadd.f32 %v2875_v6, %v2828_v48 }
 0x496   : > { %v2677_v11 = vpop.permute.xlu1 %2676  ;;  %v2901_v31 = vpop.permute.xlu0 %2900 }
 0x497   : > { %v2685_v51 = vadd.f32 %v2677_v11, %v9766_v34 }
 0x49a   : > { %v2703_v37 = vpop.permute.xlu1 %2702  ;;  %v2927_v14 = vpop.permute.xlu0 %2926 }
 0x49e   : > { %v2729_v38 = vpop.permute.xlu1 %2728  ;;  %v2953_v33 = vpop.permute.xlu0 %2952 }
 0x49f   : > { %v2737_v9 = vadd.f32 %v2729_v38, %v2633_v20  ;;  %v2910_v20 = vadd.f32 %v2901_v31, %v2838_v57  ;;  %v2936_v57 = vadd.f32 %v2927_v14, %v2848_v8  ;;  %v3097_v31 = vmul.f32 %v7779_v28, %v9767_v15 }
 0x4a1   : > { %v2829_v27 = vadd.f32 %v2825_v50, %v2737_v9  ;;  %v3086_v50 = vmul.f32 %v7744_v26, %v7661_v59 }
 0x4a2   : > { %v2755_v19 = vpop.permute.xlu1 %2754  ;;  %v2979_v2 = vpop.permute.xlu0 %2978 }
 0x4a3   : > { %v2885_v39 = vadd.f32 %v7797_v56, %v2829_v27  ;;  %v2763_v63 = vadd.f32 %v2755_v19, %v2659_v10  ;;  %v2988_v45 = vadd.f32 %v2979_v2, %v2884_v47  ;;  %v9768_v47 = vld [vmem:[#allocation71_spill] sm:$0xff] }
 0x4a4   : > { %v2711_v24 = vadd.f32 %v2703_v37, %v9768_v47 }
 0x4a5   : > { %v2989_v48 = vadd.f32 %v7865_v55, %v2885_v39  ;;  %v2839_v30 = vadd.f32 %v2835_v61, %v2763_v63  ;;  %v7963_v6 = vadd.f32 %v3076_v40, %v2988_v45  ;;  %v3087_v39 = vmul.f32 %v7744_v26, %v9767_v15 }
 0x4a6   : > { %v2781_v38 = vpop.permute.xlu1 %2780  ;;  %v3005_v56 = vpop.permute.xlu0 %3004  ;;  %v2962_v26 = vadd.f32 %v2953_v33, %v2858_v32 }
 0x4a7   : > { %v3081_v9 = vadd.f32 %v3077_v17, %v2989_v48  ;;  %v2911_v36 = vadd.f32 %v7820_v4, %v2839_v30  ;;  %v2789_v11 = vadd.f32 %v2781_v38, %v2685_v51  ;;  %v3014_v10 = vadd.f32 %v3005_v56, %v2910_v20 }
 0x4a9   : > { %v3137_v45 = vadd.f32 %v7911_v22, %v3081_v9  ;;  %v3015_v63 = vadd.f32 %v7873_v58, %v2911_v36  ;;  %v2849_v52 = vadd.f32 %v2845_v0, %v2789_v11  ;;  %v7974_v55 = vadd.f32 %v3086_v50, %v3014_v10 }
 0x4aa   : > { %v2807_v27 = vpop.permute.xlu1 %2806  ;;  %v3031_v4 = vpop.permute.xlu0 %3030  ;;  %v2855_v22 = vmul.f32 %v5957_v1, %v7707_v5  ;;  %v3096_v58 = vmul.f32 %v7779_v28, %v7661_v59  ;;  %v3106_v5 = vmul.f32 %v7804_v41, %v7661_v59 }
 0x4ab   : > { %v3241_v51 = vadd.f32 %v7931_v16, %v3137_v45  ;;  %v3091_v61 = vadd.f32 %v3087_v39, %v3015_v63  ;;  %v2937_v37 = vadd.f32 %v7837_v18, %v2849_v52  ;;  %v2815_v19 = vadd.f32 %v2807_v27, %v2711_v24 }
 0x4ac   : > { %v3040_v2 = vadd.f32 %v3031_v4, %v2936_v57 }
 0x4ad   : > { %vm3323_vm14 = vcmp.gt.f32.partialorder %v3241_v51, 0.0  ;;  %v3327_v8 = vmul.f32 0.1, %v3241_v51  ;;  %v3163_v14 = vadd.f32 %v7922_v7, %v3091_v61  ;;  %v3041_v40 = vadd.f32 %v7881_v60, %v2937_v37  ;;  %v9769_v37 = vld [vmem:[#allocation21_spill] sm:$0xff] }
 0x4ae   : > { %v2859_v34 = vadd.f32 %v2855_v22, %v2815_v19  ;;  %v3125_v17 = vpop.permute.xlu1 %3124  ;;  %v3057_v16 = vpop.permute.xlu0 %3056  ;;  %v7985_v20 = vadd.f32 %v3096_v58, %v3040_v2  ;;  %v3107_v60 = vmul.f32 %v7804_v41, %v9767_v15 }
 0x4af   : > { %v3267_v18 = vadd.f32 %v7935_v25, %v3163_v14  ;;  %v3101_v32 = vadd.f32 %v3097_v31, %v3041_v40  ;;  %v3066_v33 = vadd.f32 %v3057_v16, %v2962_v26  ;;  %v3331_v1 = vsel %vm3323_vm14, %v3241_v51, %v3327_v8  ;;  %v9770_v26 = vld [vmem:[#allocation17_spill] sm:$0xff]  ;;  %v9771_v40 = vld [vmem:[#allocation15_spill] sm:$0xff] }
 0x4b0   : > { %v2963_v28 = vadd.f32 %v7852_v35, %v2859_v34  ;;  %v3376_v56 = vmul.f32 %v7886_v21, %v3331_v1  ;;  %v3431_v50 = vmul.f32 %v7888_v42, %v3331_v1 }
 0x4b1   : > { %v3339_v48 = vmul.f32 0.1, %v3267_v18  ;;  %v3189_v7 = vadd.f32 %v7926_v29, %v3101_v32  ;;  %v3110_v30 = vadd.f32 %v3106_v5, %v3066_v33  ;;  %vm3335_vm15 = vcmp.gt.f32.partialorder %v3267_v18, 0.0 }
 0x4b2   : > { %v3067_v0 = vadd.f32 %v7896_v12, %v2963_v28  ;;  %v3151_v38 = vpop.permute.xlu1 %3150  ;;  %v3127_v25 = vpop.permute.xlu0 %3126  ;;  %v3380_v36 = vadd.f32 %v3376_v56, %v7892_v49  ;;  %v3435_v41 = vadd.f32 %v3431_v50, %v7900_v43 }
 0x4b3   : > { %v3293_v59 = vadd.f32 %v7940_v44, %v3189_v7  ;;  %v3343_v35 = vsel %vm3335_vm15, %v3267_v18, %v3339_v48  ;;  %v3161_v34 = vadd.f32 %v3151_v38, %v9771_v40  ;;  %v3136_v16 = vadd.f32 %v3127_v25, %v7963_v6  ;;  %v9773_v7 = vld [vmem:[#allocation18_spill] sm:$0xff] }
 0x4b4   : > { %v3111_v9 = vadd.f32 %v3107_v60, %v3067_v0  ;;  %v3386_v29 = vmul.f32 %v7894_v46, %v3343_v35  ;;  %v3441_v12 = vmul.f32 %v7898_v54, %v3343_v35 }
 0x4b5   : > { %vm3347_vm0 = vcmp.gt.f32.partialorder %v3293_v59, 0.0  ;;  %v3351_v11 = vmul.f32 0.1, %v3293_v59 }
 0x4b6   : > { %v3215_v15 = vadd.f32 %v7928_v13, %v3111_v9  ;;  %v3177_v10 = vpop.permute.xlu1 %3176  ;;  %v3153_v47 = vpop.permute.xlu0 %3152  ;;  %v3390_v24 = vadd.f32 %v3386_v29, %v3380_v36  ;;  %v3445_v45 = vadd.f32 %v3441_v12, %v3435_v41  ;;  %v3135_v13 = vadd.f32 %v3125_v17, %v7760_v23  ;;  %v9772_v23 = vld [vmem:[#allocation16_spill] sm:$0xff] }
 0x4b7   : > { %v3355_v39 = vsel %vm3347_vm0, %v3293_v59, %v3351_v11  ;;  %v3187_v17 = vadd.f32 %v3177_v10, %v9772_v23  ;;  %v3162_v48 = vadd.f32 %v3153_v47, %v7974_v55 }
 0x4b8   : > { %v3319_v44 = vadd.f32 %v7945_v3, %v3215_v15  ;;  %v3396_v63 = vmul.f32 %v7905_v53, %v3355_v39  ;;  %v3451_v52 = vmul.f32 %v7907_v62, %v3355_v39 }
 0x4ba   : > { %v3203_v57 = vpop.permute.xlu1 %3202  ;;  %v3179_v31 = vpop.permute.xlu0 %3178  ;;  %vm3359_vm1 = vcmp.gt.f32.partialorder %v3319_v44, 0.0  ;;  %v3363_v27 = vmul.f32 0.1, %v3319_v44  ;;  %v3400_v4 = vadd.f32 %v3396_v63, %v3390_v24  ;;  %v3455_v51 = vadd.f32 %v3451_v52, %v3445_v45 }
 0x4bb   : > { %v3213_v60 = vadd.f32 %v3203_v57, %v9773_v7  ;;  %v3188_v25 = vadd.f32 %v3179_v31, %v7985_v20 }
 0x4bc   : > { %v3367_v61 = vsel %vm3359_vm1, %v3319_v44, %v3363_v27 }
 0x4bd   : > { %v3406_v19 = vmul.f32 %v9769_v37, %v3367_v61  ;;  %v3461_v22 = vmul.f32 %v9770_v26, %v3367_v61 }
 0x4be   : > { %v3229_v2 = vpop.permute.xlu1 %3228  ;;  %v3205_v58 = vpop.permute.xlu0 %3204 }
 0x4bf   : > { %v3239_v3 = vadd.f32 %v3229_v2, %v3135_v13  ;;  %v8009_v8 = vadd.f32 %v3406_v19, %v3400_v4  ;;  %v8011_v14 = vadd.f32 %v3461_v22, %v3455_v51  ;;  %v3214_v35 = vadd.f32 %v3205_v58, %v3110_v30 }
 0x4c1   : > { %vm3321_vm2 = vcmp.gt.f32.partialorder %v3239_v3, 0.0  ;;  %v3325_v18 = vmul.f32 0.1, %v3239_v3  ;;  %vm3414_vm14 = vcmp.gt.f32.partialorder %v8009_v8, 0.0  ;;  %vm3469_vm0 = vcmp.gt.f32.partialorder %v8011_v14, 0.0 }
 0x4c2   : > { %v3255_v32 = vpop.permute.xlu1 %3254  ;;  %v3231_v33 = vpop.permute.xlu0 %3230 }
 0x4c3   : > { %v3329_v5 = vsel %vm3321_vm2, %v3239_v3, %v3325_v18  ;;  %v3265_v28 = vadd.f32 %v3255_v32, %v3161_v34  ;;  %v3240_v1 = vadd.f32 %v3231_v33, %v3136_v16 }
 0x4c4   : > { %v3374_v0 = vmul.f32 %v7886_v21, %v3329_v5  ;;  %v3429_v56 = vmul.f32 %v7888_v42, %v3329_v5 }
 0x4c5   : > { %vm3333_vm3 = vcmp.gt.f32.partialorder %v3265_v28, 0.0  ;;  %v3337_v38 = vmul.f32 0.1, %v3265_v28  ;;  %vm3322_vm4 = vcmp.gt.f32.partialorder %v3240_v1, 0.0  ;;  %v3326_v6 = vmul.f32 0.1, %v3240_v1 }
 0x4c6   : > { %v3378_v50 = vadd.f32 %v3374_v0, %v7892_v49  ;;  %v3433_v59 = vadd.f32 %v3429_v56, %v7900_v43  ;;  %v3281_v9 = vpop.permute.xlu1 %3280  ;;  %v3257_v36 = vpop.permute.xlu0 %3256 }
 0x4c7   : > { %v3341_v55 = vsel %vm3333_vm3, %v3265_v28, %v3337_v38  ;;  %v3330_v29 = vsel %vm3322_vm4, %v3240_v1, %v3326_v6  ;;  %v3291_v11 = vadd.f32 %v3281_v9, %v3187_v17  ;;  %v3266_v41 = vadd.f32 %v3257_v36, %v3162_v48 }
 0x4c8   : > { %v3384_v12 = vmul.f32 %v7894_v46, %v3341_v55  ;;  %v3439_v15 = vmul.f32 %v7898_v54, %v3341_v55  ;;  %v3375_v10 = vmul.f32 %v7886_v21, %v3330_v29  ;;  %v3430_v47 = vmul.f32 %v7888_v42, %v3330_v29 }
 0x4c9   : > { %vm3345_vm5 = vcmp.gt.f32.partialorder %v3291_v11, 0.0  ;;  %v3349_v20 = vmul.f32 0.1, %v3291_v11  ;;  %vm3334_vm6 = vcmp.gt.f32.partialorder %v3266_v41, 0.0  ;;  %v3338_v24 = vmul.f32 0.1, %v3266_v41 }
 0x4ca   : > { %v3388_v39 = vadd.f32 %v3384_v12, %v3378_v50  ;;  %v3443_v30 = vadd.f32 %v3439_v15, %v3433_v59  ;;  %v3379_v45 = vadd.f32 %v3375_v10, %v7892_v49  ;;  %v3434_v44 = vadd.f32 %v3430_v47, %v7900_v43  ;;  %v3307_v63 = vpop.permute.xlu1 %3306  ;;  %v3283_v52 = vpop.permute.xlu0 %3282 }
 0x4cb   : > { %v3353_v57 = vsel %vm3345_vm5, %v3291_v11, %v3349_v20  ;;  %v3342_v31 = vsel %vm3334_vm6, %v3266_v41, %v3338_v24  ;;  %v3317_v27 = vadd.f32 %v3307_v63, %v3213_v60  ;;  %v3292_v4 = vadd.f32 %v3283_v52, %v3188_v25 }
 0x4cc   : > { %v3394_v21 = vmul.f32 %v7905_v53, %v3353_v57  ;;  %v3449_v42 = vmul.f32 %v7907_v62, %v3353_v57  ;;  %v3385_v51 = vmul.f32 %v7894_v46, %v3342_v31  ;;  %v3440_v61 = vmul.f32 %v7898_v54, %v3342_v31 }
 0x4cd   : > { %vm3357_vm8 = vcmp.gt.f32.partialorder %v3317_v27, 0.0  ;;  %v3361_v13 = vmul.f32 0.1, %v3317_v27  ;;  %vm3346_vm9 = vcmp.gt.f32.partialorder %v3292_v4, 0.0  ;;  %v3350_v49 = vmul.f32 0.1, %v3292_v4 }
 0x4ce   : > { %v3398_v19 = vadd.f32 %v3394_v21, %v3388_v39  ;;  %v3453_v43 = vadd.f32 %v3449_v42, %v3443_v30  ;;  %v3389_v22 = vadd.f32 %v3385_v51, %v3379_v45  ;;  %v3444_v2 = vadd.f32 %v3440_v61, %v3434_v44  ;;  %v3309_v58 = vpop.permute.xlu0 %3308 }
 0x4cf   : > { %v3365_v3 = vsel %vm3357_vm8, %v3317_v27, %v3361_v13  ;;  %v3354_v40 = vsel %vm3346_vm9, %v3292_v4, %v3350_v49  ;;  %v3318_v34 = vadd.f32 %v3309_v58, %v3214_v35  ;;  %v3418_v25 = vmul.f32 0.1, %v8009_v8 }
 0x4d0   : > { %v3404_v16 = vmul.f32 %v9769_v37, %v3365_v3  ;;  %v3459_v18 = vmul.f32 %v9770_v26, %v3365_v3  ;;  %v3395_v46 = vmul.f32 %v7905_v53, %v3354_v40  ;;  %v3450_v54 = vmul.f32 %v7907_v62, %v3354_v40 }
 0x4d1   : > { %vm3358_vm10 = vcmp.gt.f32.partialorder %v3318_v34, 0.0  ;;  %v3362_v32 = vmul.f32 0.1, %v3318_v34  ;;  %v3473_v59 = vmul.f32 0.1, %v8011_v14  ;;  %v8059_v11 = vstv %s5537_s11  ;;  %s5560_s11 = sld [smem:[#allocation3 + $0x7b]] }
 0x4d2   : > { %v3399_v33 = vadd.f32 %v3395_v46, %v3389_v22  ;;  %v3454_v23 = vadd.f32 %v3450_v54, %v3444_v2  ;;  %v3408_v17 = vadd.f32 %v3404_v16, %v3398_v19  ;;  %v3463_v5 = vadd.f32 %v3459_v18, %v3453_v43 }
 0x4d3   : > { %v3366_v28 = vsel %vm3358_vm10, %v3318_v34, %v3362_v32  ;;  %v3477_v35 = vsel %vm3469_vm0, %v8011_v14, %v3473_v59  ;;  %v8064_v41 = vstv %s5538_s26  ;;  %v8069_v15 = vstv %s5539_s10  ;;  %s5561_s26 = sld [smem:[#allocation3 + $0x8d]]  ;;  %s5562_s10 = sld [smem:[#allocation3 + $0x9f]] }
 0x4d4   : > { %v3405_v1 = vmul.f32 %v9769_v37, %v3366_v28  ;;  %v3460_v48 = vmul.f32 %v9770_v26, %v3366_v28  ;;  %vm3412_vm11 = vcmp.gt.f32.partialorder %v3408_v17, 0.0  ;;  %v3416_v7 = vmul.f32 0.1, %v3408_v17 }
 0x4d5   : > { %v3471_v0 = vmul.f32 0.1, %v3463_v5  ;;  %vm3467_vm12 = vcmp.gt.f32.partialorder %v3463_v5, 0.0  ;;  %v3422_v37 = vsel %vm3414_vm14, %v8009_v8, %v3418_v25  ;;  %v8053_v8 = vstv %s5536_s7  ;;  %s5555_s7 = sld [smem:[#allocation3 + $0xaf]] }
 0x4d6   : > { %v3420_v60 = vsel %vm3412_vm11, %v3408_v17, %v3416_v7  ;;  %v3409_v56 = vadd.f32 %v3405_v1, %v3399_v33  ;;  %v3464_v38 = vadd.f32 %v3460_v48, %v3454_v23  ;;  %v8079_v24 = vstv %s5541_s8  ;;  %s5564_s8 = sld [smem:[#allocation3 + $0x7c]] }
 0x4d7   : > { %3484 = vrot.lane.b32.xlu1 %v3420_v60, %s6122_s14  ;;  %v3475_v62 = vsel %vm3467_vm12, %v3463_v5, %v3471_v0  ;;  %v8084_v30 = vstv %s5542_s9  ;;  %v8089_v44 = vstv %s5543_s17  ;;  %v8096_v57 = vstv %s5548_s15  ;;  %s5565_s9 = sld [smem:[#allocation3 + $0x8e]]  ;;  %s5566_s17 = sld [smem:[#allocation3 + $0xa0]] }
 0x4d8   : > { %vm3413_vm13 = vcmp.gt.f32.partialorder %v3409_v56, 0.0  ;;  %v3417_v53 = vmul.f32 0.1, %v3409_v56  ;;  %v3472_v50 = vmul.f32 0.1, %v3464_v38  ;;  %vm3468_vm15 = vcmp.gt.f32.partialorder %v3464_v38, 0.0 }
 0x4d9   : > { %v8101_v27 = vstv %s5549_s12  ;;  %v8106_v21 = vstv %s5550_s23  ;;  %v8111_v51 = vstv %s5551_s28  ;;  %v8116_v13 = vstv %s5552_s25  ;;  %s5567_s15 = sld [smem:[#allocation3 + $0xb2]]  ;;  %s5572_s12 = sld [smem:[#allocation3 + $0x7e]] }
 0x4da   : > { %v3421_v6 = vsel %vm3413_vm13, %v3409_v56, %v3417_v53  ;;  %v3476_v26 = vsel %vm3468_vm15, %v3464_v38, %v3472_v50  ;;  %9774 = vst [vmem:[#allocation23_spill] sm:$0xff] %v8106_v21  ;;  %9775 = vst [vmem:[#allocation19_spill] sm:$0xff] %v8111_v51  ;;  %v8121_v19 = vstv %s5553_s13  ;;  %v8126_v22 = vstv %s5554_s0  ;;  %s5532_s23 = sld [smem:[#allocation3 + $0x74]]  ;;  %s5573_s28 = sld [smem:[#allocation3 + $0x90]] }
 0x4db   : > { %3504 = vrot.lane.b32.xlu1 %v3475_v62, %s6122_s14  ;;  %3486 = vrot.lane.b32.xlu0 %v3421_v6, %s6122_s14  ;;  %9776 = vst [vmem:[#allocation20_spill] sm:$0xff] %v8116_v13  ;;  %9777 = vst [vmem:[#allocation22_spill] sm:$0xff] %v8121_v19  ;;  %v8131_v58 = vstv %s5555_s7  ;;  %v8140_v18 = vstv %s5560_s11  ;;  %s5528_s25 = sld [smem:[#allocation3 + $0xbc]]  ;;  %s5533_s13 = sld [smem:[#allocation3 + $0x86]]  ;;  %vm5200_vm4 = vcmask 261120  }
 0x4dc   : > { %9778 = vst [vmem:[#allocation27_spill] sm:$0xff] %v8126_v22  ;;  %9779 = vst [vmem:[#allocation34_spill] sm:$0xff] %v8131_v58  ;;  %v8152_v5 = vstv %s5561_s26  ;;  %v8161_v7 = vstv %s5562_s10  ;;  %v8177_v62 = vstv %s5564_s8  ;;  %s5534_s0 = sld [smem:[#allocation3 + $0x98]]  ;;  %s5574_s7 = sld [smem:[#allocation3 + $0xa2]] }
 0x4dd   : > { %9780 = vst [vmem:[#allocation36_spill] sm:$0xff] %v8140_v18  ;;  %9781 = vst [vmem:[#allocation24_spill] sm:$0xff] %v8152_v5  ;;  %v8185_v50 = vstv %s5565_s9  ;;  %v8193_v59 = vstv %s5566_s17  ;;  %s5529_s11 = sld [smem:[#allocation3 + $0xbd]]  ;;  %s5544_s26 = sld [smem:[#allocation3 + $0x77]] }
 0x4de   : > { %9782 = vst [vmem:[#allocation38_spill] sm:$0xff] %v8161_v7  ;;  %9784 = vst [vmem:[#allocation47_spill] sm:$0xff] %v8177_v62  ;;  %s5535_s10 = sld [smem:[#allocation3 + $0xaa]]  ;;  %s8231_s8 = sld [smem:[#allocation3 + $0xbe]] }
 0x4df   : > { %3488 = vrot.lane.b32.xlu1 %v3422_v37, %s6122_s14  ;;  %3506 = vrot.lane.b32.xlu0 %v3476_v26, %s6122_s14  ;;  %9785 = vst [vmem:[#allocation25_spill] sm:$0xff] %v8185_v50  ;;  %9786 = vst [vmem:[#allocation31_spill] sm:$0xff] %v8193_v59  ;;  %s8235_s9 = sld [smem:[#allocation3 + $0x89]]  ;;  %s8243_s17 = sld [smem:[#allocation3 + $0x7f]] }
 0x4e3   : > { %3508 = vrot.lane.b32.xlu1 %v3477_v35, %s6122_s14  ;;  %s5540_s14 = sld [smem:[#allocation3 + $0x76]] }
 0x4e9   : > { %v8074_v47 = vstv %s5540_s14  ;;  %s5563_s14 = sld [smem:[#allocation3 + $0xb1]] }
 0x4ed   : > { %v3483_v9 = vpop.permute.xlu0 %3482 }
 0x4ee   : > { %3494 = vst.msk [vmem:[#allocation2 + $0x1] sm:$0xff] %vm1770_vm7, %v3483_v9 }
 0x4ef   : > { %v8169_v56 = vstv %s5563_s14  ;;  %s5575_s14 = sld [smem:[#allocation3 + $0xb4]] }
 0x4f0   : > { %9783 = vst [vmem:[#allocation28_spill] sm:$0xff] %v8169_v56 }
 0x4f1   : > { %v3503_v36 = vpop.permute.xlu0 %3502 }
 0x4f2   : > { %3514 = vst.msk [vmem:[#allocation2 + $0x29] sm:$0xff] %vm1770_vm7, %v3503_v36 }
 0x4f5   : > { %v8055_v55 = vld [vmem:[#allocation2] sm:$0xff] }
 0x4f6   : > { %v3576_v29 = vmul.f32 %v8053_v8, %v8055_v55  ;;  %v3602_v14 = vmul.f32 %v8059_v11, %v8055_v55  ;;  %v3628_v12 = vmul.f32 %v8064_v41, %v8055_v55  ;;  %v3654_v10 = vmul.f32 %v8069_v15, %v8055_v55  ;;  %v8094_v52 = vld [vmem:[#allocation2 + $0x1] sm:$0xff] }
 0x4f7   : > { %v3680_v20 = vmul.f32 %v8074_v47, %v8055_v55  ;;  %v3706_v39 = vmul.f32 %v8079_v24, %v8055_v55  ;;  %v3732_v45 = vmul.f32 %v8084_v30, %v8055_v55  ;;  %v3758_v63 = vmul.f32 %v8089_v44, %v8055_v55 }
 0x4f8   : > { %3584 = vrot.lane.b32.xlu0 %v3576_v29, %s6123_s16  ;;  %v3828_v31 = vmul.f32 %v8096_v57, %v8094_v52  ;;  %v3854_v4 = vmul.f32 %v8101_v27, %v8094_v52  ;;  %v3880_v42 = vmul.f32 %v8106_v21, %v8094_v52  ;;  %v3906_v61 = vmul.f32 %v8111_v51, %v8094_v52 }
 0x4f9   : > { %v3932_v49 = vmul.f32 %v8116_v13, %v8094_v52  ;;  %v3958_v43 = vmul.f32 %v8121_v19, %v8094_v52  ;;  %v3984_v2 = vmul.f32 %v8126_v22, %v8094_v52  ;;  %v4010_v3 = vmul.f32 %v8131_v58, %v8094_v52 }
 0x4fa   : > { %v8201_v29 = vstv %s5567_s15  ;;  %s8254_s15 = sld [smem:[#allocation3 + $0xbf]] }
 0x4fb   : > { %9787 = vst [vmem:[#allocation29_spill] sm:$0xff] %v8201_v29 }
 0x4fc   : > { %3610 = vrot.lane.b32.xlu0 %v3602_v14, %s6123_s16 }
 0x500   : > { %3636 = vrot.lane.b32.xlu0 %v3628_v12, %s6123_s16 }
 0x504   : > { %3662 = vrot.lane.b32.xlu0 %v3654_v10, %s6123_s16 }
 0x508   : > { %3688 = vrot.lane.b32.xlu0 %v3680_v20, %s6124_s29 }
 0x50c   : > { %3714 = vrot.lane.b32.xlu0 %v3706_v39, %s6124_s29  ;;  %v8211_v39 = vld [vmem:[#allocation2 + $0x28] sm:$0xff] }
 0x510   : > { %3740 = vrot.lane.b32.xlu0 %v3732_v45, %s6124_s29  ;;  %v8213_v45 = vstv %s5572_s12  ;;  %s8260_s12 = sld [smem:[#allocation3 + $0x9b]] }
 0x511   : > { %9788 = vst [vmem:[#allocation37_spill] sm:$0xff] %v8213_v45 }
 0x514   : > { %3766 = vrot.lane.b32.xlu0 %v3758_v63, %s6124_s29  ;;  %v8215_v63 = vstv %s5532_s23  ;;  %s8262_s23 = sld [smem:[#allocation3 + $0x91]] }
 0x518   : > { %3836 = vrot.lane.b32.xlu0 %v3828_v31, %s6123_s16 }
 0x51c   : > { %3862 = vrot.lane.b32.xlu0 %v3854_v4, %s6123_s16 }
 0x520   : > { %3888 = vrot.lane.b32.xlu0 %v3880_v42, %s6123_s16  ;;  %v4332_v42 = vmul.f32 %v8213_v45, %v8211_v39 }
 0x524   : > { %3914 = vrot.lane.b32.xlu0 %v3906_v61, %s6123_s16  ;;  %v3536_v61 = vmul.f32 %v8215_v63, %v8055_v55 }
 0x528   : > { %3940 = vrot.lane.b32.xlu0 %v3932_v49, %s6124_s29  ;;  %v8225_v49 = vstv %s5573_s28  ;;  %s8272_s28 = sld [smem:[#allocation3 + $0xa3]] }
 0x529   : > { %9789 = vst [vmem:[#allocation26_spill] sm:$0xff] %v8225_v49 }
 0x52c   : > { %3966 = vrot.lane.b32.xlu0 %v3958_v43, %s6124_s29  ;;  %v8227_v43 = vstv %s5528_s25  ;;  %s8279_s25 = sld [smem:[#allocation3 + $0xad]] }
 0x530   : > { %3992 = vrot.lane.b32.xlu0 %v3984_v2, %s6124_s29  ;;  %v8229_v2 = vstv %s5533_s13  ;;  %s8289_s13 = sld [smem:[#allocation3 + $0x7a]] }
 0x534   : > { %4018 = vrot.lane.b32.xlu0 %v4010_v3, %s6124_s29 }
 0x549   : > { %v3485_v40 = vpop.permute.xlu1 %3484 }
 0x54a   : > { %3495 = vst.msk [vmem:[#allocation2 + $0x9] sm:$0xff] %vm1770_vm7, %v3485_v40 }
 0x54d   : > { %v3505_v34 = vpop.permute.xlu1 %3504  ;;  %v3487_v16 = vpop.permute.xlu0 %3486 }
 0x54e   : > { %3515 = vst.msk [vmem:[#allocation2 + $0x31] sm:$0xff] %vm1770_vm7, %v3505_v34  ;;  %3496 = vst.msk [vmem:[#allocation2 + $0x11] sm:$0xff] %vm1770_vm7, %v3487_v16  ;;  %v4358_v34 = vmul.f32 %v8225_v49, %v8211_v39  ;;  %v3540_v16 = vadd.f32 %v3536_v61, %v8227_v43  ;;  %v8300_v61 = vstv %s8243_s17  ;;  %s5594_s17 = sld [smem:[#allocation3 + $0xa7]] }
 0x551   : > { %v3489_v46 = vpop.permute.xlu1 %3488  ;;  %v3507_v54 = vpop.permute.xlu0 %3506  ;;  %v8142_v32 = vld [vmem:[#allocation2 + $0x8] sm:$0xff] }
 0x552   : > { %v8144_v33 = vld [vmem:[#allocation2 + $0x2] sm:$0xff]  ;;  %3497 = vst.msk [vmem:[#allocation2 + $0x19] sm:$0xff] %vm1770_vm7, %v3489_v46  ;;  %3516 = vst.msk [vmem:[#allocation2 + $0x39] sm:$0xff] %vm1770_vm7, %v3507_v54  ;;  %v3577_v23 = vmul.f32 %v8053_v8, %v8142_v32  ;;  %v3603_v1 = vmul.f32 %v8059_v11, %v8142_v32  ;;  %v3629_v60 = vmul.f32 %v8064_v41, %v8142_v32  ;;  %v8248_v54 = vstv %s5534_s0  ;;  %s8291_s0 = sld [smem:[#allocation3 + $0x8c]] }
 0x553   : > { %v4080_v17 = vmul.f32 %v8140_v18, %v8144_v33  ;;  %v4106_v48 = vmul.f32 %v8152_v5, %v8144_v33  ;;  %v4132_v0 = vmul.f32 %v8161_v7, %v8144_v33  ;;  %v3655_v38 = vmul.f32 %v8069_v15, %v8142_v32  ;;  %v8209_v20 = vld [vmem:[#allocation2 + $0x9] sm:$0xff] }
 0x554   : > { %3586 = vrot.lane.b32.xlu1 %v3577_v23, %s6123_s16  ;;  %v4158_v53 = vmul.f32 %v8169_v56, %v8144_v33  ;;  %v3681_v6 = vmul.f32 %v8074_v47, %v8142_v32  ;;  %v4184_v25 = vmul.f32 %v8177_v62, %v8144_v33  ;;  %v3707_v37 = vmul.f32 %v8079_v24, %v8142_v32 }
 0x555   : > { %4088 = vrot.lane.b32.xlu0 %v4080_v17, %s6123_s16  ;;  %v3509_v28 = vpop.permute.xlu1 %3508  ;;  %v4210_v26 = vmul.f32 %v8185_v50, %v8144_v33  ;;  %v3733_v9 = vmul.f32 %v8084_v30, %v8142_v32  ;;  %v4236_v36 = vmul.f32 %v8193_v59, %v8144_v33  ;;  %v3759_v12 = vmul.f32 %v8089_v44, %v8142_v32  ;;  %v8433_v5 = vld [vmem:[#allocation2 + $0x30] sm:$0xff] }
 0x556   : > { %3517 = vst.msk [vmem:[#allocation2 + $0x41] sm:$0xff] %vm1770_vm7, %v3509_v28  ;;  %v4262_v10 = vmul.f32 %v8201_v29, %v8144_v33  ;;  %v3829_v4 = vmul.f32 %v8096_v57, %v8209_v20  ;;  %v3855_v40 = vmul.f32 %v8101_v27, %v8209_v20  ;;  %v3546_v46 = vmul.f32 %v8229_v2, %v8055_v55 }
 0x557   : > { %v8250_v23 = vstv %s5574_s7  ;;  %v8252_v17 = vstv %s5529_s11  ;;  %v8258_v28 = vstv %s5544_s26  ;;  %s8302_s7 = sld [smem:[#allocation3 + $0x9e]]  ;;  %s8317_s11 = sld [smem:[#allocation3 + $0xb0]]  ;;  %v3959_v59 = vmul.f32 %v8121_v19, %v8209_v20 }
 0x558   : > { %3612 = vrot.lane.b32.xlu1 %v3603_v1, %s6123_s16  ;;  %s8336_s26 = sld [smem:[#allocation3 + $0xb5]] }
 0x559   : > { %4114 = vrot.lane.b32.xlu0 %v4106_v48, %s6123_s16  ;;  %v8264_v48 = vstv %s5535_s10  ;;  %s5584_s10 = sld [smem:[#allocation3 + $0x81]]  ;;  %v4791_v19 = vld [vmem:[#allocation2 + $0x32] sm:$0xff] }
 0x55c   : > { %3638 = vrot.lane.b32.xlu1 %v3629_v60, %s6123_s16 }
 0x55d   : > { %4140 = vrot.lane.b32.xlu0 %v4132_v0, %s6123_s16  ;;  %v3881_v0 = vmul.f32 %v8106_v21, %v8209_v20  ;;  %v8369_v50 = vstv %s8302_s7  ;;  %s5591_s7 = sld [smem:[#allocation3 + $0xb8]] }
 0x55f   : > { %v8437_v18 = vstv %s5584_s10  ;;  %s5598_s10 = sld [smem:[#allocation3 + $0xa8]] }
 0x560   : > { %3664 = vrot.lane.b32.xlu1 %v3655_v38, %s6123_s16  ;;  %v4384_v38 = vmul.f32 %v8250_v23, %v8211_v39  ;;  %9805 = vst [vmem:[#allocation60_spill] sm:$0xff] %v8437_v18 }
 0x561   : > { %4166 = vrot.lane.b32.xlu0 %v4158_v53, %s6123_s16  ;;  %v8270_v53 = vstv %s5575_s14  ;;  %s5592_s14 = sld [smem:[#allocation3 + $0x83]] }
 0x564   : > { %3690 = vrot.lane.b32.xlu1 %v3681_v6, %s6124_s29  ;;  %v3550_v6 = vadd.f32 %v3546_v46, %v8252_v17  ;;  %v8310_v46 = vstv %s8254_s15  ;;  %s5595_s15 = sld [smem:[#allocation3 + $0xb9]] }
 0x565   : > { %4192 = vrot.lane.b32.xlu0 %v4184_v25, %s6124_s29  ;;  %v3556_v25 = vmul.f32 %v8248_v54, %v8055_v55 }
 0x568   : > { %3716 = vrot.lane.b32.xlu1 %v3707_v37, %s6124_s29 }
 0x569   : > { %4218 = vrot.lane.b32.xlu0 %v4210_v26, %s6124_s29  ;;  %v3788_v26 = vmul.f32 %v8258_v28, %v8094_v52 }
 0x56a   : > { %v3585_v35 = vpop.permute.xlu0 %3584 }
 0x56b   : > { %v3596_v1 = vadd.f32 %v3585_v35, %v3540_v16  ;;  %v8282_v35 = vstv %s8231_s8  ;;  %s5585_s8 = sld [smem:[#allocation3 + $0x93]] }
 0x56c   : > { %3742 = vrot.lane.b32.xlu1 %v3733_v9, %s6124_s29  ;;  %v8287_v9 = vstv %s8235_s9  ;;  %s5593_s9 = sld [smem:[#allocation3 + $0x95]] }
 0x56d   : > { %4244 = vrot.lane.b32.xlu0 %v4236_v36, %s6124_s29  ;;  %v3798_v16 = vmul.f32 %v8287_v9, %v8094_v52 }
 0x56e   : > { %v3611_v14 = vpop.permute.xlu0 %3610 }
 0x56f   : > { %v3622_v36 = vadd.f32 %v3611_v14, %v3550_v6  ;;  %v3566_v14 = vmul.f32 %v8264_v48, %v8055_v55  ;;  %v3933_v6 = vmul.f32 %v8116_v13, %v8209_v20 }
 0x570   : > { %3768 = vrot.lane.b32.xlu1 %v3759_v12, %s6124_s29 }
 0x571   : > { %4270 = vrot.lane.b32.xlu0 %v4262_v10, %s6124_s29 }
 0x572   : > { %v3637_v31 = vpop.permute.xlu0 %3636 }
 0x574   : > { %3838 = vrot.lane.b32.xlu1 %v3829_v4, %s6123_s16  ;;  %v3907_v4 = vmul.f32 %v8111_v51, %v8209_v20 }
 0x575   : > { %4340 = vrot.lane.b32.xlu0 %v4332_v42, %s6123_s16  ;;  %v4410_v42 = vmul.f32 %v8270_v53, %v8211_v39 }
 0x576   : > { %v8237_v3 = vpop.permute.xlu0 %3662 }
 0x578   : > { %3864 = vrot.lane.b32.xlu1 %v3855_v40, %s6123_s16  ;;  %v3560_v40 = vadd.f32 %v3556_v25, %v8282_v35  ;;  %v4436_v25 = vmul.f32 %v8300_v61, %v8211_v39 }
 0x579   : > { %4366 = vrot.lane.b32.xlu0 %v4358_v34, %s6123_s16 }
 0x57a   : > { %v3689_v60 = vpop.permute.xlu0 %3688 }
 0x57b   : > { %v3700_v37 = vadd.f32 %v3689_v60, %v3596_v1  ;;  %v8315_v1 = vstv %s8260_s12  ;;  %v3648_v60 = vadd.f32 %v3637_v31, %v3560_v40  ;;  %v3570_v31 = vadd.f32 %v3566_v14, %v8310_v46  ;;  %v8343_v40 = vld [vmem:[#allocation2 + $0x1a] sm:$0xff]  ;;  %s5586_s12 = sld [smem:[#allocation3 + $0xa5]] }
 0x57c   : > { %3890 = vrot.lane.b32.xlu1 %v3881_v0, %s6123_s16  ;;  %v8320_v0 = vstv %s8262_s23  ;;  %9792 = vst [vmem:[#allocation39_spill] sm:$0xff] %v8343_v40  ;;  %v8353_v14 = vstv %s8291_s0  ;;  %s8449_s23 = sld [smem:[#allocation3 + $0xb7]]  ;;  %s5596_s0 = sld [smem:[#allocation3 + $0x84]] }
 0x57d   : > { %4392 = vrot.lane.b32.xlu0 %v4384_v38, %s6123_s16  ;;  %v8293_v12 = vadd.f32 %v3788_v26, %v3700_v37  ;;  %v8329_v37 = vstv %s8272_s28  ;;  %v8331_v26 = vld [vmem:[#allocation2 + $0xa] sm:$0xff]  ;;  %s5588_s28 = sld [smem:[#allocation3 + $0x82]] }
 0x57e   : > { %v3715_v10 = vpop.permute.xlu0 %3714  ;;  %9790 = vst [vmem:[#allocation32_spill] sm:$0xff] %v8331_v26 }
 0x57f   : > { %v3726_v34 = vadd.f32 %v3715_v10, %v3622_v36  ;;  %v8333_v36 = vld [vmem:[#allocation2 + $0x12] sm:$0xff] }
 0x580   : > { %3916 = vrot.lane.b32.xlu1 %v3907_v4, %s6123_s16  ;;  %9791 = vst [vmem:[#allocation30_spill] sm:$0xff] %v8333_v36  ;;  %v3808_v4 = vmul.f32 %v8315_v1, %v8094_v52  ;;  %v8387_v62 = vmul.f32 %v8369_v50, %v8333_v36 }
 0x581   : > { %4418 = vrot.lane.b32.xlu0 %v4410_v42, %s6123_s16  ;;  %v8322_v38 = vadd.f32 %v3798_v16, %v3726_v34  ;;  %v8341_v42 = vstv %s8279_s25  ;;  %v4462_v34 = vmul.f32 %v8320_v0, %v8211_v39  ;;  %v8350_v16 = vstv %s8289_s13  ;;  %s5589_s25 = sld [smem:[#allocation3 + $0x94]]  ;;  %s5590_s13 = sld [smem:[#allocation3 + $0xa6]] }
 0x582   : > { %v3741_v55 = vpop.permute.xlu0 %3740  ;;  %v8360_v29 = vmul.f32 %v8350_v16, %v8331_v26  ;;  %9797 = vst [vmem:[#allocation35_spill] sm:$0xff] %v8387_v62 }
 0x583   : > { %v3752_v10 = vadd.f32 %v3741_v55, %v3648_v60  ;;  %v3674_v60 = vadd.f32 %v8237_v3, %v3570_v31  ;;  %v8373_v3 = vmul.f32 %v8350_v16, %v8343_v40  ;;  %v8377_v31 = vmul.f32 %v8353_v14, %v8333_v36 }
 0x584   : > { %3942 = vrot.lane.b32.xlu1 %v3933_v6, %s6124_s29  ;;  %v8364_v6 = vmul.f32 %v8350_v16, %v8333_v36 }
 0x585   : > { %4444 = vrot.lane.b32.xlu0 %v4436_v25, %s6124_s29  ;;  %v8356_v55 = vadd.f32 %v3808_v4, %v3752_v10  ;;  %9794 = vst [vmem:[#allocation44_spill] sm:$0xff] %v8373_v3  ;;  %9795 = vst [vmem:[#allocation40_spill] sm:$0xff] %v8377_v31  ;;  %v3818_v4 = vmul.f32 %v8341_v42, %v8094_v52  ;;  %v8392_v3 = vstv %s8317_s11  ;;  %s5597_s11 = sld [smem:[#allocation3 + $0x96]] }
 0x586   : > { %9793 = vst [vmem:[#allocation33_spill] sm:$0xff] %v8364_v6  ;;  %v3767_v25 = vpop.permute.xlu0 %3766  ;;  %v8383_v6 = vmul.f32 %v8353_v14, %v8331_v26  ;;  %v8406_v31 = vmul.f32 %v8369_v50, %v8331_v26 }
 0x587   : > { %v3778_v10 = vadd.f32 %v3767_v25, %v3674_v60  ;;  %v8396_v60 = vmul.f32 %v8353_v14, %v8343_v40  ;;  %v8402_v25 = vmul.f32 %v8392_v3, %v8333_v36  ;;  %v8435_v36 = vld [vmem:[#allocation2 + $0x29] sm:$0xff] }
 0x588   : > { %9796 = vst [vmem:[#allocation54_spill] sm:$0xff] %v8383_v6  ;;  %3968 = vrot.lane.b32.xlu1 %v3959_v59, %s6124_s29  ;;  %9800 = vst [vmem:[#allocation56_spill] sm:$0xff] %v8406_v31  ;;  %v3985_v59 = vmul.f32 %v8126_v22, %v8209_v20  ;;  %v8451_v22 = vstv %s5593_s9  ;;  %s5602_s9 = sld [smem:[#allocation3 + $0xa9]] }
 0x589   : > { %4470 = vrot.lane.b32.xlu0 %v4462_v34, %s6124_s29  ;;  %9798 = vst [vmem:[#allocation46_spill] sm:$0xff] %v8396_v60  ;;  %v8398_v52 = vadd.f32 %v3818_v4, %v3778_v10  ;;  %9799 = vst [vmem:[#allocation42_spill] sm:$0xff] %v8402_v25  ;;  %v4488_v34 = vmul.f32 %v8329_v37, %v8211_v39  ;;  %v8414_v10 = vmul.f32 %v8369_v50, %v8343_v40 }
 0x58a   : > { %v3837_v62 = vpop.permute.xlu0 %3836  ;;  %v8418_v4 = vmul.f32 %v8392_v3, %v8331_v26  ;;  %v8421_v25 = vstv %s8336_s26  ;;  %v8425_v60 = vmul.f32 %v8392_v3, %v8343_v40  ;;  %v4584_v40 = vmul.f32 %v8437_v18, %v8435_v36  ;;  %9807 = vst [vmem:[#allocation64_spill] sm:$0xff] %v8451_v22  ;;  %s5600_s26 = sld [smem:[#allocation3 + $0x85]] }
 0x58b   : > { %9801 = vst [vmem:[#allocation49_spill] sm:$0xff] %v8414_v10  ;;  %9803 = vst [vmem:[#allocation52_spill] sm:$0xff] %v8421_v25  ;;  %v4011_v10 = vmul.f32 %v8131_v58, %v8209_v20  ;;  %v4514_v7 = vmul.f32 %v8421_v25, %v8211_v39  ;;  %v8445_v26 = vstv %s5592_s14  ;;  %v8447_v58 = vstv %s5585_s8  ;;  %s5601_s14 = sld [smem:[#allocation3 + $0x97]]  ;;  %s5599_s8 = sld [smem:[#allocation3 + $0xba]] }
 0x58c   : > { %9802 = vst [vmem:[#allocation58_spill] sm:$0xff] %v8418_v4  ;;  %9804 = vst [vmem:[#allocation65_spill] sm:$0xff] %v8425_v60  ;;  %3994 = vrot.lane.b32.xlu1 %v3985_v59, %s6124_s29  ;;  %v4792_v59 = vld [vmem:[#allocation2 + $0x3a] sm:$0xff]  ;;  %v4333_v60 = vmul.f32 %v8213_v45, %v8433_v5  ;;  %v8458_v45 = vstv %s5594_s17  ;;  %v8460_v4 = vstv %s5595_s15  ;;  %s5603_s17 = sld [smem:[#allocation3 + $0xbb]]  ;;  %s5568_s15 = sld [smem:[#allocation3 + $0x7d]] }
 0x58d   : > { %4496 = vrot.lane.b32.xlu0 %v4488_v34, %s6124_s29  ;;  %9806 = vst [vmem:[#allocation59_spill] sm:$0xff] %v8447_v58  ;;  %v8463_v13 = vmul.f32 %v8451_v22, %v4792_v59  ;;  %v8466_v31 = vmul.f32 %v8458_v45, %v4792_v59  ;;  %v8469_v51 = vmul.f32 %v8460_v4, %v4792_v59 }
 0x58e   : > { %v3863_v56 = vpop.permute.xlu0 %3862 }
 0x58f   : > { %9809 = vst [vmem:[#allocation55_spill] sm:$0xff] %v8463_v13  ;;  %9810 = vst [vmem:[#allocation61_spill] sm:$0xff] %v8466_v31  ;;  %v8481_v13 = vstv %s5586_s12  ;;  %v8492_v31 = vmul.f32 %v8458_v45, %v4791_v19  ;;  %s5569_s12 = sld [smem:[#allocation3 + $0x8f]] }
 0x590   : > { %4020 = vrot.lane.b32.xlu1 %v4011_v10, %s6124_s29  ;;  %v4793_v10 = vld [vmem:[#allocation2 + $0x42] sm:$0xff]  ;;  %9811 = vst [vmem:[#allocation48_spill] sm:$0xff] %v8469_v51  ;;  %9814 = vst [vmem:[#allocation62_spill] sm:$0xff] %v8481_v13 }
 0x591   : > { %4522 = vrot.lane.b32.xlu0 %v4514_v7, %s6124_s29  ;;  %v8454_v7 = vmul.f32 %v8445_v26, %v4792_v59  ;;  %v8479_v21 = vmul.f32 %v8445_v26, %v4793_v10  ;;  %v8484_v59 = vmul.f32 %v8451_v22, %v4791_v19  ;;  %v8487_v51 = vmul.f32 %v8451_v22, %v4793_v10 }
 0x592   : > { %v3889_v34 = vpop.permute.xlu0 %3888  ;;  %9817 = vst [vmem:[#allocation43_spill] sm:$0xff] %v8492_v31  ;;  %v8509_v31 = vstv %s8449_s23  ;;  %s5570_s23 = sld [smem:[#allocation3 + $0xa1]] }
 0x593   : > { %9808 = vst [vmem:[#allocation45_spill] sm:$0xff] %v8454_v7  ;;  %v4359_v7 = vmul.f32 %v8225_v49, %v8433_v5  ;;  %9813 = vst [vmem:[#allocation57_spill] sm:$0xff] %v8479_v21  ;;  %v3848_v21 = vadd.f32 %v3837_v62, %v8293_v12  ;;  %v8499_v49 = vmul.f32 %v8460_v4, %v4791_v19 }
 0x594   : > { %4342 = vrot.lane.b32.xlu1 %v4333_v60, %s6123_s16  ;;  %v8476_v60 = vmul.f32 %v8445_v26, %v4791_v19  ;;  %9815 = vst [vmem:[#allocation50_spill] sm:$0xff] %v8484_v59  ;;  %9816 = vst [vmem:[#allocation51_spill] sm:$0xff] %v8487_v51  ;;  %v8502_v59 = vmul.f32 %v8460_v4, %v4793_v10  ;;  %v4040_v62 = vmul.f32 %v8350_v16, %v8144_v33 }
 0x595   : > { %4592 = vrot.lane.b32.xlu0 %v4584_v40, %s6123_s16  ;;  %v4610_v40 = vmul.f32 %v8447_v58, %v8435_v36  ;;  %9819 = vst [vmem:[#allocation41_spill] sm:$0xff] %v8499_v49  ;;  %9821 = vst [vmem:[#allocation67_spill] sm:$0xff] %v8509_v31  ;;  %v3874_v19 = vadd.f32 %v3863_v56, %v8322_v38  ;;  %v4050_v16 = vmul.f32 %v8353_v14, %v8144_v33 }
 0x596   : > { %v3915_v6 = vpop.permute.xlu0 %3914  ;;  %9812 = vst [vmem:[#allocation66_spill] sm:$0xff] %v8476_v60  ;;  %v8495_v60 = vmul.f32 %v8458_v45, %v4793_v10  ;;  %9820 = vst [vmem:[#allocation53_spill] sm:$0xff] %v8502_v59  ;;  %v4411_v59 = vmul.f32 %v8270_v53, %v8433_v5  ;;  %v4060_v14 = vmul.f32 %v8369_v50, %v8144_v33 }
 0x597   : > { %v4070_v50 = vmul.f32 %v8392_v3, %v8144_v33  ;;  %v4515_v33 = vmul.f32 %v8421_v25, %v8433_v5 }
 0x598   : > { %4368 = vrot.lane.b32.xlu1 %v4359_v7, %s6123_s16  ;;  %9818 = vst [vmem:[#allocation63_spill] sm:$0xff] %v8495_v60  ;;  %v4385_v7 = vmul.f32 %v8250_v23, %v8433_v5  ;;  %v8522_v60 = vstv %s5588_s28  ;;  %s8663_s28 = sld [smem:[#allocation3 + $0xb3]] }
 0x599   : > { %4618 = vrot.lane.b32.xlu0 %v4610_v40, %s6123_s16  ;;  %v4636_v40 = vmul.f32 %v8481_v13, %v8435_v36  ;;  %9822 = vst [vmem:[#allocation68_spill] sm:$0xff] %v8522_v60 }
 0x59a   : > { %v3941_v22 = vpop.permute.xlu0 %3940 }
 0x59b   : > { %v3952_v51 = vadd.f32 %v3941_v22, %v3848_v21  ;;  %v4662_v21 = vmul.f32 %v8509_v31, %v8435_v36 }
 0x59c   : > { %4394 = vrot.lane.b32.xlu1 %v4385_v7, %s6123_s16  ;;  %v4437_v7 = vmul.f32 %v8300_v61, %v8433_v5 }
 0x59d   : > { %4644 = vrot.lane.b32.xlu0 %v4636_v40, %s6123_s16  ;;  %v8516_v12 = vadd.f32 %v4040_v62, %v3952_v51  ;;  %v3900_v51 = vadd.f32 %v3889_v34, %v8356_v55  ;;  %v4688_v40 = vmul.f32 %v8522_v60, %v8435_v36  ;;  %v3926_v55 = vadd.f32 %v3915_v6, %v8398_v52 }
 0x59e   : > { %v3967_v10 = vpop.permute.xlu0 %3966  ;;  %v4489_v52 = vmul.f32 %v8329_v37, %v8433_v5 }
 0x59f   : > { %v3978_v22 = vadd.f32 %v3967_v10, %v3874_v19  ;;  %v8535_v19 = vstv %s5589_s25  ;;  %v4463_v10 = vmul.f32 %v8320_v0, %v8433_v5  ;;  %s5580_s25 = sld [smem:[#allocation3 + $0x80]] }
 0x5a0   : > { %4420 = vrot.lane.b32.xlu1 %v4411_v59, %s6123_s16  ;;  %9823 = vst [vmem:[#allocation69_spill] sm:$0xff] %v8535_v19 }
 0x5a1   : > { %4670 = vrot.lane.b32.xlu0 %v4662_v21, %s6123_s16  ;;  %v8529_v56 = vadd.f32 %v4050_v16, %v3978_v22  ;;  %v4714_v21 = vmul.f32 %v8535_v19, %v8435_v36  ;;  %v8548_v16 = vstv %s5590_s13  ;;  %s5581_s13 = sld [smem:[#allocation3 + $0x92]] }
 0x5a2   : > { %v3993_v38 = vpop.permute.xlu0 %3992  ;;  %9824 = vst [vmem:[#allocation70_spill] sm:$0xff] %v8548_v16 }
 0x5a3   : > { %v4004_v62 = vadd.f32 %v3993_v38, %v3900_v51  ;;  %v4740_v51 = vmul.f32 %v8548_v16, %v8435_v36  ;;  %v8560_v38 = vld [vmem:[#allocation2 + $0x2a] sm:$0xff] }
 0x5a4   : > { %4446 = vrot.lane.b32.xlu1 %v4437_v7, %s6124_s29  ;;  %v8562_v7 = vstv %s5596_s0  ;;  %s5582_s0 = sld [smem:[#allocation3 + $0xa4]] }
 0x5a5   : > { %4696 = vrot.lane.b32.xlu0 %v4688_v40, %s6124_s29  ;;  %v8542_v34 = vadd.f32 %v4060_v14, %v4004_v62  ;;  %9825 = vst [vmem:[#allocation71_spill] sm:$0xff] %v8562_v7  ;;  %v4836_v3 = vmul.f32 %v8562_v7, %v8560_v38  ;;  %v4539_v40 = vld [vmem:[#allocation2 + $0x31] sm:$0xff]  ;;  %v8570_v62 = vstv %s5591_s7  ;;  %s5583_s7 = sld [smem:[#allocation3 + $0xb6]] }
 0x5a6   : > { %v4019_v59 = vpop.permute.xlu0 %4018  ;;  %9826 = vst [vmem:[#allocation21_spill] sm:$0xff] %v8570_v62  ;;  %v4585_v14 = vmul.f32 %v8437_v18, %v4539_v40  ;;  %v4611_v5 = vmul.f32 %v8447_v58, %v4539_v40  ;;  %v8628_v7 = vld [vmem:[#allocation2 + $0x18] sm:$0xff] }
 0x5a7   : > { %v4030_v22 = vadd.f32 %v4019_v59, %v3926_v55  ;;  %v4766_v55 = vmul.f32 %v8570_v62, %v8435_v36  ;;  %v8577_v59 = vstv %s5597_s11  ;;  %s5605_s11 = sld [smem:[#allocation3 + $0xc0]] }
 0x5a8   : > { %4472 = vrot.lane.b32.xlu1 %v4463_v10, %s6124_s29  ;;  %9827 = vst [vmem:[#allocation17_spill] sm:$0xff] %v8577_v59  ;;  %v4862_v10 = vmul.f32 %v8577_v59, %v8560_v38  ;;  %v3537_v59 = vmul.f32 %v8215_v63, %v8142_v32 }
 0x5a9   : > { %4722 = vrot.lane.b32.xlu0 %v4714_v21, %s6124_s29  ;;  %v8554_v6 = vadd.f32 %v4070_v50, %v4030_v22  ;;  %v8584_v21 = vstv %s5600_s26  ;;  %v4637_v22 = vmul.f32 %v8481_v13, %v4539_v40  ;;  %s5610_s26 = sld [smem:[#allocation3 + $0xc4]] }
 0x5aa   : > { %9828 = vst [vmem:[#allocation15_spill] sm:$0xff] %v8584_v21  ;;  %v4940_v50 = vmul.f32 %v8584_v21, %v8560_v38 }
 0x5ac   : > { %4498 = vrot.lane.b32.xlu1 %v4489_v52, %s6124_s29  ;;  %v8591_v52 = vstv %s5598_s10  ;;  %s5604_s10 = sld [smem:[#allocation3 + $0xc8]] }
 0x5ad   : > { %4748 = vrot.lane.b32.xlu0 %v4740_v51, %s6124_s29  ;;  %9829 = vst [vmem:[#allocation16_spill] sm:$0xff] %v8591_v52  ;;  %v4663_v51 = vmul.f32 %v8509_v31, %v4539_v40  ;;  %v3557_v31 = vmul.f32 %v8248_v54, %v8142_v32 }
 0x5b0   : > { %4524 = vrot.lane.b32.xlu1 %v4515_v33, %s6124_s29  ;;  %v4888_v33 = vmul.f32 %v8591_v52, %v8560_v38  ;;  %v4741_v52 = vmul.f32 %v8548_v16, %v4539_v40  ;;  %v3547_v16 = vmul.f32 %v8229_v2, %v8142_v32 }
 0x5b1   : > { %4844 = vrot.lane.b32.xlu0 %v4836_v3, %s6123_s16  ;;  %v8598_v3 = vstv %s5601_s14  ;;  %s5609_s14 = sld [smem:[#allocation3 + $0xc9]] }
 0x5b2   : > { %9830 = vst [vmem:[#allocation18_spill] sm:$0xff] %v8598_v3 }
 0x5b4   : > { %4594 = vrot.lane.b32.xlu1 %v4585_v14, %s6123_s16  ;;  %v4689_v14 = vmul.f32 %v8522_v60, %v4539_v40  ;;  %v8646_v60 = vstv %s5569_s12  ;;  %s5608_s12 = sld [smem:[#allocation3 + $0xc3]] }
 0x5b5   : > { %4774 = vrot.lane.b32.xlu0 %v4766_v55, %s6124_s29  ;;  %v4966_v55 = vmul.f32 %v8598_v3, %v8560_v38 }
 0x5b8   : > { %4620 = vrot.lane.b32.xlu1 %v4611_v5, %s6123_s16  ;;  %v8605_v5 = vstv %s5599_s8  ;;  %s5606_s8 = sld [smem:[#allocation3 + $0xc1]] }
 0x5b9   : > { %4870 = vrot.lane.b32.xlu0 %v4862_v10, %s6123_s16  ;;  %9831 = vst [vmem:[#allocation72_spill] sm:$0xff] %v8605_v5 }
 0x5bc   : > { %4646 = vrot.lane.b32.xlu1 %v4637_v22, %s6123_s16 }
 0x5bd   : > { %4948 = vrot.lane.b32.xlu0 %v4940_v50, %s6124_s29  ;;  %v4715_v50 = vmul.f32 %v8535_v19, %v4539_v40  ;;  %v8641_v19 = vstv %s5568_s15  ;;  %s5612_s15 = sld [smem:[#allocation3 + $0xc6]] }
 0x5be   : > { %9834 = vst [vmem:[#allocation75_spill] sm:$0xff] %v8641_v19 }
 0x5c0   : > { %4672 = vrot.lane.b32.xlu1 %v4663_v51, %s6123_s16  ;;  %v4914_v51 = vmul.f32 %v8605_v5, %v8560_v38 }
 0x5c1   : > { %4896 = vrot.lane.b32.xlu0 %v4888_v33, %s6123_s16  ;;  %v8612_v33 = vstv %s5602_s9  ;;  %s5611_s9 = sld [smem:[#allocation3 + $0xc5]] }
 0x5c2   : > { %9832 = vst [vmem:[#allocation73_spill] sm:$0xff] %v8612_v33 }
 0x5c4   : > { %4698 = vrot.lane.b32.xlu1 %v4689_v14, %s6124_s29  ;;  %v4992_v14 = vmul.f32 %v8612_v33, %v8560_v38  ;;  %v8630_v33 = vld [vmem:[#allocation2 + $0x10] sm:$0xff] }
 0x5c5   : > { %4974 = vrot.lane.b32.xlu0 %v4966_v55, %s6124_s29  ;;  %v8619_v55 = vstv %s5603_s17  ;;  %v3604_v58 = vmul.f32 %v8059_v11, %v8630_v33  ;;  %s5607_s17 = sld [smem:[#allocation3 + $0xc2]] }
 0x5c6   : > { %v3587_v10 = vpop.permute.xlu1 %3586  ;;  %9833 = vst [vmem:[#allocation74_spill] sm:$0xff] %v8619_v55 }
 0x5c7   : > { %v4089_v22 = vpop.permute.xlu0 %4088 }
 0x5c8   : > { %4724 = vrot.lane.b32.xlu1 %v4715_v50, %s6124_s29  ;;  %v4767_v50 = vmul.f32 %v8570_v62, %v4539_v40  ;;  %v3579_v40 = vmul.f32 %v8053_v8, %v8628_v7  ;;  %v3541_v62 = vadd.f32 %v3537_v59, %v8227_v43  ;;  %v3605_v59 = vmul.f32 %v8059_v11, %v8628_v7 }
 0x5c9   : > { %4922 = vrot.lane.b32.xlu0 %v4914_v51, %s6123_s16  ;;  %v5018_v51 = vmul.f32 %v8619_v55, %v8560_v38  ;;  %v3578_v55 = vmul.f32 %v8053_v8, %v8630_v33 }
 0x5ca   : > { %v3613_v49 = vpop.permute.xlu1 %3612 }
 0x5cb   : > { %v4115_v3 = vpop.permute.xlu0 %4114 }
 0x5cc   : > { %4750 = vrot.lane.b32.xlu1 %v4741_v52, %s6124_s29  ;;  %v4126_v11 = vadd.f32 %v4115_v3, %v8529_v56 }
 0x5cd   : > { %5000 = vrot.lane.b32.xlu0 %v4992_v14, %s6124_s29 }
 0x5ce   : > { %v3639_v5 = vpop.permute.xlu1 %3638 }
 0x5cf   : > { %v4141_v21 = vpop.permute.xlu0 %4140 }
 0x5d0   : > { %4776 = vrot.lane.b32.xlu1 %v4767_v50, %s6124_s29  ;;  %v3597_v50 = vadd.f32 %v3587_v10, %v3541_v62  ;;  %v3551_v62 = vadd.f32 %v3547_v16, %v8252_v17 }
 0x5d1   : > { %5026 = vrot.lane.b32.xlu0 %v5018_v51, %s6124_s29  ;;  %v4100_v51 = vadd.f32 %v4089_v22, %v8516_v12  ;;  %v3789_v22 = vmul.f32 %v8258_v28, %v8209_v20 }
 0x5d2   : > { %v3665_v52 = vpop.permute.xlu1 %3664  ;;  %v3623_v18 = vadd.f32 %v3613_v49, %v3551_v62  ;;  %v3567_v49 = vmul.f32 %v8264_v48, %v8142_v32  ;;  %v3656_v32 = vmul.f32 %v8069_v15, %v8630_v33 }
 0x5d3   : > { %v4167_v14 = vpop.permute.xlu0 %4166 }
 0x5d4   : > { %3590 = vrot.lane.b32.xlu1 %v3579_v40, %s6123_s16  ;;  %v4292_v40 = vmul.f32 %v8641_v19, %v8211_v39 }
 0x5d5   : > { %3588 = vrot.lane.b32.xlu0 %v3578_v55, %s6123_s16  ;;  %v8661_v55 = vstv %s5570_s23  ;;  %s5613_s23 = sld [smem:[#allocation3 + $0xc7]] }
 0x5d6   : > { %v3691_v8 = vpop.permute.xlu1 %3690 }
 0x5d7   : > { %v4193_v13 = vpop.permute.xlu0 %4192  ;;  %v3701_v10 = vadd.f32 %v3691_v8, %v3597_v50  ;;  %v4302_v8 = vmul.f32 %v8646_v60, %v8211_v39 }
 0x5d8   : > { %v4204_v12 = vadd.f32 %v4193_v13, %v4100_v51  ;;  %3616 = vrot.lane.b32.xlu1 %v3605_v59, %s6123_s16  ;;  %v3561_v13 = vadd.f32 %v3557_v31, %v8282_v35  ;;  %v3631_v51 = vmul.f32 %v8064_v41, %v8628_v7  ;;  %v3799_v59 = vmul.f32 %v8287_v9, %v8209_v20 }
 0x5d9   : > { %3614 = vrot.lane.b32.xlu0 %v3604_v58, %s6123_s16  ;;  %v8666_v25 = vadd.f32 %v3789_v22, %v3701_v10  ;;  %v3630_v58 = vmul.f32 %v8064_v41, %v8630_v33  ;;  %v4312_v22 = vmul.f32 %v8661_v55, %v8211_v39 }
 0x5da   : > { %v8668_v19 = vadd.f32 %v4292_v40, %v4204_v12  ;;  %v3717_v16 = vpop.permute.xlu1 %3716  ;;  %v3649_v31 = vadd.f32 %v3639_v5, %v3561_v13  ;;  %v4152_v40 = vadd.f32 %v4141_v21, %v8542_v34  ;;  %v3809_v34 = vmul.f32 %v8315_v1, %v8209_v20 }
 0x5db   : > { %v4219_v50 = vpop.permute.xlu0 %4218  ;;  %v3727_v56 = vadd.f32 %v3717_v16, %v3623_v18  ;;  %v3657_v18 = vmul.f32 %v8069_v15, %v8628_v7  ;;  %v8700_v21 = vstv %s8663_s28  ;;  %s9879_s28 = sshll.u32 %s6333_s1, 6 }
 0x5dc   : > { %v4230_v3 = vadd.f32 %v4219_v50, %v4126_v11  ;;  %3642 = vrot.lane.b32.xlu1 %v3631_v51, %s6123_s16  ;;  %v3571_v11 = vadd.f32 %v3567_v49, %v8310_v46  ;;  %v4178_v50 = vadd.f32 %v4167_v14, %v8554_v6  ;;  %v3683_v49 = vmul.f32 %v8074_v47, %v8628_v7 }
 0x5dd   : > { %3640 = vrot.lane.b32.xlu0 %v3630_v58, %s6123_s16  ;;  %v8684_v41 = vadd.f32 %v3799_v59, %v3727_v56  ;;  %v3682_v56 = vmul.f32 %v8074_v47, %v8630_v33  ;;  %v4322_v6 = vmul.f32 %v8700_v21, %v8211_v39  ;;  %v3709_v47 = vmul.f32 %v8079_v24, %v8628_v7 }
 0x5de   : > { %v8686_v62 = vadd.f32 %v4302_v8, %v4230_v3  ;;  %v3743_v10 = vpop.permute.xlu1 %3742  ;;  %v3675_v16 = vadd.f32 %v3665_v52, %v3571_v11 }
 0x5df   : > { %v4245_v12 = vpop.permute.xlu0 %4244  ;;  %v3753_v5 = vadd.f32 %v3743_v10, %v3649_v31  ;;  %v3819_v31 = vmul.f32 %v8341_v42, %v8209_v20 }
 0x5e0   : > { %v4256_v13 = vadd.f32 %v4245_v12, %v4152_v40  ;;  %3668 = vrot.lane.b32.xlu1 %v3657_v18, %s6123_s16  ;;  %v3708_v12 = vmul.f32 %v8079_v24, %v8630_v33  ;;  %v3735_v18 = vmul.f32 %v8084_v30, %v8628_v7  ;;  %v3761_v24 = vmul.f32 %v8089_v44, %v8628_v7 }
 0x5e1   : > { %3666 = vrot.lane.b32.xlu0 %v3656_v32, %s6123_s16  ;;  %v8703_v15 = vadd.f32 %v3809_v34, %v3753_v5  ;;  %v3734_v32 = vmul.f32 %v8084_v30, %v8630_v33  ;;  %v3760_v5 = vmul.f32 %v8089_v44, %v8630_v33  ;;  %v8739_v34 = vld [vmem:[#allocation2 + $0x11] sm:$0xff]  ;;  %v8749_v44 = vstv %s5580_s25  ;;  %s9011_s25 = scalar_lea.vmem [#allocation10], %s9879_s28 }
 0x5e2   : > { %v8705_v51 = vadd.f32 %v4312_v22, %v4256_v13  ;;  %v3769_v58 = vpop.permute.xlu1 %3768  ;;  %v8737_v13 = vld [vmem:[#allocation2 + $0x19] sm:$0xff] }
 0x5e3   : > { %v4271_v8 = vpop.permute.xlu0 %4270  ;;  %v3779_v3 = vadd.f32 %v3769_v58, %v3675_v16  ;;  %v3830_v58 = vmul.f32 %v8096_v57, %v8739_v34 }
 0x5e4   : > { %v4282_v59 = vadd.f32 %v4271_v8, %v4178_v50  ;;  %3694 = vrot.lane.b32.xlu1 %v3683_v49, %s6124_s29  ;;  %v3831_v50 = vmul.f32 %v8096_v57, %v8737_v13 }
 0x5e5   : > { %3692 = vrot.lane.b32.xlu0 %v3682_v56, %s6124_s29  ;;  %v8717_v52 = vadd.f32 %v3819_v31, %v3779_v3  ;;  %v3856_v31 = vmul.f32 %v8101_v27, %v8739_v34 }
 0x5e6   : > { %v8719_v14 = vadd.f32 %v4322_v6, %v4282_v59  ;;  %v3839_v40 = vpop.permute.xlu1 %3838  ;;  %v3857_v59 = vmul.f32 %v8101_v27, %v8737_v13 }
 0x5e7   : > { %v4341_v10 = vpop.permute.xlu0 %4340  ;;  %v3849_v8 = vadd.f32 %v3839_v40, %v8666_v25  ;;  %v8761_v25 = vstv %s5581_s13 }
 0x5e8   : > { %3720 = vrot.lane.b32.xlu1 %v3709_v47, %s6124_s29  ;;  %v4352_v49 = vadd.f32 %v4341_v10, %v8668_v19  ;;  %v4544_v47 = vmul.f32 %v8749_v44, %v8435_v36  ;;  %9835 = vst [vmem:[#allocation76_spill] sm:$0xff] %v8761_v25 }
 0x5e9   : > { %3718 = vrot.lane.b32.xlu0 %v3708_v12, %s6124_s29 }
 0x5ea   : > { %v3865_v20 = vpop.permute.xlu1 %3864 }
 0x5eb   : > { %v4367_v39 = vpop.permute.xlu0 %4366  ;;  %v3875_v19 = vadd.f32 %v3865_v20, %v8684_v41  ;;  %v4554_v41 = vmul.f32 %v8761_v25, %v8435_v36 }
 0x5ec   : > { %3746 = vrot.lane.b32.xlu1 %v3735_v18, %s6124_s29  ;;  %v4378_v40 = vadd.f32 %v4367_v39, %v8686_v62  ;;  %v8778_v62 = vstv %s5582_s0 }
 0x5ed   : > { %3744 = vrot.lane.b32.xlu0 %v3734_v32, %s6124_s29  ;;  %v9836_v32 = vld [vmem:[#allocation23_spill] sm:$0xff] }
 0x5ee   : > { %v3891_v22 = vpop.permute.xlu1 %3890  ;;  %9837 = vst [vmem:[#allocation23_spill] sm:$0xff] %v8778_v62 }
 0x5ef   : > { %v4393_v11 = vpop.permute.xlu0 %4392 }
 0x5f0   : > { %3772 = vrot.lane.b32.xlu1 %v3761_v24, %s6124_s29  ;;  %v3883_v24 = vmul.f32 %v9836_v32, %v8737_v13  ;;  %v4404_v20 = vadd.f32 %v4393_v11, %v8705_v51 }
 0x5f1   : > { %3770 = vrot.lane.b32.xlu0 %v3760_v5, %s6124_s29  ;;  %v3882_v5 = vmul.f32 %v9836_v32, %v8739_v34 }
 0x5f2   : > { %v3917_v30 = vpop.permute.xlu1 %3916 }
 0x5f3   : > { %v4419_v16 = vpop.permute.xlu0 %4418  ;;  %v3927_v51 = vadd.f32 %v3917_v30, %v8717_v52 }
 0x5f4   : > { %3842 = vrot.lane.b32.xlu1 %v3831_v50, %s6123_s16 }
 0x5f5   : > { %3840 = vrot.lane.b32.xlu0 %v3830_v58, %s6123_s16 }
 0x5f6   : > { %v3943_v56 = vpop.permute.xlu1 %3942 }
 0x5f7   : > { %v4445_v3 = vpop.permute.xlu0 %4444  ;;  %v3953_v57 = vadd.f32 %v3943_v56, %v3849_v8  ;;  %v9838_v8 = vld [vmem:[#allocation54_spill] sm:$0xff] }
 0x5f8   : > { %v4456_v6 = vadd.f32 %v4445_v3, %v4352_v49  ;;  %3868 = vrot.lane.b32.xlu1 %v3857_v59, %s6123_s16  ;;  %v9839_v59 = vld [vmem:[#allocation19_spill] sm:$0xff] }
 0x5f9   : > { %3866 = vrot.lane.b32.xlu0 %v3856_v31, %s6123_s16  ;;  %v8768_v27 = vadd.f32 %v8360_v29, %v3953_v57  ;;  %v3901_v29 = vadd.f32 %v3891_v22, %v8703_v15  ;;  %v3909_v31 = vmul.f32 %v9839_v59, %v8737_v13  ;;  %v3908_v57 = vmul.f32 %v9839_v59, %v8739_v34 }
 0x5fa   : > { %v8765_v10 = vadd.f32 %v4544_v47, %v4456_v6  ;;  %v3969_v12 = vpop.permute.xlu1 %3968  ;;  %v8793_v15 = vstv %s5583_s7  ;;  %v4430_v22 = vadd.f32 %v4419_v16, %v8719_v14  ;;  %v9843_v14 = vld [vmem:[#allocation58_spill] sm:$0xff] }
 0x5fb   : > { %v4471_v18 = vpop.permute.xlu0 %4470  ;;  %v3979_v50 = vadd.f32 %v3969_v12, %v3875_v19  ;;  %v4564_v19 = vmul.f32 %v8778_v62, %v8435_v36  ;;  %9840 = vst [vmem:[#allocation54_spill] sm:$0xff] %v8793_v15 }
 0x5fc   : > { %v4482_v58 = vadd.f32 %v4471_v18, %v4378_v40  ;;  %3894 = vrot.lane.b32.xlu1 %v3883_v24, %s6123_s16  ;;  %v9841_v40 = vld [vmem:[#allocation56_spill] sm:$0xff] }
 0x5fd   : > { %3892 = vrot.lane.b32.xlu0 %v3882_v5, %s6123_s16  ;;  %v8783_v49 = vadd.f32 %v9838_v8, %v3979_v50  ;;  %v9842_v24 = vld [vmem:[#allocation20_spill] sm:$0xff]  ;;  %v9844_v8 = vld [vmem:[#allocation22_spill] sm:$0xff] }
 0x5fe   : > { %v4558_v39 = vadd.f32 %v4554_v41, %v4482_v58  ;;  %v3995_v56 = vpop.permute.xlu1 %3994  ;;  %v3935_v5 = vmul.f32 %v9842_v24, %v8737_v13  ;;  %v3934_v50 = vmul.f32 %v9842_v24, %v8739_v34  ;;  %v9849_v24 = vld [vmem:[#allocation32_spill] sm:$0xff] }
 0x5ff   : > { %v4497_v3 = vpop.permute.xlu0 %4496  ;;  %v4005_v6 = vadd.f32 %v3995_v56, %v3901_v29  ;;  %v4574_v29 = vmul.f32 %v8793_v15, %v8435_v36  ;;  %v3961_v56 = vmul.f32 %v9844_v8, %v8737_v13 }
 0x600   : > { %v4508_v47 = vadd.f32 %v4497_v3, %v4404_v20  ;;  %3920 = vrot.lane.b32.xlu1 %v3909_v31, %s6123_s16  ;;  %v3960_v3 = vmul.f32 %v9844_v8, %v8739_v34  ;;  %v9845_v31 = vld [vmem:[#allocation27_spill] sm:$0xff] }
 0x601   : > { %3918 = vrot.lane.b32.xlu0 %v3908_v57, %s6123_s16  ;;  %v8798_v12 = vadd.f32 %v9841_v40, %v4005_v6  ;;  %v3987_v57 = vmul.f32 %v9845_v31, %v8737_v13  ;;  %v3986_v6 = vmul.f32 %v9845_v31, %v8739_v34  ;;  %v9853_v31 = vld [vmem:[#allocation24_spill] sm:$0xff] }
 0x602   : > { %v4568_v11 = vadd.f32 %v4564_v19, %v4508_v47  ;;  %v4021_v18 = vpop.permute.xlu1 %4020 }
 0x603   : > { %v4523_v32 = vpop.permute.xlu0 %4522  ;;  %v4031_v58 = vadd.f32 %v4021_v18, %v3927_v51  ;;  %v9847_v51 = vld [vmem:[#allocation34_spill] sm:$0xff] }
 0x604   : > { %v4534_v41 = vadd.f32 %v4523_v32, %v4430_v22  ;;  %3946 = vrot.lane.b32.xlu1 %v3935_v5, %s6124_s29  ;;  %v4013_v22 = vmul.f32 %v9847_v51, %v8737_v13  ;;  %v4012_v40 = vmul.f32 %v9847_v51, %v8739_v34  ;;  %v9850_v5 = vld [vmem:[#allocation36_spill] sm:$0xff]  ;;  %v4796_v51 = vmul.f32 %v8445_v26, %v8560_v38 }
 0x605   : > { %3944 = vrot.lane.b32.xlu0 %v3934_v50, %s6124_s29  ;;  %v8809_v30 = vadd.f32 %v9843_v14, %v4031_v58  ;;  %v4081_v50 = vmul.f32 %v9850_v5, %v9849_v24  ;;  %v9851_v58 = vld [vmem:[#allocation30_spill] sm:$0xff] }
 0x606   : > { %v4578_v52 = vadd.f32 %v4574_v29, %v4534_v41  ;;  %v8811_v16 = vpop.permute.xlu1 %4342  ;;  %v4082_v41 = vmul.f32 %v9850_v5, %v9851_v58 }
 0x607   : > { %v4593_v20 = vpop.permute.xlu0 %4592 }
 0x608   : > { %3972 = vrot.lane.b32.xlu1 %v3961_v56, %s6124_s29  ;;  %v4604_v29 = vadd.f32 %v4593_v20, %v8765_v10  ;;  %v9852_v56 = vld [vmem:[#allocation39_spill] sm:$0xff] }
 0x609   : > { %3970 = vrot.lane.b32.xlu0 %v3960_v3, %s6124_s29  ;;  %v4083_v3 = vmul.f32 %v9850_v5, %v9852_v56  ;;  %v9855_v5 = vld [vmem:[#allocation38_spill] sm:$0xff] }
 0x60a   : > { %v8819_v36 = vpop.permute.xlu1 %4368 }
 0x60b   : > { %v4619_v59 = vpop.permute.xlu0 %4618 }
 0x60c   : > { %3998 = vrot.lane.b32.xlu1 %v3987_v57, %s6124_s29  ;;  %v4108_v57 = vmul.f32 %v9853_v31, %v9851_v58 }
 0x60d   : > { %3996 = vrot.lane.b32.xlu0 %v3986_v6, %s6124_s29 }
 0x60e   : > { %v8827_v47 = vpop.permute.xlu1 %4394 }
 0x60f   : > { %9846 = vst [vmem:[#allocation19_spill] sm:$0xff] %v8827_v47  ;;  %v4645_v19 = vpop.permute.xlu0 %4644 }
 0x610   : > { %4024 = vrot.lane.b32.xlu1 %v4013_v22, %s6124_s29  ;;  %v4630_v22 = vadd.f32 %v4619_v59, %v4558_v39  ;;  %v4656_v26 = vadd.f32 %v4645_v19, %v4568_v11 }
 0x611   : > { %4022 = vrot.lane.b32.xlu0 %v4012_v40, %s6124_s29 }
 0x612   : > { %v8835_v18 = vpop.permute.xlu1 %4420 }
 0x613   : > { %9848 = vst [vmem:[#allocation56_spill] sm:$0xff] %v8835_v18  ;;  %v4671_v32 = vpop.permute.xlu0 %4670 }
 0x614   : > { %4090 = vrot.lane.b32.xlu1 %v4081_v50, %s6123_s16  ;;  %v4107_v50 = vmul.f32 %v9853_v31, %v9849_v24 }
 0x615   : > { %4092 = vrot.lane.b32.xlu0 %v4082_v41, %s6123_s16  ;;  %v4134_v41 = vmul.f32 %v9855_v5, %v9851_v58 }
 0x616   : > { %v8844_v14 = vpop.permute.xlu1 %4446 }
 0x617   : > { %v4697_v8 = vpop.permute.xlu0 %4696 }
 0x618   : > { %v4708_v6 = vadd.f32 %v4697_v8, %v4604_v29  ;;  %4094 = vrot.lane.b32.xlu1 %v4083_v3, %s6123_s16  ;;  %v9856_v29 = vld [vmem:[#allocation64_spill] sm:$0xff] }
 0x619   : > { %4118 = vrot.lane.b32.xlu0 %v4108_v57, %s6123_s16  ;;  %v4806_v8 = vmul.f32 %v9856_v29, %v8560_v38  ;;  %v4109_v57 = vmul.f32 %v9853_v31, %v9852_v56  ;;  %v9860_v31 = vld [vmem:[#allocation47_spill] sm:$0xff] }
 0x61a   : > { %v4800_v40 = vadd.f32 %v4796_v51, %v4708_v6  ;;  %v8854_v10 = vpop.permute.xlu1 %4472  ;;  %v9858_v6 = vld [vmem:[#allocation28_spill] sm:$0xff] }
 0x61b   : > { %9854 = vst [vmem:[#allocation20_spill] sm:$0xff] %v8854_v10  ;;  %v4723_v20 = vpop.permute.xlu0 %4722  ;;  %v4160_v51 = vmul.f32 %v9858_v6, %v9851_v58 }
 0x61c   : > { %v4734_v18 = vadd.f32 %v4723_v20, %v4630_v22  ;;  %4116 = vrot.lane.b32.xlu1 %v4107_v50, %s6123_s16  ;;  %v4816_v22 = vmul.f32 %v8458_v45, %v8560_v38  ;;  %v4186_v50 = vmul.f32 %v9860_v31, %v9851_v58  ;;  %v4682_v45 = vadd.f32 %v4671_v32, %v4578_v52 }
 0x61d   : > { %4144 = vrot.lane.b32.xlu0 %v4134_v41, %s6123_s16 }
 0x61e   : > { %v4810_v39 = vadd.f32 %v4806_v8, %v4734_v18  ;;  %v8864_v59 = vpop.permute.xlu1 %4498  ;;  %v4133_v18 = vmul.f32 %v9855_v5, %v9849_v24  ;;  %v9861_v8 = vld [vmem:[#allocation25_spill] sm:$0xff] }
 0x61f   : > { %9857 = vst [vmem:[#allocation58_spill] sm:$0xff] %v8864_v59  ;;  %v4749_v3 = vpop.permute.xlu0 %4748 }
 0x620   : > { %v4760_v15 = vadd.f32 %v4749_v3, %v4656_v26  ;;  %4120 = vrot.lane.b32.xlu1 %v4109_v57, %s6123_s16  ;;  %v4212_v26 = vmul.f32 %v9861_v8, %v9851_v58  ;;  %v4826_v57 = vmul.f32 %v8460_v4, %v8560_v38 }
 0x621   : > { %4170 = vrot.lane.b32.xlu0 %v4160_v51, %s6123_s16 }
 0x622   : > { %v8874_v20 = vadd.f32 %v4816_v22, %v4760_v15  ;;  %v8876_v11 = vpop.permute.xlu1 %4524  ;;  %v4135_v15 = vmul.f32 %v9855_v5, %v9852_v56  ;;  %v4159_v22 = vmul.f32 %v9858_v6, %v9849_v24  ;;  %v9863_v5 = vld [vmem:[#allocation31_spill] sm:$0xff] }
 0x623   : > { %9859 = vst [vmem:[#allocation22_spill] sm:$0xff] %v8876_v11  ;;  %v4845_v19 = vpop.permute.xlu0 %4844  ;;  %v4187_v11 = vmul.f32 %v9860_v31, %v9852_v56 }
 0x624   : > { %4142 = vrot.lane.b32.xlu1 %v4133_v18, %s6123_s16  ;;  %v4238_v18 = vmul.f32 %v9863_v5, %v9851_v58  ;;  %v4856_v4 = vadd.f32 %v4845_v19, %v4800_v40 }
 0x625   : > { %4196 = vrot.lane.b32.xlu0 %v4186_v50, %s6124_s29 }
 0x626   : > { %v8884_v41 = vpop.permute.xlu1 %4594 }
 0x627   : > { %v4775_v29 = vpop.permute.xlu0 %4774 }
 0x628   : > { %v4786_v3 = vadd.f32 %v4775_v29, %v4682_v45  ;;  %4146 = vrot.lane.b32.xlu1 %v4135_v15, %s6123_s16  ;;  %v4161_v45 = vmul.f32 %v9858_v6, %v9852_v56  ;;  %v9865_v29 = vld [vmem:[#allocation29_spill] sm:$0xff]  ;;  %v4185_v6 = vmul.f32 %v9860_v31, %v9849_v24  ;;  %v8942_v31 = vstv %s5611_s9 }
 0x629   : > { %4222 = vrot.lane.b32.xlu0 %v4212_v26, %s6124_s29  ;;  %v4264_v15 = vmul.f32 %v9865_v29, %v9851_v58  ;;  %v9867_v58 = vld [vmem:[#allocation37_spill] sm:$0xff]  ;;  %9874 = vst [vmem:[#allocation64_spill] sm:$0xff] %v8942_v31 }
 0x62a   : > { %v8894_v51 = vadd.f32 %v4826_v57, %v4786_v3  ;;  %v8896_v52 = vpop.permute.xlu1 %4620  ;;  %v8910_v3 = vld [vmem:[#allocation2 + $0x38] sm:$0xff] }
 0x62b   : > { %9862 = vst [vmem:[#allocation27_spill] sm:$0xff] %v8896_v52  ;;  %v4871_v32 = vpop.permute.xlu0 %4870 }
 0x62c   : > { %4168 = vrot.lane.b32.xlu1 %v4159_v22, %s6123_s16  ;;  %v4334_v22 = vmul.f32 %v9867_v58, %v8910_v3 }
 0x62d   : > { %4248 = vrot.lane.b32.xlu0 %v4238_v18, %s6124_s29  ;;  %v8920_v18 = vstv %s5605_s11 }
 0x62e   : > { %v8904_v38 = vpop.permute.xlu1 %4646  ;;  %9868 = vst [vmem:[#allocation36_spill] sm:$0xff] %v8920_v18 }
 0x62f   : > { %9864 = vst [vmem:[#allocation34_spill] sm:$0xff] %v8904_v38  ;;  %v4949_v50 = vpop.permute.xlu0 %4948  ;;  %v9870_v38 = vld [vmem:[#allocation26_spill] sm:$0xff] }
 0x630   : > { %v4960_v26 = vadd.f32 %v4949_v50, %v4856_v4  ;;  %4172 = vrot.lane.b32.xlu1 %v4161_v45, %s6123_s16  ;;  %v4882_v50 = vadd.f32 %v4871_v32, %v4810_v39  ;;  %v8924_v45 = vstv %s5610_s26  ;;  %v4360_v59 = vmul.f32 %v9870_v38, %v8910_v3  ;;  %s6125_s26 = smov [#allocation10]  }
 0x631   : > { %4274 = vrot.lane.b32.xlu0 %v4264_v15, %s6124_s29  ;;  %9869 = vst [vmem:[#allocation30_spill] sm:$0xff] %v8924_v45  ;;  %v8940_v32 = vstv %s5606_s8 }
 0x632   : > { %vm5042_vm7 = vcmp.gt.f32.partialorder %v4960_v26, 0.0  ;;  %v5046_v40 = vmul.f32 0.1, %v4960_v26  ;;  %v8914_v19 = vpop.permute.xlu1 %4672  ;;  %9873 = vst [vmem:[#allocation38_spill] sm:$0xff] %v8940_v32 }
 0x633   : > { %9866 = vst [vmem:[#allocation32_spill] sm:$0xff] %v8914_v19  ;;  %v4897_v57 = vpop.permute.xlu0 %4896 }
 0x634   : > { %v5050_v4 = vsel %vm5042_vm7, %v4960_v26, %v5046_v40  ;;  %4194 = vrot.lane.b32.xlu1 %v4185_v6, %s6124_s29  ;;  %v8933_v26 = vstv %s5604_s10  ;;  %v8935_v40 = vstv %s5609_s14  ;;  %s6044_s10 = sshll.u32 %s6125_s26, 4  ;;  %s6045_s10 = int_to_ptr.vmem [resolvable:$false] %s6044_s10 }
 0x635   : > { %4344 = vrot.lane.b32.xlu0 %v4334_v22, %s6123_s16  ;;  %v5095_v62 = vmul.f32 %v8920_v18, %v5050_v4  ;;  %9871 = vst [vmem:[#allocation39_spill] sm:$0xff] %v8933_v26  ;;  %9872 = vst [vmem:[#allocation24_spill] sm:$0xff] %v8935_v40  ;;  %v5150_v39 = vmul.f32 %v8924_v45, %v5050_v4  ;;  %v4386_v4 = vmul.f32 %v8250_v23, %v8910_v3  ;;  %s6046_s14 = scalar_lea.vmem %s6045_s10, 2048 }
 0x636   : > { %v8926_v15 = vpop.permute.xlu1 %4698 }
 0x637   : > { %v4975_v19 = vpop.permute.xlu0 %4974  ;;  %v5154_v45 = vadd.f32 %v5150_v39, %v8935_v40  ;;  %v4412_v39 = vmul.f32 %v8270_v53, %v8910_v3  ;;  %v5959_v40 = vld [vmem:[#allocation2 + $0x1a] sm:$0xff] }
 0x638   : > { %v4986_v47 = vadd.f32 %v4975_v19, %v4882_v50  ;;  %4198 = vrot.lane.b32.xlu1 %v4187_v11, %s6124_s29  ;;  %v4211_v50 = vmul.f32 %v9861_v8, %v9849_v24  ;;  %v5099_v11 = vadd.f32 %v5095_v62, %v8933_v26 }
 0x639   : > { %4370 = vrot.lane.b32.xlu0 %v4360_v59, %s6123_s16 }
 0x63a   : > { %vm5054_vm1 = vcmp.gt.f32.partialorder %v4986_v47, 0.0  ;;  %v5058_v6 = vmul.f32 0.1, %v4986_v47  ;;  %v8944_v22 = vpop.permute.xlu1 %4724 }
 0x63b   : > { %9875 = vst [vmem:[#allocation28_spill] sm:$0xff] %v8944_v22  ;;  %v4923_v19 = vpop.permute.xlu0 %4922  ;;  %v4908_v22 = vadd.f32 %v4897_v57, %v8874_v20  ;;  %v3538_v20 = vmul.f32 %v8215_v63, %v8630_v33  ;;  %v8970_v57 = vstv %s5612_s15 }
 0x63c   : > { %v5062_v59 = vsel %vm5054_vm1, %v4986_v47, %v5058_v6  ;;  %4220 = vrot.lane.b32.xlu1 %v4211_v50, %s6124_s29  ;;  %v4213_v47 = vmul.f32 %v9861_v8, %v9852_v56  ;;  %9877 = vst [vmem:[#allocation25_spill] sm:$0xff] %v8970_v57  ;;  %v4438_v50 = vmul.f32 %v8300_v61, %v8910_v3 }
 0x63d   : > { %v5105_v18 = vmul.f32 %v8940_v32, %v5062_v59  ;;  %v5160_v52 = vmul.f32 %v8942_v31, %v5062_v59  ;;  %4396 = vrot.lane.b32.xlu0 %v4386_v4, %s6123_s16  ;;  %v8963_v59 = vstv %s5607_s17  ;;  %v8986_v31 = vstv %s5613_s23 }
 0x63e   : > { %v8957_v10 = vpop.permute.xlu1 %4750  ;;  %9876 = vst [vmem:[#allocation47_spill] sm:$0xff] %v8963_v59 }
 0x63f   : > { %v5109_v24 = vadd.f32 %v5105_v18, %v5099_v11  ;;  %v5164_v25 = vadd.f32 %v5160_v52, %v5154_v45  ;;  %v5001_v62 = vpop.permute.xlu0 %5000  ;;  %v4934_v52 = vadd.f32 %v4923_v19, %v8894_v51  ;;  %v5958_v45 = vld [vmem:[#allocation2 + $0xa] sm:$0xff] }
 0x640   : > { %v5012_v6 = vadd.f32 %v5001_v62, %v4908_v22  ;;  %4224 = vrot.lane.b32.xlu1 %v4213_v47, %s6124_s29  ;;  %v4237_v22 = vmul.f32 %v5958_v45, %v9863_v5  ;;  %v3548_v62 = vmul.f32 %v8229_v2, %v8630_v33  ;;  %v3542_v47 = vadd.f32 %v3538_v20, %v8227_v43 }
 0x641   : > { %4422 = vrot.lane.b32.xlu0 %v4412_v39, %s6123_s16  ;;  %v8984_v39 = vstv %s5608_s12 }
 0x642   : > { %vm5066_vm2 = vcmp.gt.f32.partialorder %v5012_v6, 0.0  ;;  %v5070_v18 = vmul.f32 0.1, %v5012_v6  ;;  %v8972_v56 = vpop.permute.xlu1 %4776 }
 0x643   : > { %v5027_v8 = vpop.permute.xlu0 %5026 }
 0x644   : > { %v5074_v4 = vsel %vm5066_vm2, %v5012_v6, %v5070_v18  ;;  %v5038_v11 = vadd.f32 %v5027_v8, %v4934_v52  ;;  %4246 = vrot.lane.b32.xlu1 %v4237_v22, %s6124_s29  ;;  %v4464_v22 = vmul.f32 %v8320_v0, %v8910_v3 }
 0x645   : > { %v5115_v51 = vmul.f32 %v8963_v59, %v5074_v4  ;;  %v5170_v19 = vmul.f32 %v8970_v57, %v5074_v4  ;;  %4448 = vrot.lane.b32.xlu0 %v4438_v50, %s6124_s29  ;;  %v4239_v59 = vmul.f32 %v5959_v40, %v9863_v5 }
 0x646   : > { %vm5078_vm3 = vcmp.gt.f32.partialorder %v5038_v11, 0.0  ;;  %v5082_v6 = vmul.f32 0.1, %v5038_v11  ;;  %v3591_v8 = vpop.permute.xlu1 %3590 }
 0x647   : > { %v5119_v52 = vadd.f32 %v5115_v51, %v5109_v24  ;;  %v5174_v18 = vadd.f32 %v5170_v19, %v5164_v25  ;;  %v3589_v32 = vpop.permute.xlu0 %3588  ;;  %v3552_v25 = vadd.f32 %v3548_v62, %v8252_v17  ;;  %v3558_v24 = vmul.f32 %v8248_v54, %v8630_v33 }
 0x648   : > { %v5086_v4 = vsel %vm5078_vm3, %v5038_v11, %v5082_v6  ;;  %v3598_v50 = vadd.f32 %v3589_v32, %v3542_v47  ;;  %4250 = vrot.lane.b32.xlu1 %v4239_v59, %s6124_s29  ;;  %v4263_v11 = vmul.f32 %v5958_v45, %v9865_v29  ;;  %v4490_v32 = vmul.f32 %v8329_v37, %v8910_v3 }
 0x649   : > { %v5125_v20 = vmul.f32 %v8984_v39, %v5086_v4  ;;  %v5180_v57 = vmul.f32 %v8986_v31, %v5086_v4  ;;  %4474 = vrot.lane.b32.xlu0 %v4464_v22, %s6124_s29  ;;  %v3568_v62 = vmul.f32 %v8264_v48, %v8630_v33  ;;  %v4265_v4 = vmul.f32 %v5959_v40, %v9865_v29 }
 0x64a   : > { %v3617_v19 = vpop.permute.xlu1 %3616  ;;  %v3539_v33 = vmul.f32 %v8215_v63, %v8628_v7  ;;  %v3549_v40 = vmul.f32 %v8229_v2, %v8628_v7  ;;  %v9880_v63 = vld [vmem:[#allocation60_spill] sm:$0xff]  ;;  %v3559_v2 = vmul.f32 %v8248_v54, %v8628_v7 }
 0x64b   : > { %v5129_v51 = vadd.f32 %v5125_v20, %v5119_v52  ;;  %v5184_v5 = vadd.f32 %v5180_v57, %v5174_v18  ;;  %v3615_v26 = vpop.permute.xlu0 %3614  ;;  %v3562_v57 = vadd.f32 %v3558_v24, %v8282_v35  ;;  %v9019_v24 = vld [vmem:[#allocation2 + $0x40] sm:$0xff]  ;;  %v3572_v29 = vadd.f32 %v3568_v62, %v8310_v46 }
 0x64c   : > { %v3624_v47 = vadd.f32 %v3615_v26, %v3552_v25  ;;  %4272 = vrot.lane.b32.xlu1 %v4263_v11, %s6124_s29  ;;  %v9878_v26 = vld [vmem:[#allocation52_spill] sm:$0xff]  ;;  %v3553_v62 = vadd.f32 %v3549_v40, %v8252_v17 }
 0x64d   : > { %vm5133_vm5 = vcmp.gt.f32.partialorder %v5129_v51, 0.0  ;;  %v5137_v59 = vmul.f32 0.1, %v5129_v51  ;;  %vm5188_vm6 = vcmp.gt.f32.partialorder %v5184_v5, 0.0  ;;  %v5192_v6 = vmul.f32 0.1, %v5184_v5  ;;  %4500 = vrot.lane.b32.xlu0 %v4490_v32, %s6124_s29 }
 0x64e   : > { %v3643_v18 = vpop.permute.xlu1 %3642  ;;  %v4516_v20 = vmul.f32 %v9878_v26, %v8910_v3  ;;  %v4335_v32 = vmul.f32 %v9867_v58, %v9019_v24  ;;  %v4361_v58 = vmul.f32 %v9870_v38, %v9019_v24  ;;  %v3625_v54 = vadd.f32 %v3617_v19, %v3553_v62 }
 0x64f   : > { %v5141_v45 = vsel %vm5133_vm5, %v5129_v51, %v5137_v59  ;;  %v5196_v52 = vsel %vm5188_vm6, %v5184_v5, %v5192_v6  ;;  %v3641_v22 = vpop.permute.xlu0 %3640  ;;  %v9021_v51 = vld [vmem:[#allocation2 + $0x39] sm:$0xff]  ;;  %v3543_v6 = vadd.f32 %v3539_v33, %v8227_v43  ;;  %v3563_v38 = vadd.f32 %v3559_v2, %v8282_v35 }
 0x650   : > { %5201 = vst.msk [vmem:[%s9011_s25] sm:$0xff] %vm5200_vm4, %v5141_v45  ;;  %5614 = vst.msk [vmem:[%s9011_s25 + $0x20] sm:$0xff] %vm5200_vm4, %v5196_v52  ;;  %v3650_v25 = vadd.f32 %v3641_v22, %v3562_v57  ;;  %4276 = vrot.lane.b32.xlu1 %v4265_v4, %s6124_s29  ;;  %v4586_v59 = vmul.f32 %v9880_v63, %v9021_v51  ;;  %v9881_v4 = vld [vmem:[#allocation59_spill] sm:$0xff]  ;;  %v3801_v19 = vmul.f32 %v8287_v9, %v8737_v13 }
 0x651   : > { %4526 = vrot.lane.b32.xlu0 %v4516_v20, %s6124_s29  ;;  %v3599_v45 = vadd.f32 %v3591_v8, %v3543_v6  ;;  %v4612_v20 = vmul.f32 %v9881_v4, %v9021_v51  ;;  %v3790_v8 = vmul.f32 %v8258_v28, %v8739_v34  ;;  %v3800_v62 = vmul.f32 %v8287_v9, %v8739_v34 }
 0x652   : > { %v3669_v5 = vpop.permute.xlu1 %3668 }
 0x653   : > { %v3667_v11 = vpop.permute.xlu0 %3666 }
 0x654   : > { %v3676_v57 = vadd.f32 %v3667_v11, %v3572_v29  ;;  %4346 = vrot.lane.b32.xlu1 %v4335_v32, %s6123_s16  ;;  %v3791_v29 = vmul.f32 %v8258_v28, %v8737_v13  ;;  %v3569_v11 = vmul.f32 %v8264_v48, %v8628_v7  ;;  %v9882_v28 = vld [vmem:[#allocation62_spill] sm:$0xff]  ;;  %v3651_v48 = vadd.f32 %v3643_v18, %v3563_v38 }
 0x655   : > { %4596 = vrot.lane.b32.xlu0 %v4586_v59, %s6123_s16  ;;  %v4387_v59 = vmul.f32 %v8250_v23, %v9019_v24  ;;  %v4638_v6 = vmul.f32 %v9882_v28, %v9021_v51  ;;  %v3810_v18 = vmul.f32 %v8315_v1, %v8739_v34  ;;  %v4439_v38 = vmul.f32 %v8300_v61, %v9019_v24 }
 0x656   : > { %v3695_v52 = vpop.permute.xlu1 %3694  ;;  %v3573_v23 = vadd.f32 %v3569_v11, %v8310_v46 }
 0x657   : > { %v3693_v22 = vpop.permute.xlu0 %3692  ;;  %v3703_v43 = vadd.f32 %v3695_v52, %v3599_v45 }
 0x658   : > { %v3702_v33 = vadd.f32 %v3693_v22, %v3598_v50  ;;  %4372 = vrot.lane.b32.xlu1 %v4361_v58, %s6123_s16  ;;  %v9883_v58 = vld [vmem:[#allocation67_spill] sm:$0xff]  ;;  %v3677_v46 = vadd.f32 %v3669_v5, %v3573_v23 }
 0x659   : > { %4622 = vrot.lane.b32.xlu0 %v4612_v20, %s6123_s16  ;;  %v9048_v17 = vadd.f32 %v3791_v29, %v3703_v43  ;;  %v4664_v20 = vmul.f32 %v9883_v58, %v9021_v51 }
 0x65a   : > { %v3794_v40 = vadd.f32 %v3790_v8, %v3702_v33  ;;  %v3721_v50 = vpop.permute.xlu1 %3720  ;;  %v3811_v33 = vmul.f32 %v8315_v1, %v8737_v13  ;;  %v3821_v1 = vmul.f32 %v8341_v42, %v8737_v13 }
 0x65b   : > { %v3719_v32 = vpop.permute.xlu0 %3718  ;;  %v3729_v45 = vadd.f32 %v3721_v50, %v3625_v54 }
 0x65c   : > { %v3728_v52 = vadd.f32 %v3719_v32, %v3624_v47  ;;  %4398 = vrot.lane.b32.xlu1 %v4387_v59, %s6123_s16  ;;  %v4413_v47 = vmul.f32 %v8270_v53, %v9019_v24  ;;  %v3820_v59 = vmul.f32 %v8341_v42, %v8739_v34  ;;  %v4491_v34 = vmul.f32 %v8329_v37, %v9019_v24  ;;  %v9108_v37 = vld [vmem:[#allocation2 + $0x41] sm:$0xff] }
 0x65d   : > { %4648 = vrot.lane.b32.xlu0 %v4638_v6, %s6123_s16  ;;  %v9063_v35 = vadd.f32 %v3801_v19, %v3729_v45 }
 0x65e   : > { %v3804_v7 = vadd.f32 %v3800_v62, %v3728_v52  ;;  %v3747_v2 = vpop.permute.xlu1 %3746  ;;  %v4465_v52 = vmul.f32 %v8320_v0, %v9019_v24 }
 0x65f   : > { %v3745_v22 = vpop.permute.xlu0 %3744  ;;  %v3755_v43 = vadd.f32 %v3747_v2, %v3651_v48  ;;  %v9886_v48 = vld [vmem:[#allocation70_spill] sm:$0xff] }
 0x660   : > { %v3754_v9 = vadd.f32 %v3745_v22, %v3650_v25  ;;  %4424 = vrot.lane.b32.xlu1 %v4413_v47, %s6123_s16  ;;  %v9884_v25 = vld [vmem:[#allocation68_spill] sm:$0xff]  ;;  %v4742_v23 = vmul.f32 %v9886_v48, %v9021_v51 }
 0x661   : > { %4674 = vrot.lane.b32.xlu0 %v4664_v20, %s6123_s16  ;;  %v9076_v29 = vadd.f32 %v3811_v33, %v3755_v43  ;;  %v4690_v11 = vmul.f32 %v9884_v25, %v9021_v51  ;;  %v9104_v47 = vld [vmem:[#allocation2 + $0x3a] sm:$0xff]  ;;  %v9887_v20 = vld [vmem:[#allocation71_spill] sm:$0xff] }
 0x662   : > { %v3814_v8 = vadd.f32 %v3810_v18, %v3754_v9  ;;  %v3773_v53 = vpop.permute.xlu1 %3772  ;;  %v4838_v43 = vmul.f32 %v9104_v47, %v9887_v20  ;;  %v4587_v18 = vmul.f32 %v9880_v63, %v9108_v37 }
 0x663   : > { %v3771_v54 = vpop.permute.xlu0 %3770  ;;  %v3781_v50 = vadd.f32 %v3773_v53, %v3677_v46  ;;  %v9888_v46 = vld [vmem:[#allocation21_spill] sm:$0xff] }
 0x664   : > { %v3780_v32 = vadd.f32 %v3771_v54, %v3676_v57  ;;  %4450 = vrot.lane.b32.xlu1 %v4439_v38, %s6124_s29  ;;  %v9885_v57 = vld [vmem:[#allocation69_spill] sm:$0xff] }
 0x665   : > { %4700 = vrot.lane.b32.xlu0 %v4690_v11, %s6124_s29  ;;  %v9088_v5 = vadd.f32 %v3821_v1, %v3781_v50  ;;  %v4716_v19 = vmul.f32 %v9885_v57, %v9021_v51  ;;  %v4613_v11 = vmul.f32 %v9881_v4, %v9108_v37  ;;  %v9889_v50 = vld [vmem:[#allocation17_spill] sm:$0xff]  ;;  %v4639_v4 = vmul.f32 %v9882_v28, %v9108_v37 }
 0x666   : > { %v3824_v6 = vadd.f32 %v3820_v59, %v3780_v32  ;;  %v3843_v45 = vpop.permute.xlu1 %3842  ;;  %v4864_v32 = vmul.f32 %v9104_v47, %v9889_v50  ;;  %v4665_v28 = vmul.f32 %v9883_v58, %v9108_v37  ;;  %v4691_v58 = vmul.f32 %v9884_v25, %v9108_v37 }
 0x667   : > { %v3841_v61 = vpop.permute.xlu0 %3840 }
 0x668   : > { %v3850_v62 = vadd.f32 %v3841_v61, %v3794_v40  ;;  %4476 = vrot.lane.b32.xlu1 %v4465_v52, %s6124_s29  ;;  %v4517_v40 = vmul.f32 %v9878_v26, %v9019_v24  ;;  %v4768_v26 = vmul.f32 %v9888_v46, %v9021_v51  ;;  %v9891_v52 = vld [vmem:[#allocation44_spill] sm:$0xff] }
 0x669   : > { %4726 = vrot.lane.b32.xlu0 %v4716_v19, %s6124_s29 }
 0x66a   : > { %v3869_v42 = vpop.permute.xlu1 %3868 }
 0x66b   : > { %v3867_v13 = vpop.permute.xlu0 %3866  ;;  %v3877_v59 = vadd.f32 %v3869_v42, %v9063_v35  ;;  %v9893_v42 = vld [vmem:[#allocation40_spill] sm:$0xff] }
 0x66c   : > { %v3876_v2 = vadd.f32 %v3867_v13, %v3804_v7  ;;  %4502 = vrot.lane.b32.xlu1 %v4491_v34, %s6124_s29  ;;  %v9892_v13 = vld [vmem:[#allocation15_spill] sm:$0xff] }
 0x66d   : > { %4752 = vrot.lane.b32.xlu0 %v4742_v23, %s6124_s29  ;;  %v4942_v34 = vmul.f32 %v9104_v47, %v9892_v13 }
 0x66e   : > { %v3895_v0 = vpop.permute.xlu1 %3894 }
 0x66f   : > { %v3893_v22 = vpop.permute.xlu0 %3892  ;;  %v3903_v35 = vadd.f32 %v3895_v0, %v9076_v29  ;;  %v9896_v0 = vld [vmem:[#allocation35_spill] sm:$0xff] }
 0x670   : > { %v3902_v9 = vadd.f32 %v3893_v22, %v3814_v8  ;;  %4528 = vrot.lane.b32.xlu1 %v4517_v40, %s6124_s29  ;;  %v3851_v8 = vadd.f32 %v3843_v45, %v9048_v17  ;;  %v9894_v40 = vld [vmem:[#allocation46_spill] sm:$0xff] }
 0x671   : > { %4848 = vrot.lane.b32.xlu0 %v4838_v43, %s6123_s16 }
 0x672   : > { %v3921_v7 = vpop.permute.xlu1 %3920 }
 0x673   : > { %v3919_v33 = vpop.permute.xlu0 %3918  ;;  %v3929_v29 = vadd.f32 %v3921_v7, %v9088_v5  ;;  %v9900_v7 = vld [vmem:[#allocation65_spill] sm:$0xff] }
 0x674   : > { %v3928_v53 = vadd.f32 %v3919_v33, %v3824_v6  ;;  %4598 = vrot.lane.b32.xlu1 %v4587_v18, %s6123_s16  ;;  %v9890_v6 = vld [vmem:[#allocation33_spill] sm:$0xff] }
 0x675   : > { %4778 = vrot.lane.b32.xlu0 %v4768_v26, %s6124_s29  ;;  %v9895_v26 = vld [vmem:[#allocation16_spill] sm:$0xff] }
 0x676   : > { %v3947_v54 = vpop.permute.xlu1 %3946 }
 0x677   : > { %v3945_v38 = vpop.permute.xlu0 %3944  ;;  %v3955_v1 = vadd.f32 %v3947_v54, %v3851_v8  ;;  %v4890_v8 = vmul.f32 %v9104_v47, %v9895_v26 }
 0x678   : > { %v3954_v63 = vadd.f32 %v3945_v38, %v3850_v62  ;;  %4624 = vrot.lane.b32.xlu1 %v4613_v11, %s6123_s16  ;;  %v9897_v11 = vld [vmem:[#allocation49_spill] sm:$0xff] }
 0x679   : > { %4874 = vrot.lane.b32.xlu0 %v4864_v32, %s6123_s16  ;;  %v4047_v17 = vadd.f32 %v9891_v52, %v3955_v1 }
 0x67a   : > { %v4046_v61 = vadd.f32 %v9890_v6, %v3954_v63  ;;  %v3973_v45 = vpop.permute.xlu1 %3972 }
 0x67b   : > { %v3971_v19 = vpop.permute.xlu0 %3970  ;;  %v3981_v23 = vadd.f32 %v3973_v45, %v3877_v59  ;;  %v9898_v59 = vld [vmem:[#allocation18_spill] sm:$0xff] }
 0x67c   : > { %v3980_v62 = vadd.f32 %v3971_v19, %v3876_v2  ;;  %4650 = vrot.lane.b32.xlu1 %v4639_v4, %s6123_s16  ;;  %v4968_v6 = vmul.f32 %v9104_v47, %v9898_v59  ;;  %v9899_v45 = vld [vmem:[#allocation42_spill] sm:$0xff] }
 0x67d   : > { %4952 = vrot.lane.b32.xlu0 %v4942_v34, %s6124_s29  ;;  %v4057_v43 = vadd.f32 %v9894_v40, %v3981_v23  ;;  %v4717_v23 = vmul.f32 %v9885_v57, %v9108_v37 }
 0x67e   : > { %v4056_v22 = vadd.f32 %v9893_v42, %v3980_v62  ;;  %v3999_v33 = vpop.permute.xlu1 %3998  ;;  %v9901_v62 = vld [vmem:[#allocation72_spill] sm:$0xff] }
 0x67f   : > { %v3997_v18 = vpop.permute.xlu0 %3996  ;;  %v4007_v54 = vadd.f32 %v3999_v33, %v3903_v35  ;;  %v4916_v25 = vmul.f32 %v9104_v47, %v9901_v62  ;;  %v4743_v33 = vmul.f32 %v9886_v48, %v9108_v37 }
 0x680   : > { %v4006_v2 = vadd.f32 %v3997_v18, %v3902_v9  ;;  %4676 = vrot.lane.b32.xlu1 %v4665_v28, %s6123_s16  ;;  %v9902_v18 = vld [vmem:[#allocation73_spill] sm:$0xff] }
 0x681   : > { %4900 = vrot.lane.b32.xlu0 %v4890_v8, %s6123_s16  ;;  %v4067_v32 = vadd.f32 %v9897_v11, %v4007_v54  ;;  %v4994_v28 = vmul.f32 %v9104_v47, %v9902_v18  ;;  %v9171_v54 = vld [vmem:[#allocation2 + $0x32] sm:$0xff] }
 0x682   : > { %v4066_v38 = vadd.f32 %v9896_v0, %v4006_v2  ;;  %v4025_v1 = vpop.permute.xlu1 %4024  ;;  %v4837_v2 = vmul.f32 %v9171_v54, %v9887_v20 }
 0x683   : > { %v4023_v63 = vpop.permute.xlu0 %4022  ;;  %v4033_v52 = vadd.f32 %v4025_v1, %v3929_v29  ;;  %v9903_v29 = vld [vmem:[#allocation74_spill] sm:$0xff] }
 0x684   : > { %v4032_v9 = vadd.f32 %v4023_v63, %v3928_v53  ;;  %4702 = vrot.lane.b32.xlu1 %v4691_v58, %s6124_s29  ;;  %v5020_v48 = vmul.f32 %v9104_v47, %v9903_v29  ;;  %v9182_v1 = vld [vmem:[#allocation2 + $0x42] sm:$0xff] }
 0x685   : > { %4978 = vrot.lane.b32.xlu0 %v4968_v6, %s6124_s29  ;;  %v4077_v19 = vadd.f32 %v9900_v7, %v4033_v52  ;;  %v4839_v63 = vmul.f32 %v9182_v1, %v9887_v20 }
 0x686   : > { %v4076_v5 = vadd.f32 %v9899_v45, %v4032_v9  ;;  %v4091_v4 = vpop.permute.xlu1 %4090  ;;  %v9904_v45 = vld [vmem:[#allocation75_spill] sm:$0xff] }
 0x687   : > { %v4093_v34 = vpop.permute.xlu0 %4092  ;;  %v9159_v35 = vadd.f32 %v4091_v4, %v8768_v27  ;;  %v4294_v7 = vmul.f32 %v9904_v45, %v8910_v3 }
 0x688   : > { %v4102_v53 = vadd.f32 %v4093_v34, %v4046_v61  ;;  %4728 = vrot.lane.b32.xlu1 %v4717_v23, %s6124_s29 }
 0x689   : > { %4926 = vrot.lane.b32.xlu0 %v4916_v25, %s6123_s16 }
 0x68a   : > { %v4095_v42 = vpop.permute.xlu1 %4094 }
 0x68b   : > { %v4119_v40 = vpop.permute.xlu0 %4118  ;;  %v9167_v57 = vadd.f32 %v4095_v42, %v4047_v17  ;;  %v4865_v42 = vmul.f32 %v9182_v1, %v9889_v50 }
 0x68c   : > { %v4128_v8 = vadd.f32 %v4119_v40, %v4056_v22  ;;  %4754 = vrot.lane.b32.xlu1 %v4743_v33, %s6124_s29 }
 0x68d   : > { %5004 = vrot.lane.b32.xlu0 %v4994_v28, %s6124_s29 }
 0x68e   : > { %v4117_v27 = vpop.permute.xlu1 %4116 }
 0x68f   : > { %v4145_v61 = vpop.permute.xlu0 %4144  ;;  %v9178_v0 = vadd.f32 %v4117_v27, %v8783_v49 }
 0x690   : > { %v4154_v17 = vadd.f32 %v4145_v61, %v4066_v38  ;;  %4846 = vrot.lane.b32.xlu1 %v4837_v2, %s6123_s16  ;;  %v4769_v38 = vmul.f32 %v9888_v46, %v9108_v37  ;;  %v4304_v46 = vmul.f32 %v8646_v60, %v8910_v3  ;;  %v4941_v61 = vmul.f32 %v9171_v54, %v9892_v13 }
 0x691   : > { %5030 = vrot.lane.b32.xlu0 %v5020_v48, %s6124_s29 }
 0x692   : > { %v4121_v22 = vpop.permute.xlu1 %4120 }
 0x693   : > { %v4171_v11 = vpop.permute.xlu0 %4170  ;;  %v9186_v58 = vadd.f32 %v4121_v22, %v4057_v43 }
 0x694   : > { %v4180_v6 = vadd.f32 %v4171_v11, %v4076_v5  ;;  %4850 = vrot.lane.b32.xlu1 %v4839_v63, %s6123_s16  ;;  %v4863_v5 = vmul.f32 %v9171_v54, %v9889_v50  ;;  %v4324_v50 = vmul.f32 %v8700_v21, %v8910_v3  ;;  %v4943_v11 = vmul.f32 %v9182_v1, %v9892_v13  ;;  %v9221_v63 = vld [vmem:[#allocation2 + $0x30] sm:$0xff] }
 0x696   : > { %v4143_v47 = vpop.permute.xlu1 %4142 }
 0x697   : > { %v4197_v49 = vpop.permute.xlu0 %4196  ;;  %v9192_v52 = vadd.f32 %v4143_v47, %v8798_v12  ;;  %v4293_v47 = vmul.f32 %v9221_v63, %v9904_v45 }
 0x698   : > { %v4206_v9 = vadd.f32 %v4197_v49, %v4102_v53  ;;  %4780 = vrot.lane.b32.xlu1 %v4769_v38, %s6124_s29 }
 0x69a   : > { %v4298_v20 = vadd.f32 %v4294_v7, %v4206_v9  ;;  %v4147_v43 = vpop.permute.xlu1 %4146  ;;  %v4889_v9 = vmul.f32 %v9171_v54, %v9895_v26 }
 0x69b   : > { %v4223_v4 = vpop.permute.xlu0 %4222  ;;  %v9199_v34 = vadd.f32 %v4147_v43, %v4067_v32  ;;  %v4314_v32 = vmul.f32 %v8661_v55, %v8910_v3 }
 0x69c   : > { %v4232_v23 = vadd.f32 %v4223_v4, %v4128_v8  ;;  %4872 = vrot.lane.b32.xlu1 %v4863_v5, %s6123_s16  ;;  %v4295_v4 = vmul.f32 %v9904_v45, %v9019_v24  ;;  %v9237_v5 = vld [vmem:[#allocation2 + $0x31] sm:$0xff] }
 0x69e   : > { %v4308_v12 = vadd.f32 %v4304_v46, %v4232_v23  ;;  %v4169_v25 = vpop.permute.xlu1 %4168  ;;  %v4545_v23 = vmul.f32 %v9237_v5, %v8749_v44 }
 0x69f   : > { %v4249_v53 = vpop.permute.xlu0 %4248  ;;  %v9207_v40 = vadd.f32 %v4169_v25, %v8809_v30 }
 0x6a0   : > { %v4258_v33 = vadd.f32 %v4249_v53, %v4154_v17  ;;  %4876 = vrot.lane.b32.xlu1 %v4865_v42, %s6123_s16 }
 0x6a2   : > { %v4318_v28 = vadd.f32 %v4314_v32, %v4258_v33  ;;  %v4173_v8 = vpop.permute.xlu1 %4172 }
 0x6a3   : > { %v4275_v27 = vpop.permute.xlu0 %4274  ;;  %v9214_v2 = vadd.f32 %v4173_v8, %v4077_v19  ;;  %v4967_v8 = vmul.f32 %v9171_v54, %v9898_v59 }
 0x6a4   : > { %v4284_v48 = vadd.f32 %v4275_v27, %v4180_v6  ;;  %4950 = vrot.lane.b32.xlu1 %v4941_v61, %s6124_s29 }
 0x6a6   : > { %v4328_v30 = vadd.f32 %v4324_v50, %v4284_v48  ;;  %v4195_v17 = vpop.permute.xlu1 %4194  ;;  %v9905_v48 = vld [vmem:[#allocation20_spill] sm:$0xff] }
 0x6a7   : > { %v4345_v22 = vpop.permute.xlu0 %4344  ;;  %v4205_v19 = vadd.f32 %v4195_v17, %v9159_v35  ;;  %v9906_v17 = vld [vmem:[#allocation66_spill] sm:$0xff] }
 0x6a8   : > { %v4354_v49 = vadd.f32 %v4345_v22, %v4298_v20  ;;  %4954 = vrot.lane.b32.xlu1 %v4943_v11, %s6124_s29  ;;  %v9907_v11 = vld [vmem:[#allocation76_spill] sm:$0xff] }
 0x6a9   : > { %v4297_v6 = vadd.f32 %v4293_v47, %v4205_v19  ;;  %v4555_v47 = vmul.f32 %v9237_v5, %v9907_v11 }
 0x6aa   : > { %v4199_v3 = vpop.permute.xlu1 %4198 }
 0x6ab   : > { %v4371_v38 = vpop.permute.xlu0 %4370  ;;  %v4353_v7 = vadd.f32 %v8811_v16, %v4297_v6  ;;  %v4207_v13 = vadd.f32 %v4199_v3, %v9167_v57  ;;  %v4891_v16 = vmul.f32 %v9182_v1, %v9895_v26  ;;  %v4303_v57 = vmul.f32 %v9221_v63, %v8646_v60 }
 0x6ac   : > { %v4380_v43 = vadd.f32 %v4371_v38, %v4308_v12  ;;  %4898 = vrot.lane.b32.xlu1 %v4889_v9, %s6123_s16  ;;  %v4305_v26 = vmul.f32 %v8646_v60, %v9019_v24  ;;  %v4313_v60 = vmul.f32 %v9221_v63, %v8661_v55  ;;  %v4546_v6 = vmul.f32 %v8749_v44, %v9021_v51 }
 0x6ad   : > { %v4457_v35 = vadd.f32 %v8844_v14, %v4353_v7  ;;  %v9235_v20 = vadd.f32 %v4295_v4, %v4207_v13  ;;  %v9908_v7 = vld [vmem:[#allocation27_spill] sm:$0xff] }
 0x6ae   : > { %v4221_v46 = vpop.permute.xlu1 %4220 }
 0x6af   : > { %v4397_v25 = vpop.permute.xlu0 %4396  ;;  %v4231_v45 = vadd.f32 %v4221_v46, %v9178_v0  ;;  %v4549_v53 = vadd.f32 %v4545_v23, %v4457_v35  ;;  %v4915_v23 = vmul.f32 %v9171_v54, %v9901_v62 }
 0x6b0   : > { %v4406_v12 = vadd.f32 %v4397_v25, %v4318_v28  ;;  %4902 = vrot.lane.b32.xlu1 %v4891_v16, %s6123_s16 }
 0x6b1   : > { %v4307_v14 = vadd.f32 %v4303_v57, %v4231_v45  ;;  %v4605_v42 = vadd.f32 %v8884_v41, %v4549_v53  ;;  %v9910_v57 = vld [vmem:[#allocation28_spill] sm:$0xff]  ;;  %v9911_v53 = vld [vmem:[#allocation23_spill] sm:$0xff] }
 0x6b2   : > { %v4225_v33 = vpop.permute.xlu1 %4224 }
 0x6b3   : > { %v4423_v32 = vpop.permute.xlu0 %4422  ;;  %v4379_v27 = vadd.f32 %v8819_v36, %v4307_v14  ;;  %v4233_v61 = vadd.f32 %v4225_v33, %v9186_v58  ;;  %v4709_v28 = vadd.f32 %v8926_v15, %v4605_v42  ;;  %v4969_v15 = vmul.f32 %v9182_v1, %v9898_v59  ;;  %v9912_v42 = vld [vmem:[#allocation58_spill] sm:$0xff] }
 0x6b4   : > { %v4432_v0 = vadd.f32 %v4423_v32, %v4328_v30  ;;  %4976 = vrot.lane.b32.xlu1 %v4967_v8, %s6124_s29  ;;  %v4556_v59 = vmul.f32 %v9907_v11, %v9021_v51  ;;  %v4565_v14 = vmul.f32 %v9237_v5, %v9911_v53 }
 0x6b5   : > { %v4483_v50 = vadd.f32 %v9905_v48, %v4379_v27  ;;  %v9257_v41 = vadd.f32 %v4305_v26, %v4233_v61  ;;  %v9260_v22 = vadd.f32 %v9906_v17, %v4709_v28  ;;  %v9913_v26 = vld [vmem:[#allocation50_spill] sm:$0xff] }
 0x6b6   : > { %v4247_v36 = vpop.permute.xlu1 %4246 }
 0x6b7   : > { %v4449_v58 = vpop.permute.xlu0 %4448  ;;  %v4257_v30 = vadd.f32 %v4247_v36, %v9192_v52  ;;  %v4559_v3 = vadd.f32 %v4555_v47, %v4483_v50  ;;  %v4315_v52 = vmul.f32 %v8661_v55, %v9019_v24  ;;  %v4323_v55 = vmul.f32 %v9221_v63, %v8700_v21  ;;  %v9914_v36 = vld [vmem:[#allocation34_spill] sm:$0xff] }
 0x6b8   : > { %v4458_v19 = vadd.f32 %v4449_v58, %v4354_v49  ;;  %4980 = vrot.lane.b32.xlu1 %v4969_v15, %s6124_s29  ;;  %v9909_v49 = vld [vmem:[#allocation19_spill] sm:$0xff]  ;;  %v4566_v50 = vmul.f32 %v9911_v53, %v9021_v51 }
 0x6b9   : > { %v4317_v38 = vadd.f32 %v4313_v60, %v4257_v30  ;;  %v4631_v13 = vadd.f32 %v9908_v7, %v4559_v3  ;;  %v4993_v30 = vmul.f32 %v9171_v54, %v9902_v18 }
 0x6ba   : > { %v9272_v9 = vadd.f32 %v4546_v6, %v4458_v19  ;;  %v4251_v4 = vpop.permute.xlu1 %4250  ;;  %v9916_v19 = vld [vmem:[#allocation56_spill] sm:$0xff] }
 0x6bb   : > { %v4475_v35 = vpop.permute.xlu0 %4474  ;;  %v4405_v46 = vadd.f32 %v9909_v49, %v4317_v38  ;;  %v4259_v25 = vadd.f32 %v4251_v4, %v9199_v34  ;;  %v4735_v45 = vadd.f32 %v9910_v57, %v4631_v13  ;;  %v9917_v4 = vld [vmem:[#allocation22_spill] sm:$0xff]  ;;  %v9919_v49 = vld [vmem:[#allocation32_spill] sm:$0xff] }
 0x6bc   : > { %v4484_v16 = vadd.f32 %v4475_v35, %v4380_v43  ;;  %4924 = vrot.lane.b32.xlu1 %v4915_v23, %s6123_s16  ;;  %v4917_v43 = vmul.f32 %v9182_v1, %v9901_v62  ;;  %v4325_v62 = vmul.f32 %v8700_v21, %v9019_v24  ;;  %v9918_v21 = vld [vmem:[#allocation43_spill] sm:$0xff] }
 0x6bd   : > { %v4509_v33 = vadd.f32 %v9912_v42, %v4405_v46  ;;  %v4319_v8 = vadd.f32 %v4315_v52, %v4259_v25  ;;  %v9289_v27 = vadd.f32 %v9913_v26, %v4735_v45 }
 0x6be   : > { %v4560_v32 = vadd.f32 %v4556_v59, %v4484_v16  ;;  %v4273_v61 = vpop.permute.xlu1 %4272  ;;  %v5019_v16 = vmul.f32 %v9171_v54, %v9903_v29 }
 0x6bf   : > { %v4501_v34 = vpop.permute.xlu0 %4500  ;;  %v4283_v28 = vadd.f32 %v4273_v61, %v9207_v40  ;;  %v4569_v17 = vadd.f32 %v4565_v14, %v4509_v33  ;;  %v9915_v40 = vld [vmem:[#allocation54_spill] sm:$0xff]  ;;  %v9920_v14 = vld [vmem:[#allocation41_spill] sm:$0xff]  ;;  %v5021_v33 = vmul.f32 %v9182_v1, %v9903_v29 }
 0x6c0   : > { %v4510_v48 = vadd.f32 %v4501_v34, %v4406_v12  ;;  %4928 = vrot.lane.b32.xlu1 %v4917_v43, %s6123_s16  ;;  %v4576_v12 = vmul.f32 %v9915_v40, %v9021_v51  ;;  %v4575_v13 = vmul.f32 %v9237_v5, %v9915_v40  ;;  %s5625_s16 = sshll.u32 %s6179_s22, 10  ;;  %s5211_s22 = scalar_lea.sflag [#allocation5], %s6333_s1 }
 0x6c1   : > { %v4327_v47 = vadd.f32 %v4323_v55, %v4283_v28  ;;  %v4657_v58 = vadd.f32 %v9914_v36, %v4569_v17  ;;  %v9921_v17 = vld [vmem:[#allocation45_spill] sm:$0xff]  ;;  %s9402_s7 = scalar_lea.hbm %s9457_s5, %s5625_s16 }
 0x6c2   : > { %v4570_v60 = vadd.f32 %v4566_v50, %v4510_v48  ;;  %v4277_v15 = vpop.permute.xlu1 %4276  ;;  %v4547_v48 = vmul.f32 %v8749_v44, %v9108_v37  ;;  %v4567_v44 = vmul.f32 %v9911_v53, %v9108_v37 }
 0x6c3   : > { %v4527_v63 = vpop.permute.xlu0 %4526  ;;  %v4431_v6 = vadd.f32 %v9916_v19, %v4327_v47  ;;  %v4285_v3 = vadd.f32 %v4277_v15, %v9214_v2  ;;  %v4761_v7 = vadd.f32 %v8957_v10, %v4657_v58  ;;  %v4995_v2 = vmul.f32 %v9182_v1, %v9902_v18 }
 0x6c4   : > { %v4536_v38 = vadd.f32 %v4527_v63, %v4432_v0  ;;  %5002 = vrot.lane.b32.xlu1 %v4993_v30, %s6124_s29  ;;  %v4557_v15 = vmul.f32 %v9907_v11, %v9108_v37  ;;  %v9922_v30 = vld [vmem:[#allocation55_spill] sm:$0xff]  ;;  %v4577_v11 = vmul.f32 %v9915_v40, %v9108_v37 }
 0x6c5   : > { %v4535_v35 = vadd.f32 %v9917_v4, %v4431_v6  ;;  %v4329_v23 = vadd.f32 %v4325_v62, %v4285_v3  ;;  %v9314_v24 = vadd.f32 %v9918_v21, %v4761_v7 }
 0x6c6   : > { %v4580_v59 = vadd.f32 %v4576_v12, %v4536_v38  ;;  %v4347_v51 = vpop.permute.xlu1 %4346  ;;  %v9923_v38 = vld [vmem:[#allocation61_spill] sm:$0xff] }
 0x6c7   : > { %v4597_v52 = vpop.permute.xlu0 %4596  ;;  %v4355_v0 = vadd.f32 %v4347_v51, %v9235_v20  ;;  %v4579_v10 = vadd.f32 %v4575_v13, %v4535_v35 }
 0x6c8   : > { %5006 = vrot.lane.b32.xlu1 %v4995_v2, %s6124_s29 }
 0x6c9   : > { %v4683_v46 = vadd.f32 %v9919_v49, %v4579_v10 }
 0x6ca   : > { %v4373_v5 = vpop.permute.xlu1 %4372 }
 0x6cb   : > { %v4623_v25 = vpop.permute.xlu0 %4622  ;;  %v4381_v57 = vadd.f32 %v4373_v5, %v9257_v41  ;;  %v4787_v45 = vadd.f32 %v8972_v56, %v4683_v46  ;;  %v4606_v41 = vadd.f32 %v4597_v52, %v9272_v9 }
 0x6cc   : > { %5028 = vrot.lane.b32.xlu1 %v5019_v16, %s6124_s29  ;;  %v4632_v50 = vadd.f32 %v4623_v25, %v4560_v32 }
 0x6cd   : > { %v9327_v18 = vadd.f32 %v9920_v14, %v4787_v45 }
 0x6ce   : > { %v4399_v20 = vpop.permute.xlu1 %4398 }
 0x6cf   : > { %v4649_v42 = vpop.permute.xlu0 %4648  ;;  %v4407_v26 = vadd.f32 %v4399_v20, %v4319_v8 }
 0x6d0   : > { %5032 = vrot.lane.b32.xlu1 %v5021_v33, %s6124_s29  ;;  %v4658_v63 = vadd.f32 %v4649_v42, %v4570_v60  ;;  %s5224_s29 = sshll.u32 %s9011_s25, 4  ;;  %s9404_s29 = int_to_ptr.vmem [resolvable:$true] %s5224_s29 }
 0x6d1   : > { %s6040_s11 = scalar_lea.vmem %s9404_s29, 1024  ;;  %p6047_p2 = scmp.lt.s32.totalorder %s9404_s29, %s6045_s10 }
 0x6d2   : > { %v4425_v55 = vpop.permute.xlu1 %4424  ;;  %p6041_p13 = scmp.ne.s32.totalorder %s9404_s29, %s6040_s11  ;;  %p6048_p7 = scmp.lt.s32.totalorder %s6046_s14, %s6040_s11 }
 0x6d3   : > { %v4675_v61 = vpop.permute.xlu0 %4674  ;;  %v4433_v54 = vadd.f32 %v4425_v55, %v4329_v23 }
 0x6d4   : > { %v4684_v60 = vadd.f32 %v4675_v61, %v4580_v59  ;;  %p6042_p11 = pnand %p6041_p13, %p9937_p4  ;;  %p6049_p6 = por %p6048_p7, %p6047_p2 }
 0x6d6   : > { %v4451_v34 = vpop.permute.xlu1 %4450  ;;  %p6043_p0 = pneg %p6042_p11 }
 0x6d7   : > { %v4701_v56 = vpop.permute.xlu0 %4700  ;;  %v4459_v43 = vadd.f32 %v4451_v34, %v4355_v0  ;;  %v9924_v0 = vld [vmem:[#allocation48_spill] sm:$0xff]  ;;  %v9926_v34 = vld [vmem:[#allocation30_spill] sm:$0xff] }
 0x6d8   : > { %v4710_v28 = vadd.f32 %v4701_v56, %v4606_v41  ;;  %p6050_p12 = pnand %p6049_p6, %p6043_p0 }
 0x6d9   : > { %v4551_v36 = vadd.f32 %v4547_v48, %v4459_v43 }
 0x6da   : > { %v4802_v47 = vadd.f32 %v9921_v17, %v4710_v28  ;;  %v4477_v29 = vpop.permute.xlu1 %4476  ;;  %v9927_v28 = vld [vmem:[#allocation57_spill] sm:$0xff] }
 0x6db   : > { %v4727_v1 = vpop.permute.xlu0 %4726  ;;  %v4485_v8 = vadd.f32 %v4477_v29, %v4381_v57  ;;  %v9928_v29 = vld [vmem:[#allocation39_spill] sm:$0xff] }
 0x6dc   : > { %v4736_v58 = vadd.f32 %v4727_v1, %v4632_v50 }
 0x6dd   : > { %v4561_v9 = vadd.f32 %v4557_v15, %v4485_v8  ;;  %v9929_v8 = vld [vmem:[#allocation24_spill] sm:$0xff]  ;;  %v9930_v15 = vld [vmem:[#allocation38_spill] sm:$0xff] }
 0x6de   : > { %v4812_v62 = vadd.f32 %v9922_v30, %v4736_v58  ;;  %v4503_v12 = vpop.permute.xlu1 %4502 }
 0x6df   : > { %v4753_v19 = vpop.permute.xlu0 %4752  ;;  %v4511_v6 = vadd.f32 %v4503_v12, %v4407_v26  ;;  %v9932_v12 = vld [vmem:[#allocation51_spill] sm:$0xff] }
 0x6e0   : > { %v4762_v3 = vadd.f32 %v4753_v19, %v4658_v63 }
 0x6e1   : > { %v4571_v32 = vadd.f32 %v4567_v44, %v4511_v6 }
 0x6e2   : > { %v4822_v7 = vadd.f32 %v9923_v38, %v4762_v3  ;;  %v4529_v13 = vpop.permute.xlu1 %4528 }
 0x6e3   : > { %v4849_v4 = vpop.permute.xlu0 %4848  ;;  %v4537_v35 = vadd.f32 %v4529_v13, %v4433_v54  ;;  %v9925_v54 = vld [vmem:[#allocation36_spill] sm:$0xff] }
 0x6e4   : > { %v4858_v5 = vadd.f32 %v4849_v4, %v4802_v47 }
 0x6e5   : > { %v4581_v23 = vadd.f32 %v4577_v11, %v4537_v35  ;;  %v9933_v11 = vld [vmem:[#allocation63_spill] sm:$0xff] }
 0x6e6   : > { %v4599_v21 = vpop.permute.xlu1 %4598 }
 0x6e7   : > { %v4779_v51 = vpop.permute.xlu0 %4778  ;;  %v4607_v52 = vadd.f32 %v4599_v21, %v4551_v36 }
 0x6e8   : > { %v4788_v2 = vadd.f32 %v4779_v51, %v4684_v60 }
 0x6ea   : > { %v4832_v10 = vadd.f32 %v9924_v0, %v4788_v2  ;;  %v4625_v49 = vpop.permute.xlu1 %4624  ;;  %v9934_v2 = vld [vmem:[#allocation47_spill] sm:$0xff]  ;;  %v9935_v0 = vld [vmem:[#allocation25_spill] sm:$0xff] }
 0x6eb   : > { %v4875_v46 = vpop.permute.xlu0 %4874  ;;  %v4633_v53 = vadd.f32 %v4625_v49, %v4561_v9  ;;  %v9931_v9 = vld [vmem:[#allocation64_spill] sm:$0xff] }
 0x6ec   : > { %v4884_v59 = vadd.f32 %v4875_v46, %v4812_v62 }
 0x6ee   : > { %v4651_v25 = vpop.permute.xlu1 %4650 }
 0x6ef   : > { %v4953_v16 = vpop.permute.xlu0 %4952  ;;  %v4659_v57 = vadd.f32 %v4651_v25, %v4571_v32 }
 0x6f0   : > { %v4962_v45 = vadd.f32 %v4953_v16, %v4858_v5 }
 0x6f2   : > { %v5048_v14 = vmul.f32 0.1, %v4962_v45  ;;  %vm5044_vm8 = vcmp.gt.f32.partialorder %v4962_v45, 0.0  ;;  %v4677_v20 = vpop.permute.xlu1 %4676 }
 0x6f3   : > { %v4901_v37 = vpop.permute.xlu0 %4900  ;;  %v4685_v40 = vadd.f32 %v4677_v20, %v4581_v23 }
 0x6f4   : > { %v5052_v42 = vsel %vm5044_vm8, %v4962_v45, %v5048_v14  ;;  %v4910_v62 = vadd.f32 %v4901_v37, %v4822_v7 }
 0x6f5   : > { %v5097_v41 = vmul.f32 %v9925_v54, %v5052_v42  ;;  %v5152_v56 = vmul.f32 %v9926_v34, %v5052_v42 }
 0x6f6   : > { %v4703_v33 = vpop.permute.xlu1 %4702 }
 0x6f7   : > { %v4979_v26 = vpop.permute.xlu0 %4978  ;;  %v4711_v55 = vadd.f32 %v4703_v33, %v4607_v52  ;;  %v5101_v1 = vadd.f32 %v5097_v41, %v9928_v29  ;;  %v5156_v58 = vadd.f32 %v5152_v56, %v9929_v8  ;;  %v9936_v33 = vld [vmem:[#allocation53_spill] sm:$0xff] }
 0x6f8   : > { %v4988_v61 = vadd.f32 %v4979_v26, %v4884_v59 }
 0x6f9   : > { %v4803_v48 = vadd.f32 %v9927_v28, %v4711_v55 }
 0x6fa   : > { %vm5056_vm9 = vcmp.gt.f32.partialorder %v4988_v61, 0.0  ;;  %v5060_v43 = vmul.f32 0.1, %v4988_v61  ;;  %v4729_v50 = vpop.permute.xlu1 %4728 }
 0x6fb   : > { %v4927_v17 = vpop.permute.xlu0 %4926  ;;  %v4737_v36 = vadd.f32 %v4729_v50, %v4633_v53 }
 0x6fc   : > { %v5064_v47 = vsel %vm5056_vm9, %v4988_v61, %v5060_v43  ;;  %v4936_v4 = vadd.f32 %v4927_v17, %v4832_v10 }
 0x6fd   : > { %v5107_v63 = vmul.f32 %v9930_v15, %v5064_v47  ;;  %v5162_v30 = vmul.f32 %v9931_v9, %v5064_v47  ;;  %v4813_v19 = vadd.f32 %v9932_v12, %v4737_v36 }
 0x6fe   : > { %v4755_v44 = vpop.permute.xlu1 %4754 }
 0x6ff   : > { %v5111_v6 = vadd.f32 %v5107_v63, %v5101_v1  ;;  %v5166_v3 = vadd.f32 %v5162_v30, %v5156_v58  ;;  %v5005_v32 = vpop.permute.xlu0 %5004  ;;  %v4763_v38 = vadd.f32 %v4755_v44, %v4659_v57 }
 0x700   : > { %v5014_v13 = vadd.f32 %v5005_v32, %v4910_v62 }
 0x701   : > { %v9354_v60 = vadd.f32 %v9933_v11, %v4763_v38 }
 0x702   : > { %vm5068_vm10 = vcmp.gt.f32.partialorder %v5014_v13, 0.0  ;;  %v5072_v35 = vmul.f32 0.1, %v5014_v13  ;;  %v4847_v23 = vpop.permute.xlu1 %4846 }
 0x703   : > { %v5031_v21 = vpop.permute.xlu0 %5030  ;;  %v4857_v28 = vadd.f32 %v4847_v23, %v9260_v22 }
 0x704   : > { %v5076_v51 = vsel %vm5068_vm10, %v5014_v13, %v5072_v35  ;;  %v5040_v52 = vadd.f32 %v5031_v21, %v4936_v4 }
 0x705   : > { %v5117_v7 = vmul.f32 %v9934_v2, %v5076_v51  ;;  %v5172_v49 = vmul.f32 %v9935_v0, %v5076_v51 }
 0x706   : > { %vm5080_vm11 = vcmp.gt.f32.partialorder %v5040_v52, 0.0  ;;  %v5084_v46 = vmul.f32 0.1, %v5040_v52  ;;  %v4851_v25 = vpop.permute.xlu1 %4850 }
 0x707   : > { %v5121_v53 = vadd.f32 %v5117_v7, %v5111_v6  ;;  %v5176_v5 = vadd.f32 %v5172_v49, %v5166_v3  ;;  %v4859_v47 = vadd.f32 %v4851_v25, %v4803_v48 }
 0x708   : > { %v5088_v10 = vsel %vm5080_vm11, %v5040_v52, %v5084_v46 }
 0x709   : > { %v5127_v16 = vmul.f32 %v8984_v39, %v5088_v10  ;;  %v5182_v57 = vmul.f32 %v8986_v31, %v5088_v10 }
 0x70a   : > { %v4781_v20 = vpop.permute.xlu1 %4780 }
 0x70b   : > { %v5131_v45 = vadd.f32 %v5127_v16, %v5121_v53  ;;  %v5186_v14 = vadd.f32 %v5182_v57, %v5176_v5  ;;  %v4789_v37 = vadd.f32 %v4781_v20, %v4685_v40 }
 0x70d   : > { %vm5135_vm12 = vcmp.gt.f32.partialorder %v5131_v45, 0.0  ;;  %v5139_v59 = vmul.f32 0.1, %v5131_v45  ;;  %vm5190_vm13 = vcmp.gt.f32.partialorder %v5186_v14, 0.0  ;;  %v5194_v42 = vmul.f32 0.1, %v5186_v14 }
 0x70e   : > { %v9361_v26 = vadd.f32 %v9936_v33, %v4789_v37  ;;  %v4873_v41 = vpop.permute.xlu1 %4872 }
 0x70f   : > { %v5143_v55 = vsel %vm5135_vm12, %v5131_v45, %v5139_v59  ;;  %v5198_v61 = vsel %vm5190_vm13, %v5186_v14, %v5194_v42  ;;  %v4883_v30 = vadd.f32 %v4873_v41, %v9289_v27 }
 0x710   : > { %5203 = vst.msk [vmem:[%s9011_s25 + $0x10] sm:$0xff] %vm5200_vm4, %v5143_v55  ;;  %5616 = vst.msk [vmem:[%s9011_s25 + $0x30] sm:$0xff] %vm5200_vm4, %v5198_v61 }
 0x712   : > { %v4877_v56 = vpop.permute.xlu1 %4876 }
 0x713   : > { %v4885_v22 = vadd.f32 %v4877_v56, %v4813_v19 }
 0x716   : > { %v4951_v43 = vpop.permute.xlu1 %4950 }
 0x717   : > { %v4961_v40 = vadd.f32 %v4951_v43, %v4857_v28 }
 0x719   : > { %v5047_v36 = vmul.f32 0.1, %v4961_v40  ;;  %vm5043_vm14 = vcmp.gt.f32.partialorder %v4961_v40, 0.0 }
 0x71a   : > { %v4955_v50 = vpop.permute.xlu1 %4954 }
 0x71b   : > { %v4963_v1 = vadd.f32 %v4955_v50, %v4859_v47  ;;  %v5051_v63 = vsel %vm5043_vm14, %v4961_v40, %v5047_v36 }
 0x71c   : > { %v5096_v6 = vmul.f32 %v9925_v54, %v5051_v63  ;;  %v5151_v3 = vmul.f32 %v9926_v34, %v5051_v63 }
 0x71d   : > { %v5049_v62 = vmul.f32 0.1, %v4963_v1  ;;  %vm5045_vm15 = vcmp.gt.f32.partialorder %v4963_v1, 0.0 }
 0x71e   : > { %v4899_v17 = vpop.permute.xlu1 %4898  ;;  %v5100_v13 = vadd.f32 %v5096_v6, %v9928_v29  ;;  %v5155_v4 = vadd.f32 %v5151_v3, %v9929_v8 }
 0x71f   : > { %v5053_v32 = vsel %vm5045_vm15, %v4963_v1, %v5049_v62  ;;  %v4909_v57 = vadd.f32 %v4899_v17, %v9314_v24 }
 0x720   : > { %v5098_v27 = vmul.f32 %v9925_v54, %v5053_v32  ;;  %v5153_v23 = vmul.f32 %v9926_v34, %v5053_v32 }
 0x722   : > { %v4903_v58 = vpop.permute.xlu1 %4902  ;;  %v5102_v53 = vadd.f32 %v5098_v27, %v9928_v29  ;;  %v5157_v5 = vadd.f32 %v5153_v23, %v9929_v8 }
 0x723   : > { %v4911_v20 = vadd.f32 %v4903_v58, %v9354_v60 }
 0x726   : > { %v4977_v12 = vpop.permute.xlu1 %4976 }
 0x727   : > { %v4987_v44 = vadd.f32 %v4977_v12, %v4883_v30 }
 0x729   : > { %vm5055_vm0 = vcmp.gt.f32.partialorder %v4987_v44, 0.0  ;;  %v5059_v38 = vmul.f32 0.1, %v4987_v44 }
 0x72a   : > { %v4981_v48 = vpop.permute.xlu1 %4980 }
 0x72b   : > { %v5063_v35 = vsel %vm5055_vm0, %v4987_v44, %v5059_v38  ;;  %v4989_v11 = vadd.f32 %v4981_v48, %v4885_v22 }
 0x72c   : > { %v5106_v21 = vmul.f32 %v9930_v15, %v5063_v35  ;;  %v5161_v51 = vmul.f32 %v9931_v9, %v5063_v35 }
 0x72d   : > { %vm5057_vm7 = vcmp.gt.f32.partialorder %v4989_v11, 0.0  ;;  %v5061_v19 = vmul.f32 0.1, %v4989_v11 }
 0x72e   : > { %v5110_v52 = vadd.f32 %v5106_v21, %v5100_v13  ;;  %v5165_v7 = vadd.f32 %v5161_v51, %v5155_v4  ;;  %v4925_v49 = vpop.permute.xlu1 %4924 }
 0x72f   : > { %v5065_v46 = vsel %vm5057_vm7, %v4989_v11, %v5061_v19 }
 0x730   : > { %v5108_v25 = vmul.f32 %v9930_v15, %v5065_v46  ;;  %v5163_v54 = vmul.f32 %v9931_v9, %v5065_v46  ;;  %v4935_v9 = vadd.f32 %v4925_v49, %v9327_v18 }
 0x732   : > { %v5112_v10 = vadd.f32 %v5108_v25, %v5102_v53  ;;  %v5167_v34 = vadd.f32 %v5163_v54, %v5157_v5  ;;  %v4929_v16 = vpop.permute.xlu1 %4928 }
 0x733   : > { %v4937_v28 = vadd.f32 %v4929_v16, %v9361_v26 }
 0x736   : > { %v5003_v45 = vpop.permute.xlu1 %5002 }
 0x737   : > { %v5013_v14 = vadd.f32 %v5003_v45, %v4909_v57 }
 0x739   : > { %vm5067_vm1 = vcmp.gt.f32.partialorder %v5013_v14, 0.0  ;;  %v5071_v37 = vmul.f32 0.1, %v5013_v14 }
 0x73a   : > { %v5007_v59 = vpop.permute.xlu1 %5006 }
 0x73b   : > { %v5075_v42 = vsel %vm5067_vm1, %v5013_v14, %v5071_v37  ;;  %v5015_v29 = vadd.f32 %v5007_v59, %v4911_v20 }
 0x73c   : > { %v5116_v8 = vmul.f32 %v9934_v2, %v5075_v42  ;;  %v5171_v15 = vmul.f32 %v9935_v0, %v5075_v42 }
 0x73d   : > { %vm5069_vm2 = vcmp.gt.f32.partialorder %v5015_v29, 0.0  ;;  %v5073_v33 = vmul.f32 0.1, %v5015_v29 }
 0x73e   : > { %v5120_v55 = vadd.f32 %v5116_v8, %v5110_v52  ;;  %v5175_v61 = vadd.f32 %v5171_v15, %v5165_v7  ;;  %v5029_v24 = vpop.permute.xlu1 %5028 }
 0x73f   : > { %v5077_v41 = vsel %vm5069_vm2, %v5015_v29, %v5073_v33  ;;  %v5039_v56 = vadd.f32 %v5029_v24, %v4935_v9 }
 0x740   : > { %v5118_v60 = vmul.f32 %v9934_v2, %v5077_v41  ;;  %v5173_v43 = vmul.f32 %v9935_v0, %v5077_v41 }
 0x741   : > { %vm5079_vm3 = vcmp.gt.f32.partialorder %v5039_v56, 0.0  ;;  %v5083_v50 = vmul.f32 0.1, %v5039_v56 }
 0x742   : > { %v5122_v40 = vadd.f32 %v5118_v60, %v5112_v10  ;;  %v5177_v17 = vadd.f32 %v5173_v43, %v5167_v34  ;;  %v5033_v47 = vpop.permute.xlu1 %5032 }
 0x743   : > { %v5087_v36 = vsel %vm5079_vm3, %v5039_v56, %v5083_v50  ;;  %v5041_v18 = vadd.f32 %v5033_v47, %v4937_v28 }
 0x744   : > { %v5126_v1 = vmul.f32 %v8984_v39, %v5087_v36  ;;  %v5181_v58 = vmul.f32 %v8986_v31, %v5087_v36 }
 0x745   : > { %vm5081_vm5 = vcmp.gt.f32.partialorder %v5041_v18, 0.0  ;;  %v5085_v2 = vmul.f32 0.1, %v5041_v18 }
 0x746   : > { %v5130_v0 = vadd.f32 %v5126_v1, %v5120_v55  ;;  %v5185_v63 = vadd.f32 %v5181_v58, %v5175_v61 }
 0x747   : > { %v5089_v26 = vsel %vm5081_vm5, %v5041_v18, %v5085_v2 }
 0x748   : > { %vm5134_vm6 = vcmp.gt.f32.partialorder %v5130_v0, 0.0  ;;  %v5138_v30 = vmul.f32 0.1, %v5130_v0  ;;  %vm5189_vm8 = vcmp.gt.f32.partialorder %v5185_v63, 0.0  ;;  %v5193_v62 = vmul.f32 0.1, %v5185_v63 }
 0x749   : > { %v5128_v12 = vmul.f32 %v8984_v39, %v5089_v26  ;;  %v5183_v6 = vmul.f32 %v8986_v31, %v5089_v26 }
 0x74a   : > { %v5142_v3 = vsel %vm5134_vm6, %v5130_v0, %v5138_v30  ;;  %v5197_v44 = vsel %vm5189_vm8, %v5185_v63, %v5193_v62 }
 0x74b   : > { %5202 = vst.msk [vmem:[%s9011_s25 + $0x8] sm:$0xff] %vm5200_vm4, %v5142_v3  ;;  %5615 = vst.msk [vmem:[%s9011_s25 + $0x28] sm:$0xff] %vm5200_vm4, %v5197_v44  ;;  %v5132_v22 = vadd.f32 %v5128_v12, %v5122_v40  ;;  %v5187_v32 = vadd.f32 %v5183_v6, %v5177_v17 }
 0x74d   : > { %vm5136_vm9 = vcmp.gt.f32.partialorder %v5132_v22, 0.0  ;;  %v5140_v38 = vmul.f32 0.1, %v5132_v22  ;;  %vm5191_vm10 = vcmp.gt.f32.partialorder %v5187_v32, 0.0  ;;  %v5195_v39 = vmul.f32 0.1, %v5187_v32 }
 0x74f   : > { %v5144_v31 = vsel %vm5136_vm9, %v5132_v22, %v5140_v38  ;;  %v5199_v48 = vsel %vm5191_vm10, %v5187_v32, %v5195_v39 }
 0x750   : > { %5204 = vst.msk [vmem:[%s9011_s25 + $0x18] sm:$0xff] %vm5200_vm4, %v5144_v31  ;;  %5617 = vst.msk [vmem:[%s9011_s25 + $0x38] sm:$0xff] %vm5200_vm4, %v5199_v48 }
 0x751   : > { %6053 = shalt.err (!%p6050_p12)
}
 0x752   : > { %s6054_s8 = scalar_lea.hbm %s9402_s7, 1024  ;;  %s6058_s15 = scalar_lea.hbm %s9457_s5, 2048 }
 0x753   : > { %p6055_p9 = scmp.ne.s32.totalorder %s9402_s7, %s6054_s8  ;;  %p6059_p5 = scmp.lt.u32.totalorder %s9402_s7, %s9457_s5 }
 0x754   : > { %p6060_p8 = scmp.lt.u32.totalorder %s6058_s15, %s6054_s8  ;;  %p6062_p13 = scmp.lt.u32.totalorder %s6054_s8, %s9402_s7 }
 0x755   : > { %p6056_p10 = pnand %p6055_p9, %p9937_p4 }
 0x756   : > { %p6061_p3 = por %p6060_p8, %p6059_p5 }
 0x757   : > { %p6057_p1 = pneg %p6056_p10 }
 0x758   : > { %p6063_p11 = por %p6062_p13, %p6061_p3 }
 0x75a   : > { %p6064_p0 = pnand %p6063_p11, %p6057_p1 }
 0x75c   : > { %6067 = shalt.err (!%p6064_p0)
}
 0x75d   : > { %s6126_s28 = smov 128   ;;  %s6127_s25 = smov 8  }
 0x75e   : > { %5890 = dma.vmem_to_hbm [thread:$0]  (%p9937_p4), %s9404_s29, 1024, %s9402_s7, %s5211_s22, %s6126_s28, %s6126_s28, %s6127_s25  }
 0x75f PF: > { %s5239_s16 = sand.u32 1, %s6102_s18   ;;  %p9938_p2 = scmp.ne.s32.totalorder %s9613_s6, 0 }
 0x760   : > { %p9939_p7 = scmp.ge.s32.totalorder %s6114_s21, 2  ;;  %s5240_s13 = scalar_lea.sflag [#allocation5], %s5239_s16 }
 0x762   : > { %p5904_p6 = pnand %p9939_p7, %p9938_p2 }
 0x764   : > { %6097 = dma.done.wait (!%p5904_p6), %s5240_s13, 1024  }
 0x765   : > { %6099 = vsyncadd (!%p5904_p6), %s5240_s13, 4294966272  ;;  %p22_p12 = scmp.ge.s32.totalorder %s6183_s24, 4   ;;  %s9940_s18 = smov %s6106_s19 }
 0x766   : > { %s9941_s19 = smov %s6110_s20  ;;  %s9942_s20 = smov %s6195_s27 }
 0x767   : > { %s9943_s21 = smov %s6183_s24  ;;  %24 = sbr.rel (!%p22_p12) target bundleno = 11 (0xb), region = 111 }
 0x76e   :  { %5245 = vsyncpa [#allocation4], 1 }
 0x76f   :  { %5247 = vsyncpa [#allocation4 + $0x1], 1 }
 0x770   :  { %5248 = vsyncpa [#allocation9], 1 }
 0x771   :  { %5250 = vsyncpa [#allocation9 + $0x1], 1 }
 0x772   :  { %5251 = vsyncpa [#allocation5], 1 }
 0x773   :  { %5253 = vsyncpa [#allocation5 + $0x1], 1 }
 0x774   :  { %5254 = vsyncpa [#allocation6], 1 }
 0x775   :  { %5256 = vsyncpa [#allocation6 + $0x1], 1 }

</bundles_post_ra>
